<compile_context>
chip_gen: v5e
topology: v5e:2x2
jax: 0.10.0
libtpu: 0.0.40
codegen_flags: <defaults>
</compile_context>

<pallas_src>
import jax
import jax.numpy as jnp
from jax.experimental import pallas as pl
from jax.experimental.pallas import tpu as pltpu

C0 = 32        # conv0 out channels
C1 = 64        # conv1 out channels
BN_EPS = 1e-5


def _vmem_spec():
    return pl.BlockSpec(memory_space=pltpu.MemorySpace.VMEM)


def _bn_relu(x, gamma, beta):
    # Training-mode BatchNorm2d (batch mean / biased batch variance) + ReLU on a
    # 2-D (rows = B*H*W, cols = channels) slab.  All f32 on the VPU.
    mean = jnp.mean(x, axis=0, keepdims=True)
    var = jnp.mean(jnp.square(x - mean), axis=0, keepdims=True)
    y = (x - mean) * jax.lax.rsqrt(var + BN_EPS) * gamma + beta
    return jnp.maximum(y, 0.0)


def _make_fused_kernel(B, H, W):
    # Static shape bookkeeping (conv0: 5x5, stride (2,1), pad 2; conv1: 3x3, pad 1).
    H0 = (H + 4 - 5) // 2 + 1          # conv0 out H   (16 -> 8)
    W0 = (W + 4 - 5) // 1 + 1          # conv0 out W   (16 -> 16)
    H0p, W0p = H0 // 2, W0 // 2        # pool0 out     (4, 8)
    H1, W1 = H0p, W0p                  # conv1 out     (4, 8)
    H1p, W1p = H1 // 2, W1 // 2        # pool1 out     (2, 4)
    M0 = B * H0 * W0
    M1 = B * H1 * W1

    def kernel(xpe_ref, xpo_ref, w0_ref, g0_ref, bt0_ref, w1_ref, g1_ref, bt1_ref,
               out_ref, act0_ref, tmp0_ref, a0p_ref, act1_ref, tmp1_ref):
        # ---------------- conv0: 5x5, stride (2,1), Cin=1 (bias folded away) --------
        # The stride-2 H subsampling is pre-split into even/odd padded rows (xpe/xpo),
        # so every tap is a plain contiguous VMEM window.  Cin == 1 makes each tap a
        # rank-1 update -> 25 VPU broadcast-FMAs into an f32 accumulator.
        w0 = w0_ref[...]                                           # (25, C0)
        acc0 = jnp.zeros((M0, C0), jnp.float32)
        for t in range(25):
            i, j = t // 5, t % 5
            src = xpe_ref if i % 2 == 0 else xpo_ref
            tap = src[:, i // 2:i // 2 + H0, j:j + W0, :]          # (B, H0, W0, 1)
            acc0 = acc0 + tap.reshape(M0, 1) * w0[t:t + 1, :]      # (M0, C0)

        # ---------------- BN0 + ReLU ----------------
        y0 = _bn_relu(acc0, g0_ref[...], bt0_ref[...])
        # Store with H split into (H0p, pair) so the H-direction pool is a static
        # index.  This reshape is a layout no-op (W0 is a multiple of 8).
        act0_ref[...] = y0.reshape(B, H0p, 2, W0, C0)

        # ---------------- pool0: 2x2 / stride 2 (all in VMEM) ----------------
        tmp0_ref[...] = jnp.maximum(act0_ref[:, :, 0, :, :], act0_ref[:, :, 1, :, :])
        pooled0 = jnp.maximum(tmp0_ref[:, :, pl.ds(0, W0p, 2), :],
                              tmp0_ref[:, :, pl.ds(1, W0p, 2), :])  # (B, H0p, W0p, C0)

        # ---------------- zero-pad (pad=1) for conv1, inside VMEM ----------------
        a0p_ref[...] = jnp.zeros((B, H1 + 2, W1 + 2, C0), jnp.float32)
        a0p_ref[:, 1:H1 + 1, 1:W1 + 1, :] = pooled0

        # ---------------- conv1: 3x3, 32 -> 64, on the MXU (bias folded away) -------
        acc1 = jnp.zeros((M1, C1), jnp.float32)
        for t in range(9):
            i, j = t // 3, t % 3
            tap = a0p_ref[:, i:i + H1, j:j + W1, :]                # (B, H1, W1, C0)
            acc1 = acc1 + jnp.dot(tap.reshape(M1, C0), w1_ref[t],
                                  preferred_element_type=jnp.float32)

        # ---------------- BN1 + ReLU ----------------
        y1 = _bn_relu(acc1, g1_ref[...], bt1_ref[...])
        act1_ref[...] = y1.reshape(B, H1p, 2, W1, C1)

        # ---------------- pool1 -> written straight to the HBM output ---------------
        tmp1_ref[...] = jnp.maximum(act1_ref[:, :, 0, :, :], act1_ref[:, :, 1, :, :])
        out_ref[...] = jnp.maximum(tmp1_ref[:, :, pl.ds(0, W1p, 2), :],
                                   tmp1_ref[:, :, pl.ds(1, W1p, 2), :])  # (B,H1p,W1p,C1)

    dims = dict(H0=H0, W0=W0, H0p=H0p, W0p=W0p, H1=H1, W1=W1, H1p=H1p, W1p=W1p)
    return kernel, dims


def cir_forward_fn(x_bhw, params):
    B, H, W = x_bhw.shape
    kernel, d = _make_fused_kernel(B, H, W)

    # NHWC with C=1, conv0 zero-padding, and an even/odd H-row split so the stride-2
    # conv taps become contiguous slices inside the kernel (3 tiny XLA ops total).
    x = x_bhw.astype(jnp.float32)[:, :, :, None]
    xp = jnp.pad(x, ((0, 0), (2, 2), (2, 2), (0, 0)))             # (B, H+4, W+4, 1)
    xpe, xpo = xp[:, 0::2, :, :], xp[:, 1::2, :, :]               # (B, (H+4)//2, W+4, 1)

    # Weights in tap-major layout matching the in-kernel accumulation order.
    w0m = jnp.transpose(params['w0'], (2, 3, 1, 0)).reshape(25, C0)      # (kh*kw, C0)
    w1m = jnp.transpose(params['w1'], (2, 3, 1, 0)).reshape(9, C0, C1)   # (kh*kw, C0, C1)

    out_nhwc = pl.pallas_call(
        kernel,
        out_shape=jax.ShapeDtypeStruct((B, d['H1p'], d['W1p'], C1), jnp.float32),
        in_specs=[_vmem_spec()] * 8,
        out_specs=_vmem_spec(),
        scratch_shapes=[
            pltpu.VMEM((B, d['H0p'], 2, d['W0'], C0), jnp.float32),      # act0 (H pair-split)
            pltpu.VMEM((B, d['H0p'], d['W0'], C0), jnp.float32),         # H-pooled stage 0
            pltpu.VMEM((B, d['H1'] + 2, d['W1'] + 2, C0), jnp.float32),  # zero-padded conv1 in
            pltpu.VMEM((B, d['H1p'], 2, d['W1'], C1), jnp.float32),      # act1 (H pair-split)
            pltpu.VMEM((B, d['H1p'], d['W1'], C1), jnp.float32),         # H-pooled stage 1
        ],
    )(xpe, xpo, w0m,
      params['g0'].reshape(1, C0), params['bt0'].reshape(1, C0),
      w1m,
      params['g1'].reshape(1, C1), params['bt1'].reshape(1, C1))

    # PyTorch's output.reshape(b, -1) flattens NCHW: permute the tiny (4 KiB) result
    # once in XLA; the reshape of the contiguous result is free.
    return jnp.transpose(out_nhwc, (0, 3, 1, 2)).reshape(B, -1)


cir_forward = jax.jit(cir_forward_fn)


def init_params(key):
    k0, k1 = jax.random.split(key)

    def conv_w(k, cout, cin, kh, kw):
        bound = 1.0 / (cin * kh * kw) ** 0.5
        return jax.random.uniform(k, (cout, cin, kh, kw), jnp.float32, -bound, bound)

    # NOTE: the PyTorch conv biases are intentionally omitted: a per-channel constant
    # added right before training-mode BatchNorm is exactly cancelled by the batch-mean
    # subtraction, so removing it does not change the forward output.
    return dict(
        w0=conv_w(k0, C0, 1, 5, 5),
        g0=jnp.ones((C0,), jnp.float32), bt0=jnp.zeros((C0,), jnp.float32),
        w1=conv_w(k1, C1, C0, 3, 3),
        g1=jnp.ones((C1,), jnp.float32), bt1=jnp.zeros((C1,), jnp.float32),
    )


if __name__ == "__main__":
    key = jax.random.PRNGKey(0)
    kx, kp = jax.random.split(key)
    x = jax.random.normal(kx, (2, 16, 16), jnp.float32)   # (B, H, W), as the module expects
    params = init_params(kp)

    out = cir_forward(x, params)
    jax.block_until_ready(out)

    # H: 16 -(conv0 s=(2,1))-> 8 -(pool)-> 4 -(conv1)-> 4 -(pool)-> 2
    # W: 16 ->               16 ->        8 ->          8 ->        4 ; C = 64
    assert out.shape == (2, C1 * 2 * 4), out.shape
    print("KERNEL_OK")
</pallas_src>

<mosaic_0001>
module attributes {stable_mosaic.version = 11 : i64} {
  func.func @kernel(%arg0: memref<2x10x20x1xf32, #tpu.memory_space<vmem>>, %arg1: memref<2x10x20x1xf32, #tpu.memory_space<vmem>>, %arg2: memref<25x32xf32, #tpu.memory_space<vmem>>, %arg3: memref<1x32xf32, #tpu.memory_space<vmem>>, %arg4: memref<1x32xf32, #tpu.memory_space<vmem>>, %arg5: memref<9x32x64xf32, #tpu.memory_space<vmem>>, %arg6: memref<1x64xf32, #tpu.memory_space<vmem>>, %arg7: memref<1x64xf32, #tpu.memory_space<vmem>>, %arg8: memref<2x2x4x64xf32, #tpu.memory_space<vmem>>, %arg9: memref<2x4x2x16x32xf32, #tpu.memory_space<vmem>>, %arg10: memref<2x4x16x32xf32, #tpu.memory_space<vmem>>, %arg11: memref<2x6x10x32xf32, #tpu.memory_space<vmem>>, %arg12: memref<2x2x2x8x64xf32, #tpu.memory_space<vmem>>, %arg13: memref<2x2x8x64xf32, #tpu.memory_space<vmem>>) attributes {dimension_semantics = [], scalar_prefetch = 0 : i64, scratch_operands = 5 : i64, tpu.core_type = #tpu.core_type<tc>} {
    %c0 = arith.constant 0 : index
    %c0_0 = arith.constant 0 : index
    %0 = vector.load %arg2[%c0, %c0_0] : memref<25x32xf32, #tpu.memory_space<vmem>>, vector<25x32xf32>
    %cst = arith.constant 0.000000e+00 : f32
    %1 = vector.broadcast %cst : f32 to vector<256x32xf32>
    %c0_1 = arith.constant 0 : index
    %c0_2 = arith.constant 0 : index
    %c0_3 = arith.constant 0 : index
    %c0_4 = arith.constant 0 : index
    %2 = vector.load %arg0[%c0_1, %c0_2, %c0_3, %c0_4] : memref<2x10x20x1xf32, #tpu.memory_space<vmem>>, vector<2x8x16x1xf32>
    %3 = vector.shape_cast %2 : vector<2x8x16x1xf32> to vector<256x1xf32>
    %4 = vector.extract_strided_slice %0 {offsets = [0, 0], sizes = [1, 32], strides = [1, 1]} : vector<25x32xf32> to vector<1x32xf32>
    %5 = vector.broadcast %3 : vector<256x1xf32> to vector<256x32xf32>
    %6 = vector.broadcast %4 : vector<1x32xf32> to vector<256x32xf32>
    %7 = arith.mulf %5, %6 : vector<256x32xf32>
    %8 = arith.addf %1, %7 : vector<256x32xf32>
    %c0_5 = arith.constant 0 : index
    %c0_6 = arith.constant 0 : index
    %c1 = arith.constant 1 : index
    %c0_7 = arith.constant 0 : index
    %9 = vector.load %arg0[%c0_5, %c0_6, %c1, %c0_7] : memref<2x10x20x1xf32, #tpu.memory_space<vmem>>, vector<2x8x16x1xf32>
    %10 = vector.shape_cast %9 : vector<2x8x16x1xf32> to vector<256x1xf32>
    %11 = vector.extract_strided_slice %0 {offsets = [1, 0], sizes = [1, 32], strides = [1, 1]} : vector<25x32xf32> to vector<1x32xf32>
    %12 = vector.broadcast %10 : vector<256x1xf32> to vector<256x32xf32>
    %13 = vector.broadcast %11 : vector<1x32xf32> to vector<256x32xf32>
    %14 = arith.mulf %12, %13 : vector<256x32xf32>
    %15 = arith.addf %8, %14 : vector<256x32xf32>
    %c0_8 = arith.constant 0 : index
    %c0_9 = arith.constant 0 : index
    %c2 = arith.constant 2 : index
    %c0_10 = arith.constant 0 : index
    %16 = vector.load %arg0[%c0_8, %c0_9, %c2, %c0_10] : memref<2x10x20x1xf32, #tpu.memory_space<vmem>>, vector<2x8x16x1xf32>
    %17 = vector.shape_cast %16 : vector<2x8x16x1xf32> to vector<256x1xf32>
    %18 = vector.extract_strided_slice %0 {offsets = [2, 0], sizes = [1, 32], strides = [1, 1]} : vector<25x32xf32> to vector<1x32xf32>
    %19 = vector.broadcast %17 : vector<256x1xf32> to vector<256x32xf32>
    %20 = vector.broadcast %18 : vector<1x32xf32> to vector<256x32xf32>
    %21 = arith.mulf %19, %20 : vector<256x32xf32>
    %22 = arith.addf %15, %21 : vector<256x32xf32>
    %c0_11 = arith.constant 0 : index
    %c0_12 = arith.constant 0 : index
    %c3 = arith.constant 3 : index
    %c0_13 = arith.constant 0 : index
    %23 = vector.load %arg0[%c0_11, %c0_12, %c3, %c0_13] : memref<2x10x20x1xf32, #tpu.memory_space<vmem>>, vector<2x8x16x1xf32>
    %24 = vector.shape_cast %23 : vector<2x8x16x1xf32> to vector<256x1xf32>
    %25 = vector.extract_strided_slice %0 {offsets = [3, 0], sizes = [1, 32], strides = [1, 1]} : vector<25x32xf32> to vector<1x32xf32>
    %26 = vector.broadcast %24 : vector<256x1xf32> to vector<256x32xf32>
    %27 = vector.broadcast %25 : vector<1x32xf32> to vector<256x32xf32>
    %28 = arith.mulf %26, %27 : vector<256x32xf32>
    %29 = arith.addf %22, %28 : vector<256x32xf32>
    %c0_14 = arith.constant 0 : index
    %c0_15 = arith.constant 0 : index
    %c4 = arith.constant 4 : index
    %c0_16 = arith.constant 0 : index
    %30 = vector.load %arg0[%c0_14, %c0_15, %c4, %c0_16] : memref<2x10x20x1xf32, #tpu.memory_space<vmem>>, vector<2x8x16x1xf32>
    %31 = vector.shape_cast %30 : vector<2x8x16x1xf32> to vector<256x1xf32>
    %32 = vector.extract_strided_slice %0 {offsets = [4, 0], sizes = [1, 32], strides = [1, 1]} : vector<25x32xf32> to vector<1x32xf32>
    %33 = vector.broadcast %31 : vector<256x1xf32> to vector<256x32xf32>
    %34 = vector.broadcast %32 : vector<1x32xf32> to vector<256x32xf32>
    %35 = arith.mulf %33, %34 : vector<256x32xf32>
    %36 = arith.addf %29, %35 : vector<256x32xf32>
    %c0_17 = arith.constant 0 : index
    %c0_18 = arith.constant 0 : index
    %c0_19 = arith.constant 0 : index
    %c0_20 = arith.constant 0 : index
    %37 = vector.load %arg1[%c0_17, %c0_18, %c0_19, %c0_20] : memref<2x10x20x1xf32, #tpu.memory_space<vmem>>, vector<2x8x16x1xf32>
    %38 = vector.shape_cast %37 : vector<2x8x16x1xf32> to vector<256x1xf32>
    %39 = vector.extract_strided_slice %0 {offsets = [5, 0], sizes = [1, 32], strides = [1, 1]} : vector<25x32xf32> to vector<1x32xf32>
    %40 = vector.broadcast %38 : vector<256x1xf32> to vector<256x32xf32>
    %41 = vector.broadcast %39 : vector<1x32xf32> to vector<256x32xf32>
    %42 = arith.mulf %40, %41 : vector<256x32xf32>
    %43 = arith.addf %36, %42 : vector<256x32xf32>
    %c0_21 = arith.constant 0 : index
    %c0_22 = arith.constant 0 : index
    %c1_23 = arith.constant 1 : index
    %c0_24 = arith.constant 0 : index
    %44 = vector.load %arg1[%c0_21, %c0_22, %c1_23, %c0_24] : memref<2x10x20x1xf32, #tpu.memory_space<vmem>>, vector<2x8x16x1xf32>
    %45 = vector.shape_cast %44 : vector<2x8x16x1xf32> to vector<256x1xf32>
    %46 = vector.extract_strided_slice %0 {offsets = [6, 0], sizes = [1, 32], strides = [1, 1]} : vector<25x32xf32> to vector<1x32xf32>
    %47 = vector.broadcast %45 : vector<256x1xf32> to vector<256x32xf32>
    %48 = vector.broadcast %46 : vector<1x32xf32> to vector<256x32xf32>
    %49 = arith.mulf %47, %48 : vector<256x32xf32>
    %50 = arith.addf %43, %49 : vector<256x32xf32>
    %c0_25 = arith.constant 0 : index
    %c0_26 = arith.constant 0 : index
    %c2_27 = arith.constant 2 : index
    %c0_28 = arith.constant 0 : index
    %51 = vector.load %arg1[%c0_25, %c0_26, %c2_27, %c0_28] : memref<2x10x20x1xf32, #tpu.memory_space<vmem>>, vector<2x8x16x1xf32>
    %52 = vector.shape_cast %51 : vector<2x8x16x1xf32> to vector<256x1xf32>
    %53 = vector.extract_strided_slice %0 {offsets = [7, 0], sizes = [1, 32], strides = [1, 1]} : vector<25x32xf32> to vector<1x32xf32>
    %54 = vector.broadcast %52 : vector<256x1xf32> to vector<256x32xf32>
    %55 = vector.broadcast %53 : vector<1x32xf32> to vector<256x32xf32>
    %56 = arith.mulf %54, %55 : vector<256x32xf32>
    %57 = arith.addf %50, %56 : vector<256x32xf32>
    %c0_29 = arith.constant 0 : index
    %c0_30 = arith.constant 0 : index
    %c3_31 = arith.constant 3 : index
    %c0_32 = arith.constant 0 : index
    %58 = vector.load %arg1[%c0_29, %c0_30, %c3_31, %c0_32] : memref<2x10x20x1xf32, #tpu.memory_space<vmem>>, vector<2x8x16x1xf32>
    %59 = vector.shape_cast %58 : vector<2x8x16x1xf32> to vector<256x1xf32>
    %60 = vector.extract_strided_slice %0 {offsets = [8, 0], sizes = [1, 32], strides = [1, 1]} : vector<25x32xf32> to vector<1x32xf32>
    %61 = vector.broadcast %59 : vector<256x1xf32> to vector<256x32xf32>
    %62 = vector.broadcast %60 : vector<1x32xf32> to vector<256x32xf32>
    %63 = arith.mulf %61, %62 : vector<256x32xf32>
    %64 = arith.addf %57, %63 : vector<256x32xf32>
    %c0_33 = arith.constant 0 : index
    %c0_34 = arith.constant 0 : index
    %c4_35 = arith.constant 4 : index
    %c0_36 = arith.constant 0 : index
    %65 = vector.load %arg1[%c0_33, %c0_34, %c4_35, %c0_36] : memref<2x10x20x1xf32, #tpu.memory_space<vmem>>, vector<2x8x16x1xf32>
    %66 = vector.shape_cast %65 : vector<2x8x16x1xf32> to vector<256x1xf32>
    %67 = vector.extract_strided_slice %0 {offsets = [9, 0], sizes = [1, 32], strides = [1, 1]} : vector<25x32xf32> to vector<1x32xf32>
    %68 = vector.broadcast %66 : vector<256x1xf32> to vector<256x32xf32>
    %69 = vector.broadcast %67 : vector<1x32xf32> to vector<256x32xf32>
    %70 = arith.mulf %68, %69 : vector<256x32xf32>
    %71 = arith.addf %64, %70 : vector<256x32xf32>
    %c0_37 = arith.constant 0 : index
    %c1_38 = arith.constant 1 : index
    %c0_39 = arith.constant 0 : index
    %c0_40 = arith.constant 0 : index
    %72 = vector.load %arg0[%c0_37, %c1_38, %c0_39, %c0_40] : memref<2x10x20x1xf32, #tpu.memory_space<vmem>>, vector<2x8x16x1xf32>
    %73 = vector.shape_cast %72 : vector<2x8x16x1xf32> to vector<256x1xf32>
    %74 = vector.extract_strided_slice %0 {offsets = [10, 0], sizes = [1, 32], strides = [1, 1]} : vector<25x32xf32> to vector<1x32xf32>
    %75 = vector.broadcast %73 : vector<256x1xf32> to vector<256x32xf32>
    %76 = vector.broadcast %74 : vector<1x32xf32> to vector<256x32xf32>
    %77 = arith.mulf %75, %76 : vector<256x32xf32>
    %78 = arith.addf %71, %77 : vector<256x32xf32>
    %c0_41 = arith.constant 0 : index
    %c1_42 = arith.constant 1 : index
    %c1_43 = arith.constant 1 : index
    %c0_44 = arith.constant 0 : index
    %79 = vector.load %arg0[%c0_41, %c1_42, %c1_43, %c0_44] : memref<2x10x20x1xf32, #tpu.memory_space<vmem>>, vector<2x8x16x1xf32>
    %80 = vector.shape_cast %79 : vector<2x8x16x1xf32> to vector<256x1xf32>
    %81 = vector.extract_strided_slice %0 {offsets = [11, 0], sizes = [1, 32], strides = [1, 1]} : vector<25x32xf32> to vector<1x32xf32>
    %82 = vector.broadcast %80 : vector<256x1xf32> to vector<256x32xf32>
    %83 = vector.broadcast %81 : vector<1x32xf32> to vector<256x32xf32>
    %84 = arith.mulf %82, %83 : vector<256x32xf32>
    %85 = arith.addf %78, %84 : vector<256x32xf32>
    %c0_45 = arith.constant 0 : index
    %c1_46 = arith.constant 1 : index
    %c2_47 = arith.constant 2 : index
    %c0_48 = arith.constant 0 : index
    %86 = vector.load %arg0[%c0_45, %c1_46, %c2_47, %c0_48] : memref<2x10x20x1xf32, #tpu.memory_space<vmem>>, vector<2x8x16x1xf32>
    %87 = vector.shape_cast %86 : vector<2x8x16x1xf32> to vector<256x1xf32>
    %88 = vector.extract_strided_slice %0 {offsets = [12, 0], sizes = [1, 32], strides = [1, 1]} : vector<25x32xf32> to vector<1x32xf32>
    %89 = vector.broadcast %87 : vector<256x1xf32> to vector<256x32xf32>
    %90 = vector.broadcast %88 : vector<1x32xf32> to vector<256x32xf32>
    %91 = arith.mulf %89, %90 : vector<256x32xf32>
    %92 = arith.addf %85, %91 : vector<256x32xf32>
    %c0_49 = arith.constant 0 : index
    %c1_50 = arith.constant 1 : index
    %c3_51 = arith.constant 3 : index
    %c0_52 = arith.constant 0 : index
    %93 = vector.load %arg0[%c0_49, %c1_50, %c3_51, %c0_52] : memref<2x10x20x1xf32, #tpu.memory_space<vmem>>, vector<2x8x16x1xf32>
    %94 = vector.shape_cast %93 : vector<2x8x16x1xf32> to vector<256x1xf32>
    %95 = vector.extract_strided_slice %0 {offsets = [13, 0], sizes = [1, 32], strides = [1, 1]} : vector<25x32xf32> to vector<1x32xf32>
    %96 = vector.broadcast %94 : vector<256x1xf32> to vector<256x32xf32>
    %97 = vector.broadcast %95 : vector<1x32xf32> to vector<256x32xf32>
    %98 = arith.mulf %96, %97 : vector<256x32xf32>
    %99 = arith.addf %92, %98 : vector<256x32xf32>
    %c0_53 = arith.constant 0 : index
    %c1_54 = arith.constant 1 : index
    %c4_55 = arith.constant 4 : index
    %c0_56 = arith.constant 0 : index
    %100 = vector.load %arg0[%c0_53, %c1_54, %c4_55, %c0_56] : memref<2x10x20x1xf32, #tpu.memory_space<vmem>>, vector<2x8x16x1xf32>
    %101 = vector.shape_cast %100 : vector<2x8x16x1xf32> to vector<256x1xf32>
    %102 = vector.extract_strided_slice %0 {offsets = [14, 0], sizes = [1, 32], strides = [1, 1]} : vector<25x32xf32> to vector<1x32xf32>
    %103 = vector.broadcast %101 : vector<256x1xf32> to vector<256x32xf32>
    %104 = vector.broadcast %102 : vector<1x32xf32> to vector<256x32xf32>
    %105 = arith.mulf %103, %104 : vector<256x32xf32>
    %106 = arith.addf %99, %105 : vector<256x32xf32>
    %c0_57 = arith.constant 0 : index
    %c1_58 = arith.constant 1 : index
    %c0_59 = arith.constant 0 : index
    %c0_60 = arith.constant 0 : index
    %107 = vector.load %arg1[%c0_57, %c1_58, %c0_59, %c0_60] : memref<2x10x20x1xf32, #tpu.memory_space<vmem>>, vector<2x8x16x1xf32>
    %108 = vector.shape_cast %107 : vector<2x8x16x1xf32> to vector<256x1xf32>
    %109 = vector.extract_strided_slice %0 {offsets = [15, 0], sizes = [1, 32], strides = [1, 1]} : vector<25x32xf32> to vector<1x32xf32>
    %110 = vector.broadcast %108 : vector<256x1xf32> to vector<256x32xf32>
    %111 = vector.broadcast %109 : vector<1x32xf32> to vector<256x32xf32>
    %112 = arith.mulf %110, %111 : vector<256x32xf32>
    %113 = arith.addf %106, %112 : vector<256x32xf32>
    %c0_61 = arith.constant 0 : index
    %c1_62 = arith.constant 1 : index
    %c1_63 = arith.constant 1 : index
    %c0_64 = arith.constant 0 : index
    %114 = vector.load %arg1[%c0_61, %c1_62, %c1_63, %c0_64] : memref<2x10x20x1xf32, #tpu.memory_space<vmem>>, vector<2x8x16x1xf32>
    %115 = vector.shape_cast %114 : vector<2x8x16x1xf32> to vector<256x1xf32>
    %116 = vector.extract_strided_slice %0 {offsets = [16, 0], sizes = [1, 32], strides = [1, 1]} : vector<25x32xf32> to vector<1x32xf32>
    %117 = vector.broadcast %115 : vector<256x1xf32> to vector<256x32xf32>
    %118 = vector.broadcast %116 : vector<1x32xf32> to vector<256x32xf32>
    %119 = arith.mulf %117, %118 : vector<256x32xf32>
    %120 = arith.addf %113, %119 : vector<256x32xf32>
    %c0_65 = arith.constant 0 : index
    %c1_66 = arith.constant 1 : index
    %c2_67 = arith.constant 2 : index
    %c0_68 = arith.constant 0 : index
    %121 = vector.load %arg1[%c0_65, %c1_66, %c2_67, %c0_68] : memref<2x10x20x1xf32, #tpu.memory_space<vmem>>, vector<2x8x16x1xf32>
    %122 = vector.shape_cast %121 : vector<2x8x16x1xf32> to vector<256x1xf32>
    %123 = vector.extract_strided_slice %0 {offsets = [17, 0], sizes = [1, 32], strides = [1, 1]} : vector<25x32xf32> to vector<1x32xf32>
    %124 = vector.broadcast %122 : vector<256x1xf32> to vector<256x32xf32>
    %125 = vector.broadcast %123 : vector<1x32xf32> to vector<256x32xf32>
    %126 = arith.mulf %124, %125 : vector<256x32xf32>
    %127 = arith.addf %120, %126 : vector<256x32xf32>
    %c0_69 = arith.constant 0 : index
    %c1_70 = arith.constant 1 : index
    %c3_71 = arith.constant 3 : index
    %c0_72 = arith.constant 0 : index
    %128 = vector.load %arg1[%c0_69, %c1_70, %c3_71, %c0_72] : memref<2x10x20x1xf32, #tpu.memory_space<vmem>>, vector<2x8x16x1xf32>
    %129 = vector.shape_cast %128 : vector<2x8x16x1xf32> to vector<256x1xf32>
    %130 = vector.extract_strided_slice %0 {offsets = [18, 0], sizes = [1, 32], strides = [1, 1]} : vector<25x32xf32> to vector<1x32xf32>
    %131 = vector.broadcast %129 : vector<256x1xf32> to vector<256x32xf32>
    %132 = vector.broadcast %130 : vector<1x32xf32> to vector<256x32xf32>
    %133 = arith.mulf %131, %132 : vector<256x32xf32>
    %134 = arith.addf %127, %133 : vector<256x32xf32>
    %c0_73 = arith.constant 0 : index
    %c1_74 = arith.constant 1 : index
    %c4_75 = arith.constant 4 : index
    %c0_76 = arith.constant 0 : index
    %135 = vector.load %arg1[%c0_73, %c1_74, %c4_75, %c0_76] : memref<2x10x20x1xf32, #tpu.memory_space<vmem>>, vector<2x8x16x1xf32>
    %136 = vector.shape_cast %135 : vector<2x8x16x1xf32> to vector<256x1xf32>
    %137 = vector.extract_strided_slice %0 {offsets = [19, 0], sizes = [1, 32], strides = [1, 1]} : vector<25x32xf32> to vector<1x32xf32>
    %138 = vector.broadcast %136 : vector<256x1xf32> to vector<256x32xf32>
    %139 = vector.broadcast %137 : vector<1x32xf32> to vector<256x32xf32>
    %140 = arith.mulf %138, %139 : vector<256x32xf32>
    %141 = arith.addf %134, %140 : vector<256x32xf32>
    %c0_77 = arith.constant 0 : index
    %c2_78 = arith.constant 2 : index
    %c0_79 = arith.constant 0 : index
    %c0_80 = arith.constant 0 : index
    %142 = vector.load %arg0[%c0_77, %c2_78, %c0_79, %c0_80] : memref<2x10x20x1xf32, #tpu.memory_space<vmem>>, vector<2x8x16x1xf32>
    %143 = vector.shape_cast %142 : vector<2x8x16x1xf32> to vector<256x1xf32>
    %144 = vector.extract_strided_slice %0 {offsets = [20, 0], sizes = [1, 32], strides = [1, 1]} : vector<25x32xf32> to vector<1x32xf32>
    %145 = vector.broadcast %143 : vector<256x1xf32> to vector<256x32xf32>
    %146 = vector.broadcast %144 : vector<1x32xf32> to vector<256x32xf32>
    %147 = arith.mulf %145, %146 : vector<256x32xf32>
    %148 = arith.addf %141, %147 : vector<256x32xf32>
    %c0_81 = arith.constant 0 : index
    %c2_82 = arith.constant 2 : index
    %c1_83 = arith.constant 1 : index
    %c0_84 = arith.constant 0 : index
    %149 = vector.load %arg0[%c0_81, %c2_82, %c1_83, %c0_84] : memref<2x10x20x1xf32, #tpu.memory_space<vmem>>, vector<2x8x16x1xf32>
    %150 = vector.shape_cast %149 : vector<2x8x16x1xf32> to vector<256x1xf32>
    %151 = vector.extract_strided_slice %0 {offsets = [21, 0], sizes = [1, 32], strides = [1, 1]} : vector<25x32xf32> to vector<1x32xf32>
    %152 = vector.broadcast %150 : vector<256x1xf32> to vector<256x32xf32>
    %153 = vector.broadcast %151 : vector<1x32xf32> to vector<256x32xf32>
    %154 = arith.mulf %152, %153 : vector<256x32xf32>
    %155 = arith.addf %148, %154 : vector<256x32xf32>
    %c0_85 = arith.constant 0 : index
    %c2_86 = arith.constant 2 : index
    %c2_87 = arith.constant 2 : index
    %c0_88 = arith.constant 0 : index
    %156 = vector.load %arg0[%c0_85, %c2_86, %c2_87, %c0_88] : memref<2x10x20x1xf32, #tpu.memory_space<vmem>>, vector<2x8x16x1xf32>
    %157 = vector.shape_cast %156 : vector<2x8x16x1xf32> to vector<256x1xf32>
    %158 = vector.extract_strided_slice %0 {offsets = [22, 0], sizes = [1, 32], strides = [1, 1]} : vector<25x32xf32> to vector<1x32xf32>
    %159 = vector.broadcast %157 : vector<256x1xf32> to vector<256x32xf32>
    %160 = vector.broadcast %158 : vector<1x32xf32> to vector<256x32xf32>
    %161 = arith.mulf %159, %160 : vector<256x32xf32>
    %162 = arith.addf %155, %161 : vector<256x32xf32>
    %c0_89 = arith.constant 0 : index
    %c2_90 = arith.constant 2 : index
    %c3_91 = arith.constant 3 : index
    %c0_92 = arith.constant 0 : index
    %163 = vector.load %arg0[%c0_89, %c2_90, %c3_91, %c0_92] : memref<2x10x20x1xf32, #tpu.memory_space<vmem>>, vector<2x8x16x1xf32>
    %164 = vector.shape_cast %163 : vector<2x8x16x1xf32> to vector<256x1xf32>
    %165 = vector.extract_strided_slice %0 {offsets = [23, 0], sizes = [1, 32], strides = [1, 1]} : vector<25x32xf32> to vector<1x32xf32>
    %166 = vector.broadcast %164 : vector<256x1xf32> to vector<256x32xf32>
    %167 = vector.broadcast %165 : vector<1x32xf32> to vector<256x32xf32>
    %168 = arith.mulf %166, %167 : vector<256x32xf32>
    %169 = arith.addf %162, %168 : vector<256x32xf32>
    %c0_93 = arith.constant 0 : index
    %c2_94 = arith.constant 2 : index
    %c4_95 = arith.constant 4 : index
    %c0_96 = arith.constant 0 : index
    %170 = vector.load %arg0[%c0_93, %c2_94, %c4_95, %c0_96] : memref<2x10x20x1xf32, #tpu.memory_space<vmem>>, vector<2x8x16x1xf32>
    %171 = vector.shape_cast %170 : vector<2x8x16x1xf32> to vector<256x1xf32>
    %172 = vector.extract_strided_slice %0 {offsets = [24, 0], sizes = [1, 32], strides = [1, 1]} : vector<25x32xf32> to vector<1x32xf32>
    %173 = vector.broadcast %171 : vector<256x1xf32> to vector<256x32xf32>
    %174 = vector.broadcast %172 : vector<1x32xf32> to vector<256x32xf32>
    %175 = arith.mulf %173, %174 : vector<256x32xf32>
    %176 = arith.addf %169, %175 : vector<256x32xf32>
    %c0_97 = arith.constant 0 : index
    %c0_98 = arith.constant 0 : index
    %177 = vector.load %arg3[%c0_97, %c0_98] : memref<1x32xf32, #tpu.memory_space<vmem>>, vector<1x32xf32>
    %c0_99 = arith.constant 0 : index
    %c0_100 = arith.constant 0 : index
    %178 = vector.load %arg4[%c0_99, %c0_100] : memref<1x32xf32, #tpu.memory_space<vmem>>, vector<1x32xf32>
    %cst_101 = arith.constant dense<0.000000e+00> : vector<32xf32>
    %179 = vector.multi_reduction <add>, %176, %cst_101 [0] : vector<256x32xf32> to vector<32xf32>
    %180 = vector.shape_cast %179 : vector<32xf32> to vector<1x32xf32>
    %cst_102 = arith.constant 2.560000e+02 : f32
    %181 = vector.broadcast %cst_102 : f32 to vector<1x32xf32>
    %182 = arith.divf %180, %181 : vector<1x32xf32>
    %183 = vector.broadcast %182 : vector<1x32xf32> to vector<256x32xf32>
    %184 = arith.subf %176, %183 : vector<256x32xf32>
    %185 = arith.mulf %184, %184 : vector<256x32xf32>
    %cst_103 = arith.constant dense<0.000000e+00> : vector<32xf32>
    %186 = vector.multi_reduction <add>, %185, %cst_103 [0] : vector<256x32xf32> to vector<32xf32>
    %187 = vector.shape_cast %186 : vector<32xf32> to vector<1x32xf32>
    %cst_104 = arith.constant 2.560000e+02 : f32
    %188 = vector.broadcast %cst_104 : f32 to vector<1x32xf32>
    %189 = arith.divf %187, %188 : vector<1x32xf32>
    %190 = vector.broadcast %182 : vector<1x32xf32> to vector<256x32xf32>
    %191 = arith.subf %176, %190 : vector<256x32xf32>
    %cst_105 = arith.constant 9.99999974E-6 : f32
    %192 = vector.broadcast %cst_105 : f32 to vector<1x32xf32>
    %193 = arith.addf %189, %192 : vector<1x32xf32>
    %194 = math.rsqrt %193 : vector<1x32xf32>
    %195 = vector.broadcast %194 : vector<1x32xf32> to vector<256x32xf32>
    %196 = arith.mulf %191, %195 : vector<256x32xf32>
    %197 = vector.broadcast %177 : vector<1x32xf32> to vector<256x32xf32>
    %198 = arith.mulf %196, %197 : vector<256x32xf32>
    %199 = vector.broadcast %178 : vector<1x32xf32> to vector<256x32xf32>
    %200 = arith.addf %198, %199 : vector<256x32xf32>
    %cst_106 = arith.constant 0.000000e+00 : f32
    %201 = vector.broadcast %cst_106 : f32 to vector<256x32xf32>
    %202 = arith.maximumf %200, %201 : vector<256x32xf32>
    %203 = vector.shape_cast %202 : vector<256x32xf32> to vector<2x4x2x16x32xf32>
    %c0_107 = arith.constant 0 : index
    %c0_108 = arith.constant 0 : index
    %c0_109 = arith.constant 0 : index
    %c0_110 = arith.constant 0 : index
    %c0_111 = arith.constant 0 : index
    %204 = vector.load %arg9[%c0_107, %c0_108, %c0_109, %c0_110, %c0_111] : memref<2x4x2x16x32xf32, #tpu.memory_space<vmem>>, vector<2x4x2x16x32xf32>
    tpu.vector_store %arg9[%c0_107, %c0_108, %c0_109, %c0_110, %c0_111], %203 {strides = array<i32>} : memref<2x4x2x16x32xf32, #tpu.memory_space<vmem>>, vector<2x4x2x16x32xf32>,
    %c0_112 = arith.constant 0 : index
    %c0_113 = arith.constant 0 : index
    %c0_114 = arith.constant 0 : index
    %c0_115 = arith.constant 0 : index
    %c0_116 = arith.constant 0 : index
    %205 = vector.load %arg9[%c0_112, %c0_113, %c0_114, %c0_115, %c0_116] : memref<2x4x2x16x32xf32, #tpu.memory_space<vmem>>, vector<2x4x1x16x32xf32>
    %206 = vector.shape_cast %205 : vector<2x4x1x16x32xf32> to vector<2x4x16x32xf32>
    %c0_117 = arith.constant 0 : index
    %c0_118 = arith.constant 0 : index
    %c1_119 = arith.constant 1 : index
    %c0_120 = arith.constant 0 : index
    %c0_121 = arith.constant 0 : index
    %207 = vector.load %arg9[%c0_117, %c0_118, %c1_119, %c0_120, %c0_121] : memref<2x4x2x16x32xf32, #tpu.memory_space<vmem>>, vector<2x4x1x16x32xf32>
    %208 = vector.shape_cast %207 : vector<2x4x1x16x32xf32> to vector<2x4x16x32xf32>
    %209 = arith.maximumf %206, %208 : vector<2x4x16x32xf32>
    %c0_122 = arith.constant 0 : index
    %c0_123 = arith.constant 0 : index
    %c0_124 = arith.constant 0 : index
    %c0_125 = arith.constant 0 : index
    %210 = vector.load %arg10[%c0_122, %c0_123, %c0_124, %c0_125] : memref<2x4x16x32xf32, #tpu.memory_space<vmem>>, vector<2x4x16x32xf32>
    tpu.vector_store %arg10[%c0_122, %c0_123, %c0_124, %c0_125], %209 {strides = array<i32>} : memref<2x4x16x32xf32, #tpu.memory_space<vmem>>, vector<2x4x16x32xf32>,
    %c0_126 = arith.constant 0 : index
    %c0_127 = arith.constant 0 : index
    %c0_128 = arith.constant 0 : index
    %c0_129 = arith.constant 0 : index
    %211 = tpu.strided_load %arg10[%c0_126, %c0_127, %c0_128, %c0_129] {strides = array<i32: 1, 1, 2, 1>} : memref<2x4x16x32xf32, #tpu.memory_space<vmem>>, vector<2x4x8x32xf32>
    %c0_130 = arith.constant 0 : index
    %c0_131 = arith.constant 0 : index
    %c1_132 = arith.constant 1 : index
    %c0_133 = arith.constant 0 : index
    %212 = tpu.strided_load %arg10[%c0_130, %c0_131, %c1_132, %c0_133] {strides = array<i32: 1, 1, 2, 1>} : memref<2x4x16x32xf32, #tpu.memory_space<vmem>>, vector<2x4x8x32xf32>
    %213 = arith.maximumf %211, %212 : vector<2x4x8x32xf32>
    %cst_134 = arith.constant 0.000000e+00 : f32
    %214 = vector.broadcast %cst_134 : f32 to vector<2x6x10x32xf32>
    %c0_135 = arith.constant 0 : index
    %c0_136 = arith.constant 0 : index
    %c0_137 = arith.constant 0 : index
    %c0_138 = arith.constant 0 : index
    %215 = vector.load %arg11[%c0_135, %c0_136, %c0_137, %c0_138] : memref<2x6x10x32xf32, #tpu.memory_space<vmem>>, vector<2x6x10x32xf32>
    tpu.vector_store %arg11[%c0_135, %c0_136, %c0_137, %c0_138], %214 {strides = array<i32>} : memref<2x6x10x32xf32, #tpu.memory_space<vmem>>, vector<2x6x10x32xf32>,
    %c0_139 = arith.constant 0 : index
    %c1_140 = arith.constant 1 : index
    %c1_141 = arith.constant 1 : index
    %c0_142 = arith.constant 0 : index
    %216 = vector.load %arg11[%c0_139, %c1_140, %c1_141, %c0_142] : memref<2x6x10x32xf32, #tpu.memory_space<vmem>>, vector<2x4x8x32xf32>
    tpu.vector_store %arg11[%c0_139, %c1_140, %c1_141, %c0_142], %213 {strides = array<i32>} : memref<2x6x10x32xf32, #tpu.memory_space<vmem>>, vector<2x4x8x32xf32>,
    %cst_143 = arith.constant 0.000000e+00 : f32
    %217 = vector.broadcast %cst_143 : f32 to vector<64x64xf32>
    %c0_144 = arith.constant 0 : index
    %c0_145 = arith.constant 0 : index
    %c0_146 = arith.constant 0 : index
    %c0_147 = arith.constant 0 : index
    %218 = vector.load %arg11[%c0_144, %c0_145, %c0_146, %c0_147] : memref<2x6x10x32xf32, #tpu.memory_space<vmem>>, vector<2x4x8x32xf32>
    %219 = vector.shape_cast %218 : vector<2x4x8x32xf32> to vector<64x32xf32>
    %c0_148 = arith.constant 0 : index
    %c0_149 = arith.constant 0 : index
    %c0_150 = arith.constant 0 : index
    %220 = vector.load %arg5[%c0_148, %c0_149, %c0_150] : memref<9x32x64xf32, #tpu.memory_space<vmem>>, vector<1x32x64xf32>
    %221 = vector.shape_cast %220 : vector<1x32x64xf32> to vector<32x64xf32>
    %cst_151 = arith.constant dense<0.000000e+00> : vector<64x64xf32>
    %222 = tpu.matmul %219, %221, %cst_151 {dimension_numbers = #tpu.dot_dimension_numbers<[1], [0], [0], [1], [0, 0, 1, 1], [], []>} : vector<64x32xf32>, vector<32x64xf32>, vector<64x64xf32> -> vector<64x64xf32>
    %223 = arith.addf %217, %222 : vector<64x64xf32>
    %c0_152 = arith.constant 0 : index
    %c0_153 = arith.constant 0 : index
    %c1_154 = arith.constant 1 : index
    %c0_155 = arith.constant 0 : index
    %224 = vector.load %arg11[%c0_152, %c0_153, %c1_154, %c0_155] : memref<2x6x10x32xf32, #tpu.memory_space<vmem>>, vector<2x4x8x32xf32>
    %225 = vector.shape_cast %224 : vector<2x4x8x32xf32> to vector<64x32xf32>
    %c1_156 = arith.constant 1 : index
    %c0_157 = arith.constant 0 : index
    %c0_158 = arith.constant 0 : index
    %226 = vector.load %arg5[%c1_156, %c0_157, %c0_158] : memref<9x32x64xf32, #tpu.memory_space<vmem>>, vector<1x32x64xf32>
    %227 = vector.shape_cast %226 : vector<1x32x64xf32> to vector<32x64xf32>
    %cst_159 = arith.constant dense<0.000000e+00> : vector<64x64xf32>
    %228 = tpu.matmul %225, %227, %cst_159 {dimension_numbers = #tpu.dot_dimension_numbers<[1], [0], [0], [1], [0, 0, 1, 1], [], []>} : vector<64x32xf32>, vector<32x64xf32>, vector<64x64xf32> -> vector<64x64xf32>
    %229 = arith.addf %223, %228 : vector<64x64xf32>
    %c0_160 = arith.constant 0 : index
    %c0_161 = arith.constant 0 : index
    %c2_162 = arith.constant 2 : index
    %c0_163 = arith.constant 0 : index
    %230 = vector.load %arg11[%c0_160, %c0_161, %c2_162, %c0_163] : memref<2x6x10x32xf32, #tpu.memory_space<vmem>>, vector<2x4x8x32xf32>
    %231 = vector.shape_cast %230 : vector<2x4x8x32xf32> to vector<64x32xf32>
    %c2_164 = arith.constant 2 : index
    %c0_165 = arith.constant 0 : index
    %c0_166 = arith.constant 0 : index
    %232 = vector.load %arg5[%c2_164, %c0_165, %c0_166] : memref<9x32x64xf32, #tpu.memory_space<vmem>>, vector<1x32x64xf32>
    %233 = vector.shape_cast %232 : vector<1x32x64xf32> to vector<32x64xf32>
    %cst_167 = arith.constant dense<0.000000e+00> : vector<64x64xf32>
    %234 = tpu.matmul %231, %233, %cst_167 {dimension_numbers = #tpu.dot_dimension_numbers<[1], [0], [0], [1], [0, 0, 1, 1], [], []>} : vector<64x32xf32>, vector<32x64xf32>, vector<64x64xf32> -> vector<64x64xf32>
    %235 = arith.addf %229, %234 : vector<64x64xf32>
    %c0_168 = arith.constant 0 : index
    %c1_169 = arith.constant 1 : index
    %c0_170 = arith.constant 0 : index
    %c0_171 = arith.constant 0 : index
    %236 = vector.load %arg11[%c0_168, %c1_169, %c0_170, %c0_171] : memref<2x6x10x32xf32, #tpu.memory_space<vmem>>, vector<2x4x8x32xf32>
    %237 = vector.shape_cast %236 : vector<2x4x8x32xf32> to vector<64x32xf32>
    %c3_172 = arith.constant 3 : index
    %c0_173 = arith.constant 0 : index
    %c0_174 = arith.constant 0 : index
    %238 = vector.load %arg5[%c3_172, %c0_173, %c0_174] : memref<9x32x64xf32, #tpu.memory_space<vmem>>, vector<1x32x64xf32>
    %239 = vector.shape_cast %238 : vector<1x32x64xf32> to vector<32x64xf32>
    %cst_175 = arith.constant dense<0.000000e+00> : vector<64x64xf32>
    %240 = tpu.matmul %237, %239, %cst_175 {dimension_numbers = #tpu.dot_dimension_numbers<[1], [0], [0], [1], [0, 0, 1, 1], [], []>} : vector<64x32xf32>, vector<32x64xf32>, vector<64x64xf32> -> vector<64x64xf32>
    %241 = arith.addf %235, %240 : vector<64x64xf32>
    %c0_176 = arith.constant 0 : index
    %c1_177 = arith.constant 1 : index
    %c1_178 = arith.constant 1 : index
    %c0_179 = arith.constant 0 : index
    %242 = vector.load %arg11[%c0_176, %c1_177, %c1_178, %c0_179] : memref<2x6x10x32xf32, #tpu.memory_space<vmem>>, vector<2x4x8x32xf32>
    %243 = vector.shape_cast %242 : vector<2x4x8x32xf32> to vector<64x32xf32>
    %c4_180 = arith.constant 4 : index
    %c0_181 = arith.constant 0 : index
    %c0_182 = arith.constant 0 : index
    %244 = vector.load %arg5[%c4_180, %c0_181, %c0_182] : memref<9x32x64xf32, #tpu.memory_space<vmem>>, vector<1x32x64xf32>
    %245 = vector.shape_cast %244 : vector<1x32x64xf32> to vector<32x64xf32>
    %cst_183 = arith.constant dense<0.000000e+00> : vector<64x64xf32>
    %246 = tpu.matmul %243, %245, %cst_183 {dimension_numbers = #tpu.dot_dimension_numbers<[1], [0], [0], [1], [0, 0, 1, 1], [], []>} : vector<64x32xf32>, vector<32x64xf32>, vector<64x64xf32> -> vector<64x64xf32>
    %247 = arith.addf %241, %246 : vector<64x64xf32>
    %c0_184 = arith.constant 0 : index
    %c1_185 = arith.constant 1 : index
    %c2_186 = arith.constant 2 : index
    %c0_187 = arith.constant 0 : index
    %248 = vector.load %arg11[%c0_184, %c1_185, %c2_186, %c0_187] : memref<2x6x10x32xf32, #tpu.memory_space<vmem>>, vector<2x4x8x32xf32>
    %249 = vector.shape_cast %248 : vector<2x4x8x32xf32> to vector<64x32xf32>
    %c5 = arith.constant 5 : index
    %c0_188 = arith.constant 0 : index
    %c0_189 = arith.constant 0 : index
    %250 = vector.load %arg5[%c5, %c0_188, %c0_189] : memref<9x32x64xf32, #tpu.memory_space<vmem>>, vector<1x32x64xf32>
    %251 = vector.shape_cast %250 : vector<1x32x64xf32> to vector<32x64xf32>
    %cst_190 = arith.constant dense<0.000000e+00> : vector<64x64xf32>
    %252 = tpu.matmul %249, %251, %cst_190 {dimension_numbers = #tpu.dot_dimension_numbers<[1], [0], [0], [1], [0, 0, 1, 1], [], []>} : vector<64x32xf32>, vector<32x64xf32>, vector<64x64xf32> -> vector<64x64xf32>
    %253 = arith.addf %247, %252 : vector<64x64xf32>
    %c0_191 = arith.constant 0 : index
    %c2_192 = arith.constant 2 : index
    %c0_193 = arith.constant 0 : index
    %c0_194 = arith.constant 0 : index
    %254 = vector.load %arg11[%c0_191, %c2_192, %c0_193, %c0_194] : memref<2x6x10x32xf32, #tpu.memory_space<vmem>>, vector<2x4x8x32xf32>
    %255 = vector.shape_cast %254 : vector<2x4x8x32xf32> to vector<64x32xf32>
    %c6 = arith.constant 6 : index
    %c0_195 = arith.constant 0 : index
    %c0_196 = arith.constant 0 : index
    %256 = vector.load %arg5[%c6, %c0_195, %c0_196] : memref<9x32x64xf32, #tpu.memory_space<vmem>>, vector<1x32x64xf32>
    %257 = vector.shape_cast %256 : vector<1x32x64xf32> to vector<32x64xf32>
    %cst_197 = arith.constant dense<0.000000e+00> : vector<64x64xf32>
    %258 = tpu.matmul %255, %257, %cst_197 {dimension_numbers = #tpu.dot_dimension_numbers<[1], [0], [0], [1], [0, 0, 1, 1], [], []>} : vector<64x32xf32>, vector<32x64xf32>, vector<64x64xf32> -> vector<64x64xf32>
    %259 = arith.addf %253, %258 : vector<64x64xf32>
    %c0_198 = arith.constant 0 : index
    %c2_199 = arith.constant 2 : index
    %c1_200 = arith.constant 1 : index
    %c0_201 = arith.constant 0 : index
    %260 = vector.load %arg11[%c0_198, %c2_199, %c1_200, %c0_201] : memref<2x6x10x32xf32, #tpu.memory_space<vmem>>, vector<2x4x8x32xf32>
    %261 = vector.shape_cast %260 : vector<2x4x8x32xf32> to vector<64x32xf32>
    %c7 = arith.constant 7 : index
    %c0_202 = arith.constant 0 : index
    %c0_203 = arith.constant 0 : index
    %262 = vector.load %arg5[%c7, %c0_202, %c0_203] : memref<9x32x64xf32, #tpu.memory_space<vmem>>, vector<1x32x64xf32>
    %263 = vector.shape_cast %262 : vector<1x32x64xf32> to vector<32x64xf32>
    %cst_204 = arith.constant dense<0.000000e+00> : vector<64x64xf32>
    %264 = tpu.matmul %261, %263, %cst_204 {dimension_numbers = #tpu.dot_dimension_numbers<[1], [0], [0], [1], [0, 0, 1, 1], [], []>} : vector<64x32xf32>, vector<32x64xf32>, vector<64x64xf32> -> vector<64x64xf32>
    %265 = arith.addf %259, %264 : vector<64x64xf32>
    %c0_205 = arith.constant 0 : index
    %c2_206 = arith.constant 2 : index
    %c2_207 = arith.constant 2 : index
    %c0_208 = arith.constant 0 : index
    %266 = vector.load %arg11[%c0_205, %c2_206, %c2_207, %c0_208] : memref<2x6x10x32xf32, #tpu.memory_space<vmem>>, vector<2x4x8x32xf32>
    %267 = vector.shape_cast %266 : vector<2x4x8x32xf32> to vector<64x32xf32>
    %c8 = arith.constant 8 : index
    %c0_209 = arith.constant 0 : index
    %c0_210 = arith.constant 0 : index
    %268 = vector.load %arg5[%c8, %c0_209, %c0_210] : memref<9x32x64xf32, #tpu.memory_space<vmem>>, vector<1x32x64xf32>
    %269 = vector.shape_cast %268 : vector<1x32x64xf32> to vector<32x64xf32>
    %cst_211 = arith.constant dense<0.000000e+00> : vector<64x64xf32>
    %270 = tpu.matmul %267, %269, %cst_211 {dimension_numbers = #tpu.dot_dimension_numbers<[1], [0], [0], [1], [0, 0, 1, 1], [], []>} : vector<64x32xf32>, vector<32x64xf32>, vector<64x64xf32> -> vector<64x64xf32>
    %271 = arith.addf %265, %270 : vector<64x64xf32>
    %c0_212 = arith.constant 0 : index
    %c0_213 = arith.constant 0 : index
    %272 = vector.load %arg6[%c0_212, %c0_213] : memref<1x64xf32, #tpu.memory_space<vmem>>, vector<1x64xf32>
    %c0_214 = arith.constant 0 : index
    %c0_215 = arith.constant 0 : index
    %273 = vector.load %arg7[%c0_214, %c0_215] : memref<1x64xf32, #tpu.memory_space<vmem>>, vector<1x64xf32>
    %cst_216 = arith.constant dense<0.000000e+00> : vector<64xf32>
    %274 = vector.multi_reduction <add>, %271, %cst_216 [0] : vector<64x64xf32> to vector<64xf32>
    %275 = vector.shape_cast %274 : vector<64xf32> to vector<1x64xf32>
    %cst_217 = arith.constant 6.400000e+01 : f32
    %276 = vector.broadcast %cst_217 : f32 to vector<1x64xf32>
    %277 = arith.divf %275, %276 : vector<1x64xf32>
    %278 = vector.broadcast %277 : vector<1x64xf32> to vector<64x64xf32>
    %279 = arith.subf %271, %278 : vector<64x64xf32>
    %280 = arith.mulf %279, %279 : vector<64x64xf32>
    %cst_218 = arith.constant dense<0.000000e+00> : vector<64xf32>
    %281 = vector.multi_reduction <add>, %280, %cst_218 [0] : vector<64x64xf32> to vector<64xf32>
    %282 = vector.shape_cast %281 : vector<64xf32> to vector<1x64xf32>
    %cst_219 = arith.constant 6.400000e+01 : f32
    %283 = vector.broadcast %cst_219 : f32 to vector<1x64xf32>
    %284 = arith.divf %282, %283 : vector<1x64xf32>
    %285 = vector.broadcast %277 : vector<1x64xf32> to vector<64x64xf32>
    %286 = arith.subf %271, %285 : vector<64x64xf32>
    %cst_220 = arith.constant 9.99999974E-6 : f32
    %287 = vector.broadcast %cst_220 : f32 to vector<1x64xf32>
    %288 = arith.addf %284, %287 : vector<1x64xf32>
    %289 = math.rsqrt %288 : vector<1x64xf32>
    %290 = vector.broadcast %289 : vector<1x64xf32> to vector<64x64xf32>
    %291 = arith.mulf %286, %290 : vector<64x64xf32>
    %292 = vector.broadcast %272 : vector<1x64xf32> to vector<64x64xf32>
    %293 = arith.mulf %291, %292 : vector<64x64xf32>
    %294 = vector.broadcast %273 : vector<1x64xf32> to vector<64x64xf32>
    %295 = arith.addf %293, %294 : vector<64x64xf32>
    %cst_221 = arith.constant 0.000000e+00 : f32
    %296 = vector.broadcast %cst_221 : f32 to vector<64x64xf32>
    %297 = arith.maximumf %295, %296 : vector<64x64xf32>
    %298 = vector.shape_cast %297 : vector<64x64xf32> to vector<2x2x2x8x64xf32>
    %c0_222 = arith.constant 0 : index
    %c0_223 = arith.constant 0 : index
    %c0_224 = arith.constant 0 : index
    %c0_225 = arith.constant 0 : index
    %c0_226 = arith.constant 0 : index
    %299 = vector.load %arg12[%c0_222, %c0_223, %c0_224, %c0_225, %c0_226] : memref<2x2x2x8x64xf32, #tpu.memory_space<vmem>>, vector<2x2x2x8x64xf32>
    tpu.vector_store %arg12[%c0_222, %c0_223, %c0_224, %c0_225, %c0_226], %298 {strides = array<i32>} : memref<2x2x2x8x64xf32, #tpu.memory_space<vmem>>, vector<2x2x2x8x64xf32>,
    %c0_227 = arith.constant 0 : index
    %c0_228 = arith.constant 0 : index
    %c0_229 = arith.constant 0 : index
    %c0_230 = arith.constant 0 : index
    %c0_231 = arith.constant 0 : index
    %300 = vector.load %arg12[%c0_227, %c0_228, %c0_229, %c0_230, %c0_231] : memref<2x2x2x8x64xf32, #tpu.memory_space<vmem>>, vector<2x2x1x8x64xf32>
    %301 = vector.shape_cast %300 : vector<2x2x1x8x64xf32> to vector<2x2x8x64xf32>
    %c0_232 = arith.constant 0 : index
    %c0_233 = arith.constant 0 : index
    %c1_234 = arith.constant 1 : index
    %c0_235 = arith.constant 0 : index
    %c0_236 = arith.constant 0 : index
    %302 = vector.load %arg12[%c0_232, %c0_233, %c1_234, %c0_235, %c0_236] : memref<2x2x2x8x64xf32, #tpu.memory_space<vmem>>, vector<2x2x1x8x64xf32>
    %303 = vector.shape_cast %302 : vector<2x2x1x8x64xf32> to vector<2x2x8x64xf32>
    %304 = arith.maximumf %301, %303 : vector<2x2x8x64xf32>
    %c0_237 = arith.constant 0 : index
    %c0_238 = arith.constant 0 : index
    %c0_239 = arith.constant 0 : index
    %c0_240 = arith.constant 0 : index
    %305 = vector.load %arg13[%c0_237, %c0_238, %c0_239, %c0_240] : memref<2x2x8x64xf32, #tpu.memory_space<vmem>>, vector<2x2x8x64xf32>
    tpu.vector_store %arg13[%c0_237, %c0_238, %c0_239, %c0_240], %304 {strides = array<i32>} : memref<2x2x8x64xf32, #tpu.memory_space<vmem>>, vector<2x2x8x64xf32>,
    %c0_241 = arith.constant 0 : index
    %c0_242 = arith.constant 0 : index
    %c0_243 = arith.constant 0 : index
    %c0_244 = arith.constant 0 : index
    %306 = tpu.strided_load %arg13[%c0_241, %c0_242, %c0_243, %c0_244] {strides = array<i32: 1, 1, 2, 1>} : memref<2x2x8x64xf32, #tpu.memory_space<vmem>>, vector<2x2x4x64xf32>
    %c0_245 = arith.constant 0 : index
    %c0_246 = arith.constant 0 : index
    %c1_247 = arith.constant 1 : index
    %c0_248 = arith.constant 0 : index
    %307 = tpu.strided_load %arg13[%c0_245, %c0_246, %c1_247, %c0_248] {strides = array<i32: 1, 1, 2, 1>} : memref<2x2x8x64xf32, #tpu.memory_space<vmem>>, vector<2x2x4x64xf32>
    %308 = arith.maximumf %306, %307 : vector<2x2x4x64xf32>
    %c0_249 = arith.constant 0 : index
    %c0_250 = arith.constant 0 : index
    %c0_251 = arith.constant 0 : index
    %c0_252 = arith.constant 0 : index
    %309 = vector.load %arg8[%c0_249, %c0_250, %c0_251, %c0_252] : memref<2x2x4x64xf32, #tpu.memory_space<vmem>>, vector<2x2x4x64xf32>
    tpu.vector_store %arg8[%c0_249, %c0_250, %c0_251, %c0_252], %308 {strides = array<i32>} : memref<2x2x4x64xf32, #tpu.memory_space<vmem>>, vector<2x2x4x64xf32>,
    return
  }
}

</mosaic_0001>

<bundles_post_ra>
// kernel: cir_forward_fn.1
= control target key start
LH: loop header
LB: loop body
LE: loop exit
PB: predicated region body
PF: predicated region fallthrough
CT: control target
= control target key end

     0   :  { %v8537_v0 = vmov 0   ;;  %vm6463_vm0 = vcmask 261120   ;;  %vm6957_vm5 = vcmask 254976   ;;  %vm7750_vm6 = vcmask 523264   ;;  %s15535_s0 = inlined_call_operand.vmem [shape: f32[2,10,20,1], index: 0, kind: input, shape index: {}]   ;;  %s15536_s2 = inlined_call_operand.vmem [shape: f32[25,32], index: 2, kind: input, shape index: {}]   ;;  %s15537_s1 = inlined_call_operand.vmem [shape: f32[2,10,20,1], index: 1, kind: input, shape index: {}]   ;;  %s15538_s3 = inlined_call_operand.vmem [shape: f32[1,32], index: 3, kind: input, shape index: {}]   ;;  %s15539_s4 = inlined_call_operand.vmem [shape: f32[1,32], index: 4, kind: input, shape index: {}]   ;;  %s15540_s5 = inlined_call_operand.vmem [shape: f32[9,32,64], index: 5, kind: input, shape index: {}]   ;;  %s15541_s6 = inlined_call_operand.vmem [shape: f32[1,64], index: 6, kind: input, shape index: {}]   ;;  %s15542_s7 = inlined_call_operand.vmem [shape: f32[1,64], index: 7, kind: input, shape index: {}]   ;;  %s15543_s8 = inlined_call_operand.vmem [shape: f32[2,2,4,64], index: 8, kind: output, shape index: {}]  }
   0x1   :  { %8522 = vset.pattern.permute.xlu2 %v8537_v0  ;;  %8521 = vset.pattern.permute.xlu1 %v8537_v0  ;;  %v37_v1 = vld [vmem:[%s15535_s0 + $0x30] sm:$0xff]  ;;  %v35_v2 = vld [vmem:[%s15535_s0 + $0x18] sm:$0xff]  ;;  %v33_v3 = vld [vmem:[%s15535_s0] sm:$0xff]  ;;  %vm7911_vm11 = vcmask 519168  }
   0x2   :  { %8520 = vset.pattern.permute.xlu0 %v8537_v0  ;;  %87 = vperm.xlu2 %8522, %v37_v1   ;;  %v38_v4 = vld [vmem:[%s15535_s0 + $0x38] sm:$0xff]  ;;  %v36_v5 = vld [vmem:[%s15535_s0 + $0x20] sm:$0xff]  ;;  %v34_v6 = vld [vmem:[%s15535_s0 + $0x8] sm:$0xff] }
   0x3   :  { %77 = vperm.xlu1 %8521, %v35_v2   ;;  %67 = vperm.xlu0 %8520, %v33_v3   ;;  %v41_v7 = vld [vmem:[%s15535_s0 + $0x60] sm:$0xff]  ;;  %v40_v8 = vld [vmem:[%s15535_s0 + $0x50] sm:$0xff]  ;;  %v39_v9 = vld [vmem:[%s15535_s0 + $0x48] sm:$0xff] }
   0x4   :  { %v44_v10 = vld [vmem:[%s15535_s0 + $0x80] sm:$0xff]  ;;  %v43_v11 = vld [vmem:[%s15535_s0 + $0x78] sm:$0xff]  ;;  %v42_v12 = vld [vmem:[%s15535_s0 + $0x68] sm:$0xff] }
   0x5   :  { %v47_v13 = vld [vmem:[%s15535_s0 + $0xa8] sm:$0xff]  ;;  %v46_v14 = vld [vmem:[%s15535_s0 + $0x98] sm:$0xff]  ;;  %v45_v15 = vld [vmem:[%s15535_s0 + $0x90] sm:$0xff] }
   0x6   :  { %v50_v16 = vld [vmem:[%s15535_s0 + $0xf8] sm:$0xff]  ;;  %v49_v17 = vld [vmem:[%s15535_s0 + $0xf0] sm:$0xff]  ;;  %v53_v19 = vld [vmem:[%s15535_s0 + $0x120] sm:$0xff] }
   0x7   :  { %v48_v18 = vld [vmem:[%s15535_s0 + $0xb0] sm:$0xff]  ;;  %v51_v21 = vld [vmem:[%s15535_s0 + $0x108] sm:$0xff]  ;;  %v56_v22 = vld [vmem:[%s15535_s0 + $0x140] sm:$0xff] }
   0x8   :  { %v52_v20 = vld [vmem:[%s15535_s0 + $0x110] sm:$0xff]  ;;  %v55_v23 = vld [vmem:[%s15535_s0 + $0x138] sm:$0xff]  ;;  %v54_v24 = vld [vmem:[%s15535_s0 + $0x128] sm:$0xff] }
   0x9   :  { %v59_v25 = vld [vmem:[%s15535_s0 + $0x168] sm:$0xff]  ;;  %v58_v26 = vld [vmem:[%s15535_s0 + $0x158] sm:$0xff]  ;;  %v57_v27 = vld [vmem:[%s15535_s0 + $0x150] sm:$0xff] }
   0xa   :  { %92 = vperm.xlu2 %8522, %v38_v4   ;;  %v62_v28 = vld [vmem:[%s15535_s0 + $0x188] sm:$0xff]  ;;  %v61_v29 = vld [vmem:[%s15535_s0 + $0x180] sm:$0xff]  ;;  %v60_v30 = vld [vmem:[%s15535_s0 + $0x170] sm:$0xff] }
   0xb   :  { %82 = vperm.xlu1 %8521, %v36_v5   ;;  %72 = vperm.xlu0 %8520, %v34_v6   ;;  %v290_v31 = vld [vmem:[%s15535_s0 + $0x1] sm:$0xff]  ;;  %v63_v33 = vld [vmem:[%s15535_s0 + $0x198] sm:$0xff]  ;;  %v291_v36 = vld [vmem:[%s15535_s0 + $0x9] sm:$0xff] }
   0xc   :  { %v64_v32 = vld [vmem:[%s15535_s0 + $0x1a0] sm:$0xff]  ;;  %v296_v38 = vld [vmem:[%s15535_s0 + $0x49] sm:$0xff]  ;;  %v294_v40 = vld [vmem:[%s15535_s0 + $0x31] sm:$0xff] }
   0xd   :  { %v293_v34 = vld [vmem:[%s15535_s0 + $0x21] sm:$0xff]  ;;  %v292_v35 = vld [vmem:[%s15535_s0 + $0x19] sm:$0xff]  ;;  %v299_v42 = vld [vmem:[%s15535_s0 + $0x69] sm:$0xff] }
   0xe   :  { %v295_v39 = vld [vmem:[%s15535_s0 + $0x39] sm:$0xff]  ;;  %v298_v43 = vld [vmem:[%s15535_s0 + $0x61] sm:$0xff]  ;;  %v297_v44 = vld [vmem:[%s15535_s0 + $0x51] sm:$0xff] }
   0xf   :  { %v302_v46 = vld [vmem:[%s15535_s0 + $0x91] sm:$0xff]  ;;  %v301_v47 = vld [vmem:[%s15535_s0 + $0x81] sm:$0xff]  ;;  %v300_v48 = vld [vmem:[%s15535_s0 + $0x79] sm:$0xff] }
  0x10   :  { %v305_v52 = vld [vmem:[%s15535_s0 + $0xb1] sm:$0xff]  ;;  %v304_v53 = vld [vmem:[%s15535_s0 + $0xa9] sm:$0xff]  ;;  %v303_v54 = vld [vmem:[%s15535_s0 + $0x99] sm:$0xff] }
  0x11   :  { %v308_v58 = vld [vmem:[%s15535_s0 + $0x109] sm:$0xff]  ;;  %v307_v59 = vld [vmem:[%s15535_s0 + $0xf9] sm:$0xff]  ;;  %v306_v60 = vld [vmem:[%s15535_s0 + $0xf1] sm:$0xff] }
  0x12   :  { %107 = vperm.xlu2 %8522, %v41_v7   ;;  %v311_v0 = vld [vmem:[%s15535_s0 + $0x129] sm:$0xff]  ;;  %v310_v1 = vld [vmem:[%s15535_s0 + $0x121] sm:$0xff]  ;;  %v309_v2 = vld [vmem:[%s15535_s0 + $0x111] sm:$0xff] }
  0x13   :  { %102 = vperm.xlu1 %8521, %v40_v8   ;;  %97 = vperm.xlu0 %8520, %v39_v9   ;;  %v314_v6 = vld [vmem:[%s15535_s0 + $0x151] sm:$0xff]  ;;  %v313_v7 = vld [vmem:[%s15535_s0 + $0x141] sm:$0xff]  ;;  %v312_v8 = vld [vmem:[%s15535_s0 + $0x139] sm:$0xff] }
  0x1a   :  { %122 = vperm.xlu2 %8522, %v44_v10  }
  0x1b   :  { %117 = vperm.xlu1 %8521, %v43_v11   ;;  %112 = vperm.xlu0 %8520, %v42_v12   ;;  %v317_v12 = vld [vmem:[%s15535_s0 + $0x171] sm:$0xff] }
  0x22   :  { %137 = vperm.xlu2 %8522, %v47_v13   ;;  %v316_v13 = vld [vmem:[%s15535_s0 + $0x169] sm:$0xff] }
  0x23   :  { %132 = vperm.xlu1 %8521, %v46_v14   ;;  %127 = vperm.xlu0 %8520, %v45_v15   ;;  %v315_v14 = vld [vmem:[%s15535_s0 + $0x159] sm:$0xff] }
  0x2a   :  { %152 = vperm.xlu2 %8522, %v50_v16  }
  0x2b   :  { %147 = vperm.xlu1 %8521, %v49_v17   ;;  %142 = vperm.xlu0 %8520, %v48_v18   ;;  %v320_v18 = vld [vmem:[%s15535_s0 + $0x199] sm:$0xff] }
  0x32   :  { %167 = vperm.xlu2 %8522, %v53_v19   ;;  %v319_v19 = vld [vmem:[%s15535_s0 + $0x189] sm:$0xff] }
  0x33   :  { %162 = vperm.xlu1 %8521, %v52_v20   ;;  %157 = vperm.xlu0 %8520, %v51_v21   ;;  %v318_v20 = vld [vmem:[%s15535_s0 + $0x181] sm:$0xff] }
  0x3a   :  { %182 = vperm.xlu2 %8522, %v56_v22  }
  0x3b   :  { %177 = vperm.xlu1 %8521, %v55_v23   ;;  %172 = vperm.xlu0 %8520, %v54_v24   ;;  %v548_v24 = vld [vmem:[%s15535_s0 + $0xa] sm:$0xff] }
  0x42   :  { %197 = vperm.xlu2 %8522, %v59_v25   ;;  %v547_v25 = vld [vmem:[%s15535_s0 + $0x2] sm:$0xff] }
  0x43   :  { %192 = vperm.xlu1 %8521, %v58_v26   ;;  %187 = vperm.xlu0 %8520, %v57_v27   ;;  %v321_v26 = vld [vmem:[%s15535_s0 + $0x1a1] sm:$0xff] }
  0x4a   :  { %212 = vperm.xlu2 %8522, %v62_v28  }
  0x4b   :  { %207 = vperm.xlu1 %8521, %v61_v29   ;;  %202 = vperm.xlu0 %8520, %v60_v30   ;;  %v551_v30 = vld [vmem:[%s15535_s0 + $0x32] sm:$0xff] }
  0x52   :  { %324 = vperm.xlu2 %8522, %v290_v31   ;;  %v550_v31 = vld [vmem:[%s15535_s0 + $0x22] sm:$0xff] }
  0x53   :  { %222 = vperm.xlu1 %8521, %v64_v32   ;;  %217 = vperm.xlu0 %8520, %v63_v33   ;;  %v549_v32 = vld [vmem:[%s15535_s0 + $0x1a] sm:$0xff] }
  0x5a   :  { %339 = vperm.xlu2 %8522, %v293_v34  }
  0x5b   :  { %334 = vperm.xlu1 %8521, %v292_v35   ;;  %329 = vperm.xlu0 %8520, %v291_v36   ;;  %v554_v36 = vld [vmem:[%s15535_s0 + $0x52] sm:$0xff] }
  0x5c   :  { %v8694_v37 = vpop.permute.xlu2 %87 }
  0x62   :  { %354 = vperm.xlu2 %8522, %v296_v38   ;;  %v553_v38 = vld [vmem:[%s15535_s0 + $0x4a] sm:$0xff] }
  0x63   :  { %349 = vperm.xlu1 %8521, %v295_v39   ;;  %344 = vperm.xlu0 %8520, %v294_v40   ;;  %v552_v39 = vld [vmem:[%s15535_s0 + $0x3a] sm:$0xff] }
  0x64   :  { %v8705_v41 = vpop.permute.xlu2 %92 }
  0x6a   :  { %369 = vperm.xlu2 %8522, %v299_v42  }
  0x6b   :  { %364 = vperm.xlu1 %8521, %v298_v43   ;;  %359 = vperm.xlu0 %8520, %v297_v44   ;;  %v557_v44 = vld [vmem:[%s15535_s0 + $0x7a] sm:$0xff] }
  0x6c   :  { %v8716_v45 = vpop.permute.xlu2 %107 }
  0x72   :  { %384 = vperm.xlu2 %8522, %v302_v46   ;;  %v556_v46 = vld [vmem:[%s15535_s0 + $0x6a] sm:$0xff] }
  0x73   :  { %379 = vperm.xlu1 %8521, %v301_v47   ;;  %374 = vperm.xlu0 %8520, %v300_v48   ;;  %v555_v47 = vld [vmem:[%s15535_s0 + $0x62] sm:$0xff] }
  0x74   :  { %v8727_v49 = vpop.permute.xlu2 %122 }
  0x75   :  { %v8729_v50 = vpop.permute.xlu1 %77  ;;  %v8731_v51 = vpop.permute.xlu0 %67 }
  0x7a   :  { %399 = vperm.xlu2 %8522, %v305_v52  }
  0x7b   :  { %394 = vperm.xlu1 %8521, %v304_v53   ;;  %389 = vperm.xlu0 %8520, %v303_v54   ;;  %v560_v54 = vld [vmem:[%s15535_s0 + $0x9a] sm:$0xff] }
  0x7c   :  { %v8742_v55 = vpop.permute.xlu2 %137 }
  0x7d   :  { %v8744_v56 = vpop.permute.xlu1 %82  ;;  %v8746_v57 = vpop.permute.xlu0 %72 }
  0x82   :  { %414 = vperm.xlu2 %8522, %v308_v58   ;;  %v559_v58 = vld [vmem:[%s15535_s0 + $0x92] sm:$0xff] }
  0x83   :  { %409 = vperm.xlu1 %8521, %v307_v59   ;;  %404 = vperm.xlu0 %8520, %v306_v60   ;;  %v558_v59 = vld [vmem:[%s15535_s0 + $0x82] sm:$0xff] }
  0x84   :  { %v8757_v61 = vpop.permute.xlu2 %152 }
  0x85   :  { %v8759_v62 = vpop.permute.xlu1 %102  ;;  %v8761_v63 = vpop.permute.xlu0 %97 }
  0x8a   :  { %429 = vperm.xlu2 %8522, %v311_v0  }
  0x8b   :  { %424 = vperm.xlu1 %8521, %v310_v1   ;;  %419 = vperm.xlu0 %8520, %v309_v2   ;;  %v563_v2 = vld [vmem:[%s15535_s0 + $0xf2] sm:$0xff] }
  0x8c   :  { %v8772_v3 = vpop.permute.xlu2 %167 }
  0x8d   :  { %v8774_v4 = vpop.permute.xlu1 %117  ;;  %v8776_v5 = vpop.permute.xlu0 %112 }
  0x92   :  { %444 = vperm.xlu2 %8522, %v314_v6   ;;  %v562_v6 = vld [vmem:[%s15535_s0 + $0xb2] sm:$0xff] }
  0x93   :  { %439 = vperm.xlu1 %8521, %v313_v7   ;;  %434 = vperm.xlu0 %8520, %v312_v8   ;;  %v561_v7 = vld [vmem:[%s15535_s0 + $0xaa] sm:$0xff] }
  0x94   :  { %v8787_v9 = vpop.permute.xlu2 %182 }
  0x95   :  { %15595 = vst [vmem:[#allocation7_spill] sm:$0xff] %v8787_v9  ;;  %v8789_v10 = vpop.permute.xlu1 %132  ;;  %v8791_v11 = vpop.permute.xlu0 %127 }
  0x9a   :  { %459 = vperm.xlu2 %8522, %v317_v12  }
  0x9b   :  { %454 = vperm.xlu1 %8521, %v316_v13   ;;  %449 = vperm.xlu0 %8520, %v315_v14   ;;  %v566_v14 = vld [vmem:[%s15535_s0 + $0x112] sm:$0xff] }
  0x9c   :  { %v8802_v15 = vpop.permute.xlu2 %197 }
  0x9d   :  { %15596 = vst [vmem:[#allocation8_spill] sm:$0xff] %v8802_v15  ;;  %v8804_v16 = vpop.permute.xlu1 %147  ;;  %v8806_v17 = vpop.permute.xlu0 %142  ;;  %v821_v15 = vld [vmem:[%s15535_s0 + $0xfb] sm:$0xff] }
  0xa2   :  { %474 = vperm.xlu2 %8522, %v320_v18   ;;  %v565_v18 = vld [vmem:[%s15535_s0 + $0x10a] sm:$0xff] }
  0xa3   :  { %469 = vperm.xlu1 %8521, %v319_v19   ;;  %464 = vperm.xlu0 %8520, %v318_v20   ;;  %v564_v19 = vld [vmem:[%s15535_s0 + $0xfa] sm:$0xff] }
  0xa4   :  { %v8817_v21 = vpop.permute.xlu2 %212 }
  0xa5   :  { %15597 = vst [vmem:[#allocation9_spill] sm:$0xff] %v8817_v21  ;;  %v8819_v22 = vpop.permute.xlu1 %162  ;;  %v8821_v23 = vpop.permute.xlu0 %157  ;;  %v817_v21 = vld [vmem:[%s15535_s0 + $0x9b] sm:$0xff] }
  0xaa   :  { %586 = vperm.xlu2 %8522, %v548_v24  }
  0xab   :  { %581 = vperm.xlu1 %8521, %v547_v25   ;;  %479 = vperm.xlu0 %8520, %v321_v26   ;;  %v569_v26 = vld [vmem:[%s15535_s0 + $0x13a] sm:$0xff] }
  0xac   :  { %v8832_v27 = vpop.permute.xlu2 %324 }
  0xad   :  { %v8834_v28 = vpop.permute.xlu1 %177  ;;  %v8836_v29 = vpop.permute.xlu0 %172 }
  0xb2   :  { %601 = vperm.xlu2 %8522, %v551_v30   ;;  %v568_v30 = vld [vmem:[%s15535_s0 + $0x12a] sm:$0xff] }
  0xb3   :  { %596 = vperm.xlu1 %8521, %v550_v31   ;;  %591 = vperm.xlu0 %8520, %v549_v32   ;;  %v567_v31 = vld [vmem:[%s15535_s0 + $0x122] sm:$0xff] }
  0xb4   :  { %v8847_v33 = vpop.permute.xlu2 %339 }
  0xb5   :  { %v8849_v34 = vpop.permute.xlu1 %192  ;;  %v8851_v35 = vpop.permute.xlu0 %187 }
  0xb6   :  { %15598 = vst [vmem:[#allocation10_spill] sm:$0xff] %v8849_v34  ;;  %v820_v34 = vld [vmem:[%s15535_s0 + $0xf3] sm:$0xff] }
  0xb7   :  { %15599 = vst [vmem:[#allocation11_spill] sm:$0xff] %v8851_v35  ;;  %v824_v35 = vld [vmem:[%s15535_s0 + $0x123] sm:$0xff] }
  0xba   :  { %616 = vperm.xlu2 %8522, %v554_v36  }
  0xbb   :  { %611 = vperm.xlu1 %8521, %v553_v38   ;;  %606 = vperm.xlu0 %8520, %v552_v39   ;;  %v572_v39 = vld [vmem:[%s15535_s0 + $0x15a] sm:$0xff] }
  0xbc   :  { %v8862_v40 = vpop.permute.xlu2 %354 }
  0xbd   :  { %v8864_v42 = vpop.permute.xlu1 %207  ;;  %v8866_v43 = vpop.permute.xlu0 %202 }
  0xbe   :  { %15600 = vst [vmem:[#allocation12_spill] sm:$0xff] %v8864_v42  ;;  %v815_v42 = vld [vmem:[%s15535_s0 + $0x83] sm:$0xff] }
  0xbf   :  { %15601 = vst [vmem:[#allocation13_spill] sm:$0xff] %v8866_v43  ;;  %v811_v43 = vld [vmem:[%s15535_s0 + $0x53] sm:$0xff] }
  0xc2   :  { %631 = vperm.xlu2 %8522, %v557_v44   ;;  %v571_v44 = vld [vmem:[%s15535_s0 + $0x152] sm:$0xff] }
  0xc3   :  { %626 = vperm.xlu1 %8521, %v556_v46   ;;  %621 = vperm.xlu0 %8520, %v555_v47   ;;  %v570_v46 = vld [vmem:[%s15535_s0 + $0x142] sm:$0xff] }
  0xc4   :  { %v8877_v48 = vpop.permute.xlu2 %369 }
  0xc5   :  { %v8879_v52 = vpop.permute.xlu1 %222  ;;  %v8881_v53 = vpop.permute.xlu0 %217 }
  0xc6   :  { %15602 = vst [vmem:[#allocation14_spill] sm:$0xff] %v8879_v52  ;;  %v812_v52 = vld [vmem:[%s15535_s0 + $0x63] sm:$0xff] }
  0xc7   :  { %15603 = vst [vmem:[#allocation15_spill] sm:$0xff] %v8881_v53 }
  0xca   :  { %646 = vperm.xlu2 %8522, %v560_v54  }
  0xcb   :  { %641 = vperm.xlu1 %8521, %v559_v58   ;;  %636 = vperm.xlu0 %8520, %v558_v59   ;;  %v575_v59 = vld [vmem:[%s15535_s0 + $0x182] sm:$0xff] }
  0xcc   :  { %v8892_v60 = vpop.permute.xlu2 %384 }
  0xcd   :  { %v8894_v0 = vpop.permute.xlu1 %334  ;;  %v8896_v1 = vpop.permute.xlu0 %329 }
  0xd2   :  { %661 = vperm.xlu2 %8522, %v563_v2   ;;  %v574_v2 = vld [vmem:[%s15535_s0 + $0x172] sm:$0xff] }
  0xd3   :  { %656 = vperm.xlu1 %8521, %v562_v6   ;;  %651 = vperm.xlu0 %8520, %v561_v7   ;;  %v573_v6 = vld [vmem:[%s15535_s0 + $0x16a] sm:$0xff] }
  0xd4   :  { %v8907_v8 = vpop.permute.xlu2 %399 }
  0xd5   :  { %v8909_v12 = vpop.permute.xlu1 %349  ;;  %v8911_v13 = vpop.permute.xlu0 %344 }
  0xda   :  { %676 = vperm.xlu2 %8522, %v566_v14  }
  0xdb   :  { %671 = vperm.xlu1 %8521, %v565_v18   ;;  %666 = vperm.xlu0 %8520, %v564_v19   ;;  %v578_v19 = vld [vmem:[%s15535_s0 + $0x1a2] sm:$0xff] }
  0xdc   :  { %v8922_v20 = vpop.permute.xlu2 %414 }
  0xdd   :  { %v8924_v24 = vpop.permute.xlu1 %364  ;;  %v8926_v25 = vpop.permute.xlu0 %359 }
  0xe2   :  { %691 = vperm.xlu2 %8522, %v569_v26   ;;  %v577_v26 = vld [vmem:[%s15535_s0 + $0x19a] sm:$0xff] }
  0xe3   :  { %686 = vperm.xlu1 %8521, %v568_v30   ;;  %681 = vperm.xlu0 %8520, %v567_v31   ;;  %v576_v30 = vld [vmem:[%s15535_s0 + $0x18a] sm:$0xff] }
  0xe4   :  { %v8937_v32 = vpop.permute.xlu2 %429 }
  0xe5   :  { %v8939_v36 = vpop.permute.xlu1 %379  ;;  %v8941_v38 = vpop.permute.xlu0 %374 }
  0xea   :  { %706 = vperm.xlu2 %8522, %v572_v39  }
  0xeb   :  { %701 = vperm.xlu1 %8521, %v571_v44   ;;  %696 = vperm.xlu0 %8520, %v570_v46   ;;  %v806_v46 = vld [vmem:[%s15535_s0 + $0x1b] sm:$0xff] }
  0xec   :  { %v8952_v47 = vpop.permute.xlu2 %444 }
  0xed   :  { %15604 = vst [vmem:[#allocation16_spill] sm:$0xff] %v8952_v47  ;;  %v8954_v54 = vpop.permute.xlu1 %394  ;;  %v8956_v58 = vpop.permute.xlu0 %389  ;;  %v823_v47 = vld [vmem:[%s15535_s0 + $0x113] sm:$0xff] }
  0xf2   :  { %721 = vperm.xlu2 %8522, %v575_v59   ;;  %v805_v59 = vld [vmem:[%s15535_s0 + $0xb] sm:$0xff] }
  0xf3   :  { %716 = vperm.xlu1 %8521, %v574_v2   ;;  %711 = vperm.xlu0 %8520, %v573_v6   ;;  %v804_v2 = vld [vmem:[%s15535_s0 + $0x3] sm:$0xff] }
  0xf4   :  { %v8967_v7 = vpop.permute.xlu2 %459 }
  0xf5   :  { %15605 = vst [vmem:[#allocation17_spill] sm:$0xff] %v8967_v7  ;;  %v8969_v14 = vpop.permute.xlu1 %409  ;;  %v8971_v18 = vpop.permute.xlu0 %404  ;;  %v814_v7 = vld [vmem:[%s15535_s0 + $0x7b] sm:$0xff] }
  0xfa   :  { %736 = vperm.xlu2 %8522, %v578_v19  }
  0xfb   :  { %731 = vperm.xlu1 %8521, %v577_v26   ;;  %726 = vperm.xlu0 %8520, %v576_v30   ;;  %v809_v30 = vld [vmem:[%s15535_s0 + $0x3b] sm:$0xff] }
  0xfc   :  { %v8982_v31 = vpop.permute.xlu2 %474 }
  0xfd   :  { %15606 = vst [vmem:[#allocation18_spill] sm:$0xff] %v8982_v31  ;;  %v8984_v39 = vpop.permute.xlu1 %424  ;;  %v8986_v44 = vpop.permute.xlu0 %419  ;;  %v808_v31 = vld [vmem:[%s15535_s0 + $0x33] sm:$0xff] }
 0x102   :  { %848 = vperm.xlu2 %8522, %v806_v46   ;;  %v807_v46 = vld [vmem:[%s15535_s0 + $0x23] sm:$0xff] }
 0x103   :  { %843 = vperm.xlu1 %8521, %v805_v59   ;;  %838 = vperm.xlu0 %8520, %v804_v2  }
 0x104   :  { %v8997_v6 = vpop.permute.xlu2 %586 }
 0x105   :  { %v8999_v19 = vpop.permute.xlu1 %439  ;;  %v9001_v26 = vpop.permute.xlu0 %434 }
 0x106   :  { %15607 = vst [vmem:[#allocation19_spill] sm:$0xff] %v8999_v19  ;;  %v827_v19 = vld [vmem:[%s15535_s0 + $0x143] sm:$0xff] }
 0x10a   :  { %863 = vperm.xlu2 %8522, %v809_v30   ;;  %v810_v30 = vld [vmem:[%s15535_s0 + $0x4b] sm:$0xff] }
 0x10b   :  { %858 = vperm.xlu1 %8521, %v808_v31   ;;  %853 = vperm.xlu0 %8520, %v807_v46  }
 0x10c   :  { %v9012_v59 = vpop.permute.xlu2 %601 }
 0x10d   :  { %v9014_v2 = vpop.permute.xlu1 %454  ;;  %v9016_v53 = vpop.permute.xlu0 %449 }
 0x10e   :  { %15608 = vst [vmem:[#allocation20_spill] sm:$0xff] %v9014_v2 }
 0x10f   :  { %15609 = vst [vmem:[#allocation21_spill] sm:$0xff] %v9016_v53 }
 0x112   :  { %878 = vperm.xlu2 %8522, %v812_v52   ;;  %v813_v52 = vld [vmem:[%s15535_s0 + $0x6b] sm:$0xff] }
 0x113   :  { %873 = vperm.xlu1 %8521, %v811_v43   ;;  %868 = vperm.xlu0 %8520, %v810_v30  }
 0x114   :  { %v9027_v31 = vpop.permute.xlu2 %616 }
 0x115   :  { %v9029_v46 = vpop.permute.xlu1 %469  ;;  %v9031_v2 = vpop.permute.xlu0 %464 }
 0x116   :  { %15610 = vst [vmem:[#allocation22_spill] sm:$0xff] %v9029_v46  ;;  %v818_v46 = vld [vmem:[%s15535_s0 + $0xab] sm:$0xff] }
 0x117   :  { %15611 = vst [vmem:[#allocation23_spill] sm:$0xff] %v9031_v2 }
 0x11a   :  { %893 = vperm.xlu2 %8522, %v815_v42   ;;  %v816_v42 = vld [vmem:[%s15535_s0 + $0x93] sm:$0xff] }
 0x11b   :  { %888 = vperm.xlu1 %8521, %v814_v7   ;;  %883 = vperm.xlu0 %8520, %v813_v52  }
 0x11c   :  { %v9042_v43 = vpop.permute.xlu2 %631 }
 0x11d   :  { %v9044_v30 = vpop.permute.xlu1 %581  ;;  %v9046_v2 = vpop.permute.xlu0 %479 }
 0x11e   :  { %15612 = vst [vmem:[#allocation24_spill] sm:$0xff] %v9046_v2 }
 0x122   :  { %908 = vperm.xlu2 %8522, %v818_v46   ;;  %v819_v46 = vld [vmem:[%s15535_s0 + $0xb3] sm:$0xff] }
 0x123   :  { %903 = vperm.xlu1 %8521, %v817_v21   ;;  %898 = vperm.xlu0 %8520, %v816_v42  }
 0x124   :  { %v9057_v7 = vpop.permute.xlu2 %646 }
 0x125   :  { %v9059_v52 = vpop.permute.xlu1 %596  ;;  %v9061_v2 = vpop.permute.xlu0 %591 }
 0x126   :  { %15613 = vst [vmem:[#allocation25_spill] sm:$0xff] %v9059_v52 }
 0x127   :  { %15614 = vst [vmem:[#allocation26_spill] sm:$0xff] %v9061_v2 }
 0x12a   :  { %923 = vperm.xlu2 %8522, %v821_v15   ;;  %v822_v15 = vld [vmem:[%s15535_s0 + $0x10b] sm:$0xff] }
 0x12b   :  { %918 = vperm.xlu1 %8521, %v820_v34   ;;  %913 = vperm.xlu0 %8520, %v819_v46  }
 0x12c   :  { %v9072_v21 = vpop.permute.xlu2 %661 }
 0x12d   :  { %15615 = vst [vmem:[#allocation27_spill] sm:$0xff] %v9072_v21  ;;  %v9074_v42 = vpop.permute.xlu1 %611  ;;  %v9076_v53 = vpop.permute.xlu0 %606 }
 0x12e   :  { %15616 = vst [vmem:[#allocation28_spill] sm:$0xff] %v9074_v42 }
 0x12f   :  { %15617 = vst [vmem:[#allocation29_spill] sm:$0xff] %v9076_v53  ;;  %v826_v53 = vld [vmem:[%s15535_s0 + $0x13b] sm:$0xff] }
 0x132   :  { %938 = vperm.xlu2 %8522, %v824_v35   ;;  %v825_v35 = vld [vmem:[%s15535_s0 + $0x12b] sm:$0xff] }
 0x133   :  { %933 = vperm.xlu1 %8521, %v823_v47   ;;  %928 = vperm.xlu0 %8520, %v822_v15  }
 0x134   :  { %v9087_v34 = vpop.permute.xlu2 %676 }
 0x135   :  { %15618 = vst [vmem:[#allocation30_spill] sm:$0xff] %v9087_v34  ;;  %v9089_v46 = vpop.permute.xlu1 %626  ;;  %v9091_v9 = vpop.permute.xlu0 %621  ;;  %v829_v34 = vld [vmem:[%s15535_s0 + $0x15b] sm:$0xff] }
 0x136   :  { %15619 = vst [vmem:[#allocation31_spill] sm:$0xff] %v9089_v46  ;;  %v830_v46 = vld [vmem:[%s15535_s0 + $0x16b] sm:$0xff] }
 0x137   :  { %15620 = vst [vmem:[#allocation32_spill] sm:$0xff] %v9091_v9 }
 0x13a   :  { %953 = vperm.xlu2 %8522, %v827_v19   ;;  %v828_v19 = vld [vmem:[%s15535_s0 + $0x153] sm:$0xff] }
 0x13b   :  { %948 = vperm.xlu1 %8521, %v826_v53   ;;  %943 = vperm.xlu0 %8520, %v825_v35  }
 0x13c   :  { %v9102_v47 = vpop.permute.xlu2 %691 }
 0x13d   :  { %15621 = vst [vmem:[#allocation33_spill] sm:$0xff] %v9102_v47  ;;  %v9104_v15 = vpop.permute.xlu1 %641  ;;  %v9106_v9 = vpop.permute.xlu0 %636  ;;  %v832_v47 = vld [vmem:[%s15535_s0 + $0x183] sm:$0xff] }
 0x13e   :  { %15622 = vst [vmem:[#allocation34_spill] sm:$0xff] %v9104_v15  ;;  %v833_v15 = vld [vmem:[%s15535_s0 + $0x18b] sm:$0xff] }
 0x13f   :  { %15623 = vst [vmem:[#allocation35_spill] sm:$0xff] %v9106_v9 }
 0x142   :  { %968 = vperm.xlu2 %8522, %v830_v46   ;;  %v831_v46 = vld [vmem:[%s15535_s0 + $0x173] sm:$0xff] }
 0x143   :  { %963 = vperm.xlu1 %8521, %v829_v34   ;;  %958 = vperm.xlu0 %8520, %v828_v19  }
 0x144   :  { %v9117_v53 = vpop.permute.xlu2 %706 }
 0x145   :  { %15624 = vst [vmem:[#allocation36_spill] sm:$0xff] %v9117_v53  ;;  %v9119_v35 = vpop.permute.xlu1 %656  ;;  %v9121_v9 = vpop.permute.xlu0 %651 }
 0x146   :  { %15625 = vst [vmem:[#allocation37_spill] sm:$0xff] %v9119_v35  ;;  %v835_v35 = vld [vmem:[%s15535_s0 + $0x1a3] sm:$0xff] }
 0x147   :  { %15626 = vst [vmem:[#allocation38_spill] sm:$0xff] %v9121_v9  ;;  %v1061_v9 = vld [vmem:[%s15535_s0 + $0x4] sm:$0xff] }
 0x14a   :  { %983 = vperm.xlu2 %8522, %v833_v15   ;;  %v834_v15 = vld [vmem:[%s15535_s0 + $0x19b] sm:$0xff] }
 0x14b   :  { %978 = vperm.xlu1 %8521, %v832_v47   ;;  %973 = vperm.xlu0 %8520, %v831_v46  }
 0x14c   :  { %v9132_v34 = vpop.permute.xlu2 %721 }
 0x14d   :  { %15627 = vst [vmem:[#allocation39_spill] sm:$0xff] %v9132_v34  ;;  %v9134_v19 = vpop.permute.xlu1 %671  ;;  %v9136_v53 = vpop.permute.xlu0 %666 }
 0x14e   :  { %15628 = vst [vmem:[#allocation40_spill] sm:$0xff] %v9134_v19  ;;  %v1063_v19 = vld [vmem:[%s15535_s0 + $0x1c] sm:$0xff] }
 0x14f   :  { %15629 = vst [vmem:[#allocation41_spill] sm:$0xff] %v9136_v53  ;;  %v1064_v53 = vld [vmem:[%s15535_s0 + $0x24] sm:$0xff] }
 0x152   :  { %1095 = vperm.xlu2 %8522, %v1061_v9   ;;  %v1062_v9 = vld [vmem:[%s15535_s0 + $0xc] sm:$0xff] }
 0x153   :  { %993 = vperm.xlu1 %8521, %v835_v35   ;;  %988 = vperm.xlu0 %8520, %v834_v15  }
 0x154   :  { %v9147_v47 = vpop.permute.xlu2 %736 }
 0x155   :  { %15630 = vst [vmem:[#allocation42_spill] sm:$0xff] %v9147_v47  ;;  %v9149_v46 = vpop.permute.xlu1 %686  ;;  %v9151_v34 = vpop.permute.xlu0 %681 }
 0x156   :  { %15631 = vst [vmem:[#allocation43_spill] sm:$0xff] %v9149_v46  ;;  %v1066_v46 = vld [vmem:[%s15535_s0 + $0x3c] sm:$0xff] }
 0x157   :  { %15632 = vst [vmem:[#allocation44_spill] sm:$0xff] %v9151_v34  ;;  %v1067_v34 = vld [vmem:[%s15535_s0 + $0x4c] sm:$0xff] }
 0x15a   :  { %1110 = vperm.xlu2 %8522, %v1064_v53   ;;  %v1065_v53 = vld [vmem:[%s15535_s0 + $0x34] sm:$0xff] }
 0x15b   :  { %1105 = vperm.xlu1 %8521, %v1063_v19   ;;  %1100 = vperm.xlu0 %8520, %v1062_v9  }
 0x15c   :  { %v9162_v35 = vpop.permute.xlu2 %848 }
 0x15d   :  { %15633 = vst [vmem:[#allocation45_spill] sm:$0xff] %v9162_v35  ;;  %v9164_v15 = vpop.permute.xlu1 %701  ;;  %v9166_v47 = vpop.permute.xlu0 %696  ;;  %v1069_v35 = vld [vmem:[%s15535_s0 + $0x64] sm:$0xff] }
 0x15e   :  { %15634 = vst [vmem:[#allocation46_spill] sm:$0xff] %v9164_v15 }
 0x15f   :  { %15635 = vst [vmem:[#allocation47_spill] sm:$0xff] %v9166_v47  ;;  %v1070_v47 = vld [vmem:[%s15535_s0 + $0x6c] sm:$0xff] }
 0x162   :  { %1125 = vperm.xlu2 %8522, %v1067_v34   ;;  %v1068_v34 = vld [vmem:[%s15535_s0 + $0x54] sm:$0xff] }
 0x163   :  { %1120 = vperm.xlu1 %8521, %v1066_v46   ;;  %1115 = vperm.xlu0 %8520, %v1065_v53  }
 0x164   :  { %v9177_v19 = vpop.permute.xlu2 %863 }
 0x165   :  { %15636 = vst [vmem:[#allocation48_spill] sm:$0xff] %v9177_v19  ;;  %v9179_v9 = vpop.permute.xlu1 %716  ;;  %v9181_v15 = vpop.permute.xlu0 %711  ;;  %v1072_v19 = vld [vmem:[%s15535_s0 + $0x84] sm:$0xff] }
 0x166   :  { %15637 = vst [vmem:[#allocation49_spill] sm:$0xff] %v9179_v9  ;;  %v1073_v9 = vld [vmem:[%s15535_s0 + $0x94] sm:$0xff] }
 0x167   :  { %15638 = vst [vmem:[#allocation50_spill] sm:$0xff] %v9181_v15 }
 0x16a   :  { %1140 = vperm.xlu2 %8522, %v1070_v47   ;;  %v1071_v47 = vld [vmem:[%s15535_s0 + $0x7c] sm:$0xff] }
 0x16b   :  { %1135 = vperm.xlu1 %8521, %v1069_v35   ;;  %1130 = vperm.xlu0 %8520, %v1068_v34  }
 0x16c   :  { %v9192_v46 = vpop.permute.xlu2 %878 }
 0x16d   :  { %15639 = vst [vmem:[#allocation51_spill] sm:$0xff] %v9192_v46  ;;  %v9194_v53 = vpop.permute.xlu1 %731  ;;  %v9196_v15 = vpop.permute.xlu0 %726  ;;  %v1075_v46 = vld [vmem:[%s15535_s0 + $0xac] sm:$0xff] }
 0x16e   :  { %15640 = vst [vmem:[#allocation52_spill] sm:$0xff] %v9194_v53  ;;  %v1076_v53 = vld [vmem:[%s15535_s0 + $0xb4] sm:$0xff] }
 0x16f   :  { %15641 = vst [vmem:[#allocation53_spill] sm:$0xff] %v9196_v15 }
 0x172   :  { %1155 = vperm.xlu2 %8522, %v1073_v9   ;;  %v1074_v9 = vld [vmem:[%s15535_s0 + $0x9c] sm:$0xff] }
 0x173   :  { %1150 = vperm.xlu1 %8521, %v1072_v19   ;;  %1145 = vperm.xlu0 %8520, %v1071_v47  }
 0x174   :  { %v9207_v35 = vpop.permute.xlu2 %893 }
 0x175   :  { %15642 = vst [vmem:[#allocation54_spill] sm:$0xff] %v9207_v35  ;;  %v9209_v34 = vpop.permute.xlu1 %843  ;;  %v9211_v15 = vpop.permute.xlu0 %838  ;;  %v1078_v35 = vld [vmem:[%s15535_s0 + $0xfc] sm:$0xff] }
 0x176   :  { %15643 = vst [vmem:[#allocation55_spill] sm:$0xff] %v9209_v34  ;;  %v1079_v34 = vld [vmem:[%s15535_s0 + $0x10c] sm:$0xff] }
 0x177   :  { %15644 = vst [vmem:[#allocation56_spill] sm:$0xff] %v9211_v15 }
 0x17a   :  { %1170 = vperm.xlu2 %8522, %v1076_v53   ;;  %v1077_v53 = vld [vmem:[%s15535_s0 + $0xf4] sm:$0xff] }
 0x17b   :  { %1165 = vperm.xlu1 %8521, %v1075_v46   ;;  %1160 = vperm.xlu0 %8520, %v1074_v9  }
 0x17c   :  { %v9222_v19 = vpop.permute.xlu2 %908 }
 0x17d   :  { %15645 = vst [vmem:[#allocation57_spill] sm:$0xff] %v9222_v19  ;;  %v9224_v47 = vpop.permute.xlu1 %858  ;;  %v9226_v15 = vpop.permute.xlu0 %853  ;;  %v1081_v19 = vld [vmem:[%s15535_s0 + $0x124] sm:$0xff] }
 0x17e   :  { %15646 = vst [vmem:[#allocation58_spill] sm:$0xff] %v9224_v47  ;;  %v1082_v47 = vld [vmem:[%s15535_s0 + $0x12c] sm:$0xff] }
 0x17f   :  { %15647 = vst [vmem:[#allocation59_spill] sm:$0xff] %v9226_v15 }
 0x182   :  { %1185 = vperm.xlu2 %8522, %v1079_v34   ;;  %v1080_v34 = vld [vmem:[%s15535_s0 + $0x114] sm:$0xff] }
 0x183   :  { %1180 = vperm.xlu1 %8521, %v1078_v35   ;;  %1175 = vperm.xlu0 %8520, %v1077_v53  }
 0x184   :  { %v9237_v46 = vpop.permute.xlu2 %923 }
 0x185   :  { %15648 = vst [vmem:[#allocation60_spill] sm:$0xff] %v9237_v46  ;;  %v9239_v9 = vpop.permute.xlu1 %873  ;;  %v9241_v15 = vpop.permute.xlu0 %868  ;;  %v1084_v46 = vld [vmem:[%s15535_s0 + $0x144] sm:$0xff] }
 0x186   :  { %15649 = vst [vmem:[#allocation61_spill] sm:$0xff] %v9239_v9  ;;  %v1085_v9 = vld [vmem:[%s15535_s0 + $0x154] sm:$0xff] }
 0x187   :  { %15650 = vst [vmem:[#allocation62_spill] sm:$0xff] %v9241_v15 }
 0x18a   :  { %1200 = vperm.xlu2 %8522, %v1082_v47   ;;  %v1083_v47 = vld [vmem:[%s15535_s0 + $0x13c] sm:$0xff] }
 0x18b   :  { %1195 = vperm.xlu1 %8521, %v1081_v19   ;;  %1190 = vperm.xlu0 %8520, %v1080_v34  }
 0x18c   :  { %v9252_v35 = vpop.permute.xlu2 %938 }
 0x18d   :  { %15651 = vst [vmem:[#allocation63_spill] sm:$0xff] %v9252_v35  ;;  %v9254_v53 = vpop.permute.xlu1 %888  ;;  %v9256_v15 = vpop.permute.xlu0 %883  ;;  %v1087_v35 = vld [vmem:[%s15535_s0 + $0x16c] sm:$0xff] }
 0x18e   :  { %15652 = vst [vmem:[#allocation64_spill] sm:$0xff] %v9254_v53  ;;  %v1088_v53 = vld [vmem:[%s15535_s0 + $0x174] sm:$0xff] }
 0x18f   :  { %15653 = vst [vmem:[#allocation65_spill] sm:$0xff] %v9256_v15 }
 0x192   :  { %1215 = vperm.xlu2 %8522, %v1085_v9   ;;  %v1086_v9 = vld [vmem:[%s15535_s0 + $0x15c] sm:$0xff] }
 0x193   :  { %1210 = vperm.xlu1 %8521, %v1084_v46   ;;  %1205 = vperm.xlu0 %8520, %v1083_v47  }
 0x194   :  { %v9267_v19 = vpop.permute.xlu2 %953 }
 0x195   :  { %15654 = vst [vmem:[#allocation66_spill] sm:$0xff] %v9267_v19  ;;  %v9269_v34 = vpop.permute.xlu1 %903  ;;  %v9271_v15 = vpop.permute.xlu0 %898 }
 0x196   :  { %15655 = vst [vmem:[#allocation67_spill] sm:$0xff] %v9269_v34  ;;  %v1090_v34 = vld [vmem:[%s15535_s0 + $0x18c] sm:$0xff] }
 0x197   :  { %15656 = vst [vmem:[#allocation68_spill] sm:$0xff] %v9271_v15  ;;  %v1091_v15 = vld [vmem:[%s15535_s0 + $0x19c] sm:$0xff] }
 0x19a   :  { %1230 = vperm.xlu2 %8522, %v1088_v53   ;;  %v1089_v53 = vld [vmem:[%s15535_s0 + $0x184] sm:$0xff] }
 0x19b   :  { %1225 = vperm.xlu1 %8521, %v1087_v35   ;;  %1220 = vperm.xlu0 %8520, %v1086_v9  }
 0x19c   :  { %v9282_v46 = vpop.permute.xlu2 %968 }
 0x19d   :  { %15657 = vst [vmem:[#allocation69_spill] sm:$0xff] %v9282_v46  ;;  %v9284_v47 = vpop.permute.xlu1 %918  ;;  %v9286_v19 = vpop.permute.xlu0 %913 }
 0x19e   :  { %15658 = vst [vmem:[#allocation70_spill] sm:$0xff] %v9284_v47  ;;  %v1318_v47 = vld [vmem:[%s15537_s1] sm:$0xff] }
 0x19f   :  { %15659 = vst [vmem:[#allocation71_spill] sm:$0xff] %v9286_v19  ;;  %v1319_v19 = vld [vmem:[%s15537_s1 + $0x8] sm:$0xff] }
 0x1a2   :  { %1245 = vperm.xlu2 %8522, %v1091_v15   ;;  %v1092_v15 = vld [vmem:[%s15535_s0 + $0x1a4] sm:$0xff] }
 0x1a3   :  { %1240 = vperm.xlu1 %8521, %v1090_v34   ;;  %1235 = vperm.xlu0 %8520, %v1089_v53  }
 0x1a4   :  { %v9297_v35 = vpop.permute.xlu2 %983 }
 0x1a5   :  { %15660 = vst [vmem:[#allocation72_spill] sm:$0xff] %v9297_v35  ;;  %v9299_v9 = vpop.permute.xlu1 %933  ;;  %v9301_v46 = vpop.permute.xlu0 %928 }
 0x1a6   :  { %15661 = vst [vmem:[#allocation73_spill] sm:$0xff] %v9299_v9  ;;  %v1321_v9 = vld [vmem:[%s15537_s1 + $0x20] sm:$0xff] }
 0x1a7   :  { %15662 = vst [vmem:[#allocation74_spill] sm:$0xff] %v9301_v46  ;;  %v1322_v46 = vld [vmem:[%s15537_s1 + $0x30] sm:$0xff] }
 0x1aa   :  { %1357 = vperm.xlu2 %8522, %v1319_v19   ;;  %v1320_v19 = vld [vmem:[%s15537_s1 + $0x18] sm:$0xff] }
 0x1ab   :  { %1352 = vperm.xlu1 %8521, %v1318_v47   ;;  %1250 = vperm.xlu0 %8520, %v1092_v15  }
 0x1ac   :  { %v9312_v34 = vpop.permute.xlu2 %1095 }
 0x1ad   :  { %15663 = vst [vmem:[#allocation75_spill] sm:$0xff] %v9312_v34  ;;  %v9314_v53 = vpop.permute.xlu1 %948  ;;  %v9316_v35 = vpop.permute.xlu0 %943  ;;  %v1324_v34 = vld [vmem:[%s15537_s1 + $0x48] sm:$0xff] }
 0x1ae   :  { %15664 = vst [vmem:[#allocation76_spill] sm:$0xff] %v9314_v53  ;;  %v1325_v53 = vld [vmem:[%s15537_s1 + $0x50] sm:$0xff] }
 0x1af   :  { %15665 = vst [vmem:[#allocation77_spill] sm:$0xff] %v9316_v35 }
 0x1b2   :  { %1372 = vperm.xlu2 %8522, %v1322_v46   ;;  %v1323_v46 = vld [vmem:[%s15537_s1 + $0x38] sm:$0xff] }
 0x1b3   :  { %1367 = vperm.xlu1 %8521, %v1321_v9   ;;  %1362 = vperm.xlu0 %8520, %v1320_v19  }
 0x1b4   :  { %v9327_v47 = vpop.permute.xlu2 %1110 }
 0x1b5   :  { %15666 = vst [vmem:[#allocation78_spill] sm:$0xff] %v9327_v47  ;;  %v9329_v15 = vpop.permute.xlu1 %963  ;;  %v9331_v35 = vpop.permute.xlu0 %958  ;;  %v1327_v47 = vld [vmem:[%s15537_s1 + $0x68] sm:$0xff] }
 0x1b6   :  { %15667 = vst [vmem:[#allocation79_spill] sm:$0xff] %v9329_v15 }
 0x1b7   :  { %15668 = vst [vmem:[#allocation80_spill] sm:$0xff] %v9331_v35  ;;  %v1328_v35 = vld [vmem:[%s15537_s1 + $0x78] sm:$0xff] }
 0x1ba   :  { %1387 = vperm.xlu2 %8522, %v1325_v53   ;;  %v1326_v53 = vld [vmem:[%s15537_s1 + $0x60] sm:$0xff] }
 0x1bb   :  { %1382 = vperm.xlu1 %8521, %v1324_v34   ;;  %1377 = vperm.xlu0 %8520, %v1323_v46  }
 0x1bc   :  { %v9342_v9 = vpop.permute.xlu2 %1125 }
 0x1bd   :  { %15669 = vst [vmem:[#allocation81_spill] sm:$0xff] %v9342_v9  ;;  %v9344_v19 = vpop.permute.xlu1 %978  ;;  %v9346_v15 = vpop.permute.xlu0 %973  ;;  %v1330_v9 = vld [vmem:[%s15537_s1 + $0x90] sm:$0xff] }
 0x1be   :  { %15670 = vst [vmem:[#allocation82_spill] sm:$0xff] %v9344_v19  ;;  %v1331_v19 = vld [vmem:[%s15537_s1 + $0x98] sm:$0xff] }
 0x1bf   :  { %15671 = vst [vmem:[#allocation83_spill] sm:$0xff] %v9346_v15 }
 0x1c2   :  { %1402 = vperm.xlu2 %8522, %v1328_v35   ;;  %v1329_v35 = vld [vmem:[%s15537_s1 + $0x80] sm:$0xff] }
 0x1c3   :  { %1397 = vperm.xlu1 %8521, %v1327_v47   ;;  %1392 = vperm.xlu0 %8520, %v1326_v53  }
 0x1c4   :  { %v9357_v34 = vpop.permute.xlu2 %1140 }
 0x1c5   :  { %15672 = vst [vmem:[#allocation84_spill] sm:$0xff] %v9357_v34  ;;  %v9359_v46 = vpop.permute.xlu1 %993  ;;  %v9361_v15 = vpop.permute.xlu0 %988  ;;  %v1333_v34 = vld [vmem:[%s15537_s1 + $0xb0] sm:$0xff] }
 0x1c6   :  { %15673 = vst [vmem:[#allocation85_spill] sm:$0xff] %v9359_v46  ;;  %v1334_v46 = vld [vmem:[%s15537_s1 + $0xf0] sm:$0xff] }
 0x1c7   :  { %15674 = vst [vmem:[#allocation86_spill] sm:$0xff] %v9361_v15 }
 0x1ca   :  { %1417 = vperm.xlu2 %8522, %v1331_v19   ;;  %v1332_v19 = vld [vmem:[%s15537_s1 + $0xa8] sm:$0xff] }
 0x1cb   :  { %1412 = vperm.xlu1 %8521, %v1330_v9   ;;  %1407 = vperm.xlu0 %8520, %v1329_v35  }
 0x1cc   :  { %v9372_v47 = vpop.permute.xlu2 %1155 }
 0x1cd   :  { %15675 = vst [vmem:[#allocation87_spill] sm:$0xff] %v9372_v47  ;;  %v9374_v53 = vpop.permute.xlu1 %1105  ;;  %v9376_v15 = vpop.permute.xlu0 %1100  ;;  %v1336_v47 = vld [vmem:[%s15537_s1 + $0x108] sm:$0xff] }
 0x1ce   :  { %15676 = vst [vmem:[#allocation88_spill] sm:$0xff] %v9374_v53  ;;  %v1337_v53 = vld [vmem:[%s15537_s1 + $0x110] sm:$0xff] }
 0x1cf   :  { %15677 = vst [vmem:[#allocation89_spill] sm:$0xff] %v9376_v15 }
 0x1d2   :  { %1432 = vperm.xlu2 %8522, %v1334_v46   ;;  %v1335_v46 = vld [vmem:[%s15537_s1 + $0xf8] sm:$0xff] }
 0x1d3   :  { %1427 = vperm.xlu1 %8521, %v1333_v34   ;;  %1422 = vperm.xlu0 %8520, %v1332_v19  }
 0x1d4   :  { %v9387_v9 = vpop.permute.xlu2 %1170 }
 0x1d5   :  { %15678 = vst [vmem:[#allocation90_spill] sm:$0xff] %v9387_v9  ;;  %v9389_v35 = vpop.permute.xlu1 %1120  ;;  %v9391_v15 = vpop.permute.xlu0 %1115  ;;  %v1339_v9 = vld [vmem:[%s15537_s1 + $0x128] sm:$0xff] }
 0x1d6   :  { %15679 = vst [vmem:[#allocation91_spill] sm:$0xff] %v9389_v35  ;;  %v1340_v35 = vld [vmem:[%s15537_s1 + $0x138] sm:$0xff] }
 0x1d7   :  { %15680 = vst [vmem:[#allocation92_spill] sm:$0xff] %v9391_v15 }
 0x1da   :  { %1447 = vperm.xlu2 %8522, %v1337_v53   ;;  %v1338_v53 = vld [vmem:[%s15537_s1 + $0x120] sm:$0xff] }
 0x1db   :  { %1442 = vperm.xlu1 %8521, %v1336_v47   ;;  %1437 = vperm.xlu0 %8520, %v1335_v46  }
 0x1dc   :  { %v9402_v34 = vpop.permute.xlu2 %1185 }
 0x1dd   :  { %15681 = vst [vmem:[#allocation93_spill] sm:$0xff] %v9402_v34  ;;  %v9404_v19 = vpop.permute.xlu1 %1135  ;;  %v9406_v15 = vpop.permute.xlu0 %1130  ;;  %v1342_v34 = vld [vmem:[%s15537_s1 + $0x150] sm:$0xff] }
 0x1de   :  { %15682 = vst [vmem:[#allocation94_spill] sm:$0xff] %v9404_v19  ;;  %v1343_v19 = vld [vmem:[%s15537_s1 + $0x158] sm:$0xff] }
 0x1df   :  { %15683 = vst [vmem:[#allocation95_spill] sm:$0xff] %v9406_v15 }
 0x1e2   :  { %1462 = vperm.xlu2 %8522, %v1340_v35   ;;  %v1341_v35 = vld [vmem:[%s15537_s1 + $0x140] sm:$0xff] }
 0x1e3   :  { %1457 = vperm.xlu1 %8521, %v1339_v9   ;;  %1452 = vperm.xlu0 %8520, %v1338_v53  }
 0x1e4   :  { %v9417_v47 = vpop.permute.xlu2 %1200 }
 0x1e5   :  { %15684 = vst [vmem:[#allocation96_spill] sm:$0xff] %v9417_v47  ;;  %v9419_v46 = vpop.permute.xlu1 %1150  ;;  %v9421_v15 = vpop.permute.xlu0 %1145  ;;  %v1345_v47 = vld [vmem:[%s15537_s1 + $0x170] sm:$0xff] }
 0x1e6   :  { %15685 = vst [vmem:[#allocation97_spill] sm:$0xff] %v9419_v46  ;;  %v1346_v46 = vld [vmem:[%s15537_s1 + $0x180] sm:$0xff] }
 0x1e7   :  { %15686 = vst [vmem:[#allocation98_spill] sm:$0xff] %v9421_v15 }
 0x1ea   :  { %1477 = vperm.xlu2 %8522, %v1343_v19   ;;  %v1344_v19 = vld [vmem:[%s15537_s1 + $0x168] sm:$0xff] }
 0x1eb   :  { %1472 = vperm.xlu1 %8521, %v1342_v34   ;;  %1467 = vperm.xlu0 %8520, %v1341_v35  }
 0x1ec   :  { %v9432_v9 = vpop.permute.xlu2 %1215 }
 0x1ed   :  { %15687 = vst [vmem:[#allocation99_spill] sm:$0xff] %v9432_v9  ;;  %v9434_v53 = vpop.permute.xlu1 %1165  ;;  %v9436_v15 = vpop.permute.xlu0 %1160 }
 0x1ee   :  { %15688 = vst [vmem:[#allocation100_spill] sm:$0xff] %v9434_v53  ;;  %v1348_v53 = vld [vmem:[%s15537_s1 + $0x198] sm:$0xff] }
 0x1ef   :  { %15689 = vst [vmem:[#allocation101_spill] sm:$0xff] %v9436_v15  ;;  %v1349_v15 = vld [vmem:[%s15537_s1 + $0x1a0] sm:$0xff] }
 0x1f2   :  { %1492 = vperm.xlu2 %8522, %v1346_v46   ;;  %v1347_v46 = vld [vmem:[%s15537_s1 + $0x188] sm:$0xff] }
 0x1f3   :  { %1487 = vperm.xlu1 %8521, %v1345_v47   ;;  %1482 = vperm.xlu0 %8520, %v1344_v19  }
 0x1f4   :  { %v9447_v34 = vpop.permute.xlu2 %1230 }
 0x1f5   :  { %15690 = vst [vmem:[#allocation102_spill] sm:$0xff] %v9447_v34  ;;  %v9449_v35 = vpop.permute.xlu1 %1180  ;;  %v9451_v9 = vpop.permute.xlu0 %1175 }
 0x1f6   :  { %15691 = vst [vmem:[#allocation103_spill] sm:$0xff] %v9449_v35  ;;  %v1576_v35 = vld [vmem:[%s15537_s1 + $0x9] sm:$0xff] }
 0x1f7   :  { %15692 = vst [vmem:[#allocation104_spill] sm:$0xff] %v9451_v9  ;;  %v1577_v9 = vld [vmem:[%s15537_s1 + $0x19] sm:$0xff] }
 0x1fa   :  { %1507 = vperm.xlu2 %8522, %v1349_v15   ;;  %v1575_v15 = vld [vmem:[%s15537_s1 + $0x1] sm:$0xff] }
 0x1fb   :  { %1502 = vperm.xlu1 %8521, %v1348_v53   ;;  %1497 = vperm.xlu0 %8520, %v1347_v46  }
 0x1fc   :  { %v9462_v47 = vpop.permute.xlu2 %1245 }
 0x1fd   :  { %15693 = vst [vmem:[#allocation105_spill] sm:$0xff] %v9462_v47  ;;  %v9464_v19 = vpop.permute.xlu1 %1195  ;;  %v9466_v34 = vpop.permute.xlu0 %1190 }
 0x1fe   :  { %15694 = vst [vmem:[#allocation106_spill] sm:$0xff] %v9464_v19  ;;  %v1579_v19 = vld [vmem:[%s15537_s1 + $0x31] sm:$0xff] }
 0x1ff   :  { %15695 = vst [vmem:[#allocation107_spill] sm:$0xff] %v9466_v34  ;;  %v1580_v34 = vld [vmem:[%s15537_s1 + $0x39] sm:$0xff] }
 0x202   :  { %1619 = vperm.xlu2 %8522, %v1577_v9   ;;  %v1578_v9 = vld [vmem:[%s15537_s1 + $0x21] sm:$0xff] }
 0x203   :  { %1614 = vperm.xlu1 %8521, %v1576_v35   ;;  %1609 = vperm.xlu0 %8520, %v1575_v15  }
 0x204   :  { %v9477_v53 = vpop.permute.xlu2 %1357 }
 0x205   :  { %15696 = vst [vmem:[#allocation108_spill] sm:$0xff] %v9477_v53  ;;  %v9479_v46 = vpop.permute.xlu1 %1210  ;;  %v9481_v47 = vpop.permute.xlu0 %1205  ;;  %v1582_v53 = vld [vmem:[%s15537_s1 + $0x51] sm:$0xff] }
 0x206   :  { %15697 = vst [vmem:[#allocation109_spill] sm:$0xff] %v9479_v46 }
 0x207   :  { %15698 = vst [vmem:[#allocation110_spill] sm:$0xff] %v9481_v47  ;;  %v1583_v47 = vld [vmem:[%s15537_s1 + $0x61] sm:$0xff] }
 0x20a   :  { %1634 = vperm.xlu2 %8522, %v1580_v34   ;;  %v1581_v34 = vld [vmem:[%s15537_s1 + $0x49] sm:$0xff] }
 0x20b   :  { %1629 = vperm.xlu1 %8521, %v1579_v19   ;;  %1624 = vperm.xlu0 %8520, %v1578_v9  }
 0x20c   :  { %v9492_v35 = vpop.permute.xlu2 %1372 }
 0x20d   :  { %15699 = vst [vmem:[#allocation111_spill] sm:$0xff] %v9492_v35  ;;  %v9494_v15 = vpop.permute.xlu1 %1225  ;;  %v9496_v46 = vpop.permute.xlu0 %1220  ;;  %v1585_v35 = vld [vmem:[%s15537_s1 + $0x79] sm:$0xff] }
 0x20e   :  { %15700 = vst [vmem:[#allocation112_spill] sm:$0xff] %v9494_v15 }
 0x20f   :  { %15701 = vst [vmem:[#allocation113_spill] sm:$0xff] %v9496_v46  ;;  %v1586_v46 = vld [vmem:[%s15537_s1 + $0x81] sm:$0xff] }
 0x212   :  { %1649 = vperm.xlu2 %8522, %v1583_v47   ;;  %v1584_v47 = vld [vmem:[%s15537_s1 + $0x69] sm:$0xff] }
 0x213   :  { %1644 = vperm.xlu1 %8521, %v1582_v53   ;;  %1639 = vperm.xlu0 %8520, %v1581_v34  }
 0x214   :  { %v9507_v19 = vpop.permute.xlu2 %1387 }
 0x215   :  { %15702 = vst [vmem:[#allocation114_spill] sm:$0xff] %v9507_v19  ;;  %v9509_v9 = vpop.permute.xlu1 %1240  ;;  %v9511_v15 = vpop.permute.xlu0 %1235  ;;  %v1588_v19 = vld [vmem:[%s15537_s1 + $0x99] sm:$0xff] }
 0x216   :  { %15703 = vst [vmem:[#allocation115_spill] sm:$0xff] %v9509_v9 }
 0x217   :  { %15704 = vst [vmem:[#allocation116_spill] sm:$0xff] %v9511_v15  ;;  %v1589_v15 = vld [vmem:[%s15537_s1 + $0xa9] sm:$0xff] }
 0x21a   :  { %1664 = vperm.xlu2 %8522, %v1586_v46   ;;  %v1587_v46 = vld [vmem:[%s15537_s1 + $0x91] sm:$0xff] }
 0x21b   :  { %1659 = vperm.xlu1 %8521, %v1585_v35   ;;  %1654 = vperm.xlu0 %8520, %v1584_v47  }
 0x21c   :  { %v9522_v53 = vpop.permute.xlu2 %1402 }
 0x21d   :  { %15705 = vst [vmem:[#allocation117_spill] sm:$0xff] %v9522_v53  ;;  %v9524_v34 = vpop.permute.xlu1 %1352  ;;  %v9526_v9 = vpop.permute.xlu0 %1250  ;;  %v1591_v53 = vld [vmem:[%s15537_s1 + $0xf1] sm:$0xff] }
 0x21e   :  { %15706 = vst [vmem:[#allocation118_spill] sm:$0xff] %v9524_v34  ;;  %v1592_v34 = vld [vmem:[%s15537_s1 + $0xf9] sm:$0xff] }
 0x21f   :  { %15707 = vst [vmem:[#allocation119_spill] sm:$0xff] %v9526_v9 }
 0x222   :  { %1679 = vperm.xlu2 %8522, %v1589_v15   ;;  %v1590_v15 = vld [vmem:[%s15537_s1 + $0xb1] sm:$0xff] }
 0x223   :  { %1674 = vperm.xlu1 %8521, %v1588_v19   ;;  %1669 = vperm.xlu0 %8520, %v1587_v46  }
 0x224   :  { %v9537_v35 = vpop.permute.xlu2 %1417 }
 0x225   :  { %15708 = vst [vmem:[#allocation120_spill] sm:$0xff] %v9537_v35  ;;  %v9539_v47 = vpop.permute.xlu1 %1367  ;;  %v9541_v9 = vpop.permute.xlu0 %1362  ;;  %v1594_v35 = vld [vmem:[%s15537_s1 + $0x111] sm:$0xff] }
 0x226   :  { %15709 = vst [vmem:[#allocation121_spill] sm:$0xff] %v9539_v47  ;;  %v1595_v47 = vld [vmem:[%s15537_s1 + $0x121] sm:$0xff] }
 0x227   :  { %15710 = vst [vmem:[#allocation122_spill] sm:$0xff] %v9541_v9 }
 0x22a   :  { %1694 = vperm.xlu2 %8522, %v1592_v34   ;;  %v1593_v34 = vld [vmem:[%s15537_s1 + $0x109] sm:$0xff] }
 0x22b   :  { %1689 = vperm.xlu1 %8521, %v1591_v53   ;;  %1684 = vperm.xlu0 %8520, %v1590_v15  }
 0x22c   :  { %v9552_v19 = vpop.permute.xlu2 %1432 }
 0x22d   :  { %15711 = vst [vmem:[#allocation123_spill] sm:$0xff] %v9552_v19  ;;  %v9554_v46 = vpop.permute.xlu1 %1382  ;;  %v9556_v9 = vpop.permute.xlu0 %1377  ;;  %v1597_v19 = vld [vmem:[%s15537_s1 + $0x139] sm:$0xff] }
 0x22e   :  { %15712 = vst [vmem:[#allocation124_spill] sm:$0xff] %v9554_v46  ;;  %v1598_v46 = vld [vmem:[%s15537_s1 + $0x141] sm:$0xff] }
 0x22f   :  { %15713 = vst [vmem:[#allocation125_spill] sm:$0xff] %v9556_v9 }
 0x232   :  { %1709 = vperm.xlu2 %8522, %v1595_v47   ;;  %v1596_v47 = vld [vmem:[%s15537_s1 + $0x129] sm:$0xff] }
 0x233   :  { %1704 = vperm.xlu1 %8521, %v1594_v35   ;;  %1699 = vperm.xlu0 %8520, %v1593_v34  }
 0x234   :  { %v9567_v53 = vpop.permute.xlu2 %1447 }
 0x235   :  { %15714 = vst [vmem:[#allocation126_spill] sm:$0xff] %v9567_v53  ;;  %v9569_v15 = vpop.permute.xlu1 %1397  ;;  %v9571_v9 = vpop.permute.xlu0 %1392  ;;  %v1600_v53 = vld [vmem:[%s15537_s1 + $0x159] sm:$0xff] }
 0x236   :  { %15715 = vst [vmem:[#allocation127_spill] sm:$0xff] %v9569_v15  ;;  %v1601_v15 = vld [vmem:[%s15537_s1 + $0x169] sm:$0xff] }
 0x237   :  { %15716 = vst [vmem:[#allocation128_spill] sm:$0xff] %v9571_v9 }
 0x23a   :  { %1724 = vperm.xlu2 %8522, %v1598_v46   ;;  %v1599_v46 = vld [vmem:[%s15537_s1 + $0x151] sm:$0xff] }
 0x23b   :  { %1719 = vperm.xlu1 %8521, %v1597_v19   ;;  %1714 = vperm.xlu0 %8520, %v1596_v47  }
 0x23c   :  { %v9582_v35 = vpop.permute.xlu2 %1462 }
 0x23d   :  { %15717 = vst [vmem:[#allocation129_spill] sm:$0xff] %v9582_v35  ;;  %v9584_v34 = vpop.permute.xlu1 %1412  ;;  %v9586_v9 = vpop.permute.xlu0 %1407  ;;  %v1603_v35 = vld [vmem:[%s15537_s1 + $0x181] sm:$0xff] }
 0x23e   :  { %15718 = vst [vmem:[#allocation130_spill] sm:$0xff] %v9584_v34  ;;  %v1604_v34 = vld [vmem:[%s15537_s1 + $0x189] sm:$0xff] }
 0x23f   :  { %15719 = vst [vmem:[#allocation131_spill] sm:$0xff] %v9586_v9 }
 0x242   :  { %1739 = vperm.xlu2 %8522, %v1601_v15   ;;  %v1602_v15 = vld [vmem:[%s15537_s1 + $0x171] sm:$0xff] }
 0x243   :  { %1734 = vperm.xlu1 %8521, %v1600_v53   ;;  %1729 = vperm.xlu0 %8520, %v1599_v46  }
 0x244   :  { %v9597_v19 = vpop.permute.xlu2 %1477 }
 0x245   :  { %15720 = vst [vmem:[#allocation132_spill] sm:$0xff] %v9597_v19  ;;  %v9599_v47 = vpop.permute.xlu1 %1427  ;;  %v9601_v9 = vpop.permute.xlu0 %1422 }
 0x246   :  { %15721 = vst [vmem:[#allocation133_spill] sm:$0xff] %v9599_v47  ;;  %v1606_v47 = vld [vmem:[%s15537_s1 + $0x1a1] sm:$0xff] }
 0x247   :  { %15722 = vst [vmem:[#allocation134_spill] sm:$0xff] %v9601_v9  ;;  %v1832_v9 = vld [vmem:[%s15537_s1 + $0x2] sm:$0xff] }
 0x24a   :  { %1754 = vperm.xlu2 %8522, %v1604_v34   ;;  %v1605_v34 = vld [vmem:[%s15537_s1 + $0x199] sm:$0xff] }
 0x24b   :  { %1749 = vperm.xlu1 %8521, %v1603_v35   ;;  %1744 = vperm.xlu0 %8520, %v1602_v15  }
 0x24c   :  { %v9612_v53 = vpop.permute.xlu2 %1492 }
 0x24d   :  { %15723 = vst [vmem:[#allocation135_spill] sm:$0xff] %v9612_v53  ;;  %v9614_v46 = vpop.permute.xlu1 %1442  ;;  %v9616_v19 = vpop.permute.xlu0 %1437 }
 0x24e   :  { %15724 = vst [vmem:[#allocation136_spill] sm:$0xff] %v9614_v46  ;;  %v1834_v46 = vld [vmem:[%s15537_s1 + $0x1a] sm:$0xff] }
 0x24f   :  { %15725 = vst [vmem:[#allocation137_spill] sm:$0xff] %v9616_v19  ;;  %v1835_v19 = vld [vmem:[%s15537_s1 + $0x22] sm:$0xff] }
 0x252   :  { %1866 = vperm.xlu2 %8522, %v1832_v9   ;;  %v1833_v9 = vld [vmem:[%s15537_s1 + $0xa] sm:$0xff] }
 0x253   :  { %1764 = vperm.xlu1 %8521, %v1606_v47   ;;  %1759 = vperm.xlu0 %8520, %v1605_v34  }
 0x254   :  { %v9627_v35 = vpop.permute.xlu2 %1507 }
 0x255   :  { %15726 = vst [vmem:[#allocation138_spill] sm:$0xff] %v9627_v35  ;;  %v9629_v15 = vpop.permute.xlu1 %1457  ;;  %v9631_v53 = vpop.permute.xlu0 %1452 }
 0x256   :  { %15727 = vst [vmem:[#allocation139_spill] sm:$0xff] %v9629_v15  ;;  %v1837_v15 = vld [vmem:[%s15537_s1 + $0x3a] sm:$0xff] }
 0x257   :  { %15728 = vst [vmem:[#allocation140_spill] sm:$0xff] %v9631_v53  ;;  %v1838_v53 = vld [vmem:[%s15537_s1 + $0x4a] sm:$0xff] }
 0x25a   :  { %1881 = vperm.xlu2 %8522, %v1835_v19   ;;  %v1836_v19 = vld [vmem:[%s15537_s1 + $0x32] sm:$0xff] }
 0x25b   :  { %1876 = vperm.xlu1 %8521, %v1834_v46   ;;  %1871 = vperm.xlu0 %8520, %v1833_v9  }
 0x25c   :  { %v9642_v47 = vpop.permute.xlu2 %1619 }
 0x25d   :  { %15729 = vst [vmem:[#allocation141_spill] sm:$0xff] %v9642_v47  ;;  %v9644_v34 = vpop.permute.xlu1 %1472  ;;  %v9646_v35 = vpop.permute.xlu0 %1467  ;;  %v1840_v47 = vld [vmem:[%s15537_s1 + $0x62] sm:$0xff] }
 0x25e   :  { %15730 = vst [vmem:[#allocation142_spill] sm:$0xff] %v9644_v34 }
 0x25f   :  { %15731 = vst [vmem:[#allocation143_spill] sm:$0xff] %v9646_v35  ;;  %v1841_v35 = vld [vmem:[%s15537_s1 + $0x6a] sm:$0xff] }
 0x262   :  { %1896 = vperm.xlu2 %8522, %v1838_v53   ;;  %v1839_v53 = vld [vmem:[%s15537_s1 + $0x52] sm:$0xff] }
 0x263   :  { %1891 = vperm.xlu1 %8521, %v1837_v15   ;;  %1886 = vperm.xlu0 %8520, %v1836_v19  }
 0x264   :  { %v9657_v46 = vpop.permute.xlu2 %1634 }
 0x265   :  { %15732 = vst [vmem:[#allocation144_spill] sm:$0xff] %v9657_v46  ;;  %v9659_v9 = vpop.permute.xlu1 %1487  ;;  %v9661_v34 = vpop.permute.xlu0 %1482  ;;  %v1843_v46 = vld [vmem:[%s15537_s1 + $0x82] sm:$0xff] }
 0x266   :  { %15733 = vst [vmem:[#allocation145_spill] sm:$0xff] %v9659_v9  ;;  %v1844_v9 = vld [vmem:[%s15537_s1 + $0x92] sm:$0xff] }
 0x267   :  { %15734 = vst [vmem:[#allocation146_spill] sm:$0xff] %v9661_v34 }
 0x26a   :  { %1911 = vperm.xlu2 %8522, %v1841_v35   ;;  %v1842_v35 = vld [vmem:[%s15537_s1 + $0x7a] sm:$0xff] }
 0x26b   :  { %1906 = vperm.xlu1 %8521, %v1840_v47   ;;  %1901 = vperm.xlu0 %8520, %v1839_v53  }
 0x26c   :  { %v9672_v15 = vpop.permute.xlu2 %1649 }
 0x26d   :  { %15735 = vst [vmem:[#allocation147_spill] sm:$0xff] %v9672_v15  ;;  %v9674_v19 = vpop.permute.xlu1 %1502  ;;  %v9676_v34 = vpop.permute.xlu0 %1497  ;;  %v1846_v15 = vld [vmem:[%s15537_s1 + $0xaa] sm:$0xff] }
 0x26e   :  { %15736 = vst [vmem:[#allocation148_spill] sm:$0xff] %v9674_v19  ;;  %v1847_v19 = vld [vmem:[%s15537_s1 + $0xb2] sm:$0xff] }
 0x26f   :  { %15737 = vst [vmem:[#allocation149_spill] sm:$0xff] %v9676_v34 }
 0x272   :  { %1926 = vperm.xlu2 %8522, %v1844_v9   ;;  %v1845_v9 = vld [vmem:[%s15537_s1 + $0x9a] sm:$0xff] }
 0x273   :  { %1921 = vperm.xlu1 %8521, %v1843_v46   ;;  %1916 = vperm.xlu0 %8520, %v1842_v35  }
 0x274   :  { %v9687_v47 = vpop.permute.xlu2 %1664 }
 0x275   :  { %15738 = vst [vmem:[#allocation150_spill] sm:$0xff] %v9687_v47  ;;  %v9689_v53 = vpop.permute.xlu1 %1614  ;;  %v9691_v34 = vpop.permute.xlu0 %1609  ;;  %v1849_v47 = vld [vmem:[%s15537_s1 + $0xfa] sm:$0xff] }
 0x276   :  { %15739 = vst [vmem:[#allocation151_spill] sm:$0xff] %v9689_v53  ;;  %v1850_v53 = vld [vmem:[%s15537_s1 + $0x10a] sm:$0xff] }
 0x277   :  { %15740 = vst [vmem:[#allocation152_spill] sm:$0xff] %v9691_v34 }
 0x27a   :  { %1941 = vperm.xlu2 %8522, %v1847_v19   ;;  %v1848_v19 = vld [vmem:[%s15537_s1 + $0xf2] sm:$0xff] }
 0x27b   :  { %1936 = vperm.xlu1 %8521, %v1846_v15   ;;  %1931 = vperm.xlu0 %8520, %v1845_v9  }
 0x27c   :  { %v9702_v46 = vpop.permute.xlu2 %1679 }
 0x27d   :  { %15741 = vst [vmem:[#allocation153_spill] sm:$0xff] %v9702_v46  ;;  %v9704_v35 = vpop.permute.xlu1 %1629  ;;  %v9706_v34 = vpop.permute.xlu0 %1624  ;;  %v1852_v46 = vld [vmem:[%s15537_s1 + $0x122] sm:$0xff] }
 0x27e   :  { %15742 = vst [vmem:[#allocation154_spill] sm:$0xff] %v9704_v35  ;;  %v1853_v35 = vld [vmem:[%s15537_s1 + $0x12a] sm:$0xff] }
 0x27f   :  { %15743 = vst [vmem:[#allocation155_spill] sm:$0xff] %v9706_v34 }
 0x282   :  { %1956 = vperm.xlu2 %8522, %v1850_v53   ;;  %v1851_v53 = vld [vmem:[%s15537_s1 + $0x112] sm:$0xff] }
 0x283   :  { %1951 = vperm.xlu1 %8521, %v1849_v47   ;;  %1946 = vperm.xlu0 %8520, %v1848_v19  }
 0x284   :  { %v9717_v15 = vpop.permute.xlu2 %1694 }
 0x285   :  { %15744 = vst [vmem:[#allocation156_spill] sm:$0xff] %v9717_v15  ;;  %v9719_v9 = vpop.permute.xlu1 %1644  ;;  %v9721_v34 = vpop.permute.xlu0 %1639  ;;  %v1855_v15 = vld [vmem:[%s15537_s1 + $0x142] sm:$0xff] }
 0x286   :  { %15745 = vst [vmem:[#allocation157_spill] sm:$0xff] %v9719_v9  ;;  %v1856_v9 = vld [vmem:[%s15537_s1 + $0x152] sm:$0xff] }
 0x287   :  { %15746 = vst [vmem:[#allocation158_spill] sm:$0xff] %v9721_v34 }
 0x28a   :  { %1971 = vperm.xlu2 %8522, %v1853_v35   ;;  %v1854_v35 = vld [vmem:[%s15537_s1 + $0x13a] sm:$0xff] }
 0x28b   :  { %1966 = vperm.xlu1 %8521, %v1852_v46   ;;  %1961 = vperm.xlu0 %8520, %v1851_v53  }
 0x28c   :  { %v9732_v47 = vpop.permute.xlu2 %1709 }
 0x28d   :  { %15747 = vst [vmem:[#allocation159_spill] sm:$0xff] %v9732_v47  ;;  %v9734_v19 = vpop.permute.xlu1 %1659  ;;  %v9736_v34 = vpop.permute.xlu0 %1654  ;;  %v1858_v47 = vld [vmem:[%s15537_s1 + $0x16a] sm:$0xff] }
 0x28e   :  { %15748 = vst [vmem:[#allocation160_spill] sm:$0xff] %v9734_v19  ;;  %v1859_v19 = vld [vmem:[%s15537_s1 + $0x172] sm:$0xff] }
 0x28f   :  { %15749 = vst [vmem:[#allocation161_spill] sm:$0xff] %v9736_v34 }
 0x292   :  { %1986 = vperm.xlu2 %8522, %v1856_v9   ;;  %v1857_v9 = vld [vmem:[%s15537_s1 + $0x15a] sm:$0xff] }
 0x293   :  { %1981 = vperm.xlu1 %8521, %v1855_v15   ;;  %1976 = vperm.xlu0 %8520, %v1854_v35  }
 0x294   :  { %v9747_v46 = vpop.permute.xlu2 %1724 }
 0x295   :  { %15750 = vst [vmem:[#allocation162_spill] sm:$0xff] %v9747_v46  ;;  %v9749_v53 = vpop.permute.xlu1 %1674  ;;  %v9751_v34 = vpop.permute.xlu0 %1669 }
 0x296   :  { %15751 = vst [vmem:[#allocation163_spill] sm:$0xff] %v9749_v53  ;;  %v1861_v53 = vld [vmem:[%s15537_s1 + $0x18a] sm:$0xff] }
 0x297   :  { %15752 = vst [vmem:[#allocation164_spill] sm:$0xff] %v9751_v34  ;;  %v1862_v34 = vld [vmem:[%s15537_s1 + $0x19a] sm:$0xff] }
 0x29a   :  { %2001 = vperm.xlu2 %8522, %v1859_v19   ;;  %v1860_v19 = vld [vmem:[%s15537_s1 + $0x182] sm:$0xff] }
 0x29b   :  { %1996 = vperm.xlu1 %8521, %v1858_v47   ;;  %1991 = vperm.xlu0 %8520, %v1857_v9  }
 0x29c   :  { %v9762_v15 = vpop.permute.xlu2 %1739 }
 0x29d   :  { %15753 = vst [vmem:[#allocation165_spill] sm:$0xff] %v9762_v15  ;;  %v9764_v35 = vpop.permute.xlu1 %1689  ;;  %v9766_v46 = vpop.permute.xlu0 %1684 }
 0x29e   :  { %15754 = vst [vmem:[#allocation166_spill] sm:$0xff] %v9764_v35  ;;  %v2089_v35 = vld [vmem:[%s15537_s1 + $0x3] sm:$0xff] }
 0x29f   :  { %15755 = vst [vmem:[#allocation167_spill] sm:$0xff] %v9766_v46  ;;  %v2090_v46 = vld [vmem:[%s15537_s1 + $0xb] sm:$0xff] }
 0x2a2   :  { %2016 = vperm.xlu2 %8522, %v1862_v34   ;;  %v1863_v34 = vld [vmem:[%s15537_s1 + $0x1a2] sm:$0xff] }
 0x2a3   :  { %2011 = vperm.xlu1 %8521, %v1861_v53   ;;  %2006 = vperm.xlu0 %8520, %v1860_v19  }
 0x2a4   :  { %v9777_v47 = vpop.permute.xlu2 %1754 }
 0x2a5   :  { %15756 = vst [vmem:[#allocation168_spill] sm:$0xff] %v9777_v47  ;;  %v9779_v9 = vpop.permute.xlu1 %1704  ;;  %v9781_v15 = vpop.permute.xlu0 %1699 }
 0x2a6   :  { %15757 = vst [vmem:[#allocation169_spill] sm:$0xff] %v9779_v9  ;;  %v2092_v9 = vld [vmem:[%s15537_s1 + $0x23] sm:$0xff] }
 0x2a7   :  { %15758 = vst [vmem:[#allocation170_spill] sm:$0xff] %v9781_v15  ;;  %v2093_v15 = vld [vmem:[%s15537_s1 + $0x33] sm:$0xff] }
 0x2aa   :  { %2128 = vperm.xlu2 %8522, %v2090_v46   ;;  %v2091_v46 = vld [vmem:[%s15537_s1 + $0x1b] sm:$0xff] }
 0x2ab   :  { %2123 = vperm.xlu1 %8521, %v2089_v35   ;;  %2021 = vperm.xlu0 %8520, %v1863_v34  }
 0x2ac   :  { %v9792_v53 = vpop.permute.xlu2 %1866 }
 0x2ad   :  { %15759 = vst [vmem:[#allocation171_spill] sm:$0xff] %v9792_v53  ;;  %v9794_v19 = vpop.permute.xlu1 %1719  ;;  %v9796_v47 = vpop.permute.xlu0 %1714  ;;  %v2095_v53 = vld [vmem:[%s15537_s1 + $0x4b] sm:$0xff] }
 0x2ae   :  { %15760 = vst [vmem:[#allocation172_spill] sm:$0xff] %v9794_v19  ;;  %v2096_v19 = vld [vmem:[%s15537_s1 + $0x53] sm:$0xff] }
 0x2af   :  { %15761 = vst [vmem:[#allocation173_spill] sm:$0xff] %v9796_v47 }
 0x2b2   :  { %2143 = vperm.xlu2 %8522, %v2093_v15   ;;  %v2094_v15 = vld [vmem:[%s15537_s1 + $0x3b] sm:$0xff] }
 0x2b3   :  { %2138 = vperm.xlu1 %8521, %v2092_v9   ;;  %2133 = vperm.xlu0 %8520, %v2091_v46  }
 0x2b4   :  { %v9807_v35 = vpop.permute.xlu2 %1881 }
 0x2b5   :  { %15762 = vst [vmem:[#allocation174_spill] sm:$0xff] %v9807_v35  ;;  %v9809_v34 = vpop.permute.xlu1 %1734  ;;  %v9811_v47 = vpop.permute.xlu0 %1729  ;;  %v2098_v35 = vld [vmem:[%s15537_s1 + $0x6b] sm:$0xff] }
 0x2b6   :  { %15763 = vst [vmem:[#allocation175_spill] sm:$0xff] %v9809_v34 }
 0x2b7   :  { %15764 = vst [vmem:[#allocation176_spill] sm:$0xff] %v9811_v47  ;;  %v2099_v47 = vld [vmem:[%s15537_s1 + $0x7b] sm:$0xff] }
 0x2ba   :  { %2158 = vperm.xlu2 %8522, %v2096_v19   ;;  %v2097_v19 = vld [vmem:[%s15537_s1 + $0x63] sm:$0xff] }
 0x2bb   :  { %2153 = vperm.xlu1 %8521, %v2095_v53   ;;  %2148 = vperm.xlu0 %8520, %v2094_v15  }
 0x2bc   :  { %v9822_v9 = vpop.permute.xlu2 %1896 }
 0x2bd   :  { %15765 = vst [vmem:[#allocation177_spill] sm:$0xff] %v9822_v9  ;;  %v9824_v46 = vpop.permute.xlu1 %1749  ;;  %v9826_v34 = vpop.permute.xlu0 %1744  ;;  %v2101_v9 = vld [vmem:[%s15537_s1 + $0x93] sm:$0xff] }
 0x2be   :  { %15766 = vst [vmem:[#allocation178_spill] sm:$0xff] %v9824_v46  ;;  %v2102_v46 = vld [vmem:[%s15537_s1 + $0x9b] sm:$0xff] }
 0x2bf   :  { %15767 = vst [vmem:[#allocation179_spill] sm:$0xff] %v9826_v34 }
 0x2c2   :  { %2173 = vperm.xlu2 %8522, %v2099_v47   ;;  %v2100_v47 = vld [vmem:[%s15537_s1 + $0x83] sm:$0xff] }
 0x2c3   :  { %2168 = vperm.xlu1 %8521, %v2098_v35   ;;  %2163 = vperm.xlu0 %8520, %v2097_v19  }
 0x2c4   :  { %v9837_v53 = vpop.permute.xlu2 %1911 }
 0x2c5   :  { %15768 = vst [vmem:[#allocation180_spill] sm:$0xff] %v9837_v53  ;;  %v9839_v15 = vpop.permute.xlu1 %1764  ;;  %v9841_v34 = vpop.permute.xlu0 %1759  ;;  %v2104_v53 = vld [vmem:[%s15537_s1 + $0xb3] sm:$0xff] }
 0x2c6   :  { %15769 = vst [vmem:[#allocation181_spill] sm:$0xff] %v9839_v15 }
 0x2c7   :  { %15770 = vst [vmem:[#allocation182_spill] sm:$0xff] %v9841_v34  ;;  %v2105_v34 = vld [vmem:[%s15537_s1 + $0xf3] sm:$0xff] }
 0x2ca   :  { %2188 = vperm.xlu2 %8522, %v2102_v46   ;;  %v2103_v46 = vld [vmem:[%s15537_s1 + $0xab] sm:$0xff] }
 0x2cb   :  { %2183 = vperm.xlu1 %8521, %v2101_v9   ;;  %2178 = vperm.xlu0 %8520, %v2100_v47  }
 0x2cc   :  { %v9852_v35 = vpop.permute.xlu2 %1926 }
 0x2cd   :  { %15771 = vst [vmem:[#allocation183_spill] sm:$0xff] %v9852_v35  ;;  %v9854_v19 = vpop.permute.xlu1 %1876  ;;  %v9856_v15 = vpop.permute.xlu0 %1871  ;;  %v2107_v35 = vld [vmem:[%s15537_s1 + $0x10b] sm:$0xff] }
 0x2ce   :  { %15772 = vst [vmem:[#allocation184_spill] sm:$0xff] %v9854_v19  ;;  %v2108_v19 = vld [vmem:[%s15537_s1 + $0x113] sm:$0xff] }
 0x2cf   :  { %15773 = vst [vmem:[#allocation185_spill] sm:$0xff] %v9856_v15 }
 0x2d2   :  { %2203 = vperm.xlu2 %8522, %v2105_v34   ;;  %v2106_v34 = vld [vmem:[%s15537_s1 + $0xfb] sm:$0xff] }
 0x2d3   :  { %2198 = vperm.xlu1 %8521, %v2104_v53   ;;  %2193 = vperm.xlu0 %8520, %v2103_v46  }
 0x2d4   :  { %v9867_v9 = vpop.permute.xlu2 %1941 }
 0x2d5   :  { %15774 = vst [vmem:[#allocation186_spill] sm:$0xff] %v9867_v9  ;;  %v9869_v47 = vpop.permute.xlu1 %1891  ;;  %v9871_v15 = vpop.permute.xlu0 %1886  ;;  %v2110_v9 = vld [vmem:[%s15537_s1 + $0x12b] sm:$0xff] }
 0x2d6   :  { %15775 = vst [vmem:[#allocation187_spill] sm:$0xff] %v9869_v47  ;;  %v2111_v47 = vld [vmem:[%s15537_s1 + $0x13b] sm:$0xff] }
 0x2d7   :  { %15776 = vst [vmem:[#allocation188_spill] sm:$0xff] %v9871_v15 }
 0x2da   :  { %2218 = vperm.xlu2 %8522, %v2108_v19   ;;  %v2109_v19 = vld [vmem:[%s15537_s1 + $0x123] sm:$0xff] }
 0x2db   :  { %2213 = vperm.xlu1 %8521, %v2107_v35   ;;  %2208 = vperm.xlu0 %8520, %v2106_v34  }
 0x2dc   :  { %v9882_v53 = vpop.permute.xlu2 %1956 }
 0x2dd   :  { %15777 = vst [vmem:[#allocation189_spill] sm:$0xff] %v9882_v53  ;;  %v9884_v46 = vpop.permute.xlu1 %1906  ;;  %v9886_v15 = vpop.permute.xlu0 %1901  ;;  %v2113_v53 = vld [vmem:[%s15537_s1 + $0x153] sm:$0xff] }
 0x2de   :  { %15778 = vst [vmem:[#allocation190_spill] sm:$0xff] %v9884_v46  ;;  %v2114_v46 = vld [vmem:[%s15537_s1 + $0x15b] sm:$0xff] }
 0x2df   :  { %15779 = vst [vmem:[#allocation191_spill] sm:$0xff] %v9886_v15 }
 0x2e2   :  { %2233 = vperm.xlu2 %8522, %v2111_v47   ;;  %v2112_v47 = vld [vmem:[%s15537_s1 + $0x143] sm:$0xff] }
 0x2e3   :  { %2228 = vperm.xlu1 %8521, %v2110_v9   ;;  %2223 = vperm.xlu0 %8520, %v2109_v19  }
 0x2e4   :  { %v9897_v35 = vpop.permute.xlu2 %1971 }
 0x2e5   :  { %15780 = vst [vmem:[#allocation192_spill] sm:$0xff] %v9897_v35  ;;  %v9899_v34 = vpop.permute.xlu1 %1921  ;;  %v9901_v15 = vpop.permute.xlu0 %1916  ;;  %v2116_v35 = vld [vmem:[%s15537_s1 + $0x173] sm:$0xff] }
 0x2e6   :  { %15781 = vst [vmem:[#allocation193_spill] sm:$0xff] %v9899_v34  ;;  %v2117_v34 = vld [vmem:[%s15537_s1 + $0x183] sm:$0xff] }
 0x2e7   :  { %15782 = vst [vmem:[#allocation194_spill] sm:$0xff] %v9901_v15 }
 0x2ea   :  { %2248 = vperm.xlu2 %8522, %v2114_v46   ;;  %v2115_v46 = vld [vmem:[%s15537_s1 + $0x16b] sm:$0xff] }
 0x2eb   :  { %2243 = vperm.xlu1 %8521, %v2113_v53   ;;  %2238 = vperm.xlu0 %8520, %v2112_v47  }
 0x2ec   :  { %v9912_v9 = vpop.permute.xlu2 %1986 }
 0x2ed   :  { %15783 = vst [vmem:[#allocation195_spill] sm:$0xff] %v9912_v9  ;;  %v9914_v19 = vpop.permute.xlu1 %1936  ;;  %v9916_v15 = vpop.permute.xlu0 %1931 }
 0x2ee   :  { %15784 = vst [vmem:[#allocation196_spill] sm:$0xff] %v9914_v19  ;;  %v2119_v19 = vld [vmem:[%s15537_s1 + $0x19b] sm:$0xff] }
 0x2ef   :  { %15785 = vst [vmem:[#allocation197_spill] sm:$0xff] %v9916_v15  ;;  %v2120_v15 = vld [vmem:[%s15537_s1 + $0x1a3] sm:$0xff] }
 0x2f2   :  { %2263 = vperm.xlu2 %8522, %v2117_v34   ;;  %v2118_v34 = vld [vmem:[%s15537_s1 + $0x18b] sm:$0xff] }
 0x2f3   :  { %2258 = vperm.xlu1 %8521, %v2116_v35   ;;  %2253 = vperm.xlu0 %8520, %v2115_v46  }
 0x2f4   :  { %v9927_v53 = vpop.permute.xlu2 %2001 }
 0x2f5   :  { %15786 = vst [vmem:[#allocation198_spill] sm:$0xff] %v9927_v53  ;;  %v9929_v47 = vpop.permute.xlu1 %1951  ;;  %v9931_v9 = vpop.permute.xlu0 %1946 }
 0x2f6   :  { %15787 = vst [vmem:[#allocation199_spill] sm:$0xff] %v9929_v47  ;;  %v2347_v47 = vld [vmem:[%s15537_s1 + $0xc] sm:$0xff] }
 0x2f7   :  { %15788 = vst [vmem:[#allocation200_spill] sm:$0xff] %v9931_v9  ;;  %v2348_v9 = vld [vmem:[%s15537_s1 + $0x1c] sm:$0xff] }
 0x2fa   :  { %2278 = vperm.xlu2 %8522, %v2120_v15   ;;  %v2346_v15 = vld [vmem:[%s15537_s1 + $0x4] sm:$0xff] }
 0x2fb   :  { %2273 = vperm.xlu1 %8521, %v2119_v19   ;;  %2268 = vperm.xlu0 %8520, %v2118_v34  }
 0x2fc   :  { %v9942_v35 = vpop.permute.xlu2 %2016 }
 0x2fd   :  { %15789 = vst [vmem:[#allocation201_spill] sm:$0xff] %v9942_v35  ;;  %v9944_v46 = vpop.permute.xlu1 %1966  ;;  %v9946_v53 = vpop.permute.xlu0 %1961 }
 0x2fe   :  { %15790 = vst [vmem:[#allocation202_spill] sm:$0xff] %v9944_v46  ;;  %v2350_v46 = vld [vmem:[%s15537_s1 + $0x34] sm:$0xff] }
 0x2ff   :  { %15791 = vst [vmem:[#allocation203_spill] sm:$0xff] %v9946_v53  ;;  %v2351_v53 = vld [vmem:[%s15537_s1 + $0x3c] sm:$0xff] }
 0x302   :  { %2390 = vperm.xlu2 %8522, %v2348_v9   ;;  %v2349_v9 = vld [vmem:[%s15537_s1 + $0x24] sm:$0xff] }
 0x303   :  { %2385 = vperm.xlu1 %8521, %v2347_v47   ;;  %2380 = vperm.xlu0 %8520, %v2346_v15  }
 0x304   :  { %v9957_v19 = vpop.permute.xlu2 %2128 }
 0x305   :  { %15792 = vst [vmem:[#allocation204_spill] sm:$0xff] %v9957_v19  ;;  %v9959_v34 = vpop.permute.xlu1 %1981  ;;  %v9961_v35 = vpop.permute.xlu0 %1976  ;;  %v2353_v19 = vld [vmem:[%s15537_s1 + $0x54] sm:$0xff] }
 0x306   :  { %15793 = vst [vmem:[#allocation205_spill] sm:$0xff] %v9959_v34 }
 0x307   :  { %15794 = vst [vmem:[#allocation206_spill] sm:$0xff] %v9961_v35  ;;  %v2354_v35 = vld [vmem:[%s15537_s1 + $0x64] sm:$0xff] }
 0x30a   :  { %2405 = vperm.xlu2 %8522, %v2351_v53   ;;  %v2352_v53 = vld [vmem:[%s15537_s1 + $0x4c] sm:$0xff] }
 0x30b   :  { %2400 = vperm.xlu1 %8521, %v2350_v46   ;;  %2395 = vperm.xlu0 %8520, %v2349_v9  }
 0x30c   :  { %v9972_v47 = vpop.permute.xlu2 %2143 }
 0x30d   :  { %15795 = vst [vmem:[#allocation207_spill] sm:$0xff] %v9972_v47  ;;  %v9974_v15 = vpop.permute.xlu1 %1996  ;;  %v9976_v34 = vpop.permute.xlu0 %1991  ;;  %v2356_v47 = vld [vmem:[%s15537_s1 + $0x7c] sm:$0xff] }
 0x30e   :  { %15796 = vst [vmem:[#allocation208_spill] sm:$0xff] %v9974_v15 }
 0x30f   :  { %15797 = vst [vmem:[#allocation209_spill] sm:$0xff] %v9976_v34  ;;  %v2357_v34 = vld [vmem:[%s15537_s1 + $0x84] sm:$0xff] }
 0x312   :  { %2420 = vperm.xlu2 %8522, %v2354_v35   ;;  %v2355_v35 = vld [vmem:[%s15537_s1 + $0x6c] sm:$0xff] }
 0x313   :  { %2415 = vperm.xlu1 %8521, %v2353_v19   ;;  %2410 = vperm.xlu0 %8520, %v2352_v53  }
 0x314   :  { %v9987_v46 = vpop.permute.xlu2 %2158 }
 0x315   :  { %15798 = vst [vmem:[#allocation210_spill] sm:$0xff] %v9987_v46  ;;  %v9989_v9 = vpop.permute.xlu1 %2011  ;;  %v9991_v15 = vpop.permute.xlu0 %2006  ;;  %v2359_v46 = vld [vmem:[%s15537_s1 + $0x9c] sm:$0xff] }
 0x316   :  { %15799 = vst [vmem:[#allocation211_spill] sm:$0xff] %v9989_v9 }
 0x317   :  { %15800 = vst [vmem:[#allocation212_spill] sm:$0xff] %v9991_v15  ;;  %v2360_v15 = vld [vmem:[%s15537_s1 + $0xac] sm:$0xff] }
 0x31a   :  { %2435 = vperm.xlu2 %8522, %v2357_v34   ;;  %v2358_v34 = vld [vmem:[%s15537_s1 + $0x94] sm:$0xff] }
 0x31b   :  { %2430 = vperm.xlu1 %8521, %v2356_v47   ;;  %2425 = vperm.xlu0 %8520, %v2355_v35  }
 0x31c   :  { %v10002_v19 = vpop.permute.xlu2 %2173 }
 0x31d   :  { %15801 = vst [vmem:[#allocation213_spill] sm:$0xff] %v10002_v19  ;;  %v10004_v53 = vpop.permute.xlu1 %2123  ;;  %v10006_v9 = vpop.permute.xlu0 %2021  ;;  %v2362_v19 = vld [vmem:[%s15537_s1 + $0xf4] sm:$0xff] }
 0x31e   :  { %15802 = vst [vmem:[#allocation214_spill] sm:$0xff] %v10004_v53  ;;  %v2363_v53 = vld [vmem:[%s15537_s1 + $0xfc] sm:$0xff] }
 0x31f   :  { %15803 = vst [vmem:[#allocation215_spill] sm:$0xff] %v10006_v9 }
 0x322   :  { %2450 = vperm.xlu2 %8522, %v2360_v15   ;;  %v2361_v15 = vld [vmem:[%s15537_s1 + $0xb4] sm:$0xff] }
 0x323   :  { %2445 = vperm.xlu1 %8521, %v2359_v46   ;;  %2440 = vperm.xlu0 %8520, %v2358_v34  }
 0x324   :  { %v10017_v47 = vpop.permute.xlu2 %2188 }
 0x325   :  { %15804 = vst [vmem:[#allocation216_spill] sm:$0xff] %v10017_v47  ;;  %v10019_v35 = vpop.permute.xlu1 %2138  ;;  %v10021_v9 = vpop.permute.xlu0 %2133  ;;  %v2365_v47 = vld [vmem:[%s15537_s1 + $0x114] sm:$0xff] }
 0x326   :  { %15805 = vst [vmem:[#allocation217_spill] sm:$0xff] %v10019_v35  ;;  %v2366_v35 = vld [vmem:[%s15537_s1 + $0x124] sm:$0xff] }
 0x327   :  { %15806 = vst [vmem:[#allocation218_spill] sm:$0xff] %v10021_v9 }
 0x32a   :  { %2465 = vperm.xlu2 %8522, %v2363_v53   ;;  %v2364_v53 = vld [vmem:[%s15537_s1 + $0x10c] sm:$0xff] }
 0x32b   :  { %2460 = vperm.xlu1 %8521, %v2362_v19   ;;  %2455 = vperm.xlu0 %8520, %v2361_v15  }
 0x32c   :  { %v10032_v46 = vpop.permute.xlu2 %2203 }
 0x32d   :  { %15807 = vst [vmem:[#allocation219_spill] sm:$0xff] %v10032_v46  ;;  %v10034_v34 = vpop.permute.xlu1 %2153  ;;  %v10036_v9 = vpop.permute.xlu0 %2148  ;;  %v2368_v46 = vld [vmem:[%s15537_s1 + $0x13c] sm:$0xff] }
 0x32e   :  { %15808 = vst [vmem:[#allocation220_spill] sm:$0xff] %v10034_v34  ;;  %v2369_v34 = vld [vmem:[%s15537_s1 + $0x144] sm:$0xff] }
 0x32f   :  { %15809 = vst [vmem:[#allocation221_spill] sm:$0xff] %v10036_v9 }
 0x332   :  { %2480 = vperm.xlu2 %8522, %v2366_v35   ;;  %v2367_v35 = vld [vmem:[%s15537_s1 + $0x12c] sm:$0xff] }
 0x333   :  { %2475 = vperm.xlu1 %8521, %v2365_v47   ;;  %2470 = vperm.xlu0 %8520, %v2364_v53  }
 0x334   :  { %v10047_v19 = vpop.permute.xlu2 %2218 }
 0x335   :  { %15810 = vst [vmem:[#allocation222_spill] sm:$0xff] %v10047_v19  ;;  %v10049_v15 = vpop.permute.xlu1 %2168  ;;  %v10051_v9 = vpop.permute.xlu0 %2163  ;;  %v2371_v19 = vld [vmem:[%s15537_s1 + $0x15c] sm:$0xff] }
 0x336   :  { %15811 = vst [vmem:[#allocation223_spill] sm:$0xff] %v10049_v15  ;;  %v2372_v15 = vld [vmem:[%s15537_s1 + $0x16c] sm:$0xff] }
 0x337   :  { %15812 = vst [vmem:[#allocation224_spill] sm:$0xff] %v10051_v9 }
 0x33a   :  { %2495 = vperm.xlu2 %8522, %v2369_v34   ;;  %v2370_v34 = vld [vmem:[%s15537_s1 + $0x154] sm:$0xff] }
 0x33b   :  { %2490 = vperm.xlu1 %8521, %v2368_v46   ;;  %2485 = vperm.xlu0 %8520, %v2367_v35  }
 0x33c   :  { %v10062_v47 = vpop.permute.xlu2 %2233 }
 0x33d   :  { %15813 = vst [vmem:[#allocation225_spill] sm:$0xff] %v10062_v47  ;;  %v10064_v53 = vpop.permute.xlu1 %2183  ;;  %v10066_v9 = vpop.permute.xlu0 %2178  ;;  %v2374_v47 = vld [vmem:[%s15537_s1 + $0x184] sm:$0xff] }
 0x33e   :  { %15814 = vst [vmem:[#allocation226_spill] sm:$0xff] %v10064_v53  ;;  %v2375_v53 = vld [vmem:[%s15537_s1 + $0x18c] sm:$0xff] }
 0x33f   :  { %15815 = vst [vmem:[#allocation227_spill] sm:$0xff] %v10066_v9 }
 0x342   :  { %2510 = vperm.xlu2 %8522, %v2372_v15   ;;  %v2373_v15 = vld [vmem:[%s15537_s1 + $0x174] sm:$0xff] }
 0x343   :  { %2505 = vperm.xlu1 %8521, %v2371_v19   ;;  %2500 = vperm.xlu0 %8520, %v2370_v34  }
 0x344   :  { %v10077_v46 = vpop.permute.xlu2 %2248 }
 0x345   :  { %15816 = vst [vmem:[#allocation228_spill] sm:$0xff] %v10077_v46  ;;  %v10079_v35 = vpop.permute.xlu1 %2198  ;;  %v10081_v9 = vpop.permute.xlu0 %2193 }
 0x346   :  { %15817 = vst [vmem:[#allocation229_spill] sm:$0xff] %v10079_v35  ;;  %v2377_v35 = vld [vmem:[%s15537_s1 + $0x1a4] sm:$0xff] }
 0x347   :  { %15818 = vst [vmem:[#allocation230_spill] sm:$0xff] %v10081_v9  ;;  %v7920_v9 = vld [vmem:[%s15535_s0 + $0x18] sm:$0xff] }
 0x34a   :  { %2525 = vperm.xlu2 %8522, %v2375_v53   ;;  %v2376_v53 = vld [vmem:[%s15537_s1 + $0x19c] sm:$0xff] }
 0x34b   :  { %2520 = vperm.xlu1 %8521, %v2374_v47   ;;  %2515 = vperm.xlu0 %8520, %v2373_v15  }
 0x34c   :  { %v10092_v19 = vpop.permute.xlu2 %2263 }
 0x34d   :  { %15819 = vst [vmem:[#allocation231_spill] sm:$0xff] %v10092_v19  ;;  %v10094_v34 = vpop.permute.xlu1 %2213  ;;  %v10096_v46 = vpop.permute.xlu0 %2208 }
 0x34e   :  { %15820 = vst [vmem:[#allocation232_spill] sm:$0xff] %v10094_v34  ;;  %v7922_v34 = vld [vmem:[%s15535_s0 + $0x30] sm:$0xff] }
 0x34f   :  { %15821 = vst [vmem:[#allocation233_spill] sm:$0xff] %v10096_v46  ;;  %v7923_v46 = vld [vmem:[%s15535_s0 + $0x38] sm:$0xff] }
 0x352   :  { %2638 = vperm.xlu2 %8522, %v7920_v9   ;;  %v7921_v9 = vld [vmem:[%s15535_s0 + $0x20] sm:$0xff] }
 0x353   :  { %2535 = vperm.xlu1 %8521, %v2377_v35   ;;  %2530 = vperm.xlu0 %8520, %v2376_v53  }
 0x354   :  { %v10107_v47 = vpop.permute.xlu2 %2278 }
 0x355   :  { %15822 = vst [vmem:[#allocation234_spill] sm:$0xff] %v10107_v47  ;;  %v10109_v15 = vpop.permute.xlu1 %2228  ;;  %v10111_v19 = vpop.permute.xlu0 %2223 }
 0x356   :  { %15823 = vst [vmem:[#allocation235_spill] sm:$0xff] %v10109_v15  ;;  %v7925_v15 = vld [vmem:[%s15535_s0 + $0x50] sm:$0xff] }
 0x357   :  { %15824 = vst [vmem:[#allocation236_spill] sm:$0xff] %v10111_v19  ;;  %v7926_v19 = vld [vmem:[%s15535_s0 + $0x60] sm:$0xff] }
 0x35a   :  { %2653 = vperm.xlu2 %8522, %v7923_v46   ;;  %v7924_v46 = vld [vmem:[%s15535_s0 + $0x48] sm:$0xff] }
 0x35b   :  { %2648 = vperm.xlu1 %8521, %v7922_v34   ;;  %2643 = vperm.xlu0 %8520, %v7921_v9  }
 0x35c   :  { %v10122_v35 = vpop.permute.xlu2 %2390 }
 0x35d   :  { %15825 = vst [vmem:[#allocation237_spill] sm:$0xff] %v10122_v35  ;;  %v10124_v53 = vpop.permute.xlu1 %2243  ;;  %v10126_v47 = vpop.permute.xlu0 %2238  ;;  %v7928_v35 = vld [vmem:[%s15535_s0 + $0x78] sm:$0xff] }
 0x35e   :  { %15826 = vst [vmem:[#allocation238_spill] sm:$0xff] %v10124_v53 }
 0x35f   :  { %15827 = vst [vmem:[#allocation239_spill] sm:$0xff] %v10126_v47  ;;  %v7929_v47 = vld [vmem:[%s15535_s0 + $0x80] sm:$0xff] }
 0x362   :  { %2668 = vperm.xlu2 %8522, %v7926_v19   ;;  %v7927_v19 = vld [vmem:[%s15535_s0 + $0x68] sm:$0xff] }
 0x363   :  { %2663 = vperm.xlu1 %8521, %v7925_v15   ;;  %2658 = vperm.xlu0 %8520, %v7924_v46  }
 0x364   :  { %v10137_v34 = vpop.permute.xlu2 %2405 }
 0x365   :  { %15828 = vst [vmem:[#allocation240_spill] sm:$0xff] %v10137_v34  ;;  %v10139_v9 = vpop.permute.xlu1 %2258  ;;  %v10141_v53 = vpop.permute.xlu0 %2253  ;;  %v7931_v34 = vld [vmem:[%s15535_s0 + $0x98] sm:$0xff] }
 0x366   :  { %15829 = vst [vmem:[#allocation241_spill] sm:$0xff] %v10139_v9 }
 0x367   :  { %15830 = vst [vmem:[#allocation242_spill] sm:$0xff] %v10141_v53  ;;  %v7932_v53 = vld [vmem:[%s15535_s0 + $0xa8] sm:$0xff] }
 0x36a   :  { %2683 = vperm.xlu2 %8522, %v7929_v47   ;;  %v7930_v47 = vld [vmem:[%s15535_s0 + $0x90] sm:$0xff] }
 0x36b   :  { %2678 = vperm.xlu1 %8521, %v7928_v35   ;;  %2673 = vperm.xlu0 %8520, %v7927_v19  }
 0x36c   :  { %v10152_v15 = vpop.permute.xlu2 %2420 }
 0x36d   :  { %15831 = vst [vmem:[#allocation243_spill] sm:$0xff] %v10152_v15  ;;  %v10154_v46 = vpop.permute.xlu1 %2273  ;;  %v10156_v9 = vpop.permute.xlu0 %2268  ;;  %v7934_v15 = vld [vmem:[%s15535_s0 + $0xc0] sm:$0xff] }
 0x36e   :  { %15832 = vst [vmem:[#allocation244_spill] sm:$0xff] %v10154_v46 }
 0x36f   :  { %15833 = vst [vmem:[#allocation245_spill] sm:$0xff] %v10156_v9  ;;  %v7935_v9 = vld [vmem:[%s15535_s0 + $0xc8] sm:$0xff] }
 0x372   :  { %2698 = vperm.xlu2 %8522, %v7932_v53   ;;  %v7933_v53 = vld [vmem:[%s15535_s0 + $0xb0] sm:$0xff] }
 0x373   :  { %2693 = vperm.xlu1 %8521, %v7931_v34   ;;  %2688 = vperm.xlu0 %8520, %v7930_v47  }
 0x374   :  { %v10167_v35 = vpop.permute.xlu2 %2435 }
 0x375   :  { %15834 = vst [vmem:[#allocation246_spill] sm:$0xff] %v10167_v35  ;;  %v10169_v19 = vpop.permute.xlu1 %2385  ;;  %v10171_v46 = vpop.permute.xlu0 %2380  ;;  %v7937_v35 = vld [vmem:[%s15535_s0 + $0x110] sm:$0xff] }
 0x376   :  { %15835 = vst [vmem:[#allocation247_spill] sm:$0xff] %v10169_v19  ;;  %v7938_v19 = vld [vmem:[%s15535_s0 + $0x120] sm:$0xff] }
 0x377   :  { %15836 = vst [vmem:[#allocation248_spill] sm:$0xff] %v10171_v46 }
 0x37a   :  { %2713 = vperm.xlu2 %8522, %v7935_v9   ;;  %v7936_v9 = vld [vmem:[%s15535_s0 + $0x108] sm:$0xff] }
 0x37b   :  { %2708 = vperm.xlu1 %8521, %v7934_v15   ;;  %2703 = vperm.xlu0 %8520, %v7933_v53  }
 0x37c   :  { %v10182_v34 = vpop.permute.xlu2 %2450 }
 0x37d   :  { %15837 = vst [vmem:[#allocation249_spill] sm:$0xff] %v10182_v34  ;;  %v10184_v47 = vpop.permute.xlu1 %2400  ;;  %v10186_v46 = vpop.permute.xlu0 %2395  ;;  %v7940_v34 = vld [vmem:[%s15535_s0 + $0x138] sm:$0xff] }
 0x37e   :  { %15838 = vst [vmem:[#allocation250_spill] sm:$0xff] %v10184_v47  ;;  %v7941_v47 = vld [vmem:[%s15535_s0 + $0x140] sm:$0xff] }
 0x37f   :  { %15839 = vst [vmem:[#allocation251_spill] sm:$0xff] %v10186_v46 }
 0x382   :  { %2728 = vperm.xlu2 %8522, %v7938_v19   ;;  %v7939_v19 = vld [vmem:[%s15535_s0 + $0x128] sm:$0xff] }
 0x383   :  { %2723 = vperm.xlu1 %8521, %v7937_v35   ;;  %2718 = vperm.xlu0 %8520, %v7936_v9  }
 0x384   :  { %v10197_v15 = vpop.permute.xlu2 %2465 }
 0x385   :  { %15840 = vst [vmem:[#allocation252_spill] sm:$0xff] %v10197_v15  ;;  %v10199_v53 = vpop.permute.xlu1 %2415  ;;  %v10201_v46 = vpop.permute.xlu0 %2410  ;;  %v7943_v15 = vld [vmem:[%s15535_s0 + $0x158] sm:$0xff] }
 0x386   :  { %15841 = vst [vmem:[#allocation253_spill] sm:$0xff] %v10199_v53  ;;  %v7944_v53 = vld [vmem:[%s15535_s0 + $0x168] sm:$0xff] }
 0x387   :  { %15842 = vst [vmem:[#allocation254_spill] sm:$0xff] %v10201_v46 }
 0x38a   :  { %2743 = vperm.xlu2 %8522, %v7941_v47   ;;  %v7942_v47 = vld [vmem:[%s15535_s0 + $0x150] sm:$0xff] }
 0x38b   :  { %2738 = vperm.xlu1 %8521, %v7940_v34   ;;  %2733 = vperm.xlu0 %8520, %v7939_v19  }
 0x38c   :  { %v10212_v35 = vpop.permute.xlu2 %2480 }
 0x38d   :  { %15843 = vst [vmem:[#allocation255_spill] sm:$0xff] %v10212_v35  ;;  %v10214_v9 = vpop.permute.xlu1 %2430  ;;  %v10216_v46 = vpop.permute.xlu0 %2425  ;;  %v7946_v35 = vld [vmem:[%s15535_s0 + $0x180] sm:$0xff] }
 0x38e   :  { %15844 = vst [vmem:[#allocation256_spill] sm:$0xff] %v10214_v9 }
 0x38f   :  { %15845 = vst [vmem:[#allocation257_spill] sm:$0xff] %v10216_v46  ;;  %v7947_v46 = vld [vmem:[%s15535_s0 + $0x188] sm:$0xff] }
 0x392   :  { %2758 = vperm.xlu2 %8522, %v7944_v53   ;;  %v7945_v53 = vld [vmem:[%s15535_s0 + $0x170] sm:$0xff] }
 0x393   :  { %2753 = vperm.xlu1 %8521, %v7943_v15   ;;  %2748 = vperm.xlu0 %8520, %v7942_v47  }
 0x394   :  { %v10227_v34 = vpop.permute.xlu2 %2495 }
 0x395   :  { %15846 = vst [vmem:[#allocation258_spill] sm:$0xff] %v10227_v34  ;;  %v10229_v19 = vpop.permute.xlu1 %2445  ;;  %v10231_v9 = vpop.permute.xlu0 %2440 }
 0x396   :  { %15847 = vst [vmem:[#allocation259_spill] sm:$0xff] %v10229_v19  ;;  %v7949_v19 = vld [vmem:[%s15535_s0 + $0x1a0] sm:$0xff] }
 0x397   :  { %15848 = vst [vmem:[#allocation260_spill] sm:$0xff] %v10231_v9  ;;  %v7950_v9 = vld [vmem:[%s15535_s0 + $0x1b0] sm:$0xff] }
 0x39a   :  { %2773 = vperm.xlu2 %8522, %v7947_v46   ;;  %v7948_v46 = vld [vmem:[%s15535_s0 + $0x198] sm:$0xff] }
 0x39b   :  { %2768 = vperm.xlu1 %8521, %v7946_v35   ;;  %2763 = vperm.xlu0 %8520, %v7945_v53  }
 0x39c   :  { %v10242_v15 = vpop.permute.xlu2 %2510 }
 0x39d   :  { %15849 = vst [vmem:[#allocation261_spill] sm:$0xff] %v10242_v15  ;;  %v10244_v47 = vpop.permute.xlu1 %2460  ;;  %v10246_v34 = vpop.permute.xlu0 %2455 }
 0x39e   :  { %15850 = vst [vmem:[#allocation262_spill] sm:$0xff] %v10244_v47  ;;  %v7952_v47 = vld [vmem:[%s15535_s0 + $0x19] sm:$0xff] }
 0x39f   :  { %15851 = vst [vmem:[#allocation263_spill] sm:$0xff] %v10246_v34  ;;  %v7953_v34 = vld [vmem:[%s15535_s0 + $0x21] sm:$0xff] }
 0x3a2   :  { %2788 = vperm.xlu2 %8522, %v7950_v9   ;;  %v7951_v9 = vld [vmem:[%s15535_s0 + $0x1b8] sm:$0xff] }
 0x3a3   :  { %2783 = vperm.xlu1 %8521, %v7949_v19   ;;  %2778 = vperm.xlu0 %8520, %v7948_v46  }
 0x3a4   :  { %v10257_v35 = vpop.permute.xlu2 %2525 }
 0x3a5   :  { %15852 = vst [vmem:[#allocation264_spill] sm:$0xff] %v10257_v35  ;;  %v10259_v53 = vpop.permute.xlu1 %2475  ;;  %v10261_v15 = vpop.permute.xlu0 %2470 }
 0x3a6   :  { %15853 = vst [vmem:[#allocation265_spill] sm:$0xff] %v10259_v53  ;;  %v7955_v53 = vld [vmem:[%s15535_s0 + $0x39] sm:$0xff] }
 0x3a7   :  { %15854 = vst [vmem:[#allocation266_spill] sm:$0xff] %v10261_v15  ;;  %v7956_v15 = vld [vmem:[%s15535_s0 + $0x49] sm:$0xff] }
 0x3aa   :  { %2900 = vperm.xlu2 %8522, %v7953_v34   ;;  %v7954_v34 = vld [vmem:[%s15535_s0 + $0x31] sm:$0xff] }
 0x3ab   :  { %2895 = vperm.xlu1 %8521, %v7952_v47   ;;  %2793 = vperm.xlu0 %8520, %v7951_v9  }
 0x3ac   :  { %v10272_v19 = vpop.permute.xlu2 %2638 }
 0x3ad   :  { %15855 = vst [vmem:[#allocation267_spill] sm:$0xff] %v10272_v19  ;;  %v10274_v46 = vpop.permute.xlu1 %2490  ;;  %v10276_v35 = vpop.permute.xlu0 %2485  ;;  %v7958_v19 = vld [vmem:[%s15535_s0 + $0x61] sm:$0xff] }
 0x3ae   :  { %15856 = vst [vmem:[#allocation268_spill] sm:$0xff] %v10274_v46  ;;  %v7959_v46 = vld [vmem:[%s15535_s0 + $0x69] sm:$0xff] }
 0x3af   :  { %15857 = vst [vmem:[#allocation269_spill] sm:$0xff] %v10276_v35 }
 0x3b2   :  { %2915 = vperm.xlu2 %8522, %v7956_v15   ;;  %v7957_v15 = vld [vmem:[%s15535_s0 + $0x51] sm:$0xff] }
 0x3b3   :  { %2910 = vperm.xlu1 %8521, %v7955_v53   ;;  %2905 = vperm.xlu0 %8520, %v7954_v34  }
 0x3b4   :  { %v10287_v47 = vpop.permute.xlu2 %2653 }
 0x3b5   :  { %15858 = vst [vmem:[#allocation270_spill] sm:$0xff] %v10287_v47  ;;  %v10289_v9 = vpop.permute.xlu1 %2505  ;;  %v10291_v35 = vpop.permute.xlu0 %2500  ;;  %v7961_v47 = vld [vmem:[%s15535_s0 + $0x81] sm:$0xff] }
 0x3b6   :  { %15859 = vst [vmem:[#allocation271_spill] sm:$0xff] %v10289_v9 }
 0x3b7   :  { %15860 = vst [vmem:[#allocation272_spill] sm:$0xff] %v10291_v35  ;;  %v7962_v35 = vld [vmem:[%s15535_s0 + $0x91] sm:$0xff] }
 0x3ba   :  { %2930 = vperm.xlu2 %8522, %v7959_v46   ;;  %v7960_v46 = vld [vmem:[%s15535_s0 + $0x79] sm:$0xff] }
 0x3bb   :  { %2925 = vperm.xlu1 %8521, %v7958_v19   ;;  %2920 = vperm.xlu0 %8520, %v7957_v15  }
 0x3bc   :  { %v10302_v53 = vpop.permute.xlu2 %2668 }
 0x3bd   :  { %15861 = vst [vmem:[#allocation273_spill] sm:$0xff] %v10302_v53  ;;  %v10304_v34 = vpop.permute.xlu1 %2520  ;;  %v10306_v9 = vpop.permute.xlu0 %2515  ;;  %v7964_v53 = vld [vmem:[%s15535_s0 + $0xa9] sm:$0xff] }
 0x3be   :  { %15862 = vst [vmem:[#allocation274_spill] sm:$0xff] %v10304_v34  ;;  %v7965_v34 = vld [vmem:[%s15535_s0 + $0xb1] sm:$0xff] }
 0x3bf   :  { %15863 = vst [vmem:[#allocation275_spill] sm:$0xff] %v10306_v9 }
 0x3c2   :  { %2945 = vperm.xlu2 %8522, %v7962_v35   ;;  %v7963_v35 = vld [vmem:[%s15535_s0 + $0x99] sm:$0xff] }
 0x3c3   :  { %2940 = vperm.xlu1 %8521, %v7961_v47   ;;  %2935 = vperm.xlu0 %8520, %v7960_v46  }
 0x3c4   :  { %v10317_v19 = vpop.permute.xlu2 %2683 }
 0x3c5   :  { %15864 = vst [vmem:[#allocation276_spill] sm:$0xff] %v10317_v19  ;;  %v10319_v15 = vpop.permute.xlu1 %2535  ;;  %v10321_v9 = vpop.permute.xlu0 %2530  ;;  %v7967_v19 = vld [vmem:[%s15535_s0 + $0xc9] sm:$0xff] }
 0x3c6   :  { %15865 = vst [vmem:[#allocation277_spill] sm:$0xff] %v10319_v15  ;;  %v7968_v15 = vld [vmem:[%s15535_s0 + $0x109] sm:$0xff] }
 0x3c7   :  { %15866 = vst [vmem:[#allocation278_spill] sm:$0xff] %v10321_v9 }
 0x3ca   :  { %2960 = vperm.xlu2 %8522, %v7965_v34   ;;  %v7966_v34 = vld [vmem:[%s15535_s0 + $0xc1] sm:$0xff] }
 0x3cb   :  { %2955 = vperm.xlu1 %8521, %v7964_v53   ;;  %2950 = vperm.xlu0 %8520, %v7963_v35  }
 0x3cc   :  { %v10332_v47 = vpop.permute.xlu2 %2698 }
 0x3cd   :  { %15867 = vst [vmem:[#allocation279_spill] sm:$0xff] %v10332_v47  ;;  %v10334_v46 = vpop.permute.xlu1 %2648  ;;  %v10336_v9 = vpop.permute.xlu0 %2643 }
 0x3ce   :  { %15868 = vst [vmem:[#allocation280_spill] sm:$0xff] %v10334_v46  ;;  %v7970_v46 = vld [vmem:[%s15535_s0 + $0x121] sm:$0xff] }
 0x3cf   :  { %15869 = vst [vmem:[#allocation281_spill] sm:$0xff] %v10336_v9  ;;  %v7971_v9 = vld [vmem:[%s15535_s0 + $0x129] sm:$0xff] }
 0x3d2   :  { %2975 = vperm.xlu2 %8522, %v7968_v15   ;;  %v7969_v15 = vld [vmem:[%s15535_s0 + $0x111] sm:$0xff] }
 0x3d3   :  { %2970 = vperm.xlu1 %8521, %v7967_v19   ;;  %2965 = vperm.xlu0 %8520, %v7966_v34  }
 0x3d4   :  { %v10347_v53 = vpop.permute.xlu2 %2713 }
 0x3d5   :  { %15870 = vst [vmem:[#allocation282_spill] sm:$0xff] %v10347_v53  ;;  %v10349_v35 = vpop.permute.xlu1 %2663  ;;  %v10351_v47 = vpop.permute.xlu0 %2658  ;;  %v7973_v53 = vld [vmem:[%s15535_s0 + $0x141] sm:$0xff] }
 0x3d6   :  { %15871 = vst [vmem:[#allocation283_spill] sm:$0xff] %v10349_v35  ;;  %v7974_v35 = vld [vmem:[%s15535_s0 + $0x151] sm:$0xff] }
 0x3d7   :  { %15872 = vst [vmem:[#allocation284_spill] sm:$0xff] %v10351_v47 }
 0x3da   :  { %2990 = vperm.xlu2 %8522, %v7971_v9   ;;  %v7972_v9 = vld [vmem:[%s15535_s0 + $0x139] sm:$0xff] }
 0x3db   :  { %2985 = vperm.xlu1 %8521, %v7970_v46   ;;  %2980 = vperm.xlu0 %8520, %v7969_v15  }
 0x3dc   :  { %v10362_v19 = vpop.permute.xlu2 %2728 }
 0x3dd   :  { %15873 = vst [vmem:[#allocation285_spill] sm:$0xff] %v10362_v19  ;;  %v10364_v34 = vpop.permute.xlu1 %2678  ;;  %v10366_v47 = vpop.permute.xlu0 %2673  ;;  %v7976_v19 = vld [vmem:[%s15535_s0 + $0x169] sm:$0xff] }
 0x3de   :  { %15874 = vst [vmem:[#allocation286_spill] sm:$0xff] %v10364_v34  ;;  %v7977_v34 = vld [vmem:[%s15535_s0 + $0x171] sm:$0xff] }
 0x3df   :  { %15875 = vst [vmem:[#allocation287_spill] sm:$0xff] %v10366_v47 }
 0x3e2   :  { %3005 = vperm.xlu2 %8522, %v7974_v35   ;;  %v7975_v35 = vld [vmem:[%s15535_s0 + $0x159] sm:$0xff] }
 0x3e3   :  { %3000 = vperm.xlu1 %8521, %v7973_v53   ;;  %2995 = vperm.xlu0 %8520, %v7972_v9  }
 0x3e4   :  { %v10377_v46 = vpop.permute.xlu2 %2743 }
 0x3e5   :  { %15876 = vst [vmem:[#allocation288_spill] sm:$0xff] %v10377_v46  ;;  %v10379_v15 = vpop.permute.xlu1 %2693  ;;  %v10381_v47 = vpop.permute.xlu0 %2688  ;;  %v7979_v46 = vld [vmem:[%s15535_s0 + $0x189] sm:$0xff] }
 0x3e6   :  { %15877 = vst [vmem:[#allocation289_spill] sm:$0xff] %v10379_v15 }
 0x3e7   :  { %15878 = vst [vmem:[#allocation290_spill] sm:$0xff] %v10381_v47  ;;  %v7980_v47 = vld [vmem:[%s15535_s0 + $0x199] sm:$0xff] }
 0x3ea   :  { %3020 = vperm.xlu2 %8522, %v7977_v34   ;;  %v7978_v34 = vld [vmem:[%s15535_s0 + $0x181] sm:$0xff] }
 0x3eb   :  { %3015 = vperm.xlu1 %8521, %v7976_v19   ;;  %3010 = vperm.xlu0 %8520, %v7975_v35  }
 0x3ec   :  { %v10392_v53 = vpop.permute.xlu2 %2758 }
 0x3ed   :  { %15879 = vst [vmem:[#allocation291_spill] sm:$0xff] %v10392_v53  ;;  %v10394_v9 = vpop.permute.xlu1 %2708  ;;  %v10396_v15 = vpop.permute.xlu0 %2703 }
 0x3ee   :  { %15880 = vst [vmem:[#allocation292_spill] sm:$0xff] %v10394_v9  ;;  %v7982_v9 = vld [vmem:[%s15535_s0 + $0x1b1] sm:$0xff] }
 0x3ef   :  { %15881 = vst [vmem:[#allocation293_spill] sm:$0xff] %v10396_v15  ;;  %v7983_v15 = vld [vmem:[%s15535_s0 + $0x1b9] sm:$0xff] }
 0x3f2   :  { %3035 = vperm.xlu2 %8522, %v7980_v47   ;;  %v7981_v47 = vld [vmem:[%s15535_s0 + $0x1a1] sm:$0xff] }
 0x3f3   :  { %3030 = vperm.xlu1 %8521, %v7979_v46   ;;  %3025 = vperm.xlu0 %8520, %v7978_v34  }
 0x3f4   :  { %v10407_v19 = vpop.permute.xlu2 %2773 }
 0x3f5   :  { %15882 = vst [vmem:[#allocation294_spill] sm:$0xff] %v10407_v19  ;;  %v10409_v35 = vpop.permute.xlu1 %2723  ;;  %v10411_v53 = vpop.permute.xlu0 %2718 }
 0x3f6   :  { %15883 = vst [vmem:[#allocation295_spill] sm:$0xff] %v10409_v35  ;;  %v7985_v35 = vld [vmem:[%s15535_s0 + $0x22] sm:$0xff] }
 0x3f7   :  { %15884 = vst [vmem:[#allocation296_spill] sm:$0xff] %v10411_v53  ;;  %v7986_v53 = vld [vmem:[%s15535_s0 + $0x32] sm:$0xff] }
 0x3fa   :  { %3050 = vperm.xlu2 %8522, %v7983_v15   ;;  %v7984_v15 = vld [vmem:[%s15535_s0 + $0x1a] sm:$0xff] }
 0x3fb   :  { %3045 = vperm.xlu1 %8521, %v7982_v9   ;;  %3040 = vperm.xlu0 %8520, %v7981_v47  }
 0x3fc   :  { %v10422_v46 = vpop.permute.xlu2 %2788 }
 0x3fd   :  { %15885 = vst [vmem:[#allocation297_spill] sm:$0xff] %v10422_v46  ;;  %v10424_v34 = vpop.permute.xlu1 %2738  ;;  %v10426_v19 = vpop.permute.xlu0 %2733 }
 0x3fe   :  { %15886 = vst [vmem:[#allocation298_spill] sm:$0xff] %v10424_v34  ;;  %v7988_v34 = vld [vmem:[%s15535_s0 + $0x4a] sm:$0xff] }
 0x3ff   :  { %15887 = vst [vmem:[#allocation299_spill] sm:$0xff] %v10426_v19  ;;  %v7989_v19 = vld [vmem:[%s15535_s0 + $0x52] sm:$0xff] }
 0x402   :  { %3162 = vperm.xlu2 %8522, %v7986_v53   ;;  %v7987_v53 = vld [vmem:[%s15535_s0 + $0x3a] sm:$0xff] }
 0x403   :  { %3157 = vperm.xlu1 %8521, %v7985_v35   ;;  %3152 = vperm.xlu0 %8520, %v7984_v15  }
 0x404   :  { %v10437_v9 = vpop.permute.xlu2 %2900 }
 0x405   :  { %15888 = vst [vmem:[#allocation300_spill] sm:$0xff] %v10437_v9  ;;  %v10439_v47 = vpop.permute.xlu1 %2753  ;;  %v10441_v46 = vpop.permute.xlu0 %2748  ;;  %v7991_v9 = vld [vmem:[%s15535_s0 + $0x6a] sm:$0xff] }
 0x406   :  { %15889 = vst [vmem:[#allocation301_spill] sm:$0xff] %v10439_v47 }
 0x407   :  { %15890 = vst [vmem:[#allocation302_spill] sm:$0xff] %v10441_v46  ;;  %v7992_v46 = vld [vmem:[%s15535_s0 + $0x7a] sm:$0xff] }
 0x40a   :  { %3177 = vperm.xlu2 %8522, %v7989_v19   ;;  %v7990_v19 = vld [vmem:[%s15535_s0 + $0x62] sm:$0xff] }
 0x40b   :  { %3172 = vperm.xlu1 %8521, %v7988_v34   ;;  %3167 = vperm.xlu0 %8520, %v7987_v53  }
 0x40c   :  { %v10452_v35 = vpop.permute.xlu2 %2915 }
 0x40d   :  { %15891 = vst [vmem:[#allocation303_spill] sm:$0xff] %v10452_v35  ;;  %v10454_v15 = vpop.permute.xlu1 %2768  ;;  %v10456_v47 = vpop.permute.xlu0 %2763  ;;  %v7994_v35 = vld [vmem:[%s15535_s0 + $0x92] sm:$0xff] }
 0x40e   :  { %15892 = vst [vmem:[#allocation304_spill] sm:$0xff] %v10454_v15 }
 0x40f   :  { %15893 = vst [vmem:[#allocation305_spill] sm:$0xff] %v10456_v47  ;;  %v7995_v47 = vld [vmem:[%s15535_s0 + $0x9a] sm:$0xff] }
 0x412   :  { %3192 = vperm.xlu2 %8522, %v7992_v46   ;;  %v7993_v46 = vld [vmem:[%s15535_s0 + $0x82] sm:$0xff] }
 0x413   :  { %3187 = vperm.xlu1 %8521, %v7991_v9   ;;  %3182 = vperm.xlu0 %8520, %v7990_v19  }
 0x414   :  { %v10467_v34 = vpop.permute.xlu2 %2930 }
 0x415   :  { %15894 = vst [vmem:[#allocation306_spill] sm:$0xff] %v10467_v34  ;;  %v10469_v53 = vpop.permute.xlu1 %2783  ;;  %v10471_v15 = vpop.permute.xlu0 %2778  ;;  %v7997_v34 = vld [vmem:[%s15535_s0 + $0xb2] sm:$0xff] }
 0x416   :  { %15895 = vst [vmem:[#allocation307_spill] sm:$0xff] %v10469_v53 }
 0x417   :  { %15896 = vst [vmem:[#allocation308_spill] sm:$0xff] %v10471_v15  ;;  %v7998_v15 = vld [vmem:[%s15535_s0 + $0xc2] sm:$0xff] }
 0x41a   :  { %3207 = vperm.xlu2 %8522, %v7995_v47   ;;  %v7996_v47 = vld [vmem:[%s15535_s0 + $0xaa] sm:$0xff] }
 0x41b   :  { %3202 = vperm.xlu1 %8521, %v7994_v35   ;;  %3197 = vperm.xlu0 %8520, %v7993_v46  }
 0x41c   :  { %v10482_v9 = vpop.permute.xlu2 %2945 }
 0x41d   :  { %15897 = vst [vmem:[#allocation309_spill] sm:$0xff] %v10482_v9  ;;  %v10484_v19 = vpop.permute.xlu1 %2895  ;;  %v10486_v53 = vpop.permute.xlu0 %2793  ;;  %v8001_v9 = vld [vmem:[%s15535_s0 + $0x112] sm:$0xff] }
 0x41e   :  { %15898 = vst [vmem:[#allocation310_spill] sm:$0xff] %v10484_v19  ;;  %v8000_v19 = vld [vmem:[%s15535_s0 + $0x10a] sm:$0xff] }
 0x41f   :  { %15899 = vst [vmem:[#allocation311_spill] sm:$0xff] %v10486_v53 }
 0x422   :  { %3222 = vperm.xlu2 %8522, %v7998_v15   ;;  %v7999_v15 = vld [vmem:[%s15535_s0 + $0xca] sm:$0xff] }
 0x423   :  { %3217 = vperm.xlu1 %8521, %v7997_v34   ;;  %3212 = vperm.xlu0 %8520, %v7996_v47  }
 0x424   :  { %v10497_v35 = vpop.permute.xlu2 %2960 }
 0x425   :  { %15900 = vst [vmem:[#allocation312_spill] sm:$0xff] %v10497_v35  ;;  %v10499_v46 = vpop.permute.xlu1 %2910  ;;  %v10501_v53 = vpop.permute.xlu0 %2905  ;;  %v8003_v35 = vld [vmem:[%s15535_s0 + $0x12a] sm:$0xff] }
 0x426   :  { %15901 = vst [vmem:[#allocation313_spill] sm:$0xff] %v10499_v46  ;;  %v8004_v46 = vld [vmem:[%s15535_s0 + $0x13a] sm:$0xff] }
 0x427   :  { %15902 = vst [vmem:[#allocation314_spill] sm:$0xff] %v10501_v53 }
 0x42a   :  { %3237 = vperm.xlu2 %8522, %v8001_v9   ;;  %v8002_v9 = vld [vmem:[%s15535_s0 + $0x122] sm:$0xff] }
 0x42b   :  { %3232 = vperm.xlu1 %8521, %v8000_v19   ;;  %3227 = vperm.xlu0 %8520, %v7999_v15  }
 0x42c   :  { %v10512_v34 = vpop.permute.xlu2 %2975 }
 0x42d   :  { %15903 = vst [vmem:[#allocation315_spill] sm:$0xff] %v10512_v34  ;;  %v10514_v47 = vpop.permute.xlu1 %2925  ;;  %v10516_v53 = vpop.permute.xlu0 %2920  ;;  %v8006_v34 = vld [vmem:[%s15535_s0 + $0x152] sm:$0xff] }
 0x42e   :  { %15904 = vst [vmem:[#allocation316_spill] sm:$0xff] %v10514_v47  ;;  %v8007_v47 = vld [vmem:[%s15535_s0 + $0x15a] sm:$0xff] }
 0x42f   :  { %15905 = vst [vmem:[#allocation317_spill] sm:$0xff] %v10516_v53 }
 0x432   :  { %3252 = vperm.xlu2 %8522, %v8004_v46   ;;  %v8005_v46 = vld [vmem:[%s15535_s0 + $0x142] sm:$0xff] }
 0x433   :  { %3247 = vperm.xlu1 %8521, %v8003_v35   ;;  %3242 = vperm.xlu0 %8520, %v8002_v9  }
 0x434   :  { %v10527_v19 = vpop.permute.xlu2 %2990 }
 0x435   :  { %15906 = vst [vmem:[#allocation318_spill] sm:$0xff] %v10527_v19  ;;  %v10529_v15 = vpop.permute.xlu1 %2940  ;;  %v10531_v53 = vpop.permute.xlu0 %2935  ;;  %v8009_v19 = vld [vmem:[%s15535_s0 + $0x172] sm:$0xff] }
 0x436   :  { %15907 = vst [vmem:[#allocation319_spill] sm:$0xff] %v10529_v15 }
 0x437   :  { %15908 = vst [vmem:[#allocation320_spill] sm:$0xff] %v10531_v53  ;;  %v8010_v53 = vld [vmem:[%s15535_s0 + $0x182] sm:$0xff] }
 0x43a   :  { %3267 = vperm.xlu2 %8522, %v8007_v47   ;;  %v8008_v47 = vld [vmem:[%s15535_s0 + $0x16a] sm:$0xff] }
 0x43b   :  { %3262 = vperm.xlu1 %8521, %v8006_v34   ;;  %3257 = vperm.xlu0 %8520, %v8005_v46  }
 0x43c   :  { %v10542_v35 = vpop.permute.xlu2 %3005 }
 0x43d   :  { %15909 = vst [vmem:[#allocation321_spill] sm:$0xff] %v10542_v35  ;;  %v10544_v9 = vpop.permute.xlu1 %2955  ;;  %v10546_v15 = vpop.permute.xlu0 %2950  ;;  %v8012_v35 = vld [vmem:[%s15535_s0 + $0x19a] sm:$0xff] }
 0x43e   :  { %15910 = vst [vmem:[#allocation322_spill] sm:$0xff] %v10544_v9 }
 0x43f   :  { %15911 = vst [vmem:[#allocation323_spill] sm:$0xff] %v10546_v15  ;;  %v8013_v15 = vld [vmem:[%s15535_s0 + $0x1a2] sm:$0xff] }
 0x442   :  { %3282 = vperm.xlu2 %8522, %v8010_v53   ;;  %v8011_v53 = vld [vmem:[%s15535_s0 + $0x18a] sm:$0xff] }
 0x443   :  { %3277 = vperm.xlu1 %8521, %v8009_v19   ;;  %3272 = vperm.xlu0 %8520, %v8008_v47  }
 0x444   :  { %v10557_v34 = vpop.permute.xlu2 %3020 }
 0x445   :  { %15912 = vst [vmem:[#allocation324_spill] sm:$0xff] %v10557_v34  ;;  %v10559_v46 = vpop.permute.xlu1 %2970  ;;  %v10561_v9 = vpop.permute.xlu0 %2965 }
 0x446   :  { %15913 = vst [vmem:[#allocation325_spill] sm:$0xff] %v10559_v46  ;;  %v8015_v46 = vld [vmem:[%s15535_s0 + $0x1ba] sm:$0xff] }
 0x447   :  { %15914 = vst [vmem:[#allocation326_spill] sm:$0xff] %v10561_v9  ;;  %v8016_v9 = vld [vmem:[%s15535_s0 + $0x1b] sm:$0xff] }
 0x44a   :  { %3297 = vperm.xlu2 %8522, %v8013_v15   ;;  %v8014_v15 = vld [vmem:[%s15535_s0 + $0x1b2] sm:$0xff] }
 0x44b   :  { %3292 = vperm.xlu1 %8521, %v8012_v35   ;;  %3287 = vperm.xlu0 %8520, %v8011_v53  }
 0x44c   :  { %v10572_v19 = vpop.permute.xlu2 %3035 }
 0x44d   :  { %15915 = vst [vmem:[#allocation327_spill] sm:$0xff] %v10572_v19  ;;  %v10574_v47 = vpop.permute.xlu1 %2985  ;;  %v10576_v34 = vpop.permute.xlu0 %2980 }
 0x44e   :  { %15916 = vst [vmem:[#allocation328_spill] sm:$0xff] %v10574_v47  ;;  %v8018_v47 = vld [vmem:[%s15535_s0 + $0x33] sm:$0xff] }
 0x44f   :  { %15917 = vst [vmem:[#allocation329_spill] sm:$0xff] %v10576_v34  ;;  %v8019_v34 = vld [vmem:[%s15535_s0 + $0x3b] sm:$0xff] }
 0x452   :  { %3409 = vperm.xlu2 %8522, %v8016_v9   ;;  %v8017_v9 = vld [vmem:[%s15535_s0 + $0x23] sm:$0xff] }
 0x453   :  { %3307 = vperm.xlu1 %8521, %v8015_v46   ;;  %3302 = vperm.xlu0 %8520, %v8014_v15  }
 0x454   :  { %v10587_v35 = vpop.permute.xlu2 %3050 }
 0x455   :  { %15918 = vst [vmem:[#allocation330_spill] sm:$0xff] %v10587_v35  ;;  %v10589_v53 = vpop.permute.xlu1 %3000  ;;  %v10591_v19 = vpop.permute.xlu0 %2995 }
 0x456   :  { %15919 = vst [vmem:[#allocation331_spill] sm:$0xff] %v10589_v53  ;;  %v8021_v53 = vld [vmem:[%s15535_s0 + $0x53] sm:$0xff] }
 0x457   :  { %15920 = vst [vmem:[#allocation332_spill] sm:$0xff] %v10591_v19  ;;  %v8022_v19 = vld [vmem:[%s15535_s0 + $0x63] sm:$0xff] }
 0x45a   :  { %3424 = vperm.xlu2 %8522, %v8019_v34   ;;  %v8020_v34 = vld [vmem:[%s15535_s0 + $0x4b] sm:$0xff] }
 0x45b   :  { %3419 = vperm.xlu1 %8521, %v8018_v47   ;;  %3414 = vperm.xlu0 %8520, %v8017_v9  }
 0x45c   :  { %v10602_v46 = vpop.permute.xlu2 %3162 }
 0x45d   :  { %15921 = vst [vmem:[#allocation333_spill] sm:$0xff] %v10602_v46  ;;  %v10604_v15 = vpop.permute.xlu1 %3015  ;;  %v10606_v35 = vpop.permute.xlu0 %3010  ;;  %v8024_v46 = vld [vmem:[%s15535_s0 + $0x7b] sm:$0xff] }
 0x45e   :  { %15922 = vst [vmem:[#allocation334_spill] sm:$0xff] %v10604_v15 }
 0x45f   :  { %15923 = vst [vmem:[#allocation335_spill] sm:$0xff] %v10606_v35  ;;  %v8025_v35 = vld [vmem:[%s15535_s0 + $0x83] sm:$0xff] }
 0x462   :  { %3439 = vperm.xlu2 %8522, %v8022_v19   ;;  %v8023_v19 = vld [vmem:[%s15535_s0 + $0x6b] sm:$0xff] }
 0x463   :  { %3434 = vperm.xlu1 %8521, %v8021_v53   ;;  %3429 = vperm.xlu0 %8520, %v8020_v34  }
 0x464   :  { %v10617_v47 = vpop.permute.xlu2 %3177 }
 0x465   :  { %15924 = vst [vmem:[#allocation336_spill] sm:$0xff] %v10617_v47  ;;  %v10619_v9 = vpop.permute.xlu1 %3030  ;;  %v10621_v15 = vpop.permute.xlu0 %3025  ;;  %v8027_v47 = vld [vmem:[%s15535_s0 + $0x9b] sm:$0xff] }
 0x466   :  { %15925 = vst [vmem:[#allocation337_spill] sm:$0xff] %v10619_v9  ;;  %v8028_v9 = vld [vmem:[%s15535_s0 + $0xab] sm:$0xff] }
 0x467   :  { %15926 = vst [vmem:[#allocation338_spill] sm:$0xff] %v10621_v15 }
 0x46a   :  { %3454 = vperm.xlu2 %8522, %v8025_v35   ;;  %v8026_v35 = vld [vmem:[%s15535_s0 + $0x93] sm:$0xff] }
 0x46b   :  { %3449 = vperm.xlu1 %8521, %v8024_v46   ;;  %3444 = vperm.xlu0 %8520, %v8023_v19  }
 0x46c   :  { %v10632_v53 = vpop.permute.xlu2 %3192 }
 0x46d   :  { %15927 = vst [vmem:[#allocation339_spill] sm:$0xff] %v10632_v53  ;;  %v10634_v34 = vpop.permute.xlu1 %3045  ;;  %v10636_v15 = vpop.permute.xlu0 %3040  ;;  %v8030_v53 = vld [vmem:[%s15535_s0 + $0xc3] sm:$0xff] }
 0x46e   :  { %15928 = vst [vmem:[#allocation340_spill] sm:$0xff] %v10634_v34  ;;  %v8031_v34 = vld [vmem:[%s15535_s0 + $0xcb] sm:$0xff] }
 0x46f   :  { %15929 = vst [vmem:[#allocation341_spill] sm:$0xff] %v10636_v15 }
 0x472   :  { %3469 = vperm.xlu2 %8522, %v8028_v9   ;;  %v8029_v9 = vld [vmem:[%s15535_s0 + $0xb3] sm:$0xff] }
 0x473   :  { %3464 = vperm.xlu1 %8521, %v8027_v47   ;;  %3459 = vperm.xlu0 %8520, %v8026_v35  }
 0x474   :  { %v10647_v46 = vpop.permute.xlu2 %3207 }
 0x475   :  { %15930 = vst [vmem:[#allocation342_spill] sm:$0xff] %v10647_v46  ;;  %v10649_v19 = vpop.permute.xlu1 %3157  ;;  %v10651_v15 = vpop.permute.xlu0 %3152 }
 0x476   :  { %15931 = vst [vmem:[#allocation343_spill] sm:$0xff] %v10649_v19  ;;  %v8033_v19 = vld [vmem:[%s15535_s0 + $0x113] sm:$0xff] }
 0x477   :  { %15932 = vst [vmem:[#allocation344_spill] sm:$0xff] %v10651_v15  ;;  %v8034_v15 = vld [vmem:[%s15535_s0 + $0x123] sm:$0xff] }
 0x47a   :  { %3484 = vperm.xlu2 %8522, %v8031_v34   ;;  %v8032_v34 = vld [vmem:[%s15535_s0 + $0x10b] sm:$0xff] }
 0x47b   :  { %3479 = vperm.xlu1 %8521, %v8030_v53   ;;  %3474 = vperm.xlu0 %8520, %v8029_v9  }
 0x47c   :  { %v10662_v47 = vpop.permute.xlu2 %3222 }
 0x47d   :  { %15933 = vst [vmem:[#allocation345_spill] sm:$0xff] %v10662_v47  ;;  %v10664_v35 = vpop.permute.xlu1 %3172  ;;  %v10666_v46 = vpop.permute.xlu0 %3167  ;;  %v8036_v47 = vld [vmem:[%s15535_s0 + $0x13b] sm:$0xff] }
 0x47e   :  { %15934 = vst [vmem:[#allocation346_spill] sm:$0xff] %v10664_v35  ;;  %v8037_v35 = vld [vmem:[%s15535_s0 + $0x143] sm:$0xff] }
 0x47f   :  { %15935 = vst [vmem:[#allocation347_spill] sm:$0xff] %v10666_v46 }
 0x482   :  { %3499 = vperm.xlu2 %8522, %v8034_v15   ;;  %v8035_v15 = vld [vmem:[%s15535_s0 + $0x12b] sm:$0xff] }
 0x483   :  { %3494 = vperm.xlu1 %8521, %v8033_v19   ;;  %3489 = vperm.xlu0 %8520, %v8032_v34  }
 0x484   :  { %v10677_v53 = vpop.permute.xlu2 %3237 }
 0x485   :  { %15936 = vst [vmem:[#allocation348_spill] sm:$0xff] %v10677_v53  ;;  %v10679_v9 = vpop.permute.xlu1 %3187  ;;  %v10681_v46 = vpop.permute.xlu0 %3182  ;;  %v8039_v53 = vld [vmem:[%s15535_s0 + $0x15b] sm:$0xff] }
 0x486   :  { %15937 = vst [vmem:[#allocation349_spill] sm:$0xff] %v10679_v9  ;;  %v8040_v9 = vld [vmem:[%s15535_s0 + $0x16b] sm:$0xff] }
 0x487   :  { %15938 = vst [vmem:[#allocation350_spill] sm:$0xff] %v10681_v46 }
 0x48a   :  { %3514 = vperm.xlu2 %8522, %v8037_v35   ;;  %v8038_v35 = vld [vmem:[%s15535_s0 + $0x153] sm:$0xff] }
 0x48b   :  { %3509 = vperm.xlu1 %8521, %v8036_v47   ;;  %3504 = vperm.xlu0 %8520, %v8035_v15  }
 0x48c   :  { %v10692_v19 = vpop.permute.xlu2 %3252 }
 0x48d   :  { %15939 = vst [vmem:[#allocation351_spill] sm:$0xff] %v10692_v19  ;;  %v10694_v34 = vpop.permute.xlu1 %3202  ;;  %v10696_v46 = vpop.permute.xlu0 %3197  ;;  %v8042_v19 = vld [vmem:[%s15535_s0 + $0x183] sm:$0xff] }
 0x48e   :  { %15940 = vst [vmem:[#allocation352_spill] sm:$0xff] %v10694_v34 }
 0x48f   :  { %15941 = vst [vmem:[#allocation353_spill] sm:$0xff] %v10696_v46  ;;  %v8043_v46 = vld [vmem:[%s15535_s0 + $0x18b] sm:$0xff] }
 0x492   :  { %3529 = vperm.xlu2 %8522, %v8040_v9   ;;  %v8041_v9 = vld [vmem:[%s15535_s0 + $0x173] sm:$0xff] }
 0x493   :  { %3524 = vperm.xlu1 %8521, %v8039_v53   ;;  %3519 = vperm.xlu0 %8520, %v8038_v35  }
 0x494   :  { %v10707_v47 = vpop.permute.xlu2 %3267 }
 0x495   :  { %15942 = vst [vmem:[#allocation354_spill] sm:$0xff] %v10707_v47  ;;  %v10709_v15 = vpop.permute.xlu1 %3217  ;;  %v10711_v34 = vpop.permute.xlu0 %3212 }
 0x496   :  { %15943 = vst [vmem:[#allocation355_spill] sm:$0xff] %v10709_v15  ;;  %v8045_v15 = vld [vmem:[%s15535_s0 + $0x1a3] sm:$0xff] }
 0x497   :  { %15944 = vst [vmem:[#allocation356_spill] sm:$0xff] %v10711_v34  ;;  %v8046_v34 = vld [vmem:[%s15535_s0 + $0x1b3] sm:$0xff] }
 0x49a   :  { %3544 = vperm.xlu2 %8522, %v8043_v46   ;;  %v8044_v46 = vld [vmem:[%s15535_s0 + $0x19b] sm:$0xff] }
 0x49b   :  { %3539 = vperm.xlu1 %8521, %v8042_v19   ;;  %3534 = vperm.xlu0 %8520, %v8041_v9  }
 0x49c   :  { %v10722_v53 = vpop.permute.xlu2 %3282 }
 0x49d   :  { %15945 = vst [vmem:[#allocation357_spill] sm:$0xff] %v10722_v53  ;;  %v10724_v35 = vpop.permute.xlu1 %3232  ;;  %v10726_v47 = vpop.permute.xlu0 %3227 }
 0x49e   :  { %15946 = vst [vmem:[#allocation358_spill] sm:$0xff] %v10724_v35  ;;  %v8048_v35 = vld [vmem:[%s15535_s0 + $0x1c] sm:$0xff] }
 0x49f   :  { %15947 = vst [vmem:[#allocation359_spill] sm:$0xff] %v10726_v47  ;;  %v8049_v47 = vld [vmem:[%s15535_s0 + $0x24] sm:$0xff] }
 0x4a2   :  { %3559 = vperm.xlu2 %8522, %v8046_v34   ;;  %v8047_v34 = vld [vmem:[%s15535_s0 + $0x1bb] sm:$0xff] }
 0x4a3   :  { %3554 = vperm.xlu1 %8521, %v8045_v15   ;;  %3549 = vperm.xlu0 %8520, %v8044_v46  }
 0x4a4   :  { %v10737_v19 = vpop.permute.xlu2 %3297 }
 0x4a5   :  { %15948 = vst [vmem:[#allocation360_spill] sm:$0xff] %v10737_v19  ;;  %v10739_v9 = vpop.permute.xlu1 %3247  ;;  %v10741_v53 = vpop.permute.xlu0 %3242 }
 0x4a6   :  { %15949 = vst [vmem:[#allocation361_spill] sm:$0xff] %v10739_v9  ;;  %v8051_v9 = vld [vmem:[%s15535_s0 + $0x3c] sm:$0xff] }
 0x4a7   :  { %15950 = vst [vmem:[#allocation362_spill] sm:$0xff] %v10741_v53  ;;  %v8052_v53 = vld [vmem:[%s15535_s0 + $0x4c] sm:$0xff] }
 0x4aa   :  { %3671 = vperm.xlu2 %8522, %v8049_v47   ;;  %v8050_v47 = vld [vmem:[%s15535_s0 + $0x34] sm:$0xff] }
 0x4ab   :  { %3666 = vperm.xlu1 %8521, %v8048_v35   ;;  %3564 = vperm.xlu0 %8520, %v8047_v34  }
 0x4ac   :  { %v10752_v15 = vpop.permute.xlu2 %3409 }
 0x4ad   :  { %15951 = vst [vmem:[#allocation363_spill] sm:$0xff] %v10752_v15  ;;  %v10754_v46 = vpop.permute.xlu1 %3262  ;;  %v10756_v19 = vpop.permute.xlu0 %3257  ;;  %v8054_v15 = vld [vmem:[%s15535_s0 + $0x64] sm:$0xff] }
 0x4ae   :  { %15952 = vst [vmem:[#allocation364_spill] sm:$0xff] %v10754_v46  ;;  %v8055_v46 = vld [vmem:[%s15535_s0 + $0x6c] sm:$0xff] }
 0x4af   :  { %15953 = vst [vmem:[#allocation365_spill] sm:$0xff] %v10756_v19 }
 0x4b2   :  { %3686 = vperm.xlu2 %8522, %v8052_v53   ;;  %v8053_v53 = vld [vmem:[%s15535_s0 + $0x54] sm:$0xff] }
 0x4b3   :  { %3681 = vperm.xlu1 %8521, %v8051_v9   ;;  %3676 = vperm.xlu0 %8520, %v8050_v47  }
 0x4b4   :  { %v10767_v35 = vpop.permute.xlu2 %3424 }
 0x4b5   :  { %15954 = vst [vmem:[#allocation366_spill] sm:$0xff] %v10767_v35  ;;  %v10769_v34 = vpop.permute.xlu1 %3277  ;;  %v10771_v19 = vpop.permute.xlu0 %3272  ;;  %v8057_v35 = vld [vmem:[%s15535_s0 + $0x84] sm:$0xff] }
 0x4b6   :  { %15955 = vst [vmem:[#allocation367_spill] sm:$0xff] %v10769_v34 }
 0x4b7   :  { %15956 = vst [vmem:[#allocation368_spill] sm:$0xff] %v10771_v19  ;;  %v8058_v19 = vld [vmem:[%s15535_s0 + $0x94] sm:$0xff] }
 0x4ba   :  { %3701 = vperm.xlu2 %8522, %v8055_v46   ;;  %v8056_v46 = vld [vmem:[%s15535_s0 + $0x7c] sm:$0xff] }
 0x4bb   :  { %3696 = vperm.xlu1 %8521, %v8054_v15   ;;  %3691 = vperm.xlu0 %8520, %v8053_v53  }
 0x4bc   :  { %v10782_v9 = vpop.permute.xlu2 %3439 }
 0x4bd   :  { %15957 = vst [vmem:[#allocation369_spill] sm:$0xff] %v10782_v9  ;;  %v10784_v47 = vpop.permute.xlu1 %3292  ;;  %v10786_v34 = vpop.permute.xlu0 %3287  ;;  %v8060_v9 = vld [vmem:[%s15535_s0 + $0xac] sm:$0xff] }
 0x4be   :  { %15958 = vst [vmem:[#allocation370_spill] sm:$0xff] %v10784_v47 }
 0x4bf   :  { %15959 = vst [vmem:[#allocation371_spill] sm:$0xff] %v10786_v34  ;;  %v8061_v34 = vld [vmem:[%s15535_s0 + $0xb4] sm:$0xff] }
 0x4c2   :  { %3716 = vperm.xlu2 %8522, %v8058_v19   ;;  %v8059_v19 = vld [vmem:[%s15535_s0 + $0x9c] sm:$0xff] }
 0x4c3   :  { %3711 = vperm.xlu1 %8521, %v8057_v35   ;;  %3706 = vperm.xlu0 %8520, %v8056_v46  }
 0x4c4   :  { %v10797_v15 = vpop.permute.xlu2 %3454 }
 0x4c5   :  { %15960 = vst [vmem:[#allocation372_spill] sm:$0xff] %v10797_v15  ;;  %v10799_v53 = vpop.permute.xlu1 %3307  ;;  %v10801_v47 = vpop.permute.xlu0 %3302  ;;  %v8063_v15 = vld [vmem:[%s15535_s0 + $0xcc] sm:$0xff] }
 0x4c6   :  { %15961 = vst [vmem:[#allocation373_spill] sm:$0xff] %v10799_v53 }
 0x4c7   :  { %15962 = vst [vmem:[#allocation374_spill] sm:$0xff] %v10801_v47  ;;  %v8064_v47 = vld [vmem:[%s15535_s0 + $0x10c] sm:$0xff] }
 0x4ca   :  { %3731 = vperm.xlu2 %8522, %v8061_v34   ;;  %v8062_v34 = vld [vmem:[%s15535_s0 + $0xc4] sm:$0xff] }
 0x4cb   :  { %3726 = vperm.xlu1 %8521, %v8060_v9   ;;  %3721 = vperm.xlu0 %8520, %v8059_v19  }
 0x4cc   :  { %v10812_v35 = vpop.permute.xlu2 %3469 }
 0x4cd   :  { %15963 = vst [vmem:[#allocation375_spill] sm:$0xff] %v10812_v35  ;;  %v10814_v46 = vpop.permute.xlu1 %3419  ;;  %v10816_v53 = vpop.permute.xlu0 %3414 }
 0x4ce   :  { %15964 = vst [vmem:[#allocation376_spill] sm:$0xff] %v10814_v46  ;;  %v8066_v46 = vld [vmem:[%s15535_s0 + $0x124] sm:$0xff] }
 0x4cf   :  { %15965 = vst [vmem:[#allocation377_spill] sm:$0xff] %v10816_v53  ;;  %v8067_v53 = vld [vmem:[%s15535_s0 + $0x12c] sm:$0xff] }
 0x4d2   :  { %3746 = vperm.xlu2 %8522, %v8064_v47   ;;  %v8065_v47 = vld [vmem:[%s15535_s0 + $0x114] sm:$0xff] }
 0x4d3   :  { %3741 = vperm.xlu1 %8521, %v8063_v15   ;;  %3736 = vperm.xlu0 %8520, %v8062_v34  }
 0x4d4   :  { %v10827_v9 = vpop.permute.xlu2 %3484 }
 0x4d5   :  { %15966 = vst [vmem:[#allocation378_spill] sm:$0xff] %v10827_v9  ;;  %v10829_v19 = vpop.permute.xlu1 %3434  ;;  %v10831_v35 = vpop.permute.xlu0 %3429  ;;  %v8069_v9 = vld [vmem:[%s15535_s0 + $0x144] sm:$0xff] }
 0x4d6   :  { %15967 = vst [vmem:[#allocation379_spill] sm:$0xff] %v10829_v19  ;;  %v8070_v19 = vld [vmem:[%s15535_s0 + $0x154] sm:$0xff] }
 0x4d7   :  { %15968 = vst [vmem:[#allocation380_spill] sm:$0xff] %v10831_v35 }
 0x4da   :  { %3761 = vperm.xlu2 %8522, %v8067_v53   ;;  %v8068_v53 = vld [vmem:[%s15535_s0 + $0x13c] sm:$0xff] }
 0x4db   :  { %3756 = vperm.xlu1 %8521, %v8066_v46   ;;  %3751 = vperm.xlu0 %8520, %v8065_v47  }
 0x4dc   :  { %v10842_v15 = vpop.permute.xlu2 %3499 }
 0x4dd   :  { %15969 = vst [vmem:[#allocation381_spill] sm:$0xff] %v10842_v15  ;;  %v10844_v34 = vpop.permute.xlu1 %3449  ;;  %v10846_v35 = vpop.permute.xlu0 %3444  ;;  %v8072_v15 = vld [vmem:[%s15535_s0 + $0x16c] sm:$0xff] }
 0x4de   :  { %15970 = vst [vmem:[#allocation382_spill] sm:$0xff] %v10844_v34 }
 0x4df   :  { %15971 = vst [vmem:[#allocation383_spill] sm:$0xff] %v10846_v35  ;;  %v8073_v35 = vld [vmem:[%s15535_s0 + $0x174] sm:$0xff] }
 0x4e2   :  { %3776 = vperm.xlu2 %8522, %v8070_v19   ;;  %v8071_v19 = vld [vmem:[%s15535_s0 + $0x15c] sm:$0xff] }
 0x4e3   :  { %3771 = vperm.xlu1 %8521, %v8069_v9   ;;  %3766 = vperm.xlu0 %8520, %v8068_v53  }
 0x4e4   :  { %v10857_v46 = vpop.permute.xlu2 %3514 }
 0x4e5   :  { %15972 = vst [vmem:[#allocation384_spill] sm:$0xff] %v10857_v46  ;;  %v10859_v47 = vpop.permute.xlu1 %3464  ;;  %v10861_v34 = vpop.permute.xlu0 %3459  ;;  %v8075_v46 = vld [vmem:[%s15535_s0 + $0x18c] sm:$0xff] }
 0x4e6   :  { %15973 = vst [vmem:[#allocation385_spill] sm:$0xff] %v10859_v47 }
 0x4e7   :  { %15974 = vst [vmem:[#allocation386_spill] sm:$0xff] %v10861_v34  ;;  %v8076_v34 = vld [vmem:[%s15535_s0 + $0x19c] sm:$0xff] }
 0x4ea   :  { %3791 = vperm.xlu2 %8522, %v8073_v35   ;;  %v8074_v35 = vld [vmem:[%s15535_s0 + $0x184] sm:$0xff] }
 0x4eb   :  { %3786 = vperm.xlu1 %8521, %v8072_v15   ;;  %3781 = vperm.xlu0 %8520, %v8071_v19  }
 0x4ec   :  { %v10872_v9 = vpop.permute.xlu2 %3529 }
 0x4ed   :  { %15975 = vst [vmem:[#allocation387_spill] sm:$0xff] %v10872_v9  ;;  %v10874_v53 = vpop.permute.xlu1 %3479  ;;  %v10876_v47 = vpop.permute.xlu0 %3474 }
 0x4ee   :  { %15976 = vst [vmem:[#allocation388_spill] sm:$0xff] %v10874_v53  ;;  %v8078_v53 = vld [vmem:[%s15535_s0 + $0x1b4] sm:$0xff] }
 0x4ef   :  { %15977 = vst [vmem:[#allocation389_spill] sm:$0xff] %v10876_v47  ;;  %v8079_v47 = vld [vmem:[%s15535_s0 + $0x1bc] sm:$0xff] }
 0x4f2   :  { %3806 = vperm.xlu2 %8522, %v8076_v34   ;;  %v8077_v34 = vld [vmem:[%s15535_s0 + $0x1a4] sm:$0xff] }
 0x4f3   :  { %3801 = vperm.xlu1 %8521, %v8075_v46   ;;  %3796 = vperm.xlu0 %8520, %v8074_v35  }
 0x4f4   :  { %v10887_v15 = vpop.permute.xlu2 %3544 }
 0x4f5   :  { %15978 = vst [vmem:[#allocation390_spill] sm:$0xff] %v10887_v15  ;;  %v10889_v19 = vpop.permute.xlu1 %3494  ;;  %v10891_v9 = vpop.permute.xlu0 %3489 }
 0x4f6   :  { %15979 = vst [vmem:[#allocation391_spill] sm:$0xff] %v10889_v19  ;;  %v8081_v19 = vld [vmem:[%s15537_s1 + $0x20] sm:$0xff] }
 0x4f7   :  { %15980 = vst [vmem:[#allocation392_spill] sm:$0xff] %v10891_v9  ;;  %v8082_v9 = vld [vmem:[%s15537_s1 + $0x30] sm:$0xff] }
 0x4fa   :  { %3821 = vperm.xlu2 %8522, %v8079_v47   ;;  %v8080_v47 = vld [vmem:[%s15537_s1 + $0x18] sm:$0xff] }
 0x4fb   :  { %3816 = vperm.xlu1 %8521, %v8078_v53   ;;  %3811 = vperm.xlu0 %8520, %v8077_v34  }
 0x4fc   :  { %v10902_v46 = vpop.permute.xlu2 %3559 }
 0x4fd   :  { %15981 = vst [vmem:[#allocation393_spill] sm:$0xff] %v10902_v46  ;;  %v10904_v35 = vpop.permute.xlu1 %3509  ;;  %v10906_v15 = vpop.permute.xlu0 %3504 }
 0x4fe   :  { %15982 = vst [vmem:[#allocation394_spill] sm:$0xff] %v10904_v35  ;;  %v8084_v35 = vld [vmem:[%s15537_s1 + $0x48] sm:$0xff] }
 0x4ff   :  { %15983 = vst [vmem:[#allocation395_spill] sm:$0xff] %v10906_v15  ;;  %v8085_v15 = vld [vmem:[%s15537_s1 + $0x50] sm:$0xff] }
 0x502   :  { %3934 = vperm.xlu2 %8522, %v8082_v9   ;;  %v8083_v9 = vld [vmem:[%s15537_s1 + $0x38] sm:$0xff] }
 0x503   :  { %3929 = vperm.xlu1 %8521, %v8081_v19   ;;  %3924 = vperm.xlu0 %8520, %v8080_v47  }
 0x504   :  { %v10917_v53 = vpop.permute.xlu2 %3671 }
 0x505   :  { %15984 = vst [vmem:[#allocation396_spill] sm:$0xff] %v10917_v53  ;;  %v10919_v34 = vpop.permute.xlu1 %3524  ;;  %v10921_v46 = vpop.permute.xlu0 %3519  ;;  %v8087_v53 = vld [vmem:[%s15537_s1 + $0x68] sm:$0xff] }
 0x506   :  { %15985 = vst [vmem:[#allocation397_spill] sm:$0xff] %v10919_v34 }
 0x507   :  { %15986 = vst [vmem:[#allocation398_spill] sm:$0xff] %v10921_v46  ;;  %v8088_v46 = vld [vmem:[%s15537_s1 + $0x78] sm:$0xff] }
 0x50a   :  { %3949 = vperm.xlu2 %8522, %v8085_v15   ;;  %v8086_v15 = vld [vmem:[%s15537_s1 + $0x60] sm:$0xff] }
 0x50b   :  { %3944 = vperm.xlu1 %8521, %v8084_v35   ;;  %3939 = vperm.xlu0 %8520, %v8083_v9  }
 0x50c   :  { %v10932_v19 = vpop.permute.xlu2 %3686 }
 0x50d   :  { %15987 = vst [vmem:[#allocation399_spill] sm:$0xff] %v10932_v19  ;;  %v10934_v47 = vpop.permute.xlu1 %3539  ;;  %v10936_v34 = vpop.permute.xlu0 %3534  ;;  %v8090_v19 = vld [vmem:[%s15537_s1 + $0x90] sm:$0xff] }
 0x50e   :  { %15988 = vst [vmem:[#allocation400_spill] sm:$0xff] %v10934_v47 }
 0x50f   :  { %15989 = vst [vmem:[#allocation401_spill] sm:$0xff] %v10936_v34  ;;  %v8091_v34 = vld [vmem:[%s15537_s1 + $0x98] sm:$0xff] }
 0x512   :  { %3964 = vperm.xlu2 %8522, %v8088_v46   ;;  %v8089_v46 = vld [vmem:[%s15537_s1 + $0x80] sm:$0xff] }
 0x513   :  { %3959 = vperm.xlu1 %8521, %v8087_v53   ;;  %3954 = vperm.xlu0 %8520, %v8086_v15  }
 0x514   :  { %v10947_v35 = vpop.permute.xlu2 %3701 }
 0x515   :  { %15990 = vst [vmem:[#allocation402_spill] sm:$0xff] %v10947_v35  ;;  %v10949_v9 = vpop.permute.xlu1 %3554  ;;  %v10951_v47 = vpop.permute.xlu0 %3549  ;;  %v8093_v35 = vld [vmem:[%s15537_s1 + $0xb0] sm:$0xff] }
 0x516   :  { %15991 = vst [vmem:[#allocation403_spill] sm:$0xff] %v10949_v9  ;;  %v8094_v9 = vld [vmem:[%s15537_s1 + $0xc0] sm:$0xff] }
 0x517   :  { %15992 = vst [vmem:[#allocation404_spill] sm:$0xff] %v10951_v47 }
 0x51a   :  { %3979 = vperm.xlu2 %8522, %v8091_v34   ;;  %v8092_v34 = vld [vmem:[%s15537_s1 + $0xa8] sm:$0xff] }
 0x51b   :  { %3974 = vperm.xlu1 %8521, %v8090_v19   ;;  %3969 = vperm.xlu0 %8520, %v8089_v46  }
 0x51c   :  { %v10962_v53 = vpop.permute.xlu2 %3716 }
 0x51d   :  { %15993 = vst [vmem:[#allocation405_spill] sm:$0xff] %v10962_v53  ;;  %v10964_v15 = vpop.permute.xlu1 %3666  ;;  %v10966_v47 = vpop.permute.xlu0 %3564  ;;  %v8097_v53 = vld [vmem:[%s15537_s1 + $0x110] sm:$0xff] }
 0x51e   :  { %15994 = vst [vmem:[#allocation406_spill] sm:$0xff] %v10964_v15  ;;  %v8096_v15 = vld [vmem:[%s15537_s1 + $0x108] sm:$0xff] }
 0x51f   :  { %15995 = vst [vmem:[#allocation407_spill] sm:$0xff] %v10966_v47 }
 0x522   :  { %3994 = vperm.xlu2 %8522, %v8094_v9   ;;  %v8095_v9 = vld [vmem:[%s15537_s1 + $0xc8] sm:$0xff] }
 0x523   :  { %3989 = vperm.xlu1 %8521, %v8093_v35   ;;  %3984 = vperm.xlu0 %8520, %v8092_v34  }
 0x524   :  { %v10977_v19 = vpop.permute.xlu2 %3731 }
 0x525   :  { %15996 = vst [vmem:[#allocation408_spill] sm:$0xff] %v10977_v19  ;;  %v10979_v46 = vpop.permute.xlu1 %3681  ;;  %v10981_v47 = vpop.permute.xlu0 %3676  ;;  %v8099_v19 = vld [vmem:[%s15537_s1 + $0x128] sm:$0xff] }
 0x526   :  { %15997 = vst [vmem:[#allocation409_spill] sm:$0xff] %v10979_v46  ;;  %v8100_v46 = vld [vmem:[%s15537_s1 + $0x138] sm:$0xff] }
 0x527   :  { %15998 = vst [vmem:[#allocation410_spill] sm:$0xff] %v10981_v47 }
 0x52a   :  { %4009 = vperm.xlu2 %8522, %v8097_v53   ;;  %v8098_v53 = vld [vmem:[%s15537_s1 + $0x120] sm:$0xff] }
 0x52b   :  { %4004 = vperm.xlu1 %8521, %v8096_v15   ;;  %3999 = vperm.xlu0 %8520, %v8095_v9  }
 0x52c   :  { %v10992_v35 = vpop.permute.xlu2 %3746 }
 0x52d   :  { %15999 = vst [vmem:[#allocation411_spill] sm:$0xff] %v10992_v35  ;;  %v10994_v34 = vpop.permute.xlu1 %3696  ;;  %v10996_v47 = vpop.permute.xlu0 %3691  ;;  %v8102_v35 = vld [vmem:[%s15537_s1 + $0x150] sm:$0xff] }
 0x52e   :  { %16000 = vst [vmem:[#allocation412_spill] sm:$0xff] %v10994_v34  ;;  %v8103_v34 = vld [vmem:[%s15537_s1 + $0x158] sm:$0xff] }
 0x52f   :  { %16001 = vst [vmem:[#allocation413_spill] sm:$0xff] %v10996_v47 }
 0x532   :  { %4024 = vperm.xlu2 %8522, %v8100_v46   ;;  %v8101_v46 = vld [vmem:[%s15537_s1 + $0x140] sm:$0xff] }
 0x533   :  { %4019 = vperm.xlu1 %8521, %v8099_v19   ;;  %4014 = vperm.xlu0 %8520, %v8098_v53  }
 0x534   :  { %v11007_v15 = vpop.permute.xlu2 %3761 }
 0x535   :  { %16002 = vst [vmem:[#allocation414_spill] sm:$0xff] %v11007_v15  ;;  %v11009_v9 = vpop.permute.xlu1 %3711  ;;  %v11011_v47 = vpop.permute.xlu0 %3706  ;;  %v8105_v15 = vld [vmem:[%s15537_s1 + $0x170] sm:$0xff] }
 0x536   :  { %16003 = vst [vmem:[#allocation415_spill] sm:$0xff] %v11009_v9 }
 0x537   :  { %16004 = vst [vmem:[#allocation416_spill] sm:$0xff] %v11011_v47  ;;  %v8106_v47 = vld [vmem:[%s15537_s1 + $0x180] sm:$0xff] }
 0x53a   :  { %4039 = vperm.xlu2 %8522, %v8103_v34   ;;  %v8104_v34 = vld [vmem:[%s15537_s1 + $0x168] sm:$0xff] }
 0x53b   :  { %4034 = vperm.xlu1 %8521, %v8102_v35   ;;  %4029 = vperm.xlu0 %8520, %v8101_v46  }
 0x53c   :  { %v11022_v19 = vpop.permute.xlu2 %3776 }
 0x53d   :  { %16005 = vst [vmem:[#allocation417_spill] sm:$0xff] %v11022_v19  ;;  %v11024_v53 = vpop.permute.xlu1 %3726  ;;  %v11026_v9 = vpop.permute.xlu0 %3721  ;;  %v8108_v19 = vld [vmem:[%s15537_s1 + $0x198] sm:$0xff] }
 0x53e   :  { %16006 = vst [vmem:[#allocation418_spill] sm:$0xff] %v11024_v53 }
 0x53f   :  { %16007 = vst [vmem:[#allocation419_spill] sm:$0xff] %v11026_v9  ;;  %v8109_v9 = vld [vmem:[%s15537_s1 + $0x1a0] sm:$0xff] }
 0x542   :  { %4054 = vperm.xlu2 %8522, %v8106_v47   ;;  %v8107_v47 = vld [vmem:[%s15537_s1 + $0x188] sm:$0xff] }
 0x543   :  { %4049 = vperm.xlu1 %8521, %v8105_v15   ;;  %4044 = vperm.xlu0 %8520, %v8104_v34  }
 0x544   :  { %v11037_v35 = vpop.permute.xlu2 %3791 }
 0x545   :  { %16008 = vst [vmem:[#allocation420_spill] sm:$0xff] %v11037_v35  ;;  %v11039_v46 = vpop.permute.xlu1 %3741  ;;  %v11041_v53 = vpop.permute.xlu0 %3736 }
 0x546   :  { %16009 = vst [vmem:[#allocation421_spill] sm:$0xff] %v11039_v46  ;;  %v8112_v46 = vld [vmem:[%s15537_s1 + $0x19] sm:$0xff] }
 0x547   :  { %16010 = vst [vmem:[#allocation422_spill] sm:$0xff] %v11041_v53  ;;  %v8111_v53 = vld [vmem:[%s15537_s1 + $0x1b8] sm:$0xff] }
 0x54a   :  { %4069 = vperm.xlu2 %8522, %v8109_v9   ;;  %v8110_v9 = vld [vmem:[%s15537_s1 + $0x1b0] sm:$0xff] }
 0x54b   :  { %4064 = vperm.xlu1 %8521, %v8108_v19   ;;  %4059 = vperm.xlu0 %8520, %v8107_v47  }
 0x54c   :  { %v11052_v15 = vpop.permute.xlu2 %3806 }
 0x54d   :  { %16011 = vst [vmem:[#allocation423_spill] sm:$0xff] %v11052_v15  ;;  %v11054_v34 = vpop.permute.xlu1 %3756  ;;  %v11056_v35 = vpop.permute.xlu0 %3751 }
 0x54e   :  { %16012 = vst [vmem:[#allocation424_spill] sm:$0xff] %v11054_v34  ;;  %v8115_v34 = vld [vmem:[%s15537_s1 + $0x39] sm:$0xff] }
 0x54f   :  { %16013 = vst [vmem:[#allocation425_spill] sm:$0xff] %v11056_v35  ;;  %v8114_v35 = vld [vmem:[%s15537_s1 + $0x31] sm:$0xff] }
 0x552   :  { %4181 = vperm.xlu2 %8522, %v8112_v46   ;;  %v8113_v46 = vld [vmem:[%s15537_s1 + $0x21] sm:$0xff] }
 0x553   :  { %4079 = vperm.xlu1 %8521, %v8111_v53   ;;  %4074 = vperm.xlu0 %8520, %v8110_v9  }
 0x554   :  { %v11067_v19 = vpop.permute.xlu2 %3821 }
 0x555   :  { %16014 = vst [vmem:[#allocation426_spill] sm:$0xff] %v11067_v19  ;;  %v11069_v47 = vpop.permute.xlu1 %3771  ;;  %v11071_v15 = vpop.permute.xlu0 %3766 }
 0x556   :  { %16015 = vst [vmem:[#allocation427_spill] sm:$0xff] %v11069_v47  ;;  %v8117_v47 = vld [vmem:[%s15537_s1 + $0x51] sm:$0xff] }
 0x557   :  { %16016 = vst [vmem:[#allocation428_spill] sm:$0xff] %v11071_v15  ;;  %v8118_v15 = vld [vmem:[%s15537_s1 + $0x61] sm:$0xff] }
 0x55a   :  { %4196 = vperm.xlu2 %8522, %v8115_v34   ;;  %v8116_v34 = vld [vmem:[%s15537_s1 + $0x49] sm:$0xff] }
 0x55b   :  { %4191 = vperm.xlu1 %8521, %v8114_v35   ;;  %4186 = vperm.xlu0 %8520, %v8113_v46  }
 0x55c   :  { %v11082_v53 = vpop.permute.xlu2 %3934 }
 0x55d   :  { %16017 = vst [vmem:[#allocation429_spill] sm:$0xff] %v11082_v53  ;;  %v11084_v9 = vpop.permute.xlu1 %3786  ;;  %v11086_v19 = vpop.permute.xlu0 %3781  ;;  %v8120_v53 = vld [vmem:[%s15537_s1 + $0x79] sm:$0xff] }
 0x55e   :  { %16018 = vst [vmem:[#allocation430_spill] sm:$0xff] %v11084_v9 }
 0x55f   :  { %16019 = vst [vmem:[#allocation431_spill] sm:$0xff] %v11086_v19  ;;  %v8121_v19 = vld [vmem:[%s15537_s1 + $0x81] sm:$0xff] }
 0x562   :  { %4211 = vperm.xlu2 %8522, %v8118_v15   ;;  %v8119_v15 = vld [vmem:[%s15537_s1 + $0x69] sm:$0xff] }
 0x563   :  { %4206 = vperm.xlu1 %8521, %v8117_v47   ;;  %4201 = vperm.xlu0 %8520, %v8116_v34  }
 0x564   :  { %v11097_v35 = vpop.permute.xlu2 %3949 }
 0x565   :  { %16020 = vst [vmem:[#allocation432_spill] sm:$0xff] %v11097_v35  ;;  %v11099_v46 = vpop.permute.xlu1 %3801  ;;  %v11101_v9 = vpop.permute.xlu0 %3796  ;;  %v8123_v35 = vld [vmem:[%s15537_s1 + $0x99] sm:$0xff] }
 0x566   :  { %16021 = vst [vmem:[#allocation433_spill] sm:$0xff] %v11099_v46 }
 0x567   :  { %16022 = vst [vmem:[#allocation434_spill] sm:$0xff] %v11101_v9  ;;  %v8124_v9 = vld [vmem:[%s15537_s1 + $0xa9] sm:$0xff] }
 0x56a   :  { %4226 = vperm.xlu2 %8522, %v8121_v19   ;;  %v8122_v19 = vld [vmem:[%s15537_s1 + $0x91] sm:$0xff] }
 0x56b   :  { %4221 = vperm.xlu1 %8521, %v8120_v53   ;;  %4216 = vperm.xlu0 %8520, %v8119_v15  }
 0x56c   :  { %v11112_v47 = vpop.permute.xlu2 %3964 }
 0x56d   :  { %16023 = vst [vmem:[#allocation435_spill] sm:$0xff] %v11112_v47  ;;  %v11114_v34 = vpop.permute.xlu1 %3816  ;;  %v11116_v46 = vpop.permute.xlu0 %3811  ;;  %v8126_v47 = vld [vmem:[%s15537_s1 + $0xc1] sm:$0xff] }
 0x56e   :  { %16024 = vst [vmem:[#allocation436_spill] sm:$0xff] %v11114_v34 }
 0x56f   :  { %16025 = vst [vmem:[#allocation437_spill] sm:$0xff] %v11116_v46  ;;  %v8127_v46 = vld [vmem:[%s15537_s1 + $0xc9] sm:$0xff] }
 0x572   :  { %4241 = vperm.xlu2 %8522, %v8124_v9   ;;  %v8125_v9 = vld [vmem:[%s15537_s1 + $0xb1] sm:$0xff] }
 0x573   :  { %4236 = vperm.xlu1 %8521, %v8123_v35   ;;  %4231 = vperm.xlu0 %8520, %v8122_v19  }
 0x574   :  { %v11127_v53 = vpop.permute.xlu2 %3979 }
 0x575   :  { %16026 = vst [vmem:[#allocation438_spill] sm:$0xff] %v11127_v53  ;;  %v11129_v15 = vpop.permute.xlu1 %3929  ;;  %v11131_v34 = vpop.permute.xlu0 %3924 }
 0x576   :  { %16027 = vst [vmem:[#allocation439_spill] sm:$0xff] %v11129_v15  ;;  %v8129_v15 = vld [vmem:[%s15537_s1 + $0x111] sm:$0xff] }
 0x577   :  { %16028 = vst [vmem:[#allocation440_spill] sm:$0xff] %v11131_v34  ;;  %v8130_v34 = vld [vmem:[%s15537_s1 + $0x121] sm:$0xff] }
 0x57a   :  { %4256 = vperm.xlu2 %8522, %v8127_v46   ;;  %v8128_v46 = vld [vmem:[%s15537_s1 + $0x109] sm:$0xff] }
 0x57b   :  { %4251 = vperm.xlu1 %8521, %v8126_v47   ;;  %4246 = vperm.xlu0 %8520, %v8125_v9  }
 0x57c   :  { %v11142_v35 = vpop.permute.xlu2 %3994 }
 0x57d   :  { %16029 = vst [vmem:[#allocation441_spill] sm:$0xff] %v11142_v35  ;;  %v11144_v19 = vpop.permute.xlu1 %3944  ;;  %v11146_v53 = vpop.permute.xlu0 %3939  ;;  %v8132_v35 = vld [vmem:[%s15537_s1 + $0x139] sm:$0xff] }
 0x57e   :  { %16030 = vst [vmem:[#allocation442_spill] sm:$0xff] %v11144_v19  ;;  %v8133_v19 = vld [vmem:[%s15537_s1 + $0x141] sm:$0xff] }
 0x57f   :  { %16031 = vst [vmem:[#allocation443_spill] sm:$0xff] %v11146_v53 }
 0x582   :  { %4271 = vperm.xlu2 %8522, %v8130_v34   ;;  %v8131_v34 = vld [vmem:[%s15537_s1 + $0x129] sm:$0xff] }
 0x583   :  { %4266 = vperm.xlu1 %8521, %v8129_v15   ;;  %4261 = vperm.xlu0 %8520, %v8128_v46  }
 0x584   :  { %v11157_v47 = vpop.permute.xlu2 %4009 }
 0x585   :  { %16032 = vst [vmem:[#allocation444_spill] sm:$0xff] %v11157_v47  ;;  %v11159_v9 = vpop.permute.xlu1 %3959  ;;  %v11161_v53 = vpop.permute.xlu0 %3954  ;;  %v8135_v47 = vld [vmem:[%s15537_s1 + $0x159] sm:$0xff] }
 0x586   :  { %16033 = vst [vmem:[#allocation445_spill] sm:$0xff] %v11159_v9 }
 0x587   :  { %16034 = vst [vmem:[#allocation446_spill] sm:$0xff] %v11161_v53  ;;  %v8136_v53 = vld [vmem:[%s15537_s1 + $0x169] sm:$0xff] }
 0x58a   :  { %4286 = vperm.xlu2 %8522, %v8133_v19   ;;  %v8134_v19 = vld [vmem:[%s15537_s1 + $0x151] sm:$0xff] }
 0x58b   :  { %4281 = vperm.xlu1 %8521, %v8132_v35   ;;  %4276 = vperm.xlu0 %8520, %v8131_v34  }
 0x58c   :  { %v11172_v15 = vpop.permute.xlu2 %4024 }
 0x58d   :  { %16035 = vst [vmem:[#allocation447_spill] sm:$0xff] %v11172_v15  ;;  %v11174_v46 = vpop.permute.xlu1 %3974  ;;  %v11176_v9 = vpop.permute.xlu0 %3969  ;;  %v8138_v15 = vld [vmem:[%s15537_s1 + $0x181] sm:$0xff] }
 0x58e   :  { %16036 = vst [vmem:[#allocation448_spill] sm:$0xff] %v11174_v46 }
 0x58f   :  { %16037 = vst [vmem:[#allocation449_spill] sm:$0xff] %v11176_v9  ;;  %v8139_v9 = vld [vmem:[%s15537_s1 + $0x189] sm:$0xff] }
 0x592   :  { %4301 = vperm.xlu2 %8522, %v8136_v53   ;;  %v8137_v53 = vld [vmem:[%s15537_s1 + $0x171] sm:$0xff] }
 0x593   :  { %4296 = vperm.xlu1 %8521, %v8135_v47   ;;  %4291 = vperm.xlu0 %8520, %v8134_v19  }
 0x594   :  { %v11187_v35 = vpop.permute.xlu2 %4039 }
 0x595   :  { %16038 = vst [vmem:[#allocation450_spill] sm:$0xff] %v11187_v35  ;;  %v11189_v34 = vpop.permute.xlu1 %3989  ;;  %v11191_v46 = vpop.permute.xlu0 %3984 }
 0x596   :  { %16039 = vst [vmem:[#allocation451_spill] sm:$0xff] %v11189_v34  ;;  %v8141_v34 = vld [vmem:[%s15537_s1 + $0x1a1] sm:$0xff] }
 0x597   :  { %16040 = vst [vmem:[#allocation452_spill] sm:$0xff] %v11191_v46  ;;  %v8142_v46 = vld [vmem:[%s15537_s1 + $0x1b1] sm:$0xff] }
 0x59a   :  { %4316 = vperm.xlu2 %8522, %v8139_v9   ;;  %v8140_v9 = vld [vmem:[%s15537_s1 + $0x199] sm:$0xff] }
 0x59b   :  { %4311 = vperm.xlu1 %8521, %v8138_v15   ;;  %4306 = vperm.xlu0 %8520, %v8137_v53  }
 0x59c   :  { %v11202_v47 = vpop.permute.xlu2 %4054 }
 0x59d   :  { %16041 = vst [vmem:[#allocation453_spill] sm:$0xff] %v11202_v47  ;;  %v11204_v19 = vpop.permute.xlu1 %4004  ;;  %v11206_v35 = vpop.permute.xlu0 %3999 }
 0x59e   :  { %16042 = vst [vmem:[#allocation454_spill] sm:$0xff] %v11204_v19  ;;  %v8144_v19 = vld [vmem:[%s15537_s1 + $0x1a] sm:$0xff] }
 0x59f   :  { %16043 = vst [vmem:[#allocation455_spill] sm:$0xff] %v11206_v35  ;;  %v8145_v35 = vld [vmem:[%s15537_s1 + $0x22] sm:$0xff] }
 0x5a2   :  { %4331 = vperm.xlu2 %8522, %v8142_v46   ;;  %v8143_v46 = vld [vmem:[%s15537_s1 + $0x1b9] sm:$0xff] }
 0x5a3   :  { %4326 = vperm.xlu1 %8521, %v8141_v34   ;;  %4321 = vperm.xlu0 %8520, %v8140_v9  }
 0x5a4   :  { %v11217_v15 = vpop.permute.xlu2 %4069 }
 0x5a5   :  { %16044 = vst [vmem:[#allocation456_spill] sm:$0xff] %v11217_v15  ;;  %v11219_v53 = vpop.permute.xlu1 %4019  ;;  %v11221_v47 = vpop.permute.xlu0 %4014 }
 0x5a6   :  { %16045 = vst [vmem:[#allocation457_spill] sm:$0xff] %v11219_v53  ;;  %v8147_v53 = vld [vmem:[%s15537_s1 + $0x3a] sm:$0xff] }
 0x5a7   :  { %16046 = vst [vmem:[#allocation458_spill] sm:$0xff] %v11221_v47  ;;  %v8148_v47 = vld [vmem:[%s15537_s1 + $0x4a] sm:$0xff] }
 0x5aa   :  { %4443 = vperm.xlu2 %8522, %v8145_v35   ;;  %v8146_v35 = vld [vmem:[%s15537_s1 + $0x32] sm:$0xff] }
 0x5ab   :  { %4438 = vperm.xlu1 %8521, %v8144_v19   ;;  %4336 = vperm.xlu0 %8520, %v8143_v46  }
 0x5ac   :  { %v11232_v34 = vpop.permute.xlu2 %4181 }
 0x5ad   :  { %16047 = vst [vmem:[#allocation459_spill] sm:$0xff] %v11232_v34  ;;  %v11234_v9 = vpop.permute.xlu1 %4034  ;;  %v11236_v15 = vpop.permute.xlu0 %4029  ;;  %v8150_v34 = vld [vmem:[%s15537_s1 + $0x62] sm:$0xff] }
 0x5ae   :  { %16048 = vst [vmem:[#allocation460_spill] sm:$0xff] %v11234_v9  ;;  %v8151_v9 = vld [vmem:[%s15537_s1 + $0x6a] sm:$0xff] }
 0x5af   :  { %16049 = vst [vmem:[#allocation461_spill] sm:$0xff] %v11236_v15 }
 0x5b2   :  { %4458 = vperm.xlu2 %8522, %v8148_v47   ;;  %v8149_v47 = vld [vmem:[%s15537_s1 + $0x52] sm:$0xff] }
 0x5b3   :  { %4453 = vperm.xlu1 %8521, %v8147_v53   ;;  %4448 = vperm.xlu0 %8520, %v8146_v35  }
 0x5b4   :  { %v11247_v19 = vpop.permute.xlu2 %4196 }
 0x5b5   :  { %16050 = vst [vmem:[#allocation462_spill] sm:$0xff] %v11247_v19  ;;  %v11249_v46 = vpop.permute.xlu1 %4049  ;;  %v11251_v15 = vpop.permute.xlu0 %4044  ;;  %v8153_v19 = vld [vmem:[%s15537_s1 + $0x82] sm:$0xff] }
 0x5b6   :  { %16051 = vst [vmem:[#allocation463_spill] sm:$0xff] %v11249_v46 }
 0x5b7   :  { %16052 = vst [vmem:[#allocation464_spill] sm:$0xff] %v11251_v15  ;;  %v8154_v15 = vld [vmem:[%s15537_s1 + $0x92] sm:$0xff] }
 0x5ba   :  { %4473 = vperm.xlu2 %8522, %v8151_v9   ;;  %v8152_v9 = vld [vmem:[%s15537_s1 + $0x7a] sm:$0xff] }
 0x5bb   :  { %4468 = vperm.xlu1 %8521, %v8150_v34   ;;  %4463 = vperm.xlu0 %8520, %v8149_v47  }
 0x5bc   :  { %v11262_v53 = vpop.permute.xlu2 %4211 }
 0x5bd   :  { %16053 = vst [vmem:[#allocation465_spill] sm:$0xff] %v11262_v53  ;;  %v11264_v35 = vpop.permute.xlu1 %4064  ;;  %v11266_v46 = vpop.permute.xlu0 %4059  ;;  %v8156_v53 = vld [vmem:[%s15537_s1 + $0xaa] sm:$0xff] }
 0x5be   :  { %16054 = vst [vmem:[#allocation466_spill] sm:$0xff] %v11264_v35  ;;  %v8157_v35 = vld [vmem:[%s15537_s1 + $0xb2] sm:$0xff] }
 0x5bf   :  { %16055 = vst [vmem:[#allocation467_spill] sm:$0xff] %v11266_v46 }
 0x5c2   :  { %4488 = vperm.xlu2 %8522, %v8154_v15   ;;  %v8155_v15 = vld [vmem:[%s15537_s1 + $0x9a] sm:$0xff] }
 0x5c3   :  { %4483 = vperm.xlu1 %8521, %v8153_v19   ;;  %4478 = vperm.xlu0 %8520, %v8152_v9  }
 0x5c4   :  { %v11277_v34 = vpop.permute.xlu2 %4226 }
 0x5c5   :  { %16056 = vst [vmem:[#allocation468_spill] sm:$0xff] %v11277_v34  ;;  %v11279_v47 = vpop.permute.xlu1 %4079  ;;  %v11281_v46 = vpop.permute.xlu0 %4074  ;;  %v8159_v34 = vld [vmem:[%s15537_s1 + $0xca] sm:$0xff] }
 0x5c6   :  { %16057 = vst [vmem:[#allocation469_spill] sm:$0xff] %v11279_v47  ;;  %v8160_v47 = vld [vmem:[%s15537_s1 + $0x10a] sm:$0xff] }
 0x5c7   :  { %16058 = vst [vmem:[#allocation470_spill] sm:$0xff] %v11281_v46 }
 0x5ca   :  { %4503 = vperm.xlu2 %8522, %v8157_v35   ;;  %v8158_v35 = vld [vmem:[%s15537_s1 + $0xc2] sm:$0xff] }
 0x5cb   :  { %4498 = vperm.xlu1 %8521, %v8156_v53   ;;  %4493 = vperm.xlu0 %8520, %v8155_v15  }
 0x5cc   :  { %v11292_v19 = vpop.permute.xlu2 %4241 }
 0x5cd   :  { %16059 = vst [vmem:[#allocation471_spill] sm:$0xff] %v11292_v19  ;;  %v11294_v9 = vpop.permute.xlu1 %4191  ;;  %v11296_v46 = vpop.permute.xlu0 %4186 }
 0x5ce   :  { %16060 = vst [vmem:[#allocation472_spill] sm:$0xff] %v11294_v9  ;;  %v8162_v9 = vld [vmem:[%s15537_s1 + $0x122] sm:$0xff] }
 0x5cf   :  { %16061 = vst [vmem:[#allocation473_spill] sm:$0xff] %v11296_v46  ;;  %v8163_v46 = vld [vmem:[%s15537_s1 + $0x12a] sm:$0xff] }
 0x5d2   :  { %4518 = vperm.xlu2 %8522, %v8160_v47   ;;  %v8161_v47 = vld [vmem:[%s15537_s1 + $0x112] sm:$0xff] }
 0x5d3   :  { %4513 = vperm.xlu1 %8521, %v8159_v34   ;;  %4508 = vperm.xlu0 %8520, %v8158_v35  }
 0x5d4   :  { %v11307_v53 = vpop.permute.xlu2 %4256 }
 0x5d5   :  { %16062 = vst [vmem:[#allocation474_spill] sm:$0xff] %v11307_v53  ;;  %v11309_v15 = vpop.permute.xlu1 %4206  ;;  %v11311_v19 = vpop.permute.xlu0 %4201  ;;  %v8165_v53 = vld [vmem:[%s15537_s1 + $0x142] sm:$0xff] }
 0x5d6   :  { %16063 = vst [vmem:[#allocation475_spill] sm:$0xff] %v11309_v15  ;;  %v8166_v15 = vld [vmem:[%s15537_s1 + $0x152] sm:$0xff] }
 0x5d7   :  { %16064 = vst [vmem:[#allocation476_spill] sm:$0xff] %v11311_v19 }
 0x5da   :  { %4533 = vperm.xlu2 %8522, %v8163_v46   ;;  %v8164_v46 = vld [vmem:[%s15537_s1 + $0x13a] sm:$0xff] }
 0x5db   :  { %4528 = vperm.xlu1 %8521, %v8162_v9   ;;  %4523 = vperm.xlu0 %8520, %v8161_v47  }
 0x5dc   :  { %v11322_v34 = vpop.permute.xlu2 %4271 }
 0x5dd   :  { %16065 = vst [vmem:[#allocation477_spill] sm:$0xff] %v11322_v34  ;;  %v11324_v35 = vpop.permute.xlu1 %4221  ;;  %v11326_v19 = vpop.permute.xlu0 %4216  ;;  %v8168_v34 = vld [vmem:[%s15537_s1 + $0x16a] sm:$0xff] }
 0x5de   :  { %16066 = vst [vmem:[#allocation478_spill] sm:$0xff] %v11324_v35 }
 0x5df   :  { %16067 = vst [vmem:[#allocation479_spill] sm:$0xff] %v11326_v19  ;;  %v8169_v19 = vld [vmem:[%s15537_s1 + $0x172] sm:$0xff] }
 0x5e2   :  { %4548 = vperm.xlu2 %8522, %v8166_v15   ;;  %v8167_v15 = vld [vmem:[%s15537_s1 + $0x15a] sm:$0xff] }
 0x5e3   :  { %4543 = vperm.xlu1 %8521, %v8165_v53   ;;  %4538 = vperm.xlu0 %8520, %v8164_v46  }
 0x5e4   :  { %v11337_v9 = vpop.permute.xlu2 %4286 }
 0x5e5   :  { %16068 = vst [vmem:[#allocation480_spill] sm:$0xff] %v11337_v9  ;;  %v11339_v47 = vpop.permute.xlu1 %4236  ;;  %v11341_v35 = vpop.permute.xlu0 %4231  ;;  %v8171_v9 = vld [vmem:[%s15537_s1 + $0x18a] sm:$0xff] }
 0x5e6   :  { %16069 = vst [vmem:[#allocation481_spill] sm:$0xff] %v11339_v47 }
 0x5e7   :  { %16070 = vst [vmem:[#allocation482_spill] sm:$0xff] %v11341_v35  ;;  %v8172_v35 = vld [vmem:[%s15537_s1 + $0x19a] sm:$0xff] }
 0x5ea   :  { %4563 = vperm.xlu2 %8522, %v8169_v19   ;;  %v8170_v19 = vld [vmem:[%s15537_s1 + $0x182] sm:$0xff] }
 0x5eb   :  { %4558 = vperm.xlu1 %8521, %v8168_v34   ;;  %4553 = vperm.xlu0 %8520, %v8167_v15  }
 0x5ec   :  { %v11352_v53 = vpop.permute.xlu2 %4301 }
 0x5ed   :  { %16071 = vst [vmem:[#allocation483_spill] sm:$0xff] %v11352_v53  ;;  %v11354_v46 = vpop.permute.xlu1 %4251  ;;  %v11356_v47 = vpop.permute.xlu0 %4246 }
 0x5ee   :  { %16072 = vst [vmem:[#allocation484_spill] sm:$0xff] %v11354_v46  ;;  %v8174_v46 = vld [vmem:[%s15537_s1 + $0x1b2] sm:$0xff] }
 0x5ef   :  { %16073 = vst [vmem:[#allocation485_spill] sm:$0xff] %v11356_v47  ;;  %v8175_v47 = vld [vmem:[%s15537_s1 + $0x1ba] sm:$0xff] }
 0x5f2   :  { %4578 = vperm.xlu2 %8522, %v8172_v35   ;;  %v8173_v35 = vld [vmem:[%s15537_s1 + $0x1a2] sm:$0xff] }
 0x5f3   :  { %4573 = vperm.xlu1 %8521, %v8171_v9   ;;  %4568 = vperm.xlu0 %8520, %v8170_v19  }
 0x5f4   :  { %v11367_v34 = vpop.permute.xlu2 %4316 }
 0x5f5   :  { %16074 = vst [vmem:[#allocation486_spill] sm:$0xff] %v11367_v34  ;;  %v11369_v15 = vpop.permute.xlu1 %4266  ;;  %v11371_v53 = vpop.permute.xlu0 %4261 }
 0x5f6   :  { %16075 = vst [vmem:[#allocation487_spill] sm:$0xff] %v11369_v15  ;;  %v8177_v15 = vld [vmem:[%s15537_s1 + $0x23] sm:$0xff] }
 0x5f7   :  { %16076 = vst [vmem:[#allocation488_spill] sm:$0xff] %v11371_v53  ;;  %v8178_v53 = vld [vmem:[%s15537_s1 + $0x33] sm:$0xff] }
 0x5fa   :  { %4593 = vperm.xlu2 %8522, %v8175_v47   ;;  %v8176_v47 = vld [vmem:[%s15537_s1 + $0x1b] sm:$0xff] }
 0x5fb   :  { %4588 = vperm.xlu1 %8521, %v8174_v46   ;;  %4583 = vperm.xlu0 %8520, %v8173_v35  }
 0x5fc   :  { %v11382_v9 = vpop.permute.xlu2 %4331 }
 0x5fd   :  { %16077 = vst [vmem:[#allocation489_spill] sm:$0xff] %v11382_v9  ;;  %v11384_v19 = vpop.permute.xlu1 %4281  ;;  %v11386_v34 = vpop.permute.xlu0 %4276 }
 0x5fe   :  { %16078 = vst [vmem:[#allocation490_spill] sm:$0xff] %v11384_v19  ;;  %v8180_v19 = vld [vmem:[%s15537_s1 + $0x4b] sm:$0xff] }
 0x5ff   :  { %16079 = vst [vmem:[#allocation491_spill] sm:$0xff] %v11386_v34  ;;  %v8181_v34 = vld [vmem:[%s15537_s1 + $0x53] sm:$0xff] }
 0x602   :  { %4705 = vperm.xlu2 %8522, %v8178_v53   ;;  %v8179_v53 = vld [vmem:[%s15537_s1 + $0x3b] sm:$0xff] }
 0x603   :  { %4700 = vperm.xlu1 %8521, %v8177_v15   ;;  %4695 = vperm.xlu0 %8520, %v8176_v47  }
 0x604   :  { %v11397_v46 = vpop.permute.xlu2 %4443 }
 0x605   :  { %16080 = vst [vmem:[#allocation492_spill] sm:$0xff] %v11397_v46  ;;  %v11399_v35 = vpop.permute.xlu1 %4296  ;;  %v11401_v9 = vpop.permute.xlu0 %4291  ;;  %v8183_v46 = vld [vmem:[%s15537_s1 + $0x6b] sm:$0xff] }
 0x606   :  { %16081 = vst [vmem:[#allocation493_spill] sm:$0xff] %v11399_v35 }
 0x607   :  { %16082 = vst [vmem:[#allocation494_spill] sm:$0xff] %v11401_v9  ;;  %v8184_v9 = vld [vmem:[%s15537_s1 + $0x7b] sm:$0xff] }
 0x60a   :  { %4720 = vperm.xlu2 %8522, %v8181_v34   ;;  %v8182_v34 = vld [vmem:[%s15537_s1 + $0x63] sm:$0xff] }
 0x60b   :  { %4715 = vperm.xlu1 %8521, %v8180_v19   ;;  %4710 = vperm.xlu0 %8520, %v8179_v53  }
 0x60c   :  { %v11412_v15 = vpop.permute.xlu2 %4458 }
 0x60d   :  { %16083 = vst [vmem:[#allocation495_spill] sm:$0xff] %v11412_v15  ;;  %v11414_v47 = vpop.permute.xlu1 %4311  ;;  %v11416_v35 = vpop.permute.xlu0 %4306  ;;  %v8186_v15 = vld [vmem:[%s15537_s1 + $0x93] sm:$0xff] }
 0x60e   :  { %16084 = vst [vmem:[#allocation496_spill] sm:$0xff] %v11414_v47 }
 0x60f   :  { %16085 = vst [vmem:[#allocation497_spill] sm:$0xff] %v11416_v35  ;;  %v8187_v35 = vld [vmem:[%s15537_s1 + $0x9b] sm:$0xff] }
 0x612   :  { %4735 = vperm.xlu2 %8522, %v8184_v9   ;;  %v8185_v9 = vld [vmem:[%s15537_s1 + $0x83] sm:$0xff] }
 0x613   :  { %4730 = vperm.xlu1 %8521, %v8183_v46   ;;  %4725 = vperm.xlu0 %8520, %v8182_v34  }
 0x614   :  { %v11427_v19 = vpop.permute.xlu2 %4473 }
 0x615   :  { %16086 = vst [vmem:[#allocation498_spill] sm:$0xff] %v11427_v19  ;;  %v11429_v53 = vpop.permute.xlu1 %4326  ;;  %v11431_v47 = vpop.permute.xlu0 %4321  ;;  %v8189_v19 = vld [vmem:[%s15537_s1 + $0xb3] sm:$0xff] }
 0x616   :  { %16087 = vst [vmem:[#allocation499_spill] sm:$0xff] %v11429_v53 }
 0x617   :  { %16088 = vst [vmem:[#allocation500_spill] sm:$0xff] %v11431_v47  ;;  %v8190_v47 = vld [vmem:[%s15537_s1 + $0xc3] sm:$0xff] }
 0x61a   :  { %4750 = vperm.xlu2 %8522, %v8187_v35   ;;  %v8188_v35 = vld [vmem:[%s15537_s1 + $0xab] sm:$0xff] }
 0x61b   :  { %4745 = vperm.xlu1 %8521, %v8186_v15   ;;  %4740 = vperm.xlu0 %8520, %v8185_v9  }
 0x61c   :  { %v11442_v46 = vpop.permute.xlu2 %4488 }
 0x61d   :  { %16089 = vst [vmem:[#allocation501_spill] sm:$0xff] %v11442_v46  ;;  %v11444_v34 = vpop.permute.xlu1 %4438  ;;  %v11446_v53 = vpop.permute.xlu0 %4336  ;;  %v8193_v46 = vld [vmem:[%s15537_s1 + $0x113] sm:$0xff] }
 0x61e   :  { %16090 = vst [vmem:[#allocation502_spill] sm:$0xff] %v11444_v34  ;;  %v8192_v34 = vld [vmem:[%s15537_s1 + $0x10b] sm:$0xff] }
 0x61f   :  { %16091 = vst [vmem:[#allocation503_spill] sm:$0xff] %v11446_v53 }
 0x622   :  { %4765 = vperm.xlu2 %8522, %v8190_v47   ;;  %v8191_v47 = vld [vmem:[%s15537_s1 + $0xcb] sm:$0xff] }
 0x623   :  { %4760 = vperm.xlu1 %8521, %v8189_v19   ;;  %4755 = vperm.xlu0 %8520, %v8188_v35  }
 0x624   :  { %v11457_v15 = vpop.permute.xlu2 %4503 }
 0x625   :  { %16092 = vst [vmem:[#allocation504_spill] sm:$0xff] %v11457_v15  ;;  %v11459_v9 = vpop.permute.xlu1 %4453  ;;  %v11461_v53 = vpop.permute.xlu0 %4448  ;;  %v8195_v15 = vld [vmem:[%s15537_s1 + $0x12b] sm:$0xff] }
 0x626   :  { %16093 = vst [vmem:[#allocation505_spill] sm:$0xff] %v11459_v9 }
 0x627   :  { %16094 = vst [vmem:[#allocation506_spill] sm:$0xff] %v11461_v53  ;;  %v8196_v53 = vld [vmem:[%s15537_s1 + $0x13b] sm:$0xff] }
 0x62a   :  { %4780 = vperm.xlu2 %8522, %v8193_v46   ;;  %v8194_v46 = vld [vmem:[%s15537_s1 + $0x123] sm:$0xff] }
 0x62b   :  { %4775 = vperm.xlu1 %8521, %v8192_v34   ;;  %4770 = vperm.xlu0 %8520, %v8191_v47  }
 0x62c   :  { %v11472_v19 = vpop.permute.xlu2 %4518 }
 0x62d   :  { %16095 = vst [vmem:[#allocation507_spill] sm:$0xff] %v11472_v19  ;;  %v11474_v35 = vpop.permute.xlu1 %4468  ;;  %v11476_v9 = vpop.permute.xlu0 %4463  ;;  %v8198_v19 = vld [vmem:[%s15537_s1 + $0x153] sm:$0xff] }
 0x62e   :  { %16096 = vst [vmem:[#allocation508_spill] sm:$0xff] %v11474_v35 }
 0x62f   :  { %16097 = vst [vmem:[#allocation509_spill] sm:$0xff] %v11476_v9  ;;  %v8199_v9 = vld [vmem:[%s15537_s1 + $0x15b] sm:$0xff] }
 0x632   :  { %4795 = vperm.xlu2 %8522, %v8196_v53   ;;  %v8197_v53 = vld [vmem:[%s15537_s1 + $0x143] sm:$0xff] }
 0x633   :  { %4790 = vperm.xlu1 %8521, %v8195_v15   ;;  %4785 = vperm.xlu0 %8520, %v8194_v46  }
 0x634   :  { %v11487_v34 = vpop.permute.xlu2 %4533 }
 0x635   :  { %16098 = vst [vmem:[#allocation510_spill] sm:$0xff] %v11487_v34  ;;  %v11489_v47 = vpop.permute.xlu1 %4483  ;;  %v11491_v35 = vpop.permute.xlu0 %4478  ;;  %v8201_v34 = vld [vmem:[%s15537_s1 + $0x173] sm:$0xff] }
 0x636   :  { %16099 = vst [vmem:[#allocation511_spill] sm:$0xff] %v11489_v47 }
 0x637   :  { %16100 = vst [vmem:[#allocation512_spill] sm:$0xff] %v11491_v35  ;;  %v8202_v35 = vld [vmem:[%s15537_s1 + $0x183] sm:$0xff] }
 0x63a   :  { %4810 = vperm.xlu2 %8522, %v8199_v9   ;;  %v8200_v9 = vld [vmem:[%s15537_s1 + $0x16b] sm:$0xff] }
 0x63b   :  { %4805 = vperm.xlu1 %8521, %v8198_v19   ;;  %4800 = vperm.xlu0 %8520, %v8197_v53  }
 0x63c   :  { %v11502_v15 = vpop.permute.xlu2 %4548 }
 0x63d   :  { %16101 = vst [vmem:[#allocation513_spill] sm:$0xff] %v11502_v15  ;;  %v11504_v46 = vpop.permute.xlu1 %4498  ;;  %v11506_v47 = vpop.permute.xlu0 %4493  ;;  %v8204_v15 = vld [vmem:[%s15537_s1 + $0x19b] sm:$0xff] }
 0x63e   :  { %16102 = vst [vmem:[#allocation514_spill] sm:$0xff] %v11504_v46 }
 0x63f   :  { %16103 = vst [vmem:[#allocation515_spill] sm:$0xff] %v11506_v47  ;;  %v8205_v47 = vld [vmem:[%s15537_s1 + $0x1a3] sm:$0xff] }
 0x642   :  { %4825 = vperm.xlu2 %8522, %v8202_v35   ;;  %v8203_v35 = vld [vmem:[%s15537_s1 + $0x18b] sm:$0xff] }
 0x643   :  { %4820 = vperm.xlu1 %8521, %v8201_v34   ;;  %4815 = vperm.xlu0 %8520, %v8200_v9  }
 0x644   :  { %v11517_v19 = vpop.permute.xlu2 %4563 }
 0x645   :  { %16104 = vst [vmem:[#allocation516_spill] sm:$0xff] %v11517_v19  ;;  %v11519_v53 = vpop.permute.xlu1 %4513  ;;  %v11521_v46 = vpop.permute.xlu0 %4508 }
 0x646   :  { %16105 = vst [vmem:[#allocation517_spill] sm:$0xff] %v11519_v53  ;;  %v8208_v53 = vld [vmem:[%s15537_s1 + $0x1c] sm:$0xff] }
 0x647   :  { %16106 = vst [vmem:[#allocation518_spill] sm:$0xff] %v11521_v46  ;;  %v8207_v46 = vld [vmem:[%s15537_s1 + $0x1bb] sm:$0xff] }
 0x64a   :  { %4840 = vperm.xlu2 %8522, %v8205_v47   ;;  %v8206_v47 = vld [vmem:[%s15537_s1 + $0x1b3] sm:$0xff] }
 0x64b   :  { %4835 = vperm.xlu1 %8521, %v8204_v15   ;;  %4830 = vperm.xlu0 %8520, %v8203_v35  }
 0x64c   :  { %v11532_v34 = vpop.permute.xlu2 %4578 }
 0x64d   :  { %16107 = vst [vmem:[#allocation519_spill] sm:$0xff] %v11532_v34  ;;  %v11534_v9 = vpop.permute.xlu1 %4528  ;;  %v11536_v19 = vpop.permute.xlu0 %4523 }
 0x64e   :  { %16108 = vst [vmem:[#allocation520_spill] sm:$0xff] %v11534_v9  ;;  %v8211_v9 = vld [vmem:[%s15537_s1 + $0x3c] sm:$0xff] }
 0x64f   :  { %16109 = vst [vmem:[#allocation521_spill] sm:$0xff] %v11536_v19  ;;  %v8210_v19 = vld [vmem:[%s15537_s1 + $0x34] sm:$0xff] }
 0x652   :  { %4952 = vperm.xlu2 %8522, %v8208_v53   ;;  %v8209_v53 = vld [vmem:[%s15537_s1 + $0x24] sm:$0xff] }
 0x653   :  { %4850 = vperm.xlu1 %8521, %v8207_v46   ;;  %4845 = vperm.xlu0 %8520, %v8206_v47  }
 0x654   :  { %v11547_v15 = vpop.permute.xlu2 %4593 }
 0x655   :  { %16110 = vst [vmem:[#allocation522_spill] sm:$0xff] %v11547_v15  ;;  %v11549_v35 = vpop.permute.xlu1 %4543  ;;  %v11551_v34 = vpop.permute.xlu0 %4538 }
 0x656   :  { %16111 = vst [vmem:[#allocation523_spill] sm:$0xff] %v11549_v35  ;;  %v8214_v35 = vld [vmem:[%s15537_s1 + $0x64] sm:$0xff] }
 0x657   :  { %16112 = vst [vmem:[#allocation524_spill] sm:$0xff] %v11551_v34  ;;  %v8213_v34 = vld [vmem:[%s15537_s1 + $0x54] sm:$0xff] }
 0x65a   :  { %4967 = vperm.xlu2 %8522, %v8211_v9   ;;  %v8212_v9 = vld [vmem:[%s15537_s1 + $0x4c] sm:$0xff] }
 0x65b   :  { %4962 = vperm.xlu1 %8521, %v8210_v19   ;;  %4957 = vperm.xlu0 %8520, %v8209_v53  }
 0x65c   :  { %v11562_v46 = vpop.permute.xlu2 %4705 }
 0x65d   :  { %16113 = vst [vmem:[#allocation525_spill] sm:$0xff] %v11562_v46  ;;  %v11564_v47 = vpop.permute.xlu1 %4558  ;;  %v11566_v15 = vpop.permute.xlu0 %4553  ;;  %v8216_v46 = vld [vmem:[%s15537_s1 + $0x7c] sm:$0xff] }
 0x65e   :  { %16114 = vst [vmem:[#allocation526_spill] sm:$0xff] %v11564_v47 }
 0x65f   :  { %16115 = vst [vmem:[#allocation527_spill] sm:$0xff] %v11566_v15  ;;  %v8217_v15 = vld [vmem:[%s15537_s1 + $0x84] sm:$0xff] }
 0x662   :  { %4982 = vperm.xlu2 %8522, %v8214_v35   ;;  %v8215_v35 = vld [vmem:[%s15537_s1 + $0x6c] sm:$0xff] }
 0x663   :  { %4977 = vperm.xlu1 %8521, %v8213_v34   ;;  %4972 = vperm.xlu0 %8520, %v8212_v9  }
 0x664   :  { %v11577_v19 = vpop.permute.xlu2 %4720 }
 0x665   :  { %16116 = vst [vmem:[#allocation528_spill] sm:$0xff] %v11577_v19  ;;  %v11579_v53 = vpop.permute.xlu1 %4573  ;;  %v11581_v47 = vpop.permute.xlu0 %4568  ;;  %v8219_v19 = vld [vmem:[%s15537_s1 + $0x9c] sm:$0xff] }
 0x666   :  { %16117 = vst [vmem:[#allocation529_spill] sm:$0xff] %v11579_v53 }
 0x667   :  { %16118 = vst [vmem:[#allocation530_spill] sm:$0xff] %v11581_v47  ;;  %v8220_v47 = vld [vmem:[%s15537_s1 + $0xac] sm:$0xff] }
 0x66a   :  { %4997 = vperm.xlu2 %8522, %v8217_v15   ;;  %v8218_v15 = vld [vmem:[%s15537_s1 + $0x94] sm:$0xff] }
 0x66b   :  { %4992 = vperm.xlu1 %8521, %v8216_v46   ;;  %4987 = vperm.xlu0 %8520, %v8215_v35  }
 0x66c   :  { %v11592_v34 = vpop.permute.xlu2 %4735 }
 0x66d   :  { %16119 = vst [vmem:[#allocation531_spill] sm:$0xff] %v11592_v34  ;;  %v11594_v9 = vpop.permute.xlu1 %4588  ;;  %v11596_v53 = vpop.permute.xlu0 %4583  ;;  %v8222_v34 = vld [vmem:[%s15537_s1 + $0xc4] sm:$0xff] }
 0x66e   :  { %16120 = vst [vmem:[#allocation532_spill] sm:$0xff] %v11594_v9 }
 0x66f   :  { %16121 = vst [vmem:[#allocation533_spill] sm:$0xff] %v11596_v53  ;;  %v8223_v53 = vld [vmem:[%s15537_s1 + $0xcc] sm:$0xff] }
 0x672   :  { %5012 = vperm.xlu2 %8522, %v8220_v47   ;;  %v8221_v47 = vld [vmem:[%s15537_s1 + $0xb4] sm:$0xff] }
 0x673   :  { %5007 = vperm.xlu1 %8521, %v8219_v19   ;;  %5002 = vperm.xlu0 %8520, %v8218_v15  }
 0x674   :  { %v11607_v46 = vpop.permute.xlu2 %4750 }
 0x675   :  { %16122 = vst [vmem:[#allocation534_spill] sm:$0xff] %v11607_v46  ;;  %v11609_v35 = vpop.permute.xlu1 %4700  ;;  %v11611_v9 = vpop.permute.xlu0 %4695 }
 0x676   :  { %16123 = vst [vmem:[#allocation535_spill] sm:$0xff] %v11609_v35  ;;  %v8226_v35 = vld [vmem:[%s15537_s1 + $0x124] sm:$0xff] }
 0x677   :  { %16124 = vst [vmem:[#allocation536_spill] sm:$0xff] %v11611_v9  ;;  %v8225_v9 = vld [vmem:[%s15537_s1 + $0x114] sm:$0xff] }
 0x67a   :  { %5027 = vperm.xlu2 %8522, %v8223_v53   ;;  %v8224_v53 = vld [vmem:[%s15537_s1 + $0x10c] sm:$0xff] }
 0x67b   :  { %5022 = vperm.xlu1 %8521, %v8222_v34   ;;  %5017 = vperm.xlu0 %8520, %v8221_v47  }
 0x67c   :  { %v11622_v19 = vpop.permute.xlu2 %4765 }
 0x67d   :  { %16125 = vst [vmem:[#allocation537_spill] sm:$0xff] %v11622_v19  ;;  %v11624_v15 = vpop.permute.xlu1 %4715  ;;  %v11626_v46 = vpop.permute.xlu0 %4710  ;;  %v8228_v19 = vld [vmem:[%s15537_s1 + $0x13c] sm:$0xff] }
 0x67e   :  { %16126 = vst [vmem:[#allocation538_spill] sm:$0xff] %v11624_v15  ;;  %v8229_v15 = vld [vmem:[%s15537_s1 + $0x144] sm:$0xff] }
 0x67f   :  { %16127 = vst [vmem:[#allocation539_spill] sm:$0xff] %v11626_v46 }
 0x682   :  { %5042 = vperm.xlu2 %8522, %v8226_v35   ;;  %v8227_v35 = vld [vmem:[%s15537_s1 + $0x12c] sm:$0xff] }
 0x683   :  { %5037 = vperm.xlu1 %8521, %v8225_v9   ;;  %5032 = vperm.xlu0 %8520, %v8224_v53  }
 0x684   :  { %v11637_v34 = vpop.permute.xlu2 %4780 }
 0x685   :  { %16128 = vst [vmem:[#allocation540_spill] sm:$0xff] %v11637_v34  ;;  %v11639_v47 = vpop.permute.xlu1 %4730  ;;  %v11641_v46 = vpop.permute.xlu0 %4725  ;;  %v8231_v34 = vld [vmem:[%s15537_s1 + $0x15c] sm:$0xff] }
 0x686   :  { %16129 = vst [vmem:[#allocation541_spill] sm:$0xff] %v11639_v47 }
 0x687   :  { %16130 = vst [vmem:[#allocation542_spill] sm:$0xff] %v11641_v46  ;;  %v8232_v46 = vld [vmem:[%s15537_s1 + $0x16c] sm:$0xff] }
 0x68a   :  { %5057 = vperm.xlu2 %8522, %v8229_v15   ;;  %v8230_v15 = vld [vmem:[%s15537_s1 + $0x154] sm:$0xff] }
 0x68b   :  { %5052 = vperm.xlu1 %8521, %v8228_v19   ;;  %5047 = vperm.xlu0 %8520, %v8227_v35  }
 0x68c   :  { %v11652_v9 = vpop.permute.xlu2 %4795 }
 0x68d   :  { %16131 = vst [vmem:[#allocation543_spill] sm:$0xff] %v11652_v9  ;;  %v11654_v53 = vpop.permute.xlu1 %4745  ;;  %v11656_v47 = vpop.permute.xlu0 %4740  ;;  %v8234_v9 = vld [vmem:[%s15537_s1 + $0x184] sm:$0xff] }
 0x68e   :  { %16132 = vst [vmem:[#allocation544_spill] sm:$0xff] %v11654_v53 }
 0x68f   :  { %16133 = vst [vmem:[#allocation545_spill] sm:$0xff] %v11656_v47  ;;  %v8235_v47 = vld [vmem:[%s15537_s1 + $0x18c] sm:$0xff] }
 0x692   :  { %5072 = vperm.xlu2 %8522, %v8232_v46   ;;  %v8233_v46 = vld [vmem:[%s15537_s1 + $0x174] sm:$0xff] }
 0x693   :  { %5067 = vperm.xlu1 %8521, %v8231_v34   ;;  %5062 = vperm.xlu0 %8520, %v8230_v15  }
 0x694   :  { %v11667_v19 = vpop.permute.xlu2 %4810 }
 0x695   :  { %16134 = vst [vmem:[#allocation546_spill] sm:$0xff] %v11667_v19  ;;  %v11669_v35 = vpop.permute.xlu1 %4760  ;;  %v11671_v53 = vpop.permute.xlu0 %4755 }
 0x696   :  { %16135 = vst [vmem:[#allocation547_spill] sm:$0xff] %v11669_v35  ;;  %v8237_v35 = vld [vmem:[%s15537_s1 + $0x1a4] sm:$0xff] }
 0x697   :  { %16136 = vst [vmem:[#allocation548_spill] sm:$0xff] %v11671_v53  ;;  %v8238_v53 = vld [vmem:[%s15537_s1 + $0x1b4] sm:$0xff] }
 0x69a   :  { %5087 = vperm.xlu2 %8522, %v8235_v47   ;;  %v8236_v47 = vld [vmem:[%s15537_s1 + $0x19c] sm:$0xff] }
 0x69b   :  { %5082 = vperm.xlu1 %8521, %v8234_v9   ;;  %5077 = vperm.xlu0 %8520, %v8233_v46  }
 0x69c   :  { %v11682_v34 = vpop.permute.xlu2 %4825 }
 0x69d   :  { %16137 = vst [vmem:[#allocation549_spill] sm:$0xff] %v11682_v34  ;;  %v11684_v15 = vpop.permute.xlu1 %4775  ;;  %v11686_v19 = vpop.permute.xlu0 %4770 }
 0x69e   :  { %16138 = vst [vmem:[#allocation550_spill] sm:$0xff] %v11684_v15  ;;  %v8240_v15 = vld [vmem:[%s15535_s0 + $0x30] sm:$0xff] }
 0x69f   :  { %16139 = vst [vmem:[#allocation551_spill] sm:$0xff] %v11686_v19  ;;  %v8241_v19 = vld [vmem:[%s15535_s0 + $0x38] sm:$0xff] }
 0x6a2   :  { %5102 = vperm.xlu2 %8522, %v8238_v53   ;;  %v8239_v53 = vld [vmem:[%s15537_s1 + $0x1bc] sm:$0xff] }
 0x6a3   :  { %5097 = vperm.xlu1 %8521, %v8237_v35   ;;  %5092 = vperm.xlu0 %8520, %v8236_v47  }
 0x6a4   :  { %v11697_v9 = vpop.permute.xlu2 %4840 }
 0x6a5   :  { %16140 = vst [vmem:[#allocation552_spill] sm:$0xff] %v11697_v9  ;;  %v11699_v46 = vpop.permute.xlu1 %4790  ;;  %v11701_v34 = vpop.permute.xlu0 %4785 }
 0x6a6   :  { %16141 = vst [vmem:[#allocation553_spill] sm:$0xff] %v11699_v46  ;;  %v8243_v46 = vld [vmem:[%s15535_s0 + $0x50] sm:$0xff] }
 0x6a7   :  { %16142 = vst [vmem:[#allocation554_spill] sm:$0xff] %v11701_v34  ;;  %v8244_v34 = vld [vmem:[%s15535_s0 + $0x60] sm:$0xff] }
 0x6aa   :  { %5215 = vperm.xlu2 %8522, %v8241_v19   ;;  %v8242_v19 = vld [vmem:[%s15535_s0 + $0x48] sm:$0xff] }
 0x6ab   :  { %5210 = vperm.xlu1 %8521, %v8240_v15   ;;  %5107 = vperm.xlu0 %8520, %v8239_v53  }
 0x6ac   :  { %v11712_v35 = vpop.permute.xlu2 %4952 }
 0x6ad   :  { %16143 = vst [vmem:[#allocation555_spill] sm:$0xff] %v11712_v35  ;;  %v11714_v47 = vpop.permute.xlu1 %4805  ;;  %v11716_v9 = vpop.permute.xlu0 %4800  ;;  %v8246_v35 = vld [vmem:[%s15535_s0 + $0x78] sm:$0xff] }
 0x6ae   :  { %16144 = vst [vmem:[#allocation556_spill] sm:$0xff] %v11714_v47  ;;  %v8247_v47 = vld [vmem:[%s15535_s0 + $0x80] sm:$0xff] }
 0x6af   :  { %16145 = vst [vmem:[#allocation557_spill] sm:$0xff] %v11716_v9 }
 0x6b2   :  { %5230 = vperm.xlu2 %8522, %v8244_v34   ;;  %v8245_v34 = vld [vmem:[%s15535_s0 + $0x68] sm:$0xff] }
 0x6b3   :  { %5225 = vperm.xlu1 %8521, %v8243_v46   ;;  %5220 = vperm.xlu0 %8520, %v8242_v19  }
 0x6b4   :  { %v11727_v15 = vpop.permute.xlu2 %4967 }
 0x6b5   :  { %16146 = vst [vmem:[#allocation558_spill] sm:$0xff] %v11727_v15  ;;  %v11729_v53 = vpop.permute.xlu1 %4820  ;;  %v11731_v9 = vpop.permute.xlu0 %4815  ;;  %v8249_v15 = vld [vmem:[%s15535_s0 + $0x98] sm:$0xff] }
 0x6b6   :  { %16147 = vst [vmem:[#allocation559_spill] sm:$0xff] %v11729_v53 }
 0x6b7   :  { %16148 = vst [vmem:[#allocation560_spill] sm:$0xff] %v11731_v9  ;;  %v8250_v9 = vld [vmem:[%s15535_s0 + $0xa8] sm:$0xff] }
 0x6ba   :  { %5245 = vperm.xlu2 %8522, %v8247_v47   ;;  %v8248_v47 = vld [vmem:[%s15535_s0 + $0x90] sm:$0xff] }
 0x6bb   :  { %5240 = vperm.xlu1 %8521, %v8246_v35   ;;  %5235 = vperm.xlu0 %8520, %v8245_v34  }
 0x6bc   :  { %v11742_v46 = vpop.permute.xlu2 %4982 }
 0x6bd   :  { %16149 = vst [vmem:[#allocation561_spill] sm:$0xff] %v11742_v46  ;;  %v11744_v19 = vpop.permute.xlu1 %4835  ;;  %v11746_v53 = vpop.permute.xlu0 %4830  ;;  %v8252_v46 = vld [vmem:[%s15535_s0 + $0xc0] sm:$0xff] }
 0x6be   :  { %16150 = vst [vmem:[#allocation562_spill] sm:$0xff] %v11744_v19 }
 0x6bf   :  { %16151 = vst [vmem:[#allocation563_spill] sm:$0xff] %v11746_v53  ;;  %v8253_v53 = vld [vmem:[%s15535_s0 + $0xc8] sm:$0xff] }
 0x6c2   :  { %5260 = vperm.xlu2 %8522, %v8250_v9   ;;  %v8251_v9 = vld [vmem:[%s15535_s0 + $0xb0] sm:$0xff] }
 0x6c3   :  { %5255 = vperm.xlu1 %8521, %v8249_v15   ;;  %5250 = vperm.xlu0 %8520, %v8248_v47   ;;  %v11777_v47 = vld [vmem:[%s15536_s2] sm:$0xff] }
 0x6c4   :  { %v11757_v35 = vpop.permute.xlu2 %4997  ;;  %v11787_v42 = vperm.slane %v11777_v47, 0 }
 0x6c5   :  { %16152 = vst [vmem:[#allocation564_spill] sm:$0xff] %v11757_v35  ;;  %v11759_v34 = vpop.permute.xlu1 %4850  ;;  %v11761_v19 = vpop.permute.xlu0 %4845  ;;  %v8256_v35 = vld [vmem:[%s15535_s0 + $0x120] sm:$0xff] }
 0x6c6   :  { %16153 = vst [vmem:[#allocation565_spill] sm:$0xff] %v11759_v34  ;;  %v228_v21 = vmul.f32 %v11787_v42, %v8729_v50  ;;  %v11824_v50 = vmul.f32 %v11787_v42, %v8757_v61  ;;  %v235_v61 = vmul.f32 %v11787_v42, %v8776_v5  ;;  %v11861_v5 = vmul.f32 %v11787_v42, %v8819_v22 }
 0x6c7   :  { %16154 = vst [vmem:[#allocation566_spill] sm:$0xff] %v11761_v19 }
 0x6c8   :  { %16158 = vst [vmem:[#allocation570_spill] sm:$0xff] %v11787_v42 }
 0x6c9   :  { %16164 = vst [vmem:[#allocation576_spill] sm:$0xff] %v11861_v5 }
 0x6ca   :  { %5275 = vperm.xlu2 %8522, %v8253_v53   ;;  %v8255_v53 = vld [vmem:[%s15535_s0 + $0xe0] sm:$0xff] }
 0x6cb   :  { %5270 = vperm.xlu1 %8521, %v8252_v46   ;;  %5265 = vperm.xlu0 %8520, %v8251_v9   ;;  %v8254_v46 = vld [vmem:[%s15535_s0 + $0xd8] sm:$0xff]  ;;  %v230_v9 = vmul.f32 %v11787_v42, %v8694_v37  ;;  %v11810_v37 = vperm.slane %v11777_v47, 1 }
 0x6cc   :  { %v11772_v15 = vpop.permute.xlu2 %5012 }
 0x6cd   :  { %16155 = vst [vmem:[#allocation567_spill] sm:$0xff] %v11772_v15  ;;  %v11779_v19 = vpop.permute.xlu1 %4962  ;;  %v11781_v34 = vpop.permute.xlu0 %4957  ;;  %v231_v15 = vmul.f32 %v11787_v42, %v8705_v41  ;;  %v11816_v41 = vmul.f32 %v11787_v42, %v8742_v55  ;;  %v232_v55 = vmul.f32 %v11787_v42, %v8761_v63  ;;  %v11852_v63 = vmul.f32 %v11787_v42, %v8804_v16  ;;  %v8258_v16 = vld [vmem:[%s15535_s0 + $0x138] sm:$0xff] }
 0x6ce   :  { %16156 = vst [vmem:[#allocation568_spill] sm:$0xff] %v11779_v19  ;;  %v11803_v19 = vmul.f32 %v11787_v42, %v8727_v49  ;;  %v227_v49 = vmul.f32 %v11787_v42, %v8746_v57  ;;  %v11840_v57 = vmul.f32 %v11787_v42, %v8774_v4  ;;  %v241_v4 = vmul.f32 %v11787_v42, %v8806_v17 }
 0x6cf   :  { %16157 = vst [vmem:[#allocation569_spill] sm:$0xff] %v11781_v34  ;;  %v234_v34 = vmul.f32 %v11787_v42, %v8716_v45  ;;  %v229_v45 = vmul.f32 %v11787_v42, %v8744_v56  ;;  %v11836_v56 = vmul.f32 %v11787_v42, %v8772_v3  ;;  %v8259_v3 = vld [vmem:[%s15535_s0 + $0x140] sm:$0xff]  ;;  %v486_v17 = vmul.f32 %v11810_v37, %v8847_v33 }
 0x6d0   :  { %16159 = vst [vmem:[#allocation571_spill] sm:$0xff] %v11810_v37  ;;  %v489_v22 = vmul.f32 %v11810_v37, %v8862_v40  ;;  %v484_v52 = vmul.f32 %v11810_v37, %v8896_v1  ;;  %v498_v5 = vmul.f32 %v11810_v37, %v8907_v8  ;;  %v488_v33 = vmul.f32 %v11810_v37, %v8909_v12 }
 0x6d1   :  { %16163 = vst [vmem:[#allocation575_spill] sm:$0xff] %v11836_v56  ;;  %v487_v40 = vmul.f32 %v11810_v37, %v8911_v13  ;;  %v248_v1 = vmul.f32 %v11787_v42, %v8834_v28  ;;  %v247_v8 = vmul.f32 %v11787_v42, %v8836_v29  ;;  %v490_v12 = vmul.f32 %v11810_v37, %v8926_v25 }
 0x6d2   :  { %5290 = vperm.xlu2 %8522, %v8256_v35   ;;  %v226_v35 = vmul.f32 %v11787_v42, %v8731_v51  ;;  %v11903_v13 = vadd.f32 %v486_v17, %v229_v45  ;;  %v516_v29 = vadd.f32 %v484_v52, %v227_v49  ;;  %v11920_v25 = vperm.slane %v11777_v47, 2 }
 0x6d3   :  { %5285 = vperm.xlu1 %8521, %v8255_v53   ;;  %5280 = vperm.xlu0 %8520, %v8254_v46   ;;  %v233_v46 = vmul.f32 %v11787_v42, %v8759_v62  ;;  %v238_v62 = vmul.f32 %v11787_v42, %v8791_v11  ;;  %v483_v11 = vmul.f32 %v11810_v37, %v8832_v27 }
 0x6d4   :  { %v11812_v2 = vpop.permute.xlu2 %5027  ;;  %v495_v27 = vmul.f32 %v11810_v37, %v8892_v60  ;;  %v491_v60 = vmul.f32 %v11810_v37, %v8924_v24  ;;  %16167 = vst [vmem:[#allocation579_spill] sm:$0xff] %v11920_v25  ;;  %v11922_v45 = vadd.f32 %v488_v33, %v231_v15  ;;  %v494_v52 = vmul.f32 %v11810_v37, %v8939_v36  ;;  %v8261_v15 = vld [vmem:[%s15535_s0 + $0x158] sm:$0xff] }
 0x6d5   :  { %16160 = vst [vmem:[#allocation572_spill] sm:$0xff] %v11812_v2  ;;  %v11826_v51 = vpop.permute.xlu1 %4977  ;;  %v11828_v53 = vpop.permute.xlu0 %4972  ;;  %v485_v2 = vmul.f32 %v11810_v37, %v8894_v0  ;;  %v515_v0 = vadd.f32 %v483_v11, %v226_v35  ;;  %v11917_v11 = vadd.f32 %v498_v5, %v241_v4  ;;  %v522_v17 = vadd.f32 %v490_v12, %v233_v46 }
 0x6d6   :  { %16161 = vst [vmem:[#allocation573_spill] sm:$0xff] %v11826_v51  ;;  %v11846_v51 = vmul.f32 %v11787_v42, %v8789_v10  ;;  %v244_v10 = vmul.f32 %v11787_v42, %v8821_v23  ;;  %v492_v23 = vmul.f32 %v11810_v37, %v8877_v48  ;;  %v501_v48 = vmul.f32 %v11810_v37, %v8922_v20 }
 0x6d7   :  { %16162 = vst [vmem:[#allocation574_spill] sm:$0xff] %v11828_v53  ;;  %v8257_v53 = vld [vmem:[%s15535_s0 + $0x128] sm:$0xff]  ;;  %v11905_v20 = vadd.f32 %v489_v22, %v232_v55  ;;  %v11909_v24 = vadd.f32 %v495_v27, %v238_v62  ;;  %v11915_v28 = vadd.f32 %v485_v2, %v228_v21  ;;  %v519_v55 = vadd.f32 %v487_v40, %v230_v9 }
 0x6d8   :  { %v11907_v56 = vadd.f32 %v492_v23, %v235_v61  ;;  %v11926_v61 = vadd.f32 %v491_v60, %v234_v34  ;;  %v8262_v62 = vld [vmem:[%s15535_s0 + $0x168] sm:$0xff]  ;;  %v504_v2 = vmul.f32 %v11810_v37, %v8937_v32  ;;  %v493_v21 = vmul.f32 %v11810_v37, %v8941_v38  ;;  %v8260_v34 = vld [vmem:[%s15535_s0 + $0x150] sm:$0xff] }
 0x6d9   :  { %v497_v9 = vmul.f32 %v11810_v37, %v8954_v54  ;;  %v496_v32 = vmul.f32 %v11810_v37, %v8956_v58  ;;  %v500_v36 = vmul.f32 %v11810_v37, %v8969_v14  ;;  %v499_v38 = vmul.f32 %v11810_v37, %v8971_v18 }
 0x6da   :  { %5305 = vperm.xlu2 %8522, %v8259_v3   ;;  %v503_v49 = vmul.f32 %v11810_v37, %v8984_v39  ;;  %v502_v46 = vmul.f32 %v11810_v37, %v8986_v44  ;;  %v741_v4 = vmul.f32 %v11920_v25, %v8997_v6  ;;  %v505_v54 = vmul.f32 %v11810_v37, %v9001_v26 }
 0x6db   :  { %5300 = vperm.xlu1 %8521, %v8258_v16   ;;  %5295 = vperm.xlu0 %8520, %v8257_v53   ;;  %v11924_v16 = vadd.f32 %v501_v48, %v244_v10  ;;  %v744_v58 = vmul.f32 %v11920_v25, %v9012_v59  ;;  %v747_v14 = vmul.f32 %v11920_v25, %v9027_v31 }
 0x6dc   :  { %v11901_v3 = vpop.permute.xlu2 %5042  ;;  %v750_v18 = vmul.f32 %v11920_v25, %v9042_v43  ;;  %v11965_v39 = vadd.f32 %v504_v2, %v247_v8  ;;  %v526_v44 = vadd.f32 %v494_v52, %v11803_v19  ;;  %v740_v6 = vmul.f32 %v11920_v25, %v9044_v30  ;;  %v16170_v30 = vld [vmem:[#allocation575_spill] sm:$0xff]  ;;  %v16172_v8 = vld [vmem:[#allocation25_spill] sm:$0xff]  ;;  %v16175_v2 = vld [vmem:[#allocation28_spill] sm:$0xff] }
 0x6dd   :  { %v11911_v35 = vpop.permute.xlu1 %4992  ;;  %v11913_v53 = vpop.permute.xlu0 %4987  ;;  %v753_v26 = vmul.f32 %v11920_v25, %v9057_v7  ;;  %v525_v59 = vadd.f32 %v493_v21, %v11840_v57  ;;  %v529_v31 = vadd.f32 %v497_v9, %v11816_v41  ;;  %v528_v43 = vadd.f32 %v496_v32, %v11846_v51  ;;  %v16171_v7 = vld [vmem:[#allocation576_spill] sm:$0xff]  ;;  %v16176_v21 = vld [vmem:[#allocation29_spill] sm:$0xff]  ;;  %v16178_v32 = vld [vmem:[#allocation31_spill] sm:$0xff] }
 0x6de   :  { %16165 = vst [vmem:[#allocation577_spill] sm:$0xff] %v11911_v35  ;;  %v532_v10 = vadd.f32 %v500_v36, %v11824_v50  ;;  %v531_v19 = vadd.f32 %v499_v38, %v11852_v63  ;;  %v11984_v27 = vadd.f32 %v503_v49, %v16170_v30  ;;  %v534_v33 = vadd.f32 %v502_v46, %v16171_v7  ;;  %v8265_v50 = vld [vmem:[%s15535_s0 + $0x188] sm:$0xff]  ;;  %v16180_v46 = vld [vmem:[#allocation33_spill] sm:$0xff] }
 0x6df   :  { %16166 = vst [vmem:[#allocation578_spill] sm:$0xff] %v11913_v53  ;;  %v11987_v40 = vadd.f32 %v741_v4, %v516_v29  ;;  %v537_v57 = vadd.f32 %v505_v54, %v248_v1  ;;  %v11989_v48 = vadd.f32 %v744_v58, %v519_v55  ;;  %v11991_v41 = vadd.f32 %v747_v14, %v522_v17  ;;  %v16173_v29 = vld [vmem:[#allocation26_spill] sm:$0xff]  ;;  %v8264_v55 = vld [vmem:[%s15535_s0 + $0x180] sm:$0xff]  ;;  %v16179_v38 = vld [vmem:[#allocation32_spill] sm:$0xff] }
 0x6e0   :  { %v11993_v51 = vadd.f32 %v750_v18, %v525_v59  ;;  %v11998_v60 = vadd.f32 %v740_v6, %v515_v0  ;;  %v12000_v63 = vadd.f32 %v753_v26, %v528_v43  ;;  %v743_v12 = vmul.f32 %v11920_v25, %v16172_v8  ;;  %v16174_v17 = vld [vmem:[#allocation27_spill] sm:$0xff]  ;;  %v16181_v54 = vld [vmem:[#allocation34_spill] sm:$0xff]  ;;  %v16183_v6 = vld [vmem:[#allocation37_spill] sm:$0xff] }
 0x6e1   :  { %v742_v1 = vmul.f32 %v11920_v25, %v16173_v29  ;;  %v756_v0 = vmul.f32 %v11920_v25, %v16174_v17  ;;  %v746_v52 = vmul.f32 %v11920_v25, %v16175_v2  ;;  %v749_v36 = vmul.f32 %v11920_v25, %v16178_v32  ;;  %v16182_v14 = vld [vmem:[#allocation35_spill] sm:$0xff]  ;;  %v16184_v59 = vld [vmem:[#allocation38_spill] sm:$0xff]  ;;  %v16185_v8 = vld [vmem:[#allocation40_spill] sm:$0xff] }
 0x6e2   :  { %5320 = vperm.xlu2 %8522, %v8262_v62   ;;  %v8263_v62 = vld [vmem:[%s15535_s0 + $0x170] sm:$0xff]  ;;  %v748_v49 = vmul.f32 %v11920_v25, %v16179_v38  ;;  %v762_v4 = vmul.f32 %v11920_v25, %v16180_v46  ;;  %v752_v58 = vmul.f32 %v11920_v25, %v16181_v54  ;;  %v751_v18 = vmul.f32 %v11920_v25, %v16182_v14  ;;  %v16193_v38 = vld [vmem:[#allocation51_spill] sm:$0xff]  ;;  %v16194_v46 = vld [vmem:[#allocation54_spill] sm:$0xff] }
 0x6e3   :  { %5315 = vperm.xlu1 %8521, %v8261_v15   ;;  %5310 = vperm.xlu0 %8520, %v8260_v34   ;;  %v745_v15 = vmul.f32 %v11920_v25, %v16176_v21  ;;  %v16177_v34 = vld [vmem:[#allocation30_spill] sm:$0xff]  ;;  %v755_v26 = vmul.f32 %v11920_v25, %v16183_v6  ;;  %v754_v43 = vmul.f32 %v11920_v25, %v16184_v59  ;;  %v16186_v17 = vld [vmem:[#allocation41_spill] sm:$0xff]  ;;  %v16195_v54 = vld [vmem:[#allocation55_spill] sm:$0xff] }
 0x6e4   :  { %v11972_v5 = vpop.permute.xlu2 %5057  ;;  %v759_v9 = vmul.f32 %v11920_v25, %v16177_v34  ;;  %v775_v30 = vadd.f32 %v743_v12, %v11903_v13  ;;  %v774_v7 = vadd.f32 %v742_v1, %v11915_v28  ;;  %v758_v29 = vmul.f32 %v11920_v25, %v16185_v8  ;;  %v16196_v14 = vld [vmem:[#allocation56_spill] sm:$0xff]  ;;  %v16197_v6 = vld [vmem:[#allocation57_spill] sm:$0xff]  ;;  %v16198_v59 = vld [vmem:[#allocation58_spill] sm:$0xff] }
 0x6e5   :  { %v11978_v22 = vpop.permute.xlu1 %5007  ;;  %v11980_v23 = vpop.permute.xlu0 %5002  ;;  %v12042_v21 = vadd.f32 %v756_v0, %v531_v19  ;;  %v778_v34 = vadd.f32 %v746_v52, %v11905_v20  ;;  %v777_v32 = vadd.f32 %v745_v15, %v11922_v45  ;;  %v12056_v1 = vadd.f32 %v749_v36, %v11907_v56  ;;  %v16199_v8 = vld [vmem:[#allocation59_spill] sm:$0xff] }
 0x6e6   :  { %16168 = vst [vmem:[#allocation580_spill] sm:$0xff] %v11978_v22  ;;  %v12053_v12 = vadd.f32 %v759_v9, %v534_v33  ;;  %v12059_v19 = vadd.f32 %v762_v4, %v537_v57  ;;  %v12062_v20 = vadd.f32 %v752_v58, %v11909_v24  ;;  %v783_v45 = vadd.f32 %v751_v18, %v526_v44  ;;  %v8268_v33 = vld [vmem:[%s15535_s0 + $0x1b0] sm:$0xff]  ;;  %v16189_v9 = vld [vmem:[#allocation43_spill] sm:$0xff]  ;;  %v16190_v57 = vld [vmem:[#allocation44_spill] sm:$0xff] }
 0x6e7   :  { %16169 = vst [vmem:[#allocation581_spill] sm:$0xff] %v11980_v23  ;;  %v12065_v0 = vadd.f32 %v755_v26, %v11917_v11  ;;  %v786_v52 = vadd.f32 %v754_v43, %v529_v31  ;;  %v12071_v15 = vadd.f32 %v758_v29, %v11924_v16  ;;  %v760_v24 = vmul.f32 %v11920_v25, %v16190_v57  ;;  %v8267_v11 = vld [vmem:[%s15535_s0 + $0x1a0] sm:$0xff]  ;;  %v8266_v44 = vld [vmem:[%s15535_s0 + $0x198] sm:$0xff]  ;;  %v16191_v31 = vld [vmem:[#allocation45_spill] sm:$0xff] }
 0x6e8   :  { %v16192_v16 = vld [vmem:[#allocation48_spill] sm:$0xff]  ;;  %v16322_v23 = vld [vmem:[#allocation202_spill] sm:$0xff] }
 0x6ea   :  { %5335 = vperm.xlu2 %8522, %v8265_v50   ;;  %v757_v50 = vmul.f32 %v11920_v25, %v16186_v17  ;;  %v16200_v17 = vld [vmem:[#allocation60_spill] sm:$0xff] }
 0x6eb   :  { %5330 = vperm.xlu1 %8521, %v8264_v55   ;;  %5325 = vperm.xlu0 %8520, %v8263_v62   ;;  %v12047_v55 = vperm.slane %v11777_v47, 3  ;;  %v780_v62 = vadd.f32 %v748_v49, %v11926_v61  ;;  %v761_v61 = vmul.f32 %v11920_v25, %v16189_v9  ;;  %v16201_v9 = vld [vmem:[#allocation61_spill] sm:$0xff] }
 0x6ec   :  { %v12040_v2 = vpop.permute.xlu2 %5072  ;;  %v789_v56 = vadd.f32 %v757_v50, %v532_v10 }
 0x6ed   :  { %16187 = vst [vmem:[#allocation575_spill] sm:$0xff] %v12040_v2  ;;  %v12049_v13 = vpop.permute.xlu1 %5022  ;;  %v12051_v28 = vpop.permute.xlu0 %5017  ;;  %v999_v36 = vmul.f32 %v12047_v55, %v16191_v31  ;;  %v1002_v10 = vmul.f32 %v12047_v55, %v16192_v16  ;;  %v1005_v49 = vmul.f32 %v12047_v55, %v16193_v38  ;;  %v1008_v4 = vmul.f32 %v12047_v55, %v16194_v46  ;;  %v16202_v38 = vld [vmem:[#allocation62_spill] sm:$0xff] }
 0x6ee   :  { %16188 = vst [vmem:[#allocation576_spill] sm:$0xff] %v12047_v55  ;;  %v998_v58 = vmul.f32 %v12047_v55, %v16195_v54  ;;  %v997_v18 = vmul.f32 %v12047_v55, %v16196_v14  ;;  %v1011_v26 = vmul.f32 %v12047_v55, %v16197_v6  ;;  %v1001_v43 = vmul.f32 %v12047_v55, %v16198_v59  ;;  %v16203_v54 = vld [vmem:[#allocation63_spill] sm:$0xff] }
 0x6ef   :  { %v1000_v29 = vmul.f32 %v12047_v55, %v16199_v8  ;;  %v1014_v50 = vmul.f32 %v12047_v55, %v16200_v17  ;;  %v1004_v57 = vmul.f32 %v12047_v55, %v16201_v9  ;;  %v793_v31 = vadd.f32 %v761_v61, %v11965_v39 }
 0x6f0   :  { %v792_v16 = vadd.f32 %v760_v24, %v11984_v27  ;;  %v1003_v46 = vmul.f32 %v12047_v55, %v16202_v38  ;;  %v1031_v6 = vadd.f32 %v999_v36, %v774_v7  ;;  %v12113_v59 = vadd.f32 %v1002_v10, %v777_v32  ;;  %v16214_v38 = vld [vmem:[#allocation75_spill] sm:$0xff] }
 0x6f1   :  { %v12115_v8 = vadd.f32 %v1005_v49, %v780_v62  ;;  %v12117_v17 = vadd.f32 %v1008_v4, %v783_v45  ;;  %v12124_v27 = vadd.f32 %v998_v58, %v11987_v40  ;;  %v1029_v61 = vadd.f32 %v997_v18, %v11998_v60  ;;  %v8271_v40 = vld [vmem:[%s15535_s0 + $0x1d0] sm:$0xff]  ;;  %v16210_v18 = vld [vmem:[#allocation70_spill] sm:$0xff] }
 0x6f2   :  { %5350 = vperm.xlu2 %8522, %v8268_v33   ;;  %v1017_v33 = vmul.f32 %v12047_v55, %v16203_v54  ;;  %v12127_v24 = vadd.f32 %v1011_v26, %v786_v52  ;;  %v12133_v7 = vadd.f32 %v1001_v43, %v11989_v48  ;;  %v1032_v32 = vadd.f32 %v1000_v29, %v775_v30  ;;  %v16206_v52 = vld [vmem:[#allocation64_spill] sm:$0xff]  ;;  %v16207_v49 = vld [vmem:[#allocation65_spill] sm:$0xff]  ;;  %v16211_v43 = vld [vmem:[#allocation71_spill] sm:$0xff] }
 0x6f3   :  { %5345 = vperm.xlu1 %8521, %v8267_v11   ;;  %5340 = vperm.xlu0 %8520, %v8266_v44   ;;  %v12130_v44 = vperm.slane %v11777_v47, 4  ;;  %v12135_v62 = vadd.f32 %v1014_v50, %v789_v56  ;;  %v12138_v45 = vadd.f32 %v1004_v57, %v11991_v41  ;;  %v1035_v36 = vadd.f32 %v1003_v46, %v778_v34  ;;  %v8270_v30 = vld [vmem:[%s15535_s0 + $0x1c8] sm:$0xff]  ;;  %v8269_v41 = vld [vmem:[%s15535_s0 + $0x1b8] sm:$0xff]  ;;  %v16208_v56 = vld [vmem:[#allocation67_spill] sm:$0xff] }
 0x6f4   :  { %v12111_v14 = vpop.permute.xlu2 %5087  ;;  %v12143_v60 = vadd.f32 %v1017_v33, %v792_v16  ;;  %v1007_v10 = vmul.f32 %v12047_v55, %v16206_v52  ;;  %v1006_v48 = vmul.f32 %v12047_v55, %v16207_v49  ;;  %v1010_v4 = vmul.f32 %v12047_v55, %v16208_v56  ;;  %v16209_v34 = vld [vmem:[#allocation68_spill] sm:$0xff]  ;;  %v16212_v50 = vld [vmem:[#allocation73_spill] sm:$0xff]  ;;  %v16213_v57 = vld [vmem:[#allocation74_spill] sm:$0xff] }
 0x6f5   :  { %16204 = vst [vmem:[#allocation25_spill] sm:$0xff] %v12111_v14  ;;  %v12119_v11 = vpop.permute.xlu1 %5037  ;;  %v12121_v39 = vpop.permute.xlu0 %5032  ;;  %v1009_v58 = vmul.f32 %v12047_v55, %v16209_v34  ;;  %v1013_v26 = vmul.f32 %v12047_v55, %v16210_v18  ;;  %v1012_v29 = vmul.f32 %v12047_v55, %v16211_v43  ;;  %v1016_v9 = vmul.f32 %v12047_v55, %v16212_v50  ;;  %v16215_v54 = vld [vmem:[#allocation76_spill] sm:$0xff]  ;;  %v16216_v52 = vld [vmem:[#allocation77_spill] sm:$0xff]  ;;  %v16217_v56 = vld [vmem:[#allocation78_spill] sm:$0xff] }
 0x6f6   :  { %16205 = vst [vmem:[#allocation26_spill] sm:$0xff] %v12130_v44  ;;  %v1015_v16 = vmul.f32 %v12047_v55, %v16213_v57  ;;  %v1254_v46 = vmul.f32 %v12130_v44, %v16214_v38  ;;  %v1019_v33 = vmul.f32 %v12047_v55, %v16215_v54  ;;  %v1018_v49 = vmul.f32 %v12047_v55, %v16216_v52  ;;  %v16218_v18 = vld [vmem:[#allocation81_spill] sm:$0xff]  ;;  %v16219_v57 = vld [vmem:[#allocation84_spill] sm:$0xff]  ;;  %v16220_v14 = vld [vmem:[#allocation87_spill] sm:$0xff] }
 0x6f7   :  { %v1257_v34 = vmul.f32 %v12130_v44, %v16217_v56  ;;  %v1260_v43 = vmul.f32 %v12130_v44, %v16218_v18  ;;  %v1039_v50 = vadd.f32 %v1007_v10, %v11993_v51  ;;  %v1263_v38 = vmul.f32 %v12130_v44, %v16219_v57 }
 0x6f8   :  { %v1266_v54 = vmul.f32 %v12130_v44, %v16220_v14  ;;  %v1038_v56 = vadd.f32 %v1006_v48, %v12056_v1  ;;  %v1042_v55 = vadd.f32 %v1010_v4, %v12000_v63  ;;  %v1044_v18 = vadd.f32 %v1012_v29, %v12065_v0  ;;  %v8274_v48 = vld [vmem:[%s15535_s0 + $0x49] sm:$0xff] }
 0x6f9   :  { %v12196_v14 = vadd.f32 %v1016_v9, %v12053_v12  ;;  %v1047_v57 = vadd.f32 %v1015_v16, %v12071_v15  ;;  %v12202_v1 = vadd.f32 %v1019_v33, %v12059_v19  ;;  %v1050_v63 = vadd.f32 %v1018_v49, %v793_v31  ;;  %v16223_v15 = vld [vmem:[#allocation89_spill] sm:$0xff]  ;;  %v8273_v19 = vld [vmem:[%s15535_s0 + $0x39] sm:$0xff]  ;;  %v16226_v29 = vld [vmem:[#allocation92_spill] sm:$0xff] }
 0x6fa   :  { %5365 = vperm.xlu2 %8522, %v8271_v40   ;;  %v16221_v40 = vld [vmem:[#allocation88_spill] sm:$0xff]  ;;  %v12211_v0 = vadd.f32 %v1263_v38, %v1038_v56  ;;  %v8272_v31 = vld [vmem:[%s15535_s0 + $0x31] sm:$0xff]  ;;  %v16229_v33 = vld [vmem:[#allocation95_spill] sm:$0xff] }
 0x6fb   :  { %5360 = vperm.xlu1 %8521, %v8270_v30   ;;  %5355 = vperm.xlu0 %8520, %v8269_v41   ;;  %v1256_v2 = vmul.f32 %v12130_v44, %v16221_v40  ;;  %v1041_v30 = vadd.f32 %v1009_v58, %v12062_v20  ;;  %v1045_v41 = vadd.f32 %v1013_v26, %v12042_v21  ;;  %v16225_v58 = vld [vmem:[#allocation91_spill] sm:$0xff]  ;;  %v16228_v16 = vld [vmem:[#allocation94_spill] sm:$0xff]  ;;  %v16231_v38 = vld [vmem:[#allocation97_spill] sm:$0xff] }
 0x6fc   :  { %v12184_v52 = vpop.permute.xlu2 %5102  ;;  %v12199_v40 = vadd.f32 %v1254_v46, %v1029_v61  ;;  %v12204_v20 = vadd.f32 %v1257_v34, %v1032_v32  ;;  %v12206_v21 = vadd.f32 %v1260_v43, %v1035_v36  ;;  %v1255_v61 = vmul.f32 %v12130_v44, %v16223_v15  ;;  %v16224_v32 = vld [vmem:[#allocation90_spill] sm:$0xff]  ;;  %v16230_v34 = vld [vmem:[#allocation96_spill] sm:$0xff] }
 0x6fd   :  { %16222 = vst [vmem:[#allocation27_spill] sm:$0xff] %v12184_v52  ;;  %v12190_v51 = vpop.permute.xlu1 %5052  ;;  %v12192_v10 = vpop.permute.xlu0 %5047  ;;  %v12213_v12 = vadd.f32 %v1266_v54, %v1041_v30  ;;  %v12215_v4 = vadd.f32 %v1256_v2, %v1031_v6  ;;  %v1269_v36 = vmul.f32 %v12130_v44, %v16224_v32  ;;  %v1259_v26 = vmul.f32 %v12130_v44, %v16225_v58  ;;  %v16227_v6 = vld [vmem:[#allocation93_spill] sm:$0xff]  ;;  %v16232_v56 = vld [vmem:[#allocation98_spill] sm:$0xff]  ;;  %v16233_v15 = vld [vmem:[#allocation100_spill] sm:$0xff] }
 0x6fe   :  { %v1258_v2 = vmul.f32 %v12130_v44, %v16226_v29  ;;  %v1272_v9 = vmul.f32 %v12130_v44, %v16227_v6  ;;  %v1262_v46 = vmul.f32 %v12130_v44, %v16228_v16  ;;  %v1261_v49 = vmul.f32 %v12130_v44, %v16229_v33  ;;  %v16234_v58 = vld [vmem:[#allocation101_spill] sm:$0xff]  ;;  %v16235_v16 = vld [vmem:[#allocation103_spill] sm:$0xff] }
 0x6ff   :  { %v1275_v43 = vmul.f32 %v12130_v44, %v16230_v34  ;;  %v1265_v54 = vmul.f32 %v12130_v44, %v16231_v38  ;;  %v1264_v30 = vmul.f32 %v12130_v44, %v16232_v56  ;;  %v1268_v32 = vmul.f32 %v12130_v44, %v16233_v15  ;;  %v16236_v34 = vld [vmem:[#allocation104_spill] sm:$0xff] }
 0x700   :  { %v1267_v29 = vmul.f32 %v12130_v44, %v16234_v58  ;;  %v1287_v6 = vadd.f32 %v1255_v61, %v12124_v27  ;;  %v1271_v33 = vmul.f32 %v12130_v44, %v16235_v16  ;;  %v1270_v38 = vmul.f32 %v12130_v44, %v16236_v34 }
 0x701   :  { %v12256_v25 = vadd.f32 %v1269_v36, %v1044_v18  ;;  %v1291_v15 = vadd.f32 %v1259_v26, %v12113_v59  ;;  %v12267_v58 = vadd.f32 %v1272_v9, %v1047_v57  ;;  %v12270_v16 = vadd.f32 %v1262_v46, %v12115_v8  ;;  %v8277_v57 = vld [vmem:[%s15535_s0 + $0x69] sm:$0xff]  ;;  %v16245_v46 = vld [vmem:[#allocation111_spill] sm:$0xff] }
 0x702   :  { %5477 = vperm.xlu2 %8522, %v8274_v48   ;;  %v16237_v48 = vld [vmem:[#allocation106_spill] sm:$0xff]  ;;  %v1293_v34 = vadd.f32 %v1261_v49, %v12138_v45  ;;  %v12273_v18 = vadd.f32 %v1275_v43, %v1050_v63  ;;  %v12276_v59 = vadd.f32 %v1265_v54, %v12117_v17  ;;  %v12279_v36 = vadd.f32 %v1268_v32, %v12127_v24  ;;  %v16242_v63 = vld [vmem:[#allocation107_spill] sm:$0xff]  ;;  %v16247_v43 = vld [vmem:[#allocation117_spill] sm:$0xff] }
 0x703   :  { %5472 = vperm.xlu1 %8521, %v8273_v19   ;;  %5467 = vperm.xlu0 %8520, %v8272_v31   ;;  %v1274_v52 = vmul.f32 %v12130_v44, %v16237_v48  ;;  %v1290_v19 = vadd.f32 %v1258_v2, %v12133_v7  ;;  %v12261_v31 = vperm.slane %v11777_v47, 5  ;;  %v1296_v7 = vadd.f32 %v1264_v30, %v1039_v50  ;;  %v8276_v24 = vld [vmem:[%s15535_s0 + $0x61] sm:$0xff]  ;;  %v16248_v30 = vld [vmem:[#allocation118_spill] sm:$0xff] }
 0x704   :  { %v12254_v56 = vpop.permute.xlu2 %5215  ;;  %v1299_v26 = vadd.f32 %v1267_v29, %v1042_v55  ;;  %v12285_v2 = vadd.f32 %v1271_v33, %v12135_v62  ;;  %v1302_v8 = vadd.f32 %v1270_v38, %v1045_v41  ;;  %v1273_v17 = vmul.f32 %v12130_v44, %v16242_v63  ;;  %v8275_v55 = vld [vmem:[%s15535_s0 + $0x51] sm:$0xff]  ;;  %v16243_v50 = vld [vmem:[#allocation108_spill] sm:$0xff] }
 0x705   :  { %16238 = vst [vmem:[#allocation28_spill] sm:$0xff] %v12254_v56  ;;  %v12263_v27 = vpop.permute.xlu1 %5067  ;;  %v12265_v61 = vpop.permute.xlu0 %5062  ;;  %v12288_v45 = vadd.f32 %v1274_v52, %v12143_v60  ;;  %v1512_v9 = vmul.f32 %v12261_v31, %v16243_v50  ;;  %v16244_v62 = vld [vmem:[#allocation110_spill] sm:$0xff]  ;;  %v1515_v60 = vmul.f32 %v12261_v31, %v16245_v46  ;;  %v1521_v54 = vmul.f32 %v12261_v31, %v16247_v43  ;;  %v16249_v29 = vld [vmem:[#allocation120_spill] sm:$0xff]  ;;  %v16250_v38 = vld [vmem:[#allocation121_spill] sm:$0xff] }
 0x706   :  { %16239 = vst [vmem:[#allocation29_spill] sm:$0xff] %v12261_v31  ;;  %v1276_v41 = vmul.f32 %v12130_v44, %v16244_v62  ;;  %v16246_v52 = vld [vmem:[#allocation114_spill] sm:$0xff]  ;;  %v1511_v32 = vmul.f32 %v12261_v31, %v16248_v30  ;;  %v1524_v33 = vmul.f32 %v12261_v31, %v16249_v29  ;;  %v1514_v48 = vmul.f32 %v12261_v31, %v16250_v38  ;;  %v16252_v62 = vld [vmem:[#allocation123_spill] sm:$0xff]  ;;  %v16254_v30 = vld [vmem:[#allocation125_spill] sm:$0xff] }
 0x707   :  { %16240 = vst [vmem:[#allocation30_spill] sm:$0xff] %v12263_v27  ;;  %v1518_v49 = vmul.f32 %v12261_v31, %v16246_v52  ;;  %v16251_v63 = vld [vmem:[#allocation122_spill] sm:$0xff]  ;;  %v1527_v46 = vmul.f32 %v12261_v31, %v16252_v62  ;;  %v16253_v52 = vld [vmem:[#allocation124_spill] sm:$0xff]  ;;  %v1305_v43 = vadd.f32 %v1273_v17, %v12196_v14  ;;  %v1516_v29 = vmul.f32 %v12261_v31, %v16254_v30 }
 0x708   :  { %16241 = vst [vmem:[#allocation31_spill] sm:$0xff] %v12265_v61  ;;  %v1513_v50 = vmul.f32 %v12261_v31, %v16251_v63  ;;  %v1517_v27 = vmul.f32 %v12261_v31, %v16253_v52  ;;  %v16255_v44 = vld [vmem:[#allocation126_spill] sm:$0xff]  ;;  %v1544_v37 = vadd.f32 %v1512_v9, %v1287_v6  ;;  %v1308_v62 = vadd.f32 %v1276_v41, %v12202_v1  ;;  %v16260_v9 = vld [vmem:[#allocation128_spill] sm:$0xff] }
 0x709   :  { %v1530_v38 = vmul.f32 %v12261_v31, %v16255_v44  ;;  %v12330_v22 = vadd.f32 %v1515_v60, %v1290_v19  ;;  %v12338_v17 = vadd.f32 %v1521_v54, %v1296_v7  ;;  %v1543_v44 = vadd.f32 %v1511_v32, %v12199_v40  ;;  %v8280_v7 = vld [vmem:[%s15535_s0 + $0x91] sm:$0xff] }
 0x70a   :  { %5492 = vperm.xlu2 %8522, %v8277_v57   ;;  %v16256_v57 = vld [vmem:[#allocation127_spill] sm:$0xff]  ;;  %v12341_v52 = vadd.f32 %v1524_v33, %v1299_v26  ;;  %v12344_v30 = vadd.f32 %v1514_v48, %v12204_v20  ;;  %v1545_v6 = vadd.f32 %v1513_v50, %v12215_v4  ;;  %v12347_v1 = vadd.f32 %v1527_v46, %v1302_v8  ;;  %v16261_v8 = vld [vmem:[#allocation129_spill] sm:$0xff]  ;;  %v16265_v32 = vld [vmem:[#allocation134_spill] sm:$0xff] }
 0x70b   :  { %5487 = vperm.xlu1 %8521, %v8276_v24   ;;  %5482 = vperm.xlu0 %8520, %v8275_v55   ;;  %v1520_v42 = vmul.f32 %v12261_v31, %v16256_v57  ;;  %v12332_v24 = vadd.f32 %v1518_v49, %v1293_v34  ;;  %v12350_v19 = vadd.f32 %v1517_v27, %v12206_v21  ;;  %v12353_v34 = vperm.slane %v11777_v47, 6  ;;  %v8279_v21 = vld [vmem:[%s15535_s0 + $0x81] sm:$0xff]  ;;  %v8278_v27 = vld [vmem:[%s15535_s0 + $0x79] sm:$0xff]  ;;  %v16267_v46 = vld [vmem:[#allocation137_spill] sm:$0xff] }
 0x70c   :  { %v12327_v63 = vpop.permute.xlu2 %5230  ;;  %v1548_v40 = vadd.f32 %v1516_v29, %v1291_v15  ;;  %v12358_v26 = vadd.f32 %v1530_v38, %v1305_v43  ;;  %v1519_v4 = vmul.f32 %v12261_v31, %v16260_v9  ;;  %v1533_v41 = vmul.f32 %v12261_v31, %v16261_v8  ;;  %v16262_v15 = vld [vmem:[#allocation130_spill] sm:$0xff]  ;;  %v16263_v49 = vld [vmem:[#allocation131_spill] sm:$0xff]  ;;  %v16266_v48 = vld [vmem:[#allocation136_spill] sm:$0xff] }
 0x70d   :  { %v12334_v55 = vpop.permute.xlu1 %5082  ;;  %v12336_v14 = vpop.permute.xlu0 %5077  ;;  %16259 = vst [vmem:[#allocation34_spill] sm:$0xff] %v12353_v34  ;;  %v12361_v20 = vadd.f32 %v1520_v42, %v12211_v0  ;;  %v1523_v60 = vmul.f32 %v12261_v31, %v16262_v15  ;;  %v1522_v42 = vmul.f32 %v12261_v31, %v16263_v49  ;;  %v16264_v0 = vld [vmem:[#allocation133_spill] sm:$0xff]  ;;  %v1525_v33 = vmul.f32 %v12261_v31, %v16265_v32  ;;  %v16268_v29 = vld [vmem:[#allocation139_spill] sm:$0xff]  ;;  %v16269_v57 = vld [vmem:[#allocation140_spill] sm:$0xff] }
 0x70e   :  { %16257 = vst [vmem:[#allocation32_spill] sm:$0xff] %v12334_v55  ;;  %v1526_v54 = vmul.f32 %v12261_v31, %v16264_v0  ;;  %v1529_v50 = vmul.f32 %v12261_v31, %v16266_v48  ;;  %v1528_v43 = vmul.f32 %v12261_v31, %v16267_v46  ;;  %v1532_v38 = vmul.f32 %v12261_v31, %v16268_v29  ;;  %v16270_v8 = vld [vmem:[#allocation141_spill] sm:$0xff]  ;;  %v16271_v49 = vld [vmem:[#allocation144_spill] sm:$0xff]  ;;  %v16272_v48 = vld [vmem:[#allocation147_spill] sm:$0xff] }
 0x70f   :  { %16258 = vst [vmem:[#allocation33_spill] sm:$0xff] %v12336_v14  ;;  %v1531_v9 = vmul.f32 %v12261_v31, %v16269_v57  ;;  %v1770_v15 = vmul.f32 %v12353_v34, %v16270_v8  ;;  %v1773_v0 = vmul.f32 %v12353_v34, %v16271_v49  ;;  %v1551_v32 = vadd.f32 %v1519_v4, %v12270_v16  ;;  %v16273_v55 = vld [vmem:[#allocation150_spill] sm:$0xff] }
 0x710   :  { %v1776_v46 = vmul.f32 %v12353_v34, %v16272_v48  ;;  %v1779_v29 = vmul.f32 %v12353_v34, %v16273_v55  ;;  %v12402_v31 = vadd.f32 %v1533_v41, %v1308_v62  ;;  %v1555_v8 = vadd.f32 %v1523_v60, %v12213_v12 }
 0x711   :  { %v1558_v55 = vadd.f32 %v1526_v54, %v12256_v25  ;;  %v1557_v48 = vadd.f32 %v1525_v33, %v12279_v36  ;;  %v1560_v62 = vadd.f32 %v1528_v43, %v12285_v2  ;;  %v12417_v41 = vadd.f32 %v1532_v38, %v12273_v18  ;;  %v16279_v2 = vld [vmem:[#allocation153_spill] sm:$0xff]  ;;  %v16280_v54 = vld [vmem:[#allocation154_spill] sm:$0xff] }
 0x712   :  { %5507 = vperm.xlu2 %8522, %v8280_v7   ;;  %v16274_v7 = vld [vmem:[#allocation151_spill] sm:$0xff]  ;;  %v1563_v12 = vadd.f32 %v1531_v9, %v12288_v45  ;;  %v12422_v60 = vadd.f32 %v1773_v0, %v1548_v40  ;;  %v12427_v25 = vadd.f32 %v1776_v46, %v1551_v32  ;;  %v1782_v18 = vmul.f32 %v12353_v34, %v16279_v2  ;;  %v8282_v45 = vld [vmem:[%s15535_s0 + $0xa9] sm:$0xff] }
 0x713   :  { %5502 = vperm.xlu1 %8521, %v8279_v21   ;;  %5497 = vperm.xlu0 %8520, %v8278_v27   ;;  %v1769_v14 = vmul.f32 %v12353_v34, %v16274_v7  ;;  %v1554_v21 = vadd.f32 %v1522_v42, %v12276_v59  ;;  %v16276_v27 = vld [vmem:[#allocation152_spill] sm:$0xff]  ;;  %v1561_v7 = vadd.f32 %v1529_v50, %v12267_v58  ;;  %v8283_v42 = vld [vmem:[%s15535_s0 + $0xb1] sm:$0xff]  ;;  %v16281_v50 = vld [vmem:[#allocation155_spill] sm:$0xff] }
 0x714   :  { %v12400_v57 = vpop.permute.xlu2 %5245  ;;  %v1768_v16 = vmul.f32 %v12353_v34, %v16276_v27  ;;  %v12420_v59 = vadd.f32 %v1770_v15, %v1545_v6  ;;  %v8281_v6 = vld [vmem:[%s15535_s0 + $0x99] sm:$0xff]  ;;  %v1772_v33 = vmul.f32 %v12353_v34, %v16280_v54  ;;  %v1771_v43 = vmul.f32 %v12353_v34, %v16281_v50  ;;  %v16283_v38 = vld [vmem:[#allocation157_spill] sm:$0xff]  ;;  %v16289_v54 = vld [vmem:[#allocation164_spill] sm:$0xff] }
 0x715   :  { %16275 = vst [vmem:[#allocation35_spill] sm:$0xff] %v12400_v57  ;;  %v12408_v4 = vpop.permute.xlu1 %5097  ;;  %v12410_v49 = vpop.permute.xlu0 %5092  ;;  %v12429_v36 = vadd.f32 %v1779_v29, %v1554_v21  ;;  %v12431_v58 = vadd.f32 %v1769_v14, %v1544_v37  ;;  %v16282_v37 = vld [vmem:[#allocation156_spill] sm:$0xff]  ;;  %v1775_v9 = vmul.f32 %v12353_v34, %v16283_v38  ;;  %v16284_v15 = vld [vmem:[#allocation158_spill] sm:$0xff]  ;;  %v16285_v32 = vld [vmem:[#allocation159_spill] sm:$0xff]  ;;  %v1780_v50 = vmul.f32 %v12353_v34, %v16289_v54 }
 0x716   :  { %16277 = vst [vmem:[#allocation37_spill] sm:$0xff] %v12408_v4  ;;  %v1800_v40 = vadd.f32 %v1768_v16, %v1543_v44  ;;  %v1785_v14 = vmul.f32 %v12353_v34, %v16282_v37  ;;  %v1774_v0 = vmul.f32 %v12353_v34, %v16284_v15  ;;  %v1788_v46 = vmul.f32 %v12353_v34, %v16285_v32  ;;  %v16286_v29 = vld [vmem:[#allocation160_spill] sm:$0xff]  ;;  %v16287_v21 = vld [vmem:[#allocation161_spill] sm:$0xff]  ;;  %v16288_v16 = vld [vmem:[#allocation163_spill] sm:$0xff] }
 0x717   :  { %16278 = vst [vmem:[#allocation38_spill] sm:$0xff] %v12410_v49  ;;  %v1778_v44 = vmul.f32 %v12353_v34, %v16286_v29  ;;  %v1777_v27 = vmul.f32 %v12353_v34, %v16287_v21  ;;  %v1781_v2 = vmul.f32 %v12353_v34, %v16288_v16  ;;  %v12461_v37 = vadd.f32 %v1782_v18, %v1557_v48  ;;  %v16290_v38 = vld [vmem:[#allocation166_spill] sm:$0xff]  ;;  %v16291_v32 = vld [vmem:[#allocation167_spill] sm:$0xff]  ;;  %v16294_v54 = vld [vmem:[#allocation169_spill] sm:$0xff] }
 0x718   :  { %v1784_v15 = vmul.f32 %v12353_v34, %v16290_v38  ;;  %v1783_v29 = vmul.f32 %v12353_v34, %v16291_v32  ;;  %v1804_v16 = vadd.f32 %v1772_v33, %v12330_v22  ;;  %v1803_v4 = vadd.f32 %v1771_v43, %v12344_v30  ;;  %v16295_v48 = vld [vmem:[#allocation170_spill] sm:$0xff] }
 0x719   :  { %v1786_v18 = vmul.f32 %v12353_v34, %v16295_v48  ;;  %v12482_v32 = vadd.f32 %v1785_v14, %v1560_v62  ;;  %v1806_v49 = vadd.f32 %v1774_v0, %v12350_v19  ;;  %v12489_v22 = vadd.f32 %v1778_v44, %v12338_v17  ;;  %v8286_v62 = vld [vmem:[%s15535_s0 + $0xd9] sm:$0xff]  ;;  %v16299_v0 = vld [vmem:[#allocation173_spill] sm:$0xff]  ;;  %v16304_v48 = vld [vmem:[#allocation184_spill] sm:$0xff] }
 0x71a   :  { %5522 = vperm.xlu2 %8522, %v8283_v42   ;;  %v12468_v42 = vperm.slane %v11777_v47, 7  ;;  %v1807_v47 = vadd.f32 %v1775_v9, %v12332_v24  ;;  %v1809_v30 = vadd.f32 %v1777_v27, %v12361_v20  ;;  %v12493_v33 = vadd.f32 %v1781_v2, %v12341_v52  ;;  %v16297_v19 = vld [vmem:[#allocation171_spill] sm:$0xff]  ;;  %v16298_v9 = vld [vmem:[#allocation172_spill] sm:$0xff]  ;;  %v16301_v27 = vld [vmem:[#allocation177_spill] sm:$0xff] }
 0x71b   :  { %5517 = vperm.xlu1 %8521, %v8282_v45   ;;  %5512 = vperm.xlu0 %8520, %v8281_v6   ;;  %v1787_v45 = vmul.f32 %v12353_v34, %v16294_v54  ;;  %v1812_v43 = vadd.f32 %v1780_v50, %v1555_v8  ;;  %v12499_v14 = vadd.f32 %v1784_v15, %v12347_v1  ;;  %v8285_v52 = vld [vmem:[%s15535_s0 + $0xc9] sm:$0xff]  ;;  %v8284_v20 = vld [vmem:[%s15535_s0 + $0xc1] sm:$0xff] }
 0x71c   :  { %16292 = vst [vmem:[#allocation40_spill] sm:$0xff] %v12468_v42  ;;  %v12470_v21 = vpop.permute.xlu2 %5260  ;;  %v1815_v24 = vadd.f32 %v1783_v29, %v1558_v55  ;;  %v1790_v17 = vmul.f32 %v12353_v34, %v16298_v9  ;;  %v1818_v1 = vadd.f32 %v1786_v18, %v1561_v7  ;;  %v1789_v55 = vmul.f32 %v12353_v34, %v16299_v0  ;;  %v16302_v50 = vld [vmem:[#allocation180_spill] sm:$0xff]  ;;  %v16303_v29 = vld [vmem:[#allocation183_spill] sm:$0xff]  ;;  %v16305_v7 = vld [vmem:[#allocation185_spill] sm:$0xff] }
 0x71d   :  { %16293 = vst [vmem:[#allocation41_spill] sm:$0xff] %v12470_v21  ;;  %v12478_v6 = vpop.permute.xlu1 %5210  ;;  %v12480_v38 = vpop.permute.xlu0 %5107  ;;  %v12486_v21 = vadd.f32 %v1788_v46, %v1563_v12  ;;  %v2025_v12 = vmul.f32 %v12468_v42, %v16297_v19  ;;  %v12512_v8 = vadd.f32 %v1787_v45, %v12358_v26  ;;  %v16300_v46 = vld [vmem:[#allocation174_spill] sm:$0xff]  ;;  %v2031_v2 = vmul.f32 %v12468_v42, %v16301_v27  ;;  %v16307_v9 = vld [vmem:[#allocation187_spill] sm:$0xff] }
 0x71e   :  { %16296 = vst [vmem:[#allocation43_spill] sm:$0xff] %v12480_v38  ;;  %v2028_v44 = vmul.f32 %v12468_v42, %v16300_v46  ;;  %v2034_v15 = vmul.f32 %v12468_v42, %v16302_v50  ;;  %v2037_v54 = vmul.f32 %v12468_v42, %v16303_v29  ;;  %v2027_v26 = vmul.f32 %v12468_v42, %v16304_v48  ;;  %v16306_v18 = vld [vmem:[#allocation186_spill] sm:$0xff]  ;;  %v16308_v50 = vld [vmem:[#allocation188_spill] sm:$0xff]  ;;  %v16309_v48 = vld [vmem:[#allocation189_spill] sm:$0xff] }
 0x71f   :  { %v2026_v45 = vmul.f32 %v12468_v42, %v16305_v7  ;;  %v2040_v19 = vmul.f32 %v12468_v42, %v16306_v18  ;;  %v2030_v0 = vmul.f32 %v12468_v42, %v16307_v9  ;;  %v12532_v46 = vadd.f32 %v2025_v12, %v1800_v40  ;;  %v12542_v7 = vld [vmem:[%s15536_s2 + $0x8] sm:$0xff]  ;;  %v16310_v40 = vld [vmem:[#allocation190_spill] sm:$0xff]  ;;  %v16311_v12 = vld [vmem:[#allocation191_spill] sm:$0xff] }
 0x720   :  { %v1822_v27 = vadd.f32 %v1790_v17, %v12402_v31  ;;  %v2029_v29 = vmul.f32 %v12468_v42, %v16308_v50  ;;  %v2033_v31 = vmul.f32 %v12468_v42, %v16310_v40  ;;  %v2032_v17 = vmul.f32 %v12468_v42, %v16311_v12 }
 0x721   :  { %v12559_v38 = vadd.f32 %v2034_v15, %v1809_v30  ;;  %v12561_v34 = vadd.f32 %v2037_v54, %v1812_v43  ;;  %v12573_v40 = vperm.slane %v12542_v7, 0  ;;  %v16316_v15 = vld [vmem:[#allocation193_spill] sm:$0xff] }
 0x722   :  { %5537 = vperm.xlu2 %8522, %v8286_v62   ;;  %v2043_v62 = vmul.f32 %v12468_v42, %v16309_v48  ;;  %v12557_v48 = vadd.f32 %v2031_v2, %v1806_v49  ;;  %v8289_v49 = vld [vmem:[%s15535_s0 + $0x129] sm:$0xff]  ;;  %v2061_v30 = vadd.f32 %v2029_v29, %v1804_v16  ;;  %v12591_v54 = vadd.f32 %v2033_v31, %v12427_v25 }
 0x723   :  { %5532 = vperm.xlu1 %8521, %v8285_v52   ;;  %5527 = vperm.xlu0 %8520, %v8284_v20   ;;  %v1821_v52 = vadd.f32 %v1789_v55, %v12417_v41  ;;  %v12547_v20 = vadd.f32 %v2028_v44, %v1803_v4  ;;  %v12564_v41 = vadd.f32 %v2027_v26, %v12420_v59  ;;  %v16315_v2 = vld [vmem:[#allocation192_spill] sm:$0xff] }
 0x724   :  { %v12544_v18 = vpop.permute.xlu2 %5275  ;;  %v2058_v4 = vadd.f32 %v2026_v45, %v12431_v58  ;;  %v12567_v55 = vadd.f32 %v2040_v19, %v1815_v24  ;;  %v12570_v44 = vadd.f32 %v2030_v0, %v12422_v60  ;;  %16314 = vst [vmem:[#allocation48_spill] sm:$0xff] %v12573_v40  ;;  %v12578_v43 = vadd.f32 %v2043_v62, %v1818_v1  ;;  %v8288_v60 = vld [vmem:[%s15535_s0 + $0x121] sm:$0xff]  ;;  %v16317_v1 = vld [vmem:[#allocation194_spill] sm:$0xff]  ;;  %v16319_v0 = vld [vmem:[#allocation197_spill] sm:$0xff] }
 0x725   :  { %v12553_v9 = vpop.permute.xlu1 %5225  ;;  %v12555_v50 = vpop.permute.xlu0 %5220  ;;  %v2046_v59 = vmul.f32 %v12468_v42, %v16315_v2  ;;  %v2036_v58 = vmul.f32 %v12468_v42, %v16316_v15  ;;  %v8287_v24 = vld [vmem:[%s15535_s0 + $0xe1] sm:$0xff]  ;;  %v2064_v16 = vadd.f32 %v2032_v17, %v1807_v47  ;;  %v2035_v26 = vmul.f32 %v12468_v42, %v16317_v1 }
 0x726   :  { %16312 = vst [vmem:[#allocation44_spill] sm:$0xff] %v12553_v9  ;;  %v16318_v45 = vld [vmem:[#allocation196_spill] sm:$0xff]  ;;  %v2038_v29 = vmul.f32 %v12468_v42, %v16319_v0  ;;  %v16320_v62 = vld [vmem:[#allocation199_spill] sm:$0xff]  ;;  %v2045_v25 = vmul.f32 %v12468_v42, %v16322_v23  ;;  %v16327_v23 = vld [vmem:[#allocation210_spill] sm:$0xff] }
 0x727   :  { %16313 = vst [vmem:[#allocation45_spill] sm:$0xff] %v12555_v50  ;;  %v2039_v19 = vmul.f32 %v12468_v42, %v16318_v45  ;;  %v2042_v12 = vmul.f32 %v12468_v42, %v16320_v62  ;;  %v16321_v2 = vld [vmem:[#allocation200_spill] sm:$0xff]  ;;  %v16323_v47 = vld [vmem:[#allocation203_spill] sm:$0xff]  ;;  %v16325_v45 = vld [vmem:[#allocation206_spill] sm:$0xff]  ;;  %v12611_v0 = vadd.f32 %v2046_v59, %v1821_v52  ;;  %v2068_v62 = vadd.f32 %v2036_v58, %v12429_v36 }
 0x728   :  { %v2041_v15 = vmul.f32 %v12468_v42, %v16321_v2  ;;  %v2044_v31 = vmul.f32 %v12468_v42, %v16323_v47  ;;  %v16324_v17 = vld [vmem:[#allocation204_spill] sm:$0xff]  ;;  %v2047_v35 = vmul.f32 %v12468_v42, %v16325_v45  ;;  %v16326_v2 = vld [vmem:[#allocation207_spill] sm:$0xff]  ;;  %v2067_v47 = vadd.f32 %v2035_v26, %v12489_v22  ;;  %v16329_v45 = vld [vmem:[#allocation214_spill] sm:$0xff] }
 0x729   :  { %v2283_v1 = vmul.f32 %v12573_v40, %v16324_v17  ;;  %v2286_v57 = vmul.f32 %v12573_v40, %v16326_v2  ;;  %v16328_v17 = vld [vmem:[#allocation213_spill] sm:$0xff]  ;;  %v16330_v52 = vld [vmem:[#allocation216_spill] sm:$0xff]  ;;  %v2070_v2 = vadd.f32 %v2038_v29, %v12493_v33  ;;  %v12636_v26 = vadd.f32 %v2045_v25, %v12486_v21  ;;  %v16339_v25 = vld [vmem:[#allocation222_spill] sm:$0xff] }
 0x72a   :  { %5552 = vperm.xlu2 %8522, %v8289_v49   ;;  %v2289_v49 = vmul.f32 %v12573_v40, %v16327_v23  ;;  %v2292_v9 = vmul.f32 %v12573_v40, %v16328_v17  ;;  %v2295_v59 = vmul.f32 %v12573_v40, %v16330_v52  ;;  %v2074_v23 = vadd.f32 %v2042_v12, %v12482_v32  ;;  %v8292_v42 = vld [vmem:[%s15535_s0 + $0x151] sm:$0xff] }
 0x72b   :  { %5547 = vperm.xlu1 %8521, %v8288_v60   ;;  %5542 = vperm.xlu0 %8520, %v8287_v24   ;;  %v2282_v60 = vmul.f32 %v12573_v40, %v16329_v45  ;;  %v2071_v24 = vadd.f32 %v2039_v19, %v12461_v37  ;;  %v2073_v22 = vadd.f32 %v2041_v15, %v12499_v14  ;;  %v16333_v33 = vld [vmem:[#allocation217_spill] sm:$0xff]  ;;  %v16334_v14 = vld [vmem:[#allocation218_spill] sm:$0xff]  ;;  %v16337_v19 = vld [vmem:[#allocation220_spill] sm:$0xff] }
 0x72c   :  { %v12618_v53 = vpop.permute.xlu2 %5290  ;;  %v2076_v17 = vadd.f32 %v2044_v31, %v12512_v8  ;;  %v12639_v45 = vadd.f32 %v2283_v1, %v2058_v4  ;;  %v2079_v52 = vadd.f32 %v2047_v35, %v1822_v27  ;;  %v12646_v37 = vadd.f32 %v2289_v49, %v2064_v16  ;;  %v8291_v8 = vld [vmem:[%s15535_s0 + $0x141] sm:$0xff]  ;;  %v8290_v35 = vld [vmem:[%s15535_s0 + $0x139] sm:$0xff]  ;;  %v16338_v12 = vld [vmem:[#allocation221_spill] sm:$0xff] }
 0x72d   :  { %v12627_v36 = vpop.permute.xlu1 %5240  ;;  %v12629_v58 = vpop.permute.xlu0 %5235  ;;  %v2285_v32 = vmul.f32 %v12573_v40, %v16333_v33  ;;  %v2284_v21 = vmul.f32 %v12573_v40, %v16334_v14  ;;  %v12658_v27 = vadd.f32 %v2292_v9, %v2067_v47  ;;  %v12663_v4 = vadd.f32 %v2295_v59, %v2070_v2  ;;  %v16340_v1 = vld [vmem:[#allocation223_spill] sm:$0xff]  ;;  %v16342_v47 = vld [vmem:[#allocation225_spill] sm:$0xff]  ;;  %v16343_v59 = vld [vmem:[#allocation226_spill] sm:$0xff] }
 0x72e   :  { %16331 = vst [vmem:[#allocation51_spill] sm:$0xff] %v12627_v36  ;;  %v12644_v36 = vadd.f32 %v2286_v57, %v2061_v30  ;;  %v12661_v57 = vadd.f32 %v2282_v60, %v12532_v46  ;;  %v16336_v30 = vld [vmem:[#allocation219_spill] sm:$0xff]  ;;  %v2288_v29 = vmul.f32 %v12573_v40, %v16337_v19  ;;  %v2287_v15 = vmul.f32 %v12573_v40, %v16338_v12  ;;  %v16341_v46 = vld [vmem:[#allocation224_spill] sm:$0xff]  ;;  %v16345_v12 = vld [vmem:[#allocation229_spill] sm:$0xff] }
 0x72f   :  { %16332 = vst [vmem:[#allocation54_spill] sm:$0xff] %v12629_v58  ;;  %v2298_v16 = vmul.f32 %v12573_v40, %v16336_v30  ;;  %v2301_v31 = vmul.f32 %v12573_v40, %v16339_v25  ;;  %v2291_v9 = vmul.f32 %v12573_v40, %v16340_v1  ;;  %v2290_v49 = vmul.f32 %v12573_v40, %v16341_v46  ;;  %v16344_v30 = vld [vmem:[#allocation227_spill] sm:$0xff]  ;;  %v16346_v46 = vld [vmem:[#allocation230_spill] sm:$0xff]  ;;  %v16417_v58 = vld [vmem:[#allocation316_spill] sm:$0xff] }
 0x730   :  { %16335 = vst [vmem:[#allocation55_spill] sm:$0xff] %v12658_v27  ;;  %v2304_v60 = vmul.f32 %v12573_v40, %v16342_v47  ;;  %v2294_v2 = vmul.f32 %v12573_v40, %v16343_v59  ;;  %v2317_v33 = vadd.f32 %v2285_v32, %v12547_v20  ;;  %v2316_v14 = vadd.f32 %v2284_v21, %v12564_v41  ;;  %v16347_v59 = vld [vmem:[#allocation232_spill] sm:$0xff] }
 0x731   :  { %v2293_v19 = vmul.f32 %v12573_v40, %v16344_v30  ;;  %v12689_v1 = vadd.f32 %v2298_v16, %v2073_v22  ;;  %v2296_v47 = vmul.f32 %v12573_v40, %v16346_v46  ;;  %v12696_v20 = vperm.slane %v12542_v7, 1  ;;  %v16351_v22 = vld [vmem:[#allocation233_spill] sm:$0xff] }
 0x732   :  { %5567 = vperm.xlu2 %8522, %v8292_v42   ;;  %v2297_v42 = vmul.f32 %v12573_v40, %v16345_v12  ;;  %v2320_v21 = vadd.f32 %v2288_v29, %v12557_v48  ;;  %v12704_v30 = vadd.f32 %v2301_v31, %v2076_v17  ;;  %v2299_v16 = vmul.f32 %v12573_v40, %v16351_v22  ;;  %v8304_v48 = vld [vmem:[%s15535_s0 + $0x32] sm:$0xff]  ;;  %v16353_v29 = vld [vmem:[#allocation235_spill] sm:$0xff] }
 0x733   :  { %5562 = vperm.xlu1 %8521, %v8291_v8   ;;  %5557 = vperm.xlu0 %8520, %v8290_v35   ;;  %v2300_v8 = vmul.f32 %v12573_v40, %v16347_v59  ;;  %16348 = vst [vmem:[#allocation56_spill] sm:$0xff] %v12696_v20  ;;  %v2319_v35 = vadd.f32 %v2287_v15, %v12570_v44  ;;  %v16358_v22 = vld [vmem:[#allocation246_spill] sm:$0xff]  ;;  %v8338_v27 = vld [vmem:[%s15535_s0 + $0x4b] sm:$0xff] }
 0x734   :  { %v12687_v25 = vpop.permute.xlu2 %5305  ;;  %v12709_v12 = vadd.f32 %v2291_v9, %v12559_v38  ;;  %v2322_v46 = vadd.f32 %v2290_v49, %v12591_v54  ;;  %v12712_v59 = vadd.f32 %v2304_v60, %v2079_v52  ;;  %v2325_v44 = vadd.f32 %v2293_v19, %v2068_v62  ;;  %v16354_v38 = vld [vmem:[#allocation236_spill] sm:$0xff]  ;;  %v16357_v19 = vld [vmem:[#allocation243_spill] sm:$0xff] }
 0x735   :  { %v12698_v41 = vpop.permute.xlu1 %5255  ;;  %v12700_v32 = vpop.permute.xlu0 %5250  ;;  %v12721_v17 = vadd.f32 %v2297_v42, %v12567_v55  ;;  %v2303_v15 = vmul.f32 %v12573_v40, %v16353_v29  ;;  %v2302_v31 = vmul.f32 %v12573_v40, %v16354_v38  ;;  %v8294_v54 = vld [vmem:[%s15535_s0 + $0x169] sm:$0xff]  ;;  %v2328_v52 = vadd.f32 %v2296_v47, %v2071_v24  ;;  %v16359_v38 = vld [vmem:[#allocation247_spill] sm:$0xff] }
 0x736   :  { %16349 = vst [vmem:[#allocation57_spill] sm:$0xff] %v12698_v41  ;;  %v12715_v41 = vadd.f32 %v2294_v2, %v12561_v34  ;;  %v8293_v34 = vld [vmem:[%s15535_s0 + $0x159] sm:$0xff]  ;;  %v12734_v62 = vadd.f32 %v2300_v8, %v12578_v43  ;;  %v16355_v55 = vld [vmem:[#allocation237_spill] sm:$0xff]  ;;  %v16356_v49 = vld [vmem:[#allocation240_spill] sm:$0xff]  ;;  %v2331_v2 = vadd.f32 %v2299_v16, %v2074_v23  ;;  %v2547_v42 = vmul.f32 %v12696_v20, %v16357_v19 }
 0x737   :  { %16350 = vst [vmem:[#allocation58_spill] sm:$0xff] %v12700_v32  ;;  %v2541_v9 = vmul.f32 %v12696_v20, %v16355_v55  ;;  %v2544_v60 = vmul.f32 %v12696_v20, %v16356_v49  ;;  %v2550_v29 = vmul.f32 %v12696_v20, %v16358_v22  ;;  %v2540_v40 = vmul.f32 %v12696_v20, %v16359_v38  ;;  %v16360_v24 = vld [vmem:[#allocation248_spill] sm:$0xff]  ;;  %v16361_v47 = vld [vmem:[#allocation249_spill] sm:$0xff]  ;;  %v16362_v55 = vld [vmem:[#allocation250_spill] sm:$0xff] }
 0x738   :  { %16352 = vst [vmem:[#allocation59_spill] sm:$0xff] %v12715_v41  ;;  %v2539_v43 = vmul.f32 %v12696_v20, %v16360_v24  ;;  %v2553_v8 = vmul.f32 %v12696_v20, %v16361_v47  ;;  %v2543_v49 = vmul.f32 %v12696_v20, %v16362_v55  ;;  %v2335_v23 = vadd.f32 %v2303_v15, %v12611_v0  ;;  %v16363_v19 = vld [vmem:[#allocation251_spill] sm:$0xff]  ;;  %v16364_v38 = vld [vmem:[#allocation252_spill] sm:$0xff]  ;;  %v16366_v32 = vld [vmem:[#allocation253_spill] sm:$0xff] }
 0x739   :  { %v2334_v16 = vadd.f32 %v2302_v31, %v12636_v26  ;;  %v2542_v22 = vmul.f32 %v12696_v20, %v16363_v19  ;;  %v12760_v24 = vadd.f32 %v2541_v9, %v2316_v14  ;;  %v12762_v47 = vadd.f32 %v2544_v60, %v2319_v35  ;;  %v16371_v14 = vld [vmem:[#allocation255_spill] sm:$0xff] }
 0x73a   :  { %5724 = vperm.xlu2 %8522, %v8304_v48   ;;  %v2556_v48 = vmul.f32 %v12696_v20, %v16364_v38  ;;  %v12772_v31 = vadd.f32 %v2547_v42, %v2322_v46  ;;  %v12774_v55 = vadd.f32 %v2550_v29, %v2325_v44  ;;  %v2572_v19 = vadd.f32 %v2540_v40, %v12639_v45  ;;  %v8336_v46 = vld [vmem:[%s15535_s0 + $0x33] sm:$0xff]  ;;  %v16374_v29 = vld [vmem:[#allocation259_spill] sm:$0xff] }
 0x73b   :  { %5577 = vperm.xlu1 %8521, %v8294_v54   ;;  %5572 = vperm.xlu0 %8520, %v8293_v34   ;;  %v2546_v54 = vmul.f32 %v12696_v20, %v16366_v32  ;;  %v16367_v34 = vld [vmem:[#allocation254_spill] sm:$0xff]  ;;  %v2559_v35 = vmul.f32 %v12696_v20, %v16371_v14  ;;  %v2571_v9 = vadd.f32 %v2539_v43, %v12661_v57  ;;  %v12786_v38 = vperm.slane %v12542_v7, 2  ;;  %v16373_v40 = vld [vmem:[#allocation257_spill] sm:$0xff] }
 0x73c   :  { %v12758_v41 = vpop.permute.xlu2 %5320  ;;  %v2545_v0 = vmul.f32 %v12696_v20, %v16367_v34  ;;  %16370 = vst [vmem:[#allocation63_spill] sm:$0xff] %v12774_v55  ;;  %v12780_v60 = vadd.f32 %v2553_v8, %v2328_v52  ;;  %v12783_v32 = vadd.f32 %v2543_v49, %v12644_v36  ;;  %v2574_v44 = vadd.f32 %v2542_v22, %v2317_v33  ;;  %v8306_v36 = vld [vmem:[%s15535_s0 + $0x4a] sm:$0xff]  ;;  %v8305_v52 = vld [vmem:[%s15535_s0 + $0x3a] sm:$0xff] }
 0x73d   :  { %16365 = vst [vmem:[#allocation60_spill] sm:$0xff] %v12758_v41  ;;  %v12768_v15 = vpop.permute.xlu1 %5270  ;;  %v12770_v26 = vpop.permute.xlu0 %5265  ;;  %v12791_v42 = vadd.f32 %v2556_v48, %v2331_v2  ;;  %v2548_v45 = vmul.f32 %v12696_v20, %v16373_v40  ;;  %v2552_v57 = vmul.f32 %v12696_v20, %v16374_v29  ;;  %v12804_v43 = vadd.f32 %v2546_v54, %v12646_v37  ;;  %v16375_v2 = vld [vmem:[#allocation256_spill] sm:$0xff]  ;;  %v16377_v49 = vld [vmem:[#allocation262_spill] sm:$0xff]  ;;  %v16378_v34 = vld [vmem:[#allocation263_spill] sm:$0xff] }
 0x73e   :  { %16368 = vst [vmem:[#allocation61_spill] sm:$0xff] %v12768_v15  ;;  %v2577_v33 = vadd.f32 %v2545_v0, %v2320_v21  ;;  %v12808_v8 = vmul.f32 %v12696_v20, %v16375_v2  ;;  %v2555_v22 = vmul.f32 %v12696_v20, %v16377_v49  ;;  %v12812_v48 = vadd.f32 %v2559_v35, %v2334_v16  ;;  %v16379_v40 = vld [vmem:[#allocation265_spill] sm:$0xff]  ;;  %v16380_v15 = vld [vmem:[#allocation266_spill] sm:$0xff]  ;;  %v16381_v21 = vld [vmem:[#allocation267_spill] sm:$0xff] }
 0x73f   :  { %16369 = vst [vmem:[#allocation62_spill] sm:$0xff] %v12770_v26  ;;  %v2554_v14 = vmul.f32 %v12696_v20, %v16378_v34  ;;  %v2558_v29 = vmul.f32 %v12696_v20, %v16379_v40  ;;  %v2557_v37 = vmul.f32 %v12696_v20, %v16380_v15  ;;  %v2797_v54 = vmul.f32 %v12786_v38, %v16381_v21  ;;  %v16382_v0 = vld [vmem:[#allocation268_spill] sm:$0xff]  ;;  %v16383_v26 = vld [vmem:[#allocation269_spill] sm:$0xff]  ;;  %v16384_v34 = vld [vmem:[#allocation270_spill] sm:$0xff] }
 0x740   :  { %16372 = vst [vmem:[#allocation64_spill] sm:$0xff] %v12786_v38  ;;  %v2561_v2 = vmul.f32 %v12696_v20, %v16382_v0  ;;  %v2560_v16 = vmul.f32 %v12696_v20, %v16383_v26  ;;  %v2580_v35 = vadd.f32 %v2548_v45, %v12709_v12  ;;  %v2584_v49 = vadd.f32 %v2552_v57, %v12663_v4  ;;  %v16385_v15 = vld [vmem:[#allocation273_spill] sm:$0xff]  ;;  %v16387_v0 = vld [vmem:[#allocation276_spill] sm:$0xff] }
 0x741   :  { %16376 = vst [vmem:[#allocation65_spill] sm:$0xff] %v12808_v8  ;;  %v2800_v40 = vmul.f32 %v12786_v38, %v16384_v34  ;;  %v2587_v21 = vadd.f32 %v2555_v22, %v12689_v1  ;;  %v2806_v8 = vmul.f32 %v12786_v38, %v16387_v0  ;;  %v16388_v26 = vld [vmem:[#allocation280_spill] sm:$0xff]  ;;  %v2586_v57 = vadd.f32 %v2554_v14, %v12721_v17  ;;  %v16391_v22 = vld [vmem:[#allocation283_spill] sm:$0xff] }
 0x742   :  { %5981 = vperm.xlu2 %8522, %v8336_v46   ;;  %v2803_v46 = vmul.f32 %v12786_v38, %v16385_v15  ;;  %v2590_v34 = vadd.f32 %v2558_v29, %v12704_v30  ;;  %v16390_v15 = vld [vmem:[#allocation282_spill] sm:$0xff]  ;;  %v2802_v0 = vmul.f32 %v12786_v38, %v16391_v22  ;;  %v2592_v20 = vadd.f32 %v2560_v16, %v2335_v23  ;;  %v16392_v29 = vld [vmem:[#allocation284_spill] sm:$0xff] }
 0x743   :  { %5734 = vperm.xlu1 %8521, %v8306_v36   ;;  %5729 = vperm.xlu0 %8520, %v8305_v52   ;;  %v2799_v36 = vmul.f32 %v12786_v38, %v16388_v26  ;;  %v16389_v52 = vld [vmem:[#allocation281_spill] sm:$0xff]  ;;  %v2812_v1 = vmul.f32 %v12786_v38, %v16390_v15  ;;  %v12852_v26 = vadd.f32 %v2797_v54, %v2571_v9  ;;  %v16397_v15 = vld [vmem:[#allocation287_spill] sm:$0xff] }
 0x744   :  { %v12832_v55 = vpop.permute.xlu2 %5335  ;;  %v2798_v12 = vmul.f32 %v12786_v38, %v16389_v52  ;;  %v2593_v52 = vadd.f32 %v2561_v2, %v12712_v59  ;;  %v8307_v30 = vld [vmem:[%s15535_s0 + $0x52] sm:$0xff]  ;;  %v12861_v17 = vadd.f32 %v2800_v40, %v2574_v44  ;;  %v12863_v14 = vadd.f32 %v2803_v46, %v2577_v33  ;;  %v8337_v59 = vld [vmem:[%s15535_s0 + $0x3b] sm:$0xff] }
 0x745   :  { %16386 = vst [vmem:[#allocation67_spill] sm:$0xff] %v12832_v55  ;;  %v12841_v4 = vpop.permute.xlu1 %5285  ;;  %v12843_v45 = vpop.permute.xlu0 %5280  ;;  %v2589_v55 = vadd.f32 %v2557_v37, %v12734_v62  ;;  %v2801_v62 = vmul.f32 %v12786_v38, %v16392_v29  ;;  %v16393_v9 = vld [vmem:[#allocation285_spill] sm:$0xff]  ;;  %v12872_v23 = vadd.f32 %v2806_v8, %v2580_v35  ;;  %v12875_v54 = vadd.f32 %v2799_v36, %v12760_v24  ;;  %v16396_v40 = vld [vmem:[#allocation286_spill] sm:$0xff]  ;;  %v16398_v8 = vld [vmem:[#allocation288_spill] sm:$0xff] }
 0x746   :  { %v2815_v37 = vmul.f32 %v12786_v38, %v16393_v9  ;;  %v2830_v2 = vadd.f32 %v2798_v12, %v2572_v19  ;;  %v12878_v44 = vperm.slane %v12542_v7, 3  ;;  %v12880_v33 = vadd.f32 %v2812_v1, %v2586_v57  ;;  %v16399_v35 = vld [vmem:[#allocation292_spill] sm:$0xff]  ;;  %v16400_v36 = vld [vmem:[#allocation293_spill] sm:$0xff]  ;;  %v16401_v1 = vld [vmem:[#allocation295_spill] sm:$0xff] }
 0x747   :  { %16394 = vst [vmem:[#allocation68_spill] sm:$0xff] %v12872_v23  ;;  %v12883_v16 = vadd.f32 %v2802_v0, %v12762_v47  ;;  %v2805_v46 = vmul.f32 %v12786_v38, %v16396_v40  ;;  %v2804_v22 = vmul.f32 %v12786_v38, %v16397_v15  ;;  %v2818_v24 = vmul.f32 %v12786_v38, %v16398_v8  ;;  %v16402_v29 = vld [vmem:[#allocation296_spill] sm:$0xff]  ;;  %v16404_v40 = vld [vmem:[#allocation298_spill] sm:$0xff]  ;;  %v16405_v8 = vld [vmem:[#allocation299_spill] sm:$0xff] }
 0x748   :  { %16395 = vst [vmem:[#allocation70_spill] sm:$0xff] %v12878_v44  ;;  %v2811_v19 = vmul.f32 %v12786_v38, %v16399_v35  ;;  %v2810_v12 = vmul.f32 %v12786_v38, %v16400_v36  ;;  %v2833_v47 = vadd.f32 %v2801_v62, %v12783_v32  ;;  %v12896_v57 = vadd.f32 %v2815_v37, %v2589_v55  ;;  %v16407_v32 = vld [vmem:[#allocation302_spill] sm:$0xff] }
 0x749   :  { %v2814_v0 = vmul.f32 %v12786_v38, %v16401_v1  ;;  %v2817_v15 = vmul.f32 %v12786_v38, %v16404_v40  ;;  %v2816_v35 = vmul.f32 %v12786_v38, %v16405_v8  ;;  %v2819_v55 = vmul.f32 %v12786_v38, %v16407_v32 }
 0x74a   :  { %5991 = vperm.xlu2 %8522, %v8338_v27   ;;  %v2813_v27 = vmul.f32 %v12786_v38, %v16402_v29  ;;  %v2837_v36 = vadd.f32 %v2805_v46, %v12772_v31  ;;  %v2836_v1 = vadd.f32 %v2804_v22, %v12804_v43  ;;  %v16408_v29 = vld [vmem:[#allocation303_spill] sm:$0xff]  ;;  %v12922_v23 = vadd.f32 %v2818_v24, %v2592_v20  ;;  %v16412_v22 = vld [vmem:[#allocation310_spill] sm:$0xff] }
 0x74b   :  { %5739 = vperm.xlu1 %8521, %v8307_v30   ;;  %5986 = vperm.xlu0 %8520, %v8337_v59   ;;  %v16406_v30 = vld [vmem:[#allocation300_spill] sm:$0xff]  ;;  %v3058_v40 = vmul.f32 %v12878_v44, %v16408_v29  ;;  %v2843_v32 = vadd.f32 %v2811_v19, %v12780_v60  ;;  %v2842_v56 = vadd.f32 %v2810_v12, %v2584_v49  ;;  %v8369_v24 = vld [vmem:[%s15535_s0 + $0x3c] sm:$0xff]  ;;  %v8368_v60 = vld [vmem:[%s15535_s0 + $0x34] sm:$0xff] }
 0x74c   :  { %v12902_v9 = vpop.permute.xlu2 %5350  ;;  %v3055_v59 = vmul.f32 %v12878_v44, %v16406_v30  ;;  %v16410_v30 = vld [vmem:[#allocation290_spill] sm:$0xff]  ;;  %v8308_v31 = vld [vmem:[%s15535_s0 + $0x62] sm:$0xff]  ;;  %v2846_v43 = vadd.f32 %v2814_v0, %v12791_v42  ;;  %v2845_v46 = vadd.f32 %v2813_v27, %v2587_v21  ;;  %v3054_v29 = vmul.f32 %v12878_v44, %v16412_v22  ;;  %v16414_v27 = vld [vmem:[#allocation313_spill] sm:$0xff] }
 0x74d   :  { %16403 = vst [vmem:[#allocation71_spill] sm:$0xff] %v12902_v9  ;;  %v12912_v62 = vpop.permute.xlu1 %5300  ;;  %v12914_v37 = vpop.permute.xlu0 %5295  ;;  %v16409_v9 = vld [vmem:[#allocation306_spill] sm:$0xff]  ;;  %v12926_v50 = vmul.f32 %v12786_v38, %v16410_v30  ;;  %v2849_v49 = vadd.f32 %v2817_v15, %v12812_v48  ;;  %v2848_v19 = vadd.f32 %v2816_v35, %v2590_v34  ;;  %v2851_v42 = vadd.f32 %v2819_v55, %v2593_v52  ;;  %v16418_v34 = vld [vmem:[#allocation317_spill] sm:$0xff] }
 0x74e   :  { %v3061_v8 = vmul.f32 %v12878_v44, %v16409_v9  ;;  %v16413_v9 = vld [vmem:[#allocation312_spill] sm:$0xff]  ;;  %v12944_v12 = vadd.f32 %v3055_v59, %v2830_v2  ;;  %v12946_v21 = vadd.f32 %v3058_v40, %v2833_v47  ;;  %v3057_v30 = vmul.f32 %v12878_v44, %v16414_v27  ;;  %v16415_v22 = vld [vmem:[#allocation314_spill] sm:$0xff]  ;;  %v16423_v40 = vld [vmem:[#allocation325_spill] sm:$0xff] }
 0x74f   :  { %16411 = vst [vmem:[#allocation73_spill] sm:$0xff] %v12926_v50  ;;  %v3067_v20 = vmul.f32 %v12878_v44, %v16413_v9  ;;  %v3056_v9 = vmul.f32 %v12878_v44, %v16415_v22  ;;  %v16416_v50 = vld [vmem:[#allocation315_spill] sm:$0xff]  ;;  %v3060_v48 = vmul.f32 %v12878_v44, %v16417_v58  ;;  %v3059_v52 = vmul.f32 %v12878_v44, %v16418_v34  ;;  %v16419_v15 = vld [vmem:[#allocation318_spill] sm:$0xff]  ;;  %v16420_v59 = vld [vmem:[#allocation320_spill] sm:$0xff] }
 0x750   :  { %v12948_v0 = vadd.f32 %v3061_v8, %v2836_v1  ;;  %v3070_v38 = vmul.f32 %v12878_v44, %v16416_v50  ;;  %v3086_v2 = vadd.f32 %v3054_v29, %v12852_v26  ;;  %v3073_v35 = vmul.f32 %v12878_v44, %v16419_v15  ;;  %v16422_v50 = vld [vmem:[#allocation321_spill] sm:$0xff]  ;;  %v16427_v27 = vld [vmem:[#allocation328_spill] sm:$0xff] }
 0x751   :  { %v12961_v47 = vadd.f32 %v3067_v20, %v2842_v56  ;;  %v3062_v55 = vmul.f32 %v12878_v44, %v16420_v59  ;;  %v3076_v58 = vmul.f32 %v12878_v44, %v16422_v50  ;;  %v3069_v8 = vmul.f32 %v12878_v44, %v16423_v40  ;;  %v16428_v34 = vld [vmem:[#allocation329_spill] sm:$0xff] }
 0x752   :  { %5744 = vperm.xlu2 %8522, %v8308_v31   ;;  %v16424_v31 = vld [vmem:[#allocation326_spill] sm:$0xff]  ;;  %v12976_v56 = vperm.slane %v12542_v7, 4  ;;  %v3089_v20 = vadd.f32 %v3057_v30, %v12861_v17  ;;  %v3072_v22 = vmul.f32 %v12878_v44, %v16427_v27  ;;  %v3071_v15 = vmul.f32 %v12878_v44, %v16428_v34  ;;  %v8309_v17 = vld [vmem:[%s15535_s0 + $0x6a] sm:$0xff] }
 0x753   :  { %6243 = vperm.xlu1 %8521, %v8369_v24   ;;  %6238 = vperm.xlu0 %8520, %v8368_v60   ;;  %v3068_v24 = vmul.f32 %v12878_v44, %v16424_v31  ;;  %v3088_v60 = vadd.f32 %v3056_v9, %v12875_v54  ;;  %v12988_v59 = vadd.f32 %v3070_v38, %v2845_v46  ;;  %v16429_v31 = vld [vmem:[#allocation319_spill] sm:$0xff]  ;;  %v16432_v38 = vld [vmem:[#allocation332_spill] sm:$0xff] }
 0x754   :  { %v12967_v1 = vpop.permute.xlu2 %5365  ;;  %16425 = vst [vmem:[#allocation75_spill] sm:$0xff] %v12976_v56  ;;  %v3092_v50 = vadd.f32 %v3060_v48, %v12863_v14  ;;  %v3091_v40 = vadd.f32 %v3059_v52, %v12883_v16  ;;  %v12999_v54 = vadd.f32 %v3073_v35, %v2848_v19  ;;  %v3094_v30 = vadd.f32 %v3062_v55, %v2837_v36  ;;  %v16431_v9 = vld [vmem:[#allocation331_spill] sm:$0xff]  ;;  %v8370_v14 = vld [vmem:[%s15535_s0 + $0x4c] sm:$0xff] }
 0x755   :  { %16421 = vst [vmem:[#allocation74_spill] sm:$0xff] %v12967_v1  ;;  %v12978_v26 = vpop.permute.xlu1 %5315  ;;  %v12980_v29 = vpop.permute.xlu0 %5310  ;;  %v12994_v1 = vmul.f32 %v12878_v44, %v16429_v31  ;;  %v3075_v27 = vmul.f32 %v12878_v44, %v16431_v9  ;;  %v3074_v46 = vmul.f32 %v12878_v44, %v16432_v38  ;;  %v8339_v16 = vld [vmem:[%s15535_s0 + $0x53] sm:$0xff]  ;;  %v13011_v48 = vadd.f32 %v3076_v58, %v2851_v42  ;;  %v16434_v31 = vld [vmem:[#allocation336_spill] sm:$0xff]  ;;  %v16435_v38 = vld [vmem:[#allocation339_spill] sm:$0xff] }
 0x756   :  { %16426 = vst [vmem:[#allocation76_spill] sm:$0xff] %v12978_v26  ;;  %v3101_v19 = vadd.f32 %v3069_v8, %v12880_v33  ;;  %v3100_v52 = vadd.f32 %v3068_v24, %v2843_v32  ;;  %v16433_v36 = vld [vmem:[#allocation333_spill] sm:$0xff]  ;;  %v3104_v55 = vadd.f32 %v3072_v22, %v12896_v57  ;;  %v3103_v34 = vadd.f32 %v3071_v15, %v2846_v43  ;;  %v16437_v58 = vld [vmem:[#allocation344_spill] sm:$0xff]  ;;  %v16439_v24 = vld [vmem:[#allocation346_spill] sm:$0xff] }
 0x757   :  { %16430 = vst [vmem:[#allocation77_spill] sm:$0xff] %v12994_v1  ;;  %v3313_v35 = vmul.f32 %v12976_v56, %v16433_v36  ;;  %v3316_v9 = vmul.f32 %v12976_v56, %v16434_v31  ;;  %v3319_v44 = vmul.f32 %v12976_v56, %v16435_v38  ;;  %v16436_v1 = vld [vmem:[#allocation343_spill] sm:$0xff]  ;;  %v3311_v33 = vmul.f32 %v12976_v56, %v16437_v58  ;;  %v16438_v32 = vld [vmem:[#allocation345_spill] sm:$0xff]  ;;  %v16442_v31 = vld [vmem:[#allocation348_spill] sm:$0xff] }
 0x758   :  { %v3312_v42 = vmul.f32 %v12976_v56, %v16436_v1  ;;  %v3325_v8 = vmul.f32 %v12976_v56, %v16438_v32  ;;  %v3107_v57 = vadd.f32 %v3075_v27, %v12922_v23  ;;  %v3106_v43 = vadd.f32 %v3074_v46, %v2849_v49  ;;  %v16440_v15 = vld [vmem:[#allocation347_spill] sm:$0xff]  ;;  %v16443_v58 = vld [vmem:[#allocation349_spill] sm:$0xff] }
 0x759   :  { %v3315_v22 = vmul.f32 %v12976_v56, %v16439_v24  ;;  %v3345_v1 = vadd.f32 %v3313_v35, %v3088_v60  ;;  %v3328_v38 = vmul.f32 %v12976_v56, %v16442_v31  ;;  %v3318_v32 = vmul.f32 %v12976_v56, %v16443_v58  ;;  %v16447_v46 = vld [vmem:[#allocation351_spill] sm:$0xff] }
 0x75a   :  { %5749 = vperm.xlu2 %8522, %v8309_v17   ;;  %v3314_v17 = vmul.f32 %v12976_v56, %v16440_v15  ;;  %v3348_v27 = vadd.f32 %v3316_v9, %v3091_v40  ;;  %v3331_v24 = vmul.f32 %v12976_v56, %v16447_v46  ;;  %v16448_v15 = vld [vmem:[#allocation355_spill] sm:$0xff]  ;;  %v13049_v35 = vperm.slane %v12542_v7, 5 }
 0x75b   :  { %6248 = vperm.xlu1 %8521, %v8370_v14   ;;  %5996 = vperm.xlu0 %8520, %v8339_v16   ;;  %v16444_v14 = vld [vmem:[#allocation350_spill] sm:$0xff]  ;;  %v3324_v60 = vmul.f32 %v12976_v56, %v16448_v15  ;;  %v13051_v31 = vadd.f32 %v3319_v44, %v3094_v30  ;;  %v3344_v58 = vadd.f32 %v3312_v42, %v12944_v12  ;;  %v8340_v12 = vld [vmem:[%s15535_s0 + $0x63] sm:$0xff] }
 0x75c   :  { %v13032_v36 = vpop.permute.xlu2 %5477  ;;  %v3317_v16 = vmul.f32 %v12976_v56, %v16444_v14  ;;  %16449 = vst [vmem:[#allocation87_spill] sm:$0xff] %v13049_v35  ;;  %v13054_v14 = vadd.f32 %v3325_v8, %v3100_v52  ;;  %v8310_v40 = vld [vmem:[%s15535_s0 + $0x7a] sm:$0xff]  ;;  %v3347_v9 = vadd.f32 %v3315_v22, %v12946_v21  ;;  %v3346_v46 = vadd.f32 %v3314_v17, %v3089_v20  ;;  %v16453_v20 = vld [vmem:[#allocation361_spill] sm:$0xff] }
 0x75d   :  { %16441 = vst [vmem:[#allocation78_spill] sm:$0xff] %v13032_v36  ;;  %v13040_v23 = vpop.permute.xlu1 %5330  ;;  %v13042_v49 = vpop.permute.xlu0 %5325  ;;  %v3343_v36 = vadd.f32 %v3311_v33, %v3086_v2  ;;  %v8371_v44 = vld [vmem:[%s15535_s0 + $0x54] sm:$0xff]  ;;  %v13070_v2 = vadd.f32 %v3328_v38, %v3103_v34  ;;  %v3350_v30 = vadd.f32 %v3318_v32, %v12948_v0  ;;  %v3330_v52 = vmul.f32 %v12976_v56, %v16453_v20  ;;  %v16455_v17 = vld [vmem:[#allocation363_spill] sm:$0xff] }
 0x75e   :  { %16445 = vst [vmem:[#allocation81_spill] sm:$0xff] %v13040_v23  ;;  %v16451_v23 = vld [vmem:[#allocation358_spill] sm:$0xff]  ;;  %v3349_v21 = vadd.f32 %v3317_v16, %v3092_v50  ;;  %v13075_v42 = vadd.f32 %v3331_v24, %v3106_v43  ;;  %v3356_v33 = vadd.f32 %v3324_v60, %v12961_v47  ;;  %v16457_v38 = vld [vmem:[#allocation365_spill] sm:$0xff]  ;;  %v16460_v60 = vld [vmem:[#allocation376_spill] sm:$0xff] }
 0x75f   :  { %16446 = vst [vmem:[#allocation84_spill] sm:$0xff] %v13042_v49  ;;  %v3327_v15 = vmul.f32 %v12976_v56, %v16451_v23  ;;  %v16452_v49 = vld [vmem:[#allocation359_spill] sm:$0xff]  ;;  %v16454_v8 = vld [vmem:[#allocation362_spill] sm:$0xff]  ;;  %v3568_v23 = vmul.f32 %v13049_v35, %v16455_v17  ;;  %v3332_v0 = vmul.f32 %v12976_v56, %v16457_v38  ;;  %v16459_v16 = vld [vmem:[#allocation369_spill] sm:$0xff] }
 0x760   :  { %16450 = vst [vmem:[#allocation88_spill] sm:$0xff] %v13051_v31  ;;  %v3326_v26 = vmul.f32 %v12976_v56, %v16452_v49  ;;  %v3329_v22 = vmul.f32 %v12976_v56, %v16454_v8  ;;  %v16456_v49 = vld [vmem:[#allocation364_spill] sm:$0xff]  ;;  %v16458_v50 = vld [vmem:[#allocation366_spill] sm:$0xff]  ;;  %v3574_v24 = vmul.f32 %v13049_v35, %v16459_v16  ;;  %v3362_v8 = vadd.f32 %v3330_v52, %v12999_v54  ;;  %v16462_v17 = vld [vmem:[#allocation377_spill] sm:$0xff] }
 0x761   :  { %v3333_v34 = vmul.f32 %v12976_v56, %v16456_v49  ;;  %v3571_v32 = vmul.f32 %v13049_v35, %v16458_v50  ;;  %v3359_v47 = vadd.f32 %v3327_v15, %v12988_v59  ;;  %v3569_v49 = vmul.f32 %v13049_v35, %v16462_v17  ;;  %v16463_v38 = vld [vmem:[#allocation378_spill] sm:$0xff]  ;;  %v16467_v16 = vld [vmem:[#allocation380_spill] sm:$0xff]  ;;  %v16468_v31 = vld [vmem:[#allocation381_spill] sm:$0xff] }
 0x762   :  { %5754 = vperm.xlu2 %8522, %v8310_v40   ;;  %v3358_v43 = vadd.f32 %v3326_v26, %v3101_v19  ;;  %v3570_v40 = vmul.f32 %v13049_v35, %v16460_v60  ;;  %v3361_v15 = vadd.f32 %v3329_v22, %v3104_v55  ;;  %v3600_v50 = vadd.f32 %v3568_v23, %v3343_v36  ;;  %v16470_v22 = vld [vmem:[#allocation384_spill] sm:$0xff] }
 0x763   :  { %6253 = vperm.xlu1 %8521, %v8371_v44   ;;  %6001 = vperm.xlu0 %8520, %v8340_v12   ;;  %v3583_v44 = vmul.f32 %v13049_v35, %v16463_v38  ;;  %v16464_v12 = vld [vmem:[#allocation379_spill] sm:$0xff]  ;;  %v3572_v60 = vmul.f32 %v13049_v35, %v16467_v16  ;;  %v3586_v54 = vmul.f32 %v13049_v35, %v16468_v31  ;;  %v13125_v31 = vperm.slane %v12542_v7, 6 }
 0x764   :  { %v13093_v20 = vpop.permute.xlu2 %5492  ;;  %v3573_v59 = vmul.f32 %v13049_v35, %v16464_v12  ;;  %v3365_v52 = vadd.f32 %v3333_v34, %v13011_v48  ;;  %v3364_v17 = vadd.f32 %v3332_v0, %v3107_v57  ;;  %v13111_v56 = vadd.f32 %v3571_v32, %v3346_v46  ;;  %v16469_v38 = vld [vmem:[#allocation383_spill] sm:$0xff]  ;;  %v8341_v57 = vld [vmem:[%s15535_s0 + $0x6b] sm:$0xff] }
 0x765   :  { %16461 = vst [vmem:[#allocation89_spill] sm:$0xff] %v13093_v20  ;;  %v13102_v26 = vpop.permute.xlu1 %5345  ;;  %v13104_v19 = vpop.permute.xlu0 %5340  ;;  %v3575_v12 = vmul.f32 %v13049_v35, %v16469_v38  ;;  %v13118_v55 = vadd.f32 %v3574_v24, %v3349_v21  ;;  %v13120_v36 = vadd.f32 %v3570_v40, %v3345_v1  ;;  %v3589_v23 = vmul.f32 %v13049_v35, %v16470_v22  ;;  %v8372_v48 = vld [vmem:[%s15535_s0 + $0x64] sm:$0xff]  ;;  %v16473_v40 = vld [vmem:[#allocation382_spill] sm:$0xff]  ;;  %v16475_v38 = vld [vmem:[#allocation389_spill] sm:$0xff] }
 0x766   :  { %16465 = vst [vmem:[#allocation90_spill] sm:$0xff] %v13102_v26  ;;  %v3601_v46 = vadd.f32 %v3569_v49, %v3344_v58  ;;  %v13133_v34 = vadd.f32 %v3583_v44, %v3358_v43  ;;  %v13135_v21 = vadd.f32 %v3573_v59, %v3348_v27  ;;  %v16472_v1 = vld [vmem:[#allocation388_spill] sm:$0xff]  ;;  %v3604_v32 = vadd.f32 %v3572_v60, %v3347_v9  ;;  %v16476_v58 = vld [vmem:[#allocation391_spill] sm:$0xff]  ;;  %v16478_v44 = vld [vmem:[#allocation394_spill] sm:$0xff] }
 0x767   :  { %16466 = vst [vmem:[#allocation91_spill] sm:$0xff] %v13104_v19  ;;  %v8311_v19 = vld [vmem:[%s15535_s0 + $0x82] sm:$0xff]  ;;  %v3582_v0 = vmul.f32 %v13049_v35, %v16472_v1  ;;  %v13139_v24 = vadd.f32 %v3586_v54, %v3361_v15  ;;  %v13143_v16 = vmul.f32 %v13049_v35, %v16473_v40  ;;  %v3581_v22 = vmul.f32 %v13049_v35, %v16475_v38 }
 0x768   :  { %16471 = vst [vmem:[#allocation92_spill] sm:$0xff] %v13125_v31  ;;  %v3607_v26 = vadd.f32 %v3575_v12, %v3350_v30  ;;  %v3585_v43 = vmul.f32 %v13049_v35, %v16476_v58  ;;  %v16477_v27 = vld [vmem:[#allocation392_spill] sm:$0xff]  ;;  %v13151_v9 = vadd.f32 %v3589_v23, %v3364_v17  ;;  %v3588_v59 = vmul.f32 %v13049_v35, %v16478_v44  ;;  %v16479_v15 = vld [vmem:[#allocation395_spill] sm:$0xff]  ;;  %v13162_v30 = vld [vmem:[%s15536_s2 + $0x10] sm:$0xff] }
 0x769   :  { %16474 = vst [vmem:[#allocation93_spill] sm:$0xff] %v13143_v16  ;;  %v3584_v49 = vmul.f32 %v13049_v35, %v16477_v27  ;;  %v3587_v60 = vmul.f32 %v13049_v35, %v16479_v15  ;;  %v16480_v54 = vld [vmem:[#allocation396_spill] sm:$0xff]  ;;  %v16482_v17 = vld [vmem:[#allocation398_spill] sm:$0xff]  ;;  %v13172_v40 = vperm.slane %v12542_v7, 7  ;;  %v3613_v27 = vadd.f32 %v3581_v22, %v3356_v33  ;;  %v16486_v44 = vld [vmem:[#allocation399_spill] sm:$0xff] }
 0x76a   :  { %5759 = vperm.xlu2 %8522, %v8311_v19   ;;  %v3826_v19 = vmul.f32 %v13125_v31, %v16480_v54  ;;  %v3590_v23 = vmul.f32 %v13049_v35, %v16482_v17  ;;  %v3829_v15 = vmul.f32 %v13125_v31, %v16486_v44  ;;  %v16487_v54 = vld [vmem:[#allocation402_spill] sm:$0xff]  ;;  %v16489_v35 = vld [vmem:[#allocation441_spill] sm:$0xff]  ;;  %v13194_v22 = vadd.f32 %v3588_v59, %v13075_v42 }
 0x76b   :  { %6258 = vperm.xlu1 %8521, %v8372_v48   ;;  %6006 = vperm.xlu0 %8520, %v8341_v57   ;;  %v3614_v48 = vadd.f32 %v3582_v0, %v13054_v14  ;;  %v16483_v57 = vld [vmem:[#allocation422_spill] sm:$0xff]  ;;  %v3832_v14 = vmul.f32 %v13125_v31, %v16487_v54  ;;  %v4097_v7 = vmul.f32 %v13172_v40, %v16489_v35  ;;  %v8373_v35 = vld [vmem:[%s15535_s0 + $0x6c] sm:$0xff]  ;;  %v13261_v41 = vperm.slane %v13162_v30, 4 }
 0x76c   :  { %v13164_v12 = vpop.permute.xlu2 %5507  ;;  %v3839_v1 = vmul.f32 %v13125_v31, %v16483_v57  ;;  %v16488_v0 = vld [vmem:[#allocation406_spill] sm:$0xff]  ;;  %v3616_v57 = vadd.f32 %v3584_v49, %v3359_v47  ;;  %v3619_v44 = vadd.f32 %v3587_v60, %v3362_v8  ;;  %v13196_v54 = vadd.f32 %v3826_v19, %v3601_v46  ;;  %v16493_v19 = vld [vmem:[#allocation409_spill] sm:$0xff] }
 0x76d   :  { %16481 = vst [vmem:[#allocation94_spill] sm:$0xff] %v13164_v12  ;;  %v13174_v38 = vpop.permute.xlu1 %5360  ;;  %v13176_v58 = vpop.permute.xlu0 %5355  ;;  %v3825_v17 = vmul.f32 %v13125_v31, %v16488_v0  ;;  %v3617_v12 = vadd.f32 %v3585_v43, %v13070_v2  ;;  %v8312_v33 = vld [vmem:[%s15535_s0 + $0x92] sm:$0xff]  ;;  %v16490_v0 = vld [vmem:[#allocation408_spill] sm:$0xff]  ;;  %v8342_v47 = vld [vmem:[%s15535_s0 + $0x7b] sm:$0xff]  ;;  %v3622_v43 = vadd.f32 %v3590_v23, %v3365_v52  ;;  %v13209_v8 = vperm.slane %v13162_v30, 1 }
 0x76e   :  { %16484 = vst [vmem:[#allocation95_spill] sm:$0xff] %v13174_v38  ;;  %v13188_v38 = vperm.slane %v13162_v30, 0  ;;  %v3838_v2 = vmul.f32 %v13125_v31, %v16490_v0  ;;  %v3871_v49 = vadd.f32 %v3839_v1, %v3614_v48  ;;  %v13211_v46 = vadd.f32 %v3829_v15, %v3604_v32  ;;  %v16494_v16 = vld [vmem:[#allocation410_spill] sm:$0xff]  ;;  %v16497_v15 = vld [vmem:[#allocation412_spill] sm:$0xff] }
 0x76f   :  { %16485 = vst [vmem:[#allocation96_spill] sm:$0xff] %v13176_v58  ;;  %v16491_v58 = vld [vmem:[#allocation484_spill] sm:$0xff]  ;;  %v13213_v59 = vadd.f32 %v3832_v14, %v3607_v26  ;;  %v13215_v60 = vadd.f32 %v3825_v17, %v3600_v50  ;;  %v3828_v0 = vmul.f32 %v13125_v31, %v16493_v19  ;;  %v3827_v52 = vmul.f32 %v13125_v31, %v16494_v16  ;;  %v16495_v23 = vld [vmem:[#allocation518_spill] sm:$0xff]  ;;  %v16496_v50 = vld [vmem:[#allocation411_spill] sm:$0xff] }
 0x770   :  { %v4354_v42 = vmul.f32 %v13188_v38, %v16491_v58  ;;  %v4129_v48 = vadd.f32 %v4097_v7, %v3871_v49  ;;  %v4611_v1 = vmul.f32 %v13209_v8, %v16495_v23  ;;  %v13224_v58 = vperm.slane %v13162_v30, 2  ;;  %v16498_v17 = vld [vmem:[#allocation413_spill] sm:$0xff] }
 0x771   :  { %16492 = vst [vmem:[#allocation97_spill] sm:$0xff] %v13213_v59  ;;  %v13226_v26 = vadd.f32 %v3838_v2, %v3613_v27  ;;  %v3841_v32 = vmul.f32 %v13125_v31, %v16496_v50  ;;  %v3831_v14 = vmul.f32 %v13125_v31, %v16497_v15  ;;  %v3830_v16 = vmul.f32 %v13125_v31, %v16498_v17  ;;  %v16501_v23 = vld [vmem:[#allocation537_spill] sm:$0xff]  ;;  %v16503_v15 = vld [vmem:[#allocation414_spill] sm:$0xff] }
 0x772   :  { %5764 = vperm.xlu2 %8522, %v8312_v33   ;;  %v16500_v33 = vld [vmem:[#allocation425_spill] sm:$0xff]  ;;  %v4386_v19 = vadd.f32 %v4354_v42, %v4129_v48  ;;  %v13241_v27 = vperm.slane %v13162_v30, 3  ;;  %v13248_v50 = vadd.f32 %v3828_v0, %v13111_v56  ;;  %v3844_v17 = vmul.f32 %v13125_v31, %v16503_v15  ;;  %v8313_v56 = vld [vmem:[%s15535_s0 + $0x9a] sm:$0xff] }
 0x773   :  { %6263 = vperm.xlu1 %8521, %v8373_v35   ;;  %6011 = vperm.xlu0 %8520, %v8342_v47   ;;  %v3842_v49 = vmul.f32 %v13125_v31, %v16500_v33  ;;  %v4868_v35 = vmul.f32 %v13224_v58, %v16501_v23  ;;  %v16505_v42 = vld [vmem:[#allocation421_spill] sm:$0xff]  ;;  %v16506_v23 = vld [vmem:[#allocation444_spill] sm:$0xff]  ;;  %v3859_v0 = vadd.f32 %v3827_v52, %v13120_v36 }
 0x774   :  { %v13234_v7 = vpop.permute.xlu2 %5522  ;;  %v3840_v48 = vmul.f32 %v13125_v31, %v16505_v42  ;;  %v4100_v59 = vmul.f32 %v13172_v40, %v16506_v23  ;;  %v4643_v20 = vadd.f32 %v4611_v1, %v4386_v19  ;;  %v13270_v15 = vadd.f32 %v3831_v14, %v13118_v55  ;;  %v8343_v1 = vld [vmem:[%s15535_s0 + $0x83] sm:$0xff] }
 0x775   :  { %16499 = vst [vmem:[#allocation98_spill] sm:$0xff] %v13234_v7  ;;  %v13243_v2 = vpop.permute.xlu1 %5472  ;;  %v13245_v47 = vpop.permute.xlu0 %5467  ;;  %v16504_v7 = vld [vmem:[#allocation417_spill] sm:$0xff]  ;;  %v3862_v42 = vadd.f32 %v3830_v16, %v13135_v21  ;;  %v3874_v19 = vadd.f32 %v3842_v49, %v3617_v12  ;;  %v16507_v23 = vld [vmem:[#allocation487_spill] sm:$0xff]  ;;  %v13283_v55 = vadd.f32 %v3844_v17, %v3619_v44 }
 0x776   :  { %16502 = vst [vmem:[#allocation100_spill] sm:$0xff] %v13243_v2  ;;  %v3847_v33 = vmul.f32 %v13125_v31, %v16504_v7  ;;  %v5125_v2 = vmul.f32 %v13241_v27, %v12049_v13  ;;  %v13267_v7 = vadd.f32 %v3841_v32, %v3616_v57  ;;  %v8374_v13 = vld [vmem:[%s15535_s0 + $0x7c] sm:$0xff]  ;;  %v4357_v61 = vmul.f32 %v13188_v38, %v16507_v23  ;;  %v16508_v32 = vld [vmem:[#allocation424_spill] sm:$0xff]  ;;  %v16509_v12 = vld [vmem:[#allocation521_spill] sm:$0xff] }
 0x777   :  { %v4900_v36 = vadd.f32 %v4868_v35, %v4643_v20  ;;  %v5383_v57 = vmul.f32 %v13261_v41, %v12843_v45  ;;  %v13288_v21 = vadd.f32 %v3840_v48, %v13133_v34  ;;  %v3843_v14 = vmul.f32 %v13125_v31, %v16508_v32  ;;  %v16510_v45 = vld [vmem:[#allocation427_spill] sm:$0xff]  ;;  %v16512_v35 = vld [vmem:[#allocation429_spill] sm:$0xff] }
 0x778   :  { %v13285_v52 = vadd.f32 %v3847_v33, %v3622_v43  ;;  %v4132_v16 = vadd.f32 %v4100_v59, %v3874_v19  ;;  %v4614_v49 = vmul.f32 %v13209_v8, %v16509_v12  ;;  %v13295_v20 = vperm.slane %v13162_v30, 5  ;;  %v16511_v43 = vld [vmem:[#allocation428_spill] sm:$0xff] }
 0x779   :  { %v5157_v23 = vadd.f32 %v5125_v2, %v4900_v36  ;;  %v3846_v44 = vmul.f32 %v13125_v31, %v16510_v45  ;;  %v3845_v34 = vmul.f32 %v13125_v31, %v16511_v43  ;;  %v4085_v17 = vmul.f32 %v13172_v40, %v16512_v35  ;;  %v16513_v33 = vld [vmem:[#allocation432_spill] sm:$0xff]  ;;  %v16516_v45 = vld [vmem:[#allocation439_spill] sm:$0xff]  ;;  %v16518_v31 = vld [vmem:[#allocation442_spill] sm:$0xff] }
 0x77a   :  { %5769 = vperm.xlu2 %8522, %v8313_v56   ;;  %v4088_v59 = vmul.f32 %v13172_v40, %v16513_v33  ;;  %v4389_v56 = vadd.f32 %v4357_v61, %v4132_v16  ;;  %v16514_v2 = vld [vmem:[#allocation540_spill] sm:$0xff]  ;;  %v3875_v12 = vadd.f32 %v3843_v14, %v13139_v24  ;;  %v4084_v43 = vmul.f32 %v13172_v40, %v16516_v45  ;;  %v16519_v16 = vld [vmem:[#allocation447_spill] sm:$0xff] }
 0x77b   :  { %6268 = vperm.xlu1 %8521, %v8374_v13   ;;  %6016 = vperm.xlu0 %8520, %v8343_v1   ;;  %v4871_v19 = vmul.f32 %v13224_v58, %v16514_v2  ;;  %v5415_v36 = vadd.f32 %v5383_v57, %v5157_v23  ;;  %v16517_v35 = vld [vmem:[#allocation440_spill] sm:$0xff]  ;;  %v4087_v61 = vmul.f32 %v13172_v40, %v16518_v31  ;;  %v16520_v31 = vld [vmem:[#allocation443_spill] sm:$0xff] }
 0x77c   :  { %v5538_v48 = vpop.permute.xlu2 %5537  ;;  %v4083_v33 = vmul.f32 %v13172_v40, %v16517_v35  ;;  %v4103_v57 = vmul.f32 %v13172_v40, %v16519_v16  ;;  %v4646_v23 = vadd.f32 %v4614_v49, %v4389_v56  ;;  %v8314_v24 = vld [vmem:[%s15535_s0 + $0xaa] sm:$0xff]  ;;  %v3878_v14 = vadd.f32 %v3846_v44, %v13151_v9 }
 0x77d   :  { %v5640_v13 = vmul.f32 %v13295_v20, %v5538_v48  ;;  %v13308_v1 = vpop.permute.xlu1 %5487  ;;  %v13310_v32 = vpop.permute.xlu0 %5482  ;;  %v5128_v48 = vmul.f32 %v13241_v27, %v12119_v11  ;;  %v3877_v45 = vadd.f32 %v3845_v34, %v13194_v22  ;;  %v13330_v35 = vadd.f32 %v4085_v17, %v3859_v0  ;;  %v8375_v49 = vld [vmem:[%s15535_s0 + $0x84] sm:$0xff]  ;;  %v8344_v11 = vld [vmem:[%s15535_s0 + $0x93] sm:$0xff] }
 0x77e   :  { %16515 = vst [vmem:[#allocation101_spill] sm:$0xff] %v13310_v32  ;;  %v4086_v32 = vmul.f32 %v13172_v40, %v16520_v31  ;;  %v13340_v56 = vadd.f32 %v4088_v59, %v3862_v42  ;;  %v4903_v44 = vadd.f32 %v4871_v19, %v4646_v23  ;;  %v5386_v22 = vmul.f32 %v13261_v41, %v12914_v37  ;;  %v16523_v59 = vld [vmem:[#allocation524_spill] sm:$0xff] }
 0x77f   :  { %v13323_v2 = vadd.f32 %v5640_v13, %v5415_v36  ;;  %v16521_v36 = vld [vmem:[#allocation490_spill] sm:$0xff]  ;;  %v13347_v0 = vadd.f32 %v4084_v43, %v13196_v54  ;;  %v4115_v34 = vadd.f32 %v4083_v33, %v13215_v60  ;;  %v13351_v17 = vadd.f32 %v4087_v61, %v13211_v46  ;;  %v16524_v54 = vld [vmem:[#allocation451_spill] sm:$0xff] }
 0x780   :  { %v4360_v9 = vmul.f32 %v13188_v38, %v16521_v36  ;;  %v16522_v13 = vld [vmem:[#allocation446_spill] sm:$0xff]  ;;  %v4135_v42 = vadd.f32 %v4103_v57, %v3877_v45  ;;  %v4617_v31 = vmul.f32 %v13209_v8, %v16523_v59  ;;  %v5160_v19 = vadd.f32 %v5128_v48, %v4903_v44  ;;  %v16526_v33 = vld [vmem:[#allocation455_spill] sm:$0xff] }
 0x781   :  { %v4089_v16 = vmul.f32 %v13172_v40, %v16522_v13  ;;  %v4118_v37 = vadd.f32 %v4086_v32, %v13248_v50  ;;  %v4096_v43 = vmul.f32 %v13172_v40, %v16524_v54  ;;  %v16525_v60 = vld [vmem:[#allocation454_spill] sm:$0xff]  ;;  %v4098_v61 = vmul.f32 %v13172_v40, %v16526_v33  ;;  %v16527_v57 = vld [vmem:[#allocation543_spill] sm:$0xff]  ;;  %v16528_v32 = vld [vmem:[#allocation445_spill] sm:$0xff] }
 0x782   :  { %5774 = vperm.xlu2 %8522, %v8314_v24   ;;  %v4099_v46 = vmul.f32 %v13172_v40, %v16525_v60  ;;  %v4392_v24 = vadd.f32 %v4360_v9, %v4135_v42  ;;  %v4874_v45 = vmul.f32 %v13224_v58, %v16527_v57  ;;  %v5418_v36 = vadd.f32 %v5386_v22, %v5160_v19  ;;  %v16529_v13 = vld [vmem:[#allocation457_spill] sm:$0xff]  ;;  %v16530_v42 = vld [vmem:[#allocation458_spill] sm:$0xff]  ;;  %v16531_v22 = vld [vmem:[#allocation459_spill] sm:$0xff] }
 0x783   :  { %6273 = vperm.xlu1 %8521, %v8375_v49   ;;  %6021 = vperm.xlu0 %8520, %v8344_v11   ;;  %v13373_v11 = vmul.f32 %v13172_v40, %v16528_v32  ;;  %v13376_v44 = vadd.f32 %v4089_v16, %v13270_v15  ;;  %v4102_v9 = vmul.f32 %v13172_v40, %v16529_v13  ;;  %v8315_v15 = vld [vmem:[%s15535_s0 + $0xb2] sm:$0xff]  ;;  %v16533_v57 = vld [vmem:[#allocation460_spill] sm:$0xff] }
 0x784   :  { %v5553_v23 = vpop.permute.xlu2 %5552  ;;  %v4101_v59 = vmul.f32 %v13172_v40, %v16530_v42  ;;  %v4340_v19 = vmul.f32 %v13188_v38, %v16531_v22  ;;  %v4649_v54 = vadd.f32 %v4617_v31, %v4392_v24  ;;  %v5131_v60 = vmul.f32 %v13241_v27, %v12190_v51  ;;  %v16534_v13 = vld [vmem:[#allocation461_spill] sm:$0xff]  ;;  %v8345_v24 = vld [vmem:[%s15535_s0 + $0x9b] sm:$0xff] }
 0x785   :  { %v5643_v48 = vmul.f32 %v13295_v20, %v5553_v23  ;;  %v13367_v49 = vpop.permute.xlu1 %5502  ;;  %v13369_v50 = vpop.permute.xlu0 %5497  ;;  %v4128_v16 = vadd.f32 %v4096_v43, %v13226_v26  ;;  %v13393_v23 = vadd.f32 %v4099_v46, %v13267_v7  ;;  %v4105_v32 = vmul.f32 %v13172_v40, %v16533_v57  ;;  %v8376_v51 = vld [vmem:[%s15535_s0 + $0x94] sm:$0xff] }
 0x786   :  { %v4104_v31 = vmul.f32 %v13172_v40, %v16534_v13  ;;  %v16535_v26 = vld [vmem:[#allocation502_spill] sm:$0xff]  ;;  %v4906_v43 = vadd.f32 %v4874_v45, %v4649_v54  ;;  %v5389_v46 = vmul.f32 %v13261_v41, %v12980_v29  ;;  %v13413_v42 = vadd.f32 %v4101_v59, %v3875_v12  ;;  %v16537_v13 = vld [vmem:[#allocation485_spill] sm:$0xff]  ;;  %v16539_v12 = vld [vmem:[#allocation472_spill] sm:$0xff] }
 0x787   :  { %v13386_v33 = vadd.f32 %v5643_v48, %v5418_v36  ;;  %v4130_v36 = vadd.f32 %v4098_v61, %v13288_v21  ;;  %v4597_v7 = vmul.f32 %v13209_v8, %v16535_v26  ;;  %v13411_v48 = vadd.f32 %v4102_v9, %v13283_v55  ;;  %v16536_v22 = vld [vmem:[#allocation462_spill] sm:$0xff]  ;;  %v16538_v61 = vld [vmem:[#allocation536_spill] sm:$0xff] }
 0x788   :  { %v4343_v57 = vmul.f32 %v13188_v38, %v16536_v22  ;;  %v4372_v21 = vadd.f32 %v4340_v19, %v4115_v34  ;;  %v4854_v26 = vmul.f32 %v13224_v58, %v16538_v61  ;;  %v5163_v45 = vadd.f32 %v5131_v60, %v4906_v43  ;;  %v16540_v59 = vld [vmem:[#allocation504_spill] sm:$0xff]  ;;  %v16541_v34 = vld [vmem:[#allocation555_spill] sm:$0xff] }
 0x789   :  { %16532 = vst [vmem:[#allocation103_spill] sm:$0xff] %v13386_v33  ;;  %v4353_v33 = vmul.f32 %v13188_v38, %v16537_v13  ;;  %v13422_v29 = vadd.f32 %v4105_v32, %v13285_v52  ;;  %v13424_v55 = vadd.f32 %v4104_v31, %v3878_v14  ;;  %v4342_v9 = vmul.f32 %v13188_v38, %v16539_v12  ;;  %v16542_v32 = vld [vmem:[#allocation473_spill] sm:$0xff]  ;;  %v16543_v43 = vld [vmem:[#allocation547_spill] sm:$0xff] }
 0x78a   :  { %5779 = vperm.xlu2 %8522, %v8315_v15   ;;  %v4610_v54 = vmul.f32 %v13209_v8, %v16540_v59  ;;  %v4629_v15 = vadd.f32 %v4597_v7, %v4372_v21  ;;  %v5111_v19 = vmul.f32 %v13241_v27, %v16541_v34  ;;  %v5421_v13 = vadd.f32 %v5389_v46, %v5163_v45  ;;  %v16544_v7 = vld [vmem:[#allocation465_spill] sm:$0xff] }
 0x78b   :  { %6278 = vperm.xlu1 %8521, %v8376_v51   ;;  %6026 = vperm.xlu0 %8520, %v8345_v24   ;;  %v13437_v14 = vadd.f32 %v4343_v57, %v4118_v37  ;;  %v4341_v31 = vmul.f32 %v13188_v38, %v16542_v32  ;;  %v4385_v24 = vadd.f32 %v4353_v33, %v4128_v16  ;;  %v8316_v37 = vld [vmem:[%s15535_s0 + $0xc2] sm:$0xff]  ;;  %v16546_v33 = vld [vmem:[#allocation474_spill] sm:$0xff] }
 0x78c   :  { %v5568_v22 = vpop.permute.xlu2 %5567  ;;  %v4867_v61 = vmul.f32 %v13224_v58, %v16543_v43  ;;  %v13445_v21 = vmul.f32 %v13188_v38, %v16544_v7  ;;  %v4886_v46 = vadd.f32 %v4854_v26, %v4629_v15  ;;  %v5369_v45 = vmul.f32 %v13261_v41, %v12478_v6  ;;  %v8377_v6 = vld [vmem:[%s15535_s0 + $0x9c] sm:$0xff]  ;;  %v8346_v26 = vld [vmem:[%s15535_s0 + $0xab] sm:$0xff] }
 0x78d   :  { %v5646_v60 = vmul.f32 %v13295_v20, %v5568_v22  ;;  %v13433_v51 = vpop.permute.xlu1 %5517  ;;  %v13435_v52 = vpop.permute.xlu0 %5512  ;;  %v13455_v57 = vadd.f32 %v4342_v9, %v13330_v35  ;;  %v4355_v16 = vmul.f32 %v13188_v38, %v16546_v33  ;;  %v4642_v59 = vadd.f32 %v4610_v54, %v4385_v24  ;;  %v16547_v15 = vld [vmem:[#allocation488_spill] sm:$0xff]  ;;  %v16550_v7 = vld [vmem:[#allocation507_spill] sm:$0xff] }
 0x78e   :  { %v5124_v22 = vmul.f32 %v13241_v27, %v12051_v28  ;;  %v4356_v34 = vmul.f32 %v13188_v38, %v16547_v15  ;;  %v5143_v35 = vadd.f32 %v5111_v19, %v4886_v46  ;;  %v5626_v9 = vmul.f32 %v13295_v20, %v13245_v47  ;;  %v16549_v43 = vld [vmem:[#allocation476_spill] sm:$0xff]  ;;  %v16552_v15 = vld [vmem:[#allocation517_spill] sm:$0xff] }
 0x78f   :  { %v13449_v12 = vadd.f32 %v5646_v60, %v5421_v13  ;;  %v13472_v54 = vperm.slane %v13162_v30, 6  ;;  %v13475_v28 = vadd.f32 %v4341_v31, %v13347_v0  ;;  %v16548_v13 = vld [vmem:[#allocation475_spill] sm:$0xff]  ;;  %v4899_v32 = vadd.f32 %v4867_v61, %v4642_v59  ;;  %v16551_v0 = vld [vmem:[#allocation477_spill] sm:$0xff] }
 0x790   :  { %v4345_v60 = vmul.f32 %v13188_v38, %v16548_v13  ;;  %v5382_v24 = vmul.f32 %v13261_v41, %v12544_v18  ;;  %v4344_v19 = vmul.f32 %v13188_v38, %v16549_v43  ;;  %v4613_v47 = vmul.f32 %v13209_v8, %v16550_v7  ;;  %v16553_v18 = vld [vmem:[#allocation480_spill] sm:$0xff] }
 0x791   :  { %16545 = vst [vmem:[#allocation104_spill] sm:$0xff] %v13449_v12  ;;  %v5401_v46 = vadd.f32 %v5369_v45, %v5143_v35  ;;  %v4387_v33 = vadd.f32 %v4355_v16, %v4130_v36  ;;  %v4358_v31 = vmul.f32 %v13188_v38, %v16551_v0  ;;  %v4612_v61 = vmul.f32 %v13209_v8, %v16552_v15  ;;  %v16554_v36 = vld [vmem:[#allocation550_spill] sm:$0xff]  ;;  %v16556_v15 = vld [vmem:[#allocation491_spill] sm:$0xff] }
 0x792   :  { %5784 = vperm.xlu2 %8522, %v8316_v37   ;;  %v5156_v59 = vadd.f32 %v5124_v22, %v4899_v32  ;;  %v4361_v37 = vmul.f32 %v13188_v38, %v16553_v18  ;;  %v4388_v43 = vadd.f32 %v4356_v34, %v13393_v23  ;;  %v4870_v16 = vmul.f32 %v13224_v58, %v16554_v36  ;;  %v16557_v18 = vld [vmem:[#allocation572_spill] sm:$0xff] }
 0x793   :  { %6283 = vperm.xlu1 %8521, %v8377_v6   ;;  %6031 = vperm.xlu0 %8520, %v8346_v26   ;;  %v5658_v12 = vadd.f32 %v5626_v9, %v5401_v46  ;;  %v16555_v26 = vld [vmem:[#allocation551_spill] sm:$0xff]  ;;  %v13501_v32 = vadd.f32 %v4345_v60, %v13340_v56  ;;  %v4359_v23 = vmul.f32 %v13188_v38, %v16556_v15  ;;  %v8317_v46 = vld [vmem:[%s15535_s0 + $0xca] sm:$0xff] }
 0x794   :  { %v5725_v13 = vpop.permute.xlu2 %5724  ;;  %v4869_v35 = vmul.f32 %v13224_v58, %v16555_v26  ;;  %v5414_v0 = vadd.f32 %v5382_v24, %v5156_v59  ;;  %v4645_v34 = vadd.f32 %v4613_v47, %v4388_v43  ;;  %v5126_v36 = vmul.f32 %v13241_v27, %v16557_v18  ;;  %v8378_v56 = vld [vmem:[%s15535_s0 + $0xac] sm:$0xff] }
 0x795   :  { %v5883_v7 = vmul.f32 %v13472_v54, %v5725_v13  ;;  %v5533_v45 = vpop.permute.xlu1 %5532  ;;  %v13493_v6 = vpop.permute.xlu0 %5527  ;;  %v4644_v13 = vadd.f32 %v4612_v61, %v4387_v33  ;;  %v5127_v24 = vmul.f32 %v13241_v27, %v12121_v39  ;;  %v4376_v60 = vadd.f32 %v4344_v19, %v13351_v17  ;;  %v16558_v17 = vld [vmem:[#allocation510_spill] sm:$0xff]  ;;  %v16559_v19 = vld [vmem:[#allocation520_spill] sm:$0xff] }
 0x796   :  { %v5639_v22 = vmul.f32 %v13295_v20, %v5533_v45  ;;  %v4390_v47 = vadd.f32 %v4358_v31, %v13413_v42  ;;  %v13523_v33 = vadd.f32 %v4361_v37, %v13424_v55  ;;  %v13526_v61 = vperm.slane %v13162_v30, 7  ;;  %v16560_v30 = vld [vmem:[#allocation492_spill] sm:$0xff]  ;;  %v16561_v37 = vld [vmem:[#allocation494_spill] sm:$0xff] }
 0x797   :  { %v5915_v9 = vadd.f32 %v5883_v7, %v5658_v12  ;;  %v8347_v12 = vld [vmem:[%s15535_s0 + $0xb3] sm:$0xff]  ;;  %v4902_v39 = vadd.f32 %v4870_v16, %v4645_v34  ;;  %v4901_v43 = vadd.f32 %v4869_v35, %v4644_v13  ;;  %v5385_v7 = vmul.f32 %v13261_v41, %v12618_v53 }
 0x798   :  { %v13512_v59 = vadd.f32 %v5639_v22, %v5414_v0  ;;  %v5384_v45 = vmul.f32 %v13261_v41, %v12841_v4  ;;  %v4391_v26 = vadd.f32 %v4359_v23, %v13411_v48  ;;  %v4616_v42 = vmul.f32 %v13209_v8, %v16558_v17  ;;  %v16562_v0 = vld [vmem:[#allocation495_spill] sm:$0xff]  ;;  %v16563_v22 = vld [vmem:[#allocation553_spill] sm:$0xff]  ;;  %v16564_v23 = vld [vmem:[#allocation554_spill] sm:$0xff] }
 0x799   :  { %v4615_v55 = vmul.f32 %v13209_v8, %v16559_v19  ;;  %v4598_v31 = vmul.f32 %v13209_v8, %v16560_v30  ;;  %v4362_v53 = vmul.f32 %v13188_v38, %v16561_v37  ;;  %v5158_v16 = vadd.f32 %v5126_v36, %v4901_v43  ;;  %v8318_v37 = vld [vmem:[%s15535_s0 + $0xda] sm:$0xff] }
 0x79a   :  { %5789 = vperm.xlu2 %8522, %v8317_v46   ;;  %v5159_v35 = vadd.f32 %v5127_v24, %v4902_v39  ;;  %v4601_v48 = vmul.f32 %v13209_v8, %v16562_v0  ;;  %v4873_v15 = vmul.f32 %v13224_v58, %v16563_v22  ;;  %v4872_v34 = vmul.f32 %v13224_v58, %v16564_v23  ;;  %v16565_v24 = vld [vmem:[#allocation506_spill] sm:$0xff] }
 0x79b   :  { %6288 = vperm.xlu1 %8521, %v8378_v56   ;;  %6036 = vperm.xlu0 %8520, %v8347_v12   ;;  %v5416_v12 = vadd.f32 %v5384_v45, %v5158_v16  ;;  %v4599_v39 = vmul.f32 %v13209_v8, %v16565_v24  ;;  %v4648_v43 = vadd.f32 %v4616_v42, %v4391_v26  ;;  %v16573_v24 = vld [vmem:[#allocation574_spill] sm:$0xff] }
 0x79c   :  { %v5982_v4 = vpop.permute.xlu2 %5981  ;;  %v5417_v56 = vadd.f32 %v5385_v7, %v5159_v35  ;;  %v4647_v19 = vadd.f32 %v4615_v55, %v4390_v47  ;;  %v5130_v7 = vmul.f32 %v13241_v27, %v12192_v10  ;;  %v8379_v47 = vld [vmem:[%s15535_s0 + $0xb4] sm:$0xff]  ;;  %v13572_v26 = vadd.f32 %v4598_v31, %v13475_v28  ;;  %v16568_v28 = vld [vmem:[#allocation523_spill] sm:$0xff] }
 0x79d   :  { %v6140_v46 = vmul.f32 %v13526_v61, %v5982_v4  ;;  %v5548_v13 = vpop.permute.xlu1 %5547  ;;  %v5543_v18 = vpop.permute.xlu0 %5542  ;;  %v5129_v4 = vmul.f32 %v13241_v27, %v11901_v3  ;;  %v4394_v3 = vadd.f32 %v4362_v53, %v13422_v29  ;;  %v4633_v42 = vadd.f32 %v4601_v48, %v4376_v60  ;;  %v16566_v55 = vld [vmem:[#allocation513_spill] sm:$0xff]  ;;  %v16569_v60 = vld [vmem:[#allocation538_spill] sm:$0xff] }
 0x79e   :  { %v5642_v17 = vmul.f32 %v13295_v20, %v5548_v13  ;;  %v5641_v36 = vmul.f32 %v13295_v20, %v5543_v18  ;;  %v4619_v10 = vmul.f32 %v13209_v8, %v16566_v55  ;;  %v4905_v35 = vadd.f32 %v4873_v15, %v4648_v43  ;;  %v16570_v48 = vld [vmem:[#allocation509_spill] sm:$0xff] }
 0x79f   :  { %v13552_v30 = vadd.f32 %v6140_v46, %v5915_v9  ;;  %v8348_v9 = vld [vmem:[%s15535_s0 + $0xc3] sm:$0xff]  ;;  %v4904_v0 = vadd.f32 %v4872_v34, %v4647_v19  ;;  %v5388_v22 = vmul.f32 %v13261_v41, %v12687_v25  ;;  %v5387_v23 = vmul.f32 %v13261_v41, %v12912_v62  ;;  %v16567_v46 = vld [vmem:[#allocation505_spill] sm:$0xff] }
 0x7a0   :  { %v13561_v45 = vadd.f32 %v5642_v17, %v5417_v56  ;;  %v13563_v16 = vadd.f32 %v5641_v36, %v5416_v12  ;;  %v13583_v13 = vmul.f32 %v13209_v8, %v16567_v46  ;;  %v4618_v29 = vmul.f32 %v13209_v8, %v16568_v28  ;;  %v16571_v56 = vld [vmem:[#allocation556_spill] sm:$0xff]  ;;  %v16572_v17 = vld [vmem:[#allocation557_spill] sm:$0xff] }
 0x7a1   :  { %v4858_v31 = vmul.f32 %v13224_v58, %v16569_v60  ;;  %v4631_v53 = vadd.f32 %v4599_v39, %v13455_v57  ;;  %v4602_v25 = vmul.f32 %v13209_v8, %v16570_v48  ;;  %v5161_v15 = vadd.f32 %v5129_v4, %v4904_v0  ;;  %v16576_v28 = vld [vmem:[#allocation508_spill] sm:$0xff] }
 0x7a2   :  { %5794 = vperm.xlu2 %8522, %v8318_v37   ;;  %v5162_v62 = vadd.f32 %v5130_v7, %v4905_v35  ;;  %v4651_v18 = vadd.f32 %v4619_v10, %v4394_v3  ;;  %v4876_v12 = vmul.f32 %v13224_v58, %v16571_v56  ;;  %v4875_v36 = vmul.f32 %v13224_v58, %v16572_v17  ;;  %v8319_v35 = vld [vmem:[%s15535_s0 + $0xe2] sm:$0xff] }
 0x7a3   :  { %6293 = vperm.xlu1 %8521, %v8379_v47   ;;  %6041 = vperm.xlu0 %8520, %v8348_v9   ;;  %v5115_v43 = vmul.f32 %v13241_v27, %v16573_v24  ;;  %v5419_v39 = vadd.f32 %v5387_v23, %v5161_v15  ;;  %v4650_v7 = vadd.f32 %v4618_v29, %v13523_v33  ;;  %v16574_v9 = vld [vmem:[#allocation525_spill] sm:$0xff]  ;;  %v16578_v17 = vld [vmem:[#allocation76_spill] sm:$0xff] }
 0x7a4   :  { %v13592_v34 = vpop.permute.xlu2 %5991  ;;  %v5420_v57 = vadd.f32 %v5388_v22, %v5162_v62  ;;  %v4856_v3 = vmul.f32 %v13224_v58, %v16574_v9  ;;  %v4890_v55 = vadd.f32 %v4858_v31, %v4633_v42  ;;  %v5373_v10 = vmul.f32 %v13261_v41, %v12327_v63  ;;  %v16575_v22 = vld [vmem:[#allocation31_spill] sm:$0xff]  ;;  %v8349_v63 = vld [vmem:[%s15535_s0 + $0xcb] sm:$0xff] }
 0x7a5   :  { %v5563_v19 = vpop.permute.xlu1 %5562  ;;  %v5558_v37 = vpop.permute.xlu0 %5557  ;;  %v5132_v0 = vmul.f32 %v13241_v27, %v11972_v5  ;;  %v5133_v23 = vmul.f32 %v13241_v27, %v16575_v22  ;;  %v8380_v42 = vld [vmem:[%s15535_s0 + $0xc4] sm:$0xff]  ;;  %v4603_v29 = vmul.f32 %v13209_v8, %v16576_v28  ;;  %v4634_v5 = vadd.f32 %v4602_v25, %v13501_v32  ;;  %v16584_v28 = vld [vmem:[#allocation54_spill] sm:$0xff] }
 0x7a6   :  { %v5645_v47 = vmul.f32 %v13295_v20, %v5563_v19  ;;  %v5644_v4 = vmul.f32 %v13295_v20, %v5558_v37  ;;  %v5147_v60 = vadd.f32 %v5115_v43, %v4890_v55  ;;  %v5630_v31 = vmul.f32 %v13295_v20, %v13308_v1  ;;  %v16577_v62 = vld [vmem:[#allocation60_spill] sm:$0xff] }
 0x7a7   :  { %v4908_v48 = vadd.f32 %v4876_v12, %v4651_v18  ;;  %v4907_v15 = vadd.f32 %v4875_v36, %v4650_v7  ;;  %v5391_v56 = vmul.f32 %v13261_v41, %v16577_v62  ;;  %v5390_v24 = vmul.f32 %v13261_v41, %v16578_v17  ;;  %v16579_v19 = vld [vmem:[#allocation528_spill] sm:$0xff]  ;;  %v16583_v7 = vld [vmem:[#allocation573_spill] sm:$0xff] }
 0x7a8   :  { %v13614_v46 = vadd.f32 %v5645_v47, %v5420_v57  ;;  %v13616_v33 = vadd.f32 %v5644_v4, %v5419_v39  ;;  %v4859_v37 = vmul.f32 %v13224_v58, %v16579_v19  ;;  %v16580_v57 = vld [vmem:[#allocation535_spill] sm:$0xff]  ;;  %v5405_v32 = vadd.f32 %v5373_v10, %v5147_v60  ;;  %v16581_v1 = vld [vmem:[#allocation568_spill] sm:$0xff]  ;;  %v16582_v47 = vld [vmem:[#allocation569_spill] sm:$0xff] }
 0x7a9   :  { %v4855_v39 = vmul.f32 %v13224_v58, %v16580_v57  ;;  %v4888_v25 = vadd.f32 %v4856_v3, %v4631_v53  ;;  %v5113_v18 = vmul.f32 %v13241_v27, %v16581_v1  ;;  %v5164_v12 = vadd.f32 %v5132_v0, %v4907_v15  ;;  %v16585_v15 = vld [vmem:[#allocation28_spill] sm:$0xff]  ;;  %v8350_v19 = vld [vmem:[%s15535_s0 + $0xdb] sm:$0xff]  ;;  %v16588_v1 = vld [vmem:[#allocation89_spill] sm:$0xff] }
 0x7aa   :  { %5799 = vperm.xlu2 %8522, %v8319_v35   ;;  %v5165_v36 = vadd.f32 %v5133_v23, %v4908_v48  ;;  %v5112_v4 = vmul.f32 %v13241_v27, %v16582_v47  ;;  %v5116_v9 = vmul.f32 %v13241_v27, %v16583_v7  ;;  %v5662_v55 = vadd.f32 %v5630_v31, %v5405_v32  ;;  %v8320_v31 = vld [vmem:[%s15535_s0 + $0x122] sm:$0xff]  ;;  %v16589_v47 = vld [vmem:[#allocation78_spill] sm:$0xff] }
 0x7ab   :  { %6298 = vperm.xlu1 %8521, %v8380_v42   ;;  %6046 = vperm.xlu0 %8520, %v8349_v63   ;;  %v5422_v63 = vadd.f32 %v5390_v24, %v5164_v12  ;;  %v4891_v0 = vadd.f32 %v4859_v37, %v4634_v5  ;;  %v4887_v23 = vadd.f32 %v4855_v39, %v13572_v26  ;;  %v8381_v26 = vld [vmem:[%s15535_s0 + $0xcc] sm:$0xff]  ;;  %v16587_v57 = vld [vmem:[#allocation479_spill] sm:$0xff] }
 0x7ac   :  { %v5745_v43 = vpop.permute.xlu2 %5744  ;;  %v5423_v42 = vadd.f32 %v5391_v56, %v5165_v36  ;;  %v5374_v60 = vmul.f32 %v13261_v41, %v16584_v28  ;;  %v5370_v62 = vmul.f32 %v13261_v41, %v16585_v15  ;;  %v16586_v56 = vld [vmem:[#allocation45_spill] sm:$0xff]  ;;  %v4378_v37 = vadd.f32 %v13445_v21, %v13376_v44  ;;  %v16592_v44 = vld [vmem:[#allocation542_spill] sm:$0xff] }
 0x7ad   :  { %v5887_v35 = vmul.f32 %v13472_v54, %v5745_v43  ;;  %v5578_v22 = vpop.permute.xlu1 %5577  ;;  %v5573_v10 = vpop.permute.xlu0 %5572  ;;  %v5371_v17 = vmul.f32 %v13261_v41, %v16586_v56  ;;  %v4347_v39 = vmul.f32 %v13188_v38, %v16587_v57  ;;  %v5148_v32 = vadd.f32 %v5116_v9, %v4891_v0  ;;  %v16594_v0 = vld [vmem:[#allocation561_spill] sm:$0xff] }
 0x7ae   :  { %v5648_v53 = vmul.f32 %v13295_v20, %v5578_v22  ;;  %v5647_v3 = vmul.f32 %v13295_v20, %v5573_v10  ;;  %v5631_v12 = vmul.f32 %v13295_v20, %v16588_v1  ;;  %v5145_v36 = vadd.f32 %v5113_v18, %v4888_v25  ;;  %v16591_v22 = vld [vmem:[#allocation539_spill] sm:$0xff]  ;;  %v8321_v57 = vld [vmem:[%s15535_s0 + $0x12a] sm:$0xff] }
 0x7af   :  { %v13649_v48 = vadd.f32 %v5887_v35, %v5662_v55  ;;  %v5144_v43 = vadd.f32 %v5112_v4, %v4887_v23  ;;  %v5628_v7 = vmul.f32 %v13295_v20, %v16589_v47  ;;  %v16590_v55 = vld [vmem:[#allocation100_spill] sm:$0xff]  ;;  %v4857_v10 = vmul.f32 %v13224_v58, %v16591_v22  ;;  %v8382_v47 = vld [vmem:[%s15535_s0 + $0xdc] sm:$0xff] }
 0x7b0   :  { %v13658_v24 = vadd.f32 %v5648_v53, %v5423_v42  ;;  %v13660_v5 = vadd.f32 %v5647_v3, %v5422_v63  ;;  %v5627_v35 = vmul.f32 %v13295_v20, %v16590_v55  ;;  %v4860_v21 = vmul.f32 %v13224_v58, %v16592_v44  ;;  %v16593_v53 = vld [vmem:[#allocation558_spill] sm:$0xff]  ;;  %v16597_v55 = vld [vmem:[#allocation97_spill] sm:$0xff] }
 0x7b1   :  { %v5406_v42 = vadd.f32 %v5374_v60, %v5148_v32  ;;  %v4632_v25 = vadd.f32 %v13583_v13, %v13437_v14  ;;  %v4635_v18 = vadd.f32 %v4603_v29, %v4378_v37  ;;  %v5402_v4 = vadd.f32 %v5370_v62, %v5144_v43  ;;  %v16595_v62 = vld [vmem:[#allocation51_spill] sm:$0xff]  ;;  %v16596_v32 = vld [vmem:[#allocation44_spill] sm:$0xff]  ;;  %v16598_v22 = vld [vmem:[#allocation498_spill] sm:$0xff] }
 0x7b2   :  { %5804 = vperm.xlu2 %8522, %v8320_v31   ;;  %v5403_v9 = vadd.f32 %v5371_v17, %v5145_v36  ;;  %v5114_v3 = vmul.f32 %v13241_v27, %v16593_v53  ;;  %v5117_v23 = vmul.f32 %v13241_v27, %v16594_v0  ;;  %v5375_v17 = vmul.f32 %v13261_v41, %v16595_v62  ;;  %v16602_v0 = vld [vmem:[#allocation541_spill] sm:$0xff] }
 0x7b3   :  { %6303 = vperm.xlu1 %8521, %v8381_v26   ;;  %6051 = vperm.xlu0 %8520, %v8350_v19   ;;  %v5663_v28 = vadd.f32 %v5631_v12, %v5406_v42  ;;  %v5659_v26 = vadd.f32 %v5627_v35, %v5402_v4  ;;  %v4889_v13 = vadd.f32 %v4857_v10, %v4632_v25  ;;  %v16600_v42 = vld [vmem:[#allocation92_spill] sm:$0xff]  ;;  %v16601_v4 = vld [vmem:[#allocation101_spill] sm:$0xff] }
 0x7b4   :  { %v5750_v63 = vpop.permute.xlu2 %5749  ;;  %v5660_v56 = vadd.f32 %v5628_v7, %v5403_v9  ;;  %v4892_v29 = vadd.f32 %v4860_v21, %v4635_v18  ;;  %v5372_v1 = vmul.f32 %v13261_v41, %v16596_v32  ;;  %v6142_v12 = vmul.f32 %v13526_v61, %v13592_v34  ;;  %v8351_v7 = vld [vmem:[%s15535_s0 + $0xe3] sm:$0xff] }
 0x7b5   :  { %v5888_v31 = vmul.f32 %v13472_v54, %v5750_v63  ;;  %v5735_v15 = vpop.permute.xlu1 %5734  ;;  %v5730_v60 = vpop.permute.xlu0 %5729  ;;  %v4122_v35 = vadd.f32 %v13373_v11, %v16597_v55  ;;  %v4604_v10 = vmul.f32 %v13209_v8, %v16598_v22  ;;  %v5632_v34 = vmul.f32 %v13295_v20, %v13369_v50  ;;  %v16599_v21 = vld [vmem:[#allocation416_spill] sm:$0xff]  ;;  %v16609_v55 = vld [vmem:[#allocation478_spill] sm:$0xff]  ;;  %v16610_v22 = vld [vmem:[#allocation35_spill] sm:$0xff] }
 0x7b6   :  { %v5885_v19 = vmul.f32 %v13472_v54, %v5735_v15  ;;  %v5884_v14 = vmul.f32 %v13472_v54, %v5730_v60  ;;  %v5149_v44 = vadd.f32 %v5117_v23, %v4892_v29  ;;  %v3833_v25 = vmul.f32 %v16600_v42, %v16599_v21  ;;  %v16603_v23 = vld [vmem:[#allocation353_spill] sm:$0xff]  ;;  %v16605_v15 = vld [vmem:[#allocation88_spill] sm:$0xff]  ;;  %v16608_v29 = vld [vmem:[#allocation578_spill] sm:$0xff] }
 0x7b7   :  { %v13693_v37 = vadd.f32 %v5888_v31, %v5663_v28  ;;  %v5146_v18 = vadd.f32 %v5114_v3, %v4889_v13  ;;  %v5629_v9 = vmul.f32 %v13295_v20, %v16601_v4  ;;  %v4379_v53 = vadd.f32 %v4347_v39, %v4122_v35  ;;  %v16604_v31 = vld [vmem:[#allocation75_spill] sm:$0xff]  ;;  %v16606_v60 = vld [vmem:[#allocation93_spill] sm:$0xff]  ;;  %v16611_v21 = vld [vmem:[#allocation68_spill] sm:$0xff] }
 0x7b8   :  { %v5917_v36 = vadd.f32 %v5885_v19, %v5660_v56  ;;  %v5916_v43 = vadd.f32 %v5884_v14, %v5659_v26  ;;  %v4861_v11 = vmul.f32 %v13224_v58, %v16602_v0  ;;  %v5407_v28 = vadd.f32 %v5375_v17, %v5149_v44  ;;  %v16607_v3 = vld [vmem:[#allocation435_spill] sm:$0xff]  ;;  %v16613_v4 = vld [vmem:[#allocation372_spill] sm:$0xff] }
 0x7b9   :  { %v3320_v50 = vmul.f32 %v16604_v31, %v16603_v23  ;;  %v3608_v56 = vadd.f32 %v16606_v60, %v16605_v15  ;;  %v4091_v26 = vmul.f32 %v13172_v40, %v16607_v3  ;;  %v5404_v19 = vadd.f32 %v5372_v1, %v5146_v18  ;;  %v8352_v23 = vld [vmem:[%s15535_s0 + $0x123] sm:$0xff] }
 0x7ba   :  { %5809 = vperm.xlu2 %8522, %v8321_v57   ;;  %v13718_v63 = vadd.f32 %v6142_v12, %v5917_v36  ;;  %v4636_v13 = vadd.f32 %v4604_v10, %v4379_v53  ;;  %v5118_v39 = vmul.f32 %v13241_v27, %v16608_v29  ;;  %v5664_v62 = vadd.f32 %v5632_v34, %v5407_v28  ;;  %v8322_v34 = vld [vmem:[%s15535_s0 + $0x13a] sm:$0xff]  ;;  %v16615_v60 = vld [vmem:[#allocation512_spill] sm:$0xff] }
 0x7bb   :  { %6308 = vperm.xlu1 %8521, %v8382_v47   ;;  %6056 = vperm.xlu0 %8520, %v8351_v7   ;;  %v3865_v12 = vadd.f32 %v3833_v25, %v3608_v56  ;;  %v5661_v36 = vadd.f32 %v5629_v9, %v5404_v19  ;;  %v4348_v35 = vmul.f32 %v13188_v38, %v16609_v55  ;;  %v16612_v25 = vld [vmem:[#allocation77_spill] sm:$0xff]  ;;  %v16614_v9 = vld [vmem:[#allocation87_spill] sm:$0xff] }
 0x7bc   :  { %v5755_v14 = vpop.permute.xlu2 %5754  ;;  %v4893_v1 = vadd.f32 %v4861_v11, %v4636_v13  ;;  %v5376_v10 = vmul.f32 %v13261_v41, %v16610_v22  ;;  %v3095_v18 = vadd.f32 %v16612_v25, %v16611_v21  ;;  %v3577_v53 = vmul.f32 %v16614_v9, %v16613_v4  ;;  %v8383_v11 = vld [vmem:[%s15535_s0 + $0xe4] sm:$0xff]  ;;  %v16617_v13 = vld [vmem:[#allocation65_spill] sm:$0xff] }
 0x7bd   :  { %v5889_v17 = vmul.f32 %v13472_v54, %v5755_v14  ;;  %v5740_v57 = vpop.permute.xlu1 %5739  ;;  %v5987_v32 = vpop.permute.xlu0 %5986  ;;  %v4123_v15 = vadd.f32 %v4091_v26, %v3865_v12  ;;  %v4605_v56 = vmul.f32 %v13209_v8, %v16615_v60  ;;  %v5633_v19 = vmul.f32 %v13295_v20, %v13367_v49  ;;  %v16616_v14 = vld [vmem:[#allocation55_spill] sm:$0xff]  ;;  %v13767_v26 = vld [vmem:[%s15536_s2 + $0x18] ss:$0 sm:$0xff]  ;;  %v16625_v25 = vld [vmem:[#allocation449_spill] sm:$0xff] }
 0x7be   :  { %v5886_v47 = vmul.f32 %v13472_v54, %v5740_v57  ;;  %v6141_v7 = vmul.f32 %v13526_v61, %v5987_v32  ;;  %v5150_v3 = vadd.f32 %v5118_v39, %v4893_v1  ;;  %v2581_v29 = vadd.f32 %v16617_v13, %v16616_v14  ;;  %v16620_v32 = vld [vmem:[#allocation415_spill] sm:$0xff]  ;;  %v16623_v1 = vld [vmem:[#allocation309_spill] sm:$0xff] }
 0x7bf   :  { %v13737_v44 = vadd.f32 %v5889_v17, %v5664_v62  ;;  %v16619_v62 = vld [vmem:[#allocation64_spill] sm:$0xff]  ;;  %v3352_v57 = vadd.f32 %v3320_v50, %v3095_v18  ;;  %v4380_v39 = vadd.f32 %v4348_v35, %v4123_v15  ;;  %v16621_v12 = vld [vmem:[#allocation531_spill] sm:$0xff]  ;;  %v16624_v50 = vld [vmem:[#allocation70_spill] sm:$0xff] }
 0x7c0   :  { %v13746_v0 = vadd.f32 %v5886_v47, %v5661_v36  ;;  %v6173_v28 = vadd.f32 %v6141_v7, %v5916_v43  ;;  %v16618_v43 = vld [vmem:[#allocation289_spill] sm:$0xff]  ;;  %v3834_v36 = vmul.f32 %v16600_v42, %v16620_v32  ;;  %v4862_v49 = vmul.f32 %v13224_v58, %v16621_v12  ;;  %v16629_v32 = vld [vmem:[#allocation58_spill] sm:$0xff]  ;;  %v8323_v12 = vld [vmem:[%s15535_s0 + $0x142] sm:$0xff] }
 0x7c1   :  { %v2808_v17 = vmul.f32 %v16619_v62, %v16618_v43  ;;  %v5408_v47 = vadd.f32 %v5376_v10, %v5150_v3  ;;  %v16622_v7 = vld [vmem:[#allocation73_spill] sm:$0xff]  ;;  %v3064_v22 = vmul.f32 %v16624_v50, %v16623_v1  ;;  %v3609_v21 = vadd.f32 %v3577_v53, %v3352_v57  ;;  %v16628_v43 = vld [vmem:[#allocation468_spill] sm:$0xff] }
 0x7c2   :  { %5814 = vperm.xlu2 %8522, %v8322_v34   ;;  %v2839_v55 = vadd.f32 %v16622_v7, %v2581_v29  ;;  %v4092_v34 = vmul.f32 %v13172_v40, %v16625_v25  ;;  %v4637_v4 = vadd.f32 %v4605_v56, %v4380_v39  ;;  %v16626_v60 = vld [vmem:[#allocation577_spill] sm:$0xff]  ;;  %v4349_v57 = vmul.f32 %v13188_v38, %v16628_v43  ;;  %v16630_v7 = vld [vmem:[#allocation386_spill] sm:$0xff] }
 0x7c3   :  { %6313 = vperm.xlu1 %8521, %v8383_v11   ;;  %6061 = vperm.xlu0 %8520, %v8352_v23   ;;  %v5119_v35 = vmul.f32 %v13241_v27, %v16626_v60  ;;  %v5665_v15 = vadd.f32 %v5633_v19, %v5408_v47  ;;  %v16627_v23 = vld [vmem:[#allocation352_spill] sm:$0xff]  ;;  %v3866_v13 = vadd.f32 %v3834_v36, %v3609_v21  ;;  %v16632_v60 = vld [vmem:[#allocation94_spill] sm:$0xff] }
 0x7c4   :  { %v5760_v18 = vpop.permute.xlu2 %5759  ;;  %v3321_v3 = vmul.f32 %v16604_v31, %v16627_v23  ;;  %v4894_v56 = vadd.f32 %v4862_v49, %v4637_v4  ;;  %v5377_v39 = vmul.f32 %v13261_v41, %v16629_v32  ;;  %v3096_v47 = vadd.f32 %v3064_v22, %v2839_v55  ;;  %v8384_v49 = vld [vmem:[%s15535_s0 + $0x124] sm:$0xff] }
 0x7c5   :  { %v5890_v14 = vmul.f32 %v13472_v54, %v5760_v18  ;;  %v6244_v10 = vpop.permute.xlu1 %6243  ;;  %v6239_v11 = vpop.permute.xlu0 %6238  ;;  %v3578_v36 = vmul.f32 %v16614_v9, %v16630_v7  ;;  %v8353_v25 = vld [vmem:[%s15535_s0 + $0x12b] sm:$0xff]  ;;  %v4124_v18 = vadd.f32 %v4092_v34, %v3866_v13  ;;  %v16631_v4 = vld [vmem:[#allocation511_spill] sm:$0xff] }
 0x7c6   :  { %v6398_v29 = vmul.f32 %v13767_v26, %v6244_v10  ;;  %v6397_v53 = vmul.f32 %v13767_v26, %v6239_v11  ;;  %v4606_v55 = vmul.f32 %v13209_v8, %v16631_v4  ;;  %v5151_v22 = vadd.f32 %v5119_v35, %v4894_v56  ;;  %v16635_v10 = vld [vmem:[#allocation279_spill] sm:$0xff]  ;;  %v16637_v34 = vld [vmem:[#allocation545_spill] sm:$0xff] }
 0x7c7   :  { %v13787_v19 = vadd.f32 %v5890_v14, %v5665_v15  ;;  %v16633_v15 = vld [vmem:[#allocation260_spill] sm:$0xff]  ;;  %v2809_v11 = vmul.f32 %v16619_v62, %v16635_v10  ;;  %v3353_v23 = vadd.f32 %v3321_v3, %v3096_v47  ;;  %v4381_v43 = vadd.f32 %v4349_v57, %v4124_v18  ;;  %v16638_v35 = vld [vmem:[#allocation63_spill] sm:$0xff] }
 0x7c8   :  { %v13794_v1 = vadd.f32 %v6398_v29, %v6173_v28  ;;  %v13797_v21 = vadd.f32 %v6397_v53, %v13552_v30  ;;  %v5634_v28 = vmul.f32 %v13295_v20, %v16632_v60  ;;  %v16634_v14 = vld [vmem:[#allocation56_spill] sm:$0xff]  ;;  %v16636_v29 = vld [vmem:[#allocation405_spill] sm:$0xff]  ;;  %v4863_v13 = vmul.f32 %v13224_v58, %v16637_v34  ;;  %v16639_v7 = vld [vmem:[#allocation323_spill] sm:$0xff] }
 0x7c9   :  { %v2551_v30 = vmul.f32 %v16634_v14, %v16633_v15  ;;  %v3835_v53 = vmul.f32 %v16600_v42, %v16636_v29  ;;  %v5409_v32 = vadd.f32 %v5377_v39, %v5151_v22  ;;  %v2840_v56 = vadd.f32 %v2808_v17, %v16638_v35  ;;  %v16640_v15 = vld [vmem:[#allocation448_spill] sm:$0xff] }
 0x7ca   :  { %5819 = vperm.xlu2 %8522, %v8323_v12   ;;  %v3065_v4 = vmul.f32 %v16624_v50, %v16639_v7  ;;  %v3610_v60 = vadd.f32 %v3578_v36, %v3353_v23  ;;  %v4093_v3 = vmul.f32 %v13172_v40, %v16640_v15  ;;  %v4638_v10 = vadd.f32 %v4606_v55, %v4381_v43  ;;  %v16641_v29 = vld [vmem:[#allocation564_spill] sm:$0xff]  ;;  %v16643_v23 = vld [vmem:[#allocation482_spill] sm:$0xff]  ;;  %v16644_v43 = vld [vmem:[#allocation57_spill] sm:$0xff] }
 0x7cb   :  { %6318 = vperm.xlu1 %8521, %v8384_v49   ;;  %6066 = vperm.xlu0 %8520, %v8353_v25   ;;  %v5120_v57 = vmul.f32 %v13241_v27, %v16641_v29  ;;  %v5666_v12 = vadd.f32 %v5634_v28, %v5409_v32  ;;  %v16642_v25 = vld [vmem:[#allocation342_spill] sm:$0xff]  ;;  %v4350_v35 = vmul.f32 %v13188_v38, %v16643_v23  ;;  %v16649_v23 = vld [vmem:[#allocation544_spill] sm:$0xff] }
 0x7cc   :  { %v5765_v47 = vpop.permute.xlu2 %5764  ;;  %v3322_v17 = vmul.f32 %v16604_v31, %v16642_v25  ;;  %v3867_v22 = vadd.f32 %v3835_v53, %v3610_v60  ;;  %v4895_v55 = vadd.f32 %v4863_v13, %v4638_v10  ;;  %v5378_v7 = vmul.f32 %v13261_v41, %v16644_v43  ;;  %v8324_v32 = vld [vmem:[%s15535_s0 + $0x152] sm:$0xff]  ;;  %v8354_v10 = vld [vmem:[%s15535_s0 + $0x13b] sm:$0xff] }
 0x7cd   :  { %v5891_v18 = vmul.f32 %v13472_v54, %v5765_v47  ;;  %v6249_v39 = vpop.permute.xlu1 %6248  ;;  %v5997_v49 = vpop.permute.xlu0 %5996  ;;  %v3097_v15 = vadd.f32 %v3065_v4, %v2840_v56  ;;  %v16645_v47 = vld [vmem:[#allocation385_spill] sm:$0xff]  ;;  %v4864_v43 = vmul.f32 %v13224_v58, %v16649_v23  ;;  %v8325_v23 = vld [vmem:[%s15535_s0 + $0x15a] sm:$0xff] }
 0x7ce   :  { %v6399_v34 = vmul.f32 %v13767_v26, %v6249_v39  ;;  %v6143_v36 = vmul.f32 %v13526_v61, %v5997_v49  ;;  %v3579_v53 = vmul.f32 %v16614_v9, %v16645_v47  ;;  %v8385_v13 = vld [vmem:[%s15535_s0 + $0x12c] sm:$0xff]  ;;  %v5152_v4 = vadd.f32 %v5120_v57, %v4895_v55 }
 0x7cf   :  { %v13833_v28 = vadd.f32 %v5891_v18, %v5666_v12  ;;  %v4125_v12 = vadd.f32 %v4093_v3, %v3867_v22  ;;  %v16646_v18 = vld [vmem:[#allocation501_spill] sm:$0xff]  ;;  %v5635_v39 = vmul.f32 %v13295_v20, %v13435_v52  ;;  %v3354_v25 = vadd.f32 %v3322_v17, %v3097_v15  ;;  %v16650_v22 = vld [vmem:[#allocation322_spill] sm:$0xff] }
 0x7d0   :  { %v13841_v60 = vadd.f32 %v6399_v34, %v13718_v63  ;;  %v6175_v29 = vadd.f32 %v6143_v36, %v13746_v0  ;;  %v4607_v56 = vmul.f32 %v13209_v8, %v16646_v18  ;;  %v16647_v63 = vld [vmem:[#allocation59_spill] sm:$0xff]  ;;  %v5410_v47 = vadd.f32 %v5378_v7, %v5152_v4  ;;  %v16651_v52 = vld [vmem:[#allocation438_spill] sm:$0xff]  ;;  %v16652_v18 = vld [vmem:[#allocation581_spill] sm:$0xff] }
 0x7d1   :  { %v2583_v49 = vadd.f32 %v2551_v30, %v16647_v63  ;;  %v16648_v0 = vld [vmem:[#allocation419_spill] sm:$0xff]  ;;  %v4382_v36 = vadd.f32 %v4350_v35, %v4125_v12  ;;  %v3066_v57 = vmul.f32 %v16624_v50, %v16650_v22  ;;  %v3611_v55 = vadd.f32 %v3579_v53, %v3354_v25 }
 0x7d2   :  { %v3836_v34 = vmul.f32 %v16600_v42, %v16648_v0  ;;  %5824 = vperm.xlu2 %8522, %v8324_v32   ;;  %v4094_v30 = vmul.f32 %v13172_v40, %v16651_v52  ;;  %v5121_v32 = vmul.f32 %v13241_v27, %v16652_v18  ;;  %v5667_v35 = vadd.f32 %v5635_v39, %v5410_v47  ;;  %v16655_v0 = vld [vmem:[#allocation41_spill] sm:$0xff]  ;;  %v16656_v22 = vld [vmem:[#allocation375_spill] sm:$0xff] }
 0x7d3   :  { %6323 = vperm.xlu1 %8521, %v8385_v13   ;;  %6071 = vperm.xlu0 %8520, %v8354_v10   ;;  %v2841_v3 = vadd.f32 %v2809_v11, %v2583_v49  ;;  %v4639_v15 = vadd.f32 %v4607_v56, %v4382_v36  ;;  %v16653_v13 = vld [vmem:[#allocation356_spill] sm:$0xff]  ;;  %v16654_v49 = vld [vmem:[#allocation481_spill] sm:$0xff]  ;;  %v5379_v36 = vmul.f32 %v13261_v41, %v16655_v0  ;;  %v16658_v18 = vld [vmem:[#allocation515_spill] sm:$0xff] }
 0x7d4   :  { %v5770_v17 = vpop.permute.xlu2 %5769  ;;  %v3323_v11 = vmul.f32 %v16604_v31, %v16653_v13  ;;  %v3868_v10 = vadd.f32 %v3836_v34, %v3611_v55  ;;  %v4351_v25 = vmul.f32 %v13188_v38, %v16654_v49  ;;  %v3580_v34 = vmul.f32 %v16614_v9, %v16656_v22 }
 0x7d5   :  { %v5892_v12 = vmul.f32 %v13472_v54, %v5770_v17  ;;  %v6254_v63 = vpop.permute.xlu1 %6253  ;;  %v6002_v7 = vpop.permute.xlu0 %6001  ;;  %v4896_v56 = vadd.f32 %v4864_v43, %v4639_v15  ;;  %v3098_v47 = vadd.f32 %v3066_v57, %v2841_v3  ;;  %v8386_v43 = vld [vmem:[%s15535_s0 + $0x13c] sm:$0xff]  ;;  %v5636_v57 = vmul.f32 %v13295_v20, %v13433_v51 }
 0x7d6   :  { %v6400_v4 = vmul.f32 %v13767_v26, %v6254_v63  ;;  %v6144_v53 = vmul.f32 %v13526_v61, %v6002_v7  ;;  %v8355_v17 = vld [vmem:[%s15535_s0 + $0x143] sm:$0xff]  ;;  %v4126_v15 = vadd.f32 %v4094_v30, %v3868_v10  ;;  %v16660_v7 = vld [vmem:[#allocation534_spill] sm:$0xff] }
 0x7d7   :  { %v13874_v39 = vadd.f32 %v5892_v12, %v5667_v35  ;;  %v4608_v35 = vmul.f32 %v13209_v8, %v16658_v18  ;;  %v5153_v3 = vadd.f32 %v5121_v32, %v4896_v56  ;;  %v16659_v12 = vld [vmem:[#allocation418_spill] sm:$0xff]  ;;  %v4865_v13 = vmul.f32 %v13224_v58, %v16660_v7  ;;  %v16661_v10 = vld [vmem:[#allocation452_spill] sm:$0xff] }
 0x7d8   :  { %v13881_v55 = vadd.f32 %v6400_v4, %v6175_v29  ;;  %v6176_v52 = vadd.f32 %v6144_v53, %v13649_v48  ;;  %v3355_v29 = vadd.f32 %v3323_v11, %v3098_v47  ;;  %v3837_v48 = vmul.f32 %v16600_v42, %v16659_v12  ;;  %v16662_v56 = vld [vmem:[#allocation580_spill] sm:$0xff]  ;;  %v16666_v7 = vld [vmem:[#allocation514_spill] sm:$0xff] }
 0x7d9   :  { %v4383_v63 = vadd.f32 %v4351_v25, %v4126_v15  ;;  %v5411_v4 = vadd.f32 %v5379_v36, %v5153_v3  ;;  %v4095_v53 = vmul.f32 %v13172_v40, %v16661_v10  ;;  %v5122_v51 = vmul.f32 %v13241_v27, %v16662_v56  ;;  %v16664_v15 = vld [vmem:[#allocation62_spill] sm:$0xff]  ;;  %v8387_v12 = vld [vmem:[%s15535_s0 + $0x144] sm:$0xff] }
 0x7da   :  { %16657 = vst [vmem:[#allocation106_spill] sm:$0xff] %v13881_v55  ;;  %5829 = vperm.xlu2 %8522, %v8325_v23   ;;  %v3612_v30 = vadd.f32 %v3580_v34, %v3355_v29  ;;  %v5380_v18 = vmul.f32 %v13261_v41, %v16664_v15  ;;  %v8295_v3 = vld [vmem:[%s15535_s0 + $0x171] sm:$0xff] }
 0x7db   :  { %6328 = vperm.xlu1 %8521, %v8386_v43   ;;  %6076 = vperm.xlu0 %8520, %v8355_v17   ;;  %v4640_v49 = vadd.f32 %v4608_v35, %v4383_v63  ;;  %v5668_v11 = vadd.f32 %v5636_v57, %v5411_v4  ;;  %v16663_v43 = vld [vmem:[#allocation471_spill] sm:$0xff] }
 0x7dc   :  { %v5775_v32 = vpop.permute.xlu2 %5774  ;;  %v3869_v47 = vadd.f32 %v3837_v48, %v3612_v30  ;;  %v4352_v34 = vmul.f32 %v13188_v38, %v16663_v43  ;;  %v8356_v48 = vld [vmem:[%s15535_s0 + $0x153] sm:$0xff] }
 0x7dd   :  { %v5893_v0 = vmul.f32 %v13472_v54, %v5775_v32  ;;  %v6259_v23 = vpop.permute.xlu1 %6258  ;;  %v6007_v25 = vpop.permute.xlu0 %6006  ;;  %v4897_v17 = vadd.f32 %v4865_v13, %v4640_v49  ;;  %v4609_v13 = vmul.f32 %v13209_v8, %v16666_v7  ;;  %v16667_v30 = vld [vmem:[#allocation98_spill] sm:$0xff]  ;;  %v16668_v32 = vld [vmem:[#allocation548_spill] sm:$0xff] }
 0x7de   :  { %v6401_v22 = vmul.f32 %v13767_v26, %v6259_v23  ;;  %v6145_v36 = vmul.f32 %v13526_v61, %v6007_v25  ;;  %v4127_v63 = vadd.f32 %v4095_v53, %v3869_v47  ;;  %v5637_v10 = vmul.f32 %v13295_v20, %v16667_v30 }
 0x7df   :  { %v13909_v35 = vadd.f32 %v5893_v0, %v5668_v11  ;;  %v5154_v4 = vadd.f32 %v5122_v51, %v4897_v17  ;;  %v16669_v0 = vld [vmem:[#allocation567_spill] sm:$0xff] }
 0x7e0   :  { %v13914_v57 = vadd.f32 %v6401_v22, %v6176_v52  ;;  %v6177_v29 = vadd.f32 %v6145_v36, %v13693_v37  ;;  %v4384_v52 = vadd.f32 %v4352_v34, %v4127_v63  ;;  %v4866_v37 = vmul.f32 %v13224_v58, %v16668_v32  ;;  %v16670_v34 = vld [vmem:[#allocation61_spill] sm:$0xff] }
 0x7e1   :  { %v5412_v49 = vadd.f32 %v5380_v18, %v5154_v4  ;;  %v5123_v53 = vmul.f32 %v13241_v27, %v16669_v0  ;;  %v5381_v17 = vmul.f32 %v13261_v41, %v16670_v34  ;;  %v8388_v18 = vld [vmem:[%s15535_s0 + $0x154] sm:$0xff]  ;;  %v8326_v63 = vld [vmem:[%s15535_s0 + $0x16a] sm:$0xff] }
 0x7e2   :  { %16665 = vst [vmem:[#allocation107_spill] sm:$0xff] %v13914_v57  ;;  %5582 = vperm.xlu2 %8522, %v8295_v3   ;;  %v4641_v11 = vadd.f32 %v4609_v13, %v4384_v52  ;;  %v5638_v13 = vmul.f32 %v13295_v20, %v13493_v6  ;;  %v8358_v6 = vld [vmem:[%s15535_s0 + $0x16b] sm:$0xff] }
 0x7e3   :  { %6333 = vperm.xlu1 %8521, %v8387_v12   ;;  %6081 = vperm.xlu0 %8520, %v8356_v48   ;;  %v5669_v23 = vadd.f32 %v5637_v10, %v5412_v49  ;;  %v8357_v48 = vld [vmem:[%s15535_s0 + $0x15b] sm:$0xff]  ;;  %v8327_v0 = vld [vmem:[%s15535_s0 + $0x172] sm:$0xff] }
 0x7e4   :  { %v5780_v56 = vpop.permute.xlu2 %5779  ;;  %v4898_v43 = vadd.f32 %v4866_v37, %v4641_v11 }
 0x7e5   :  { %v5894_v25 = vmul.f32 %v13472_v54, %v5780_v56  ;;  %v6264_v51 = vpop.permute.xlu1 %6263  ;;  %v6012_v47 = vpop.permute.xlu0 %6011 }
 0x7e6   :  { %v6402_v22 = vmul.f32 %v13767_v26, %v6264_v51  ;;  %v6146_v36 = vmul.f32 %v13526_v61, %v6012_v47  ;;  %v5155_v7 = vadd.f32 %v5123_v53, %v4898_v43  ;;  %v8296_v53 = vld [vmem:[%s15535_s0 + $0x181] sm:$0xff] }
 0x7e7   :  { %v13936_v15 = vadd.f32 %v5894_v25, %v5669_v23  ;;  %v8328_v43 = vld [vmem:[%s15535_s0 + $0x182] sm:$0xff] }
 0x7e8   :  { %v13941_v3 = vadd.f32 %v6402_v22, %v6177_v29  ;;  %v6178_v12 = vadd.f32 %v6146_v36, %v13737_v44  ;;  %v5413_v4 = vadd.f32 %v5381_v17, %v5155_v7 }
 0x7ea   :  { %16671 = vst [vmem:[#allocation108_spill] sm:$0xff] %v13941_v3  ;;  %6338 = vperm.xlu2 %8522, %v8388_v18   ;;  %v5670_v30 = vadd.f32 %v5638_v13, %v5413_v4  ;;  %v8297_v18 = vld [vmem:[%s15535_s0 + $0x189] sm:$0xff] }
 0x7eb   :  { %6086 = vperm.xlu1 %8521, %v8357_v48   ;;  %5834 = vperm.xlu0 %8520, %v8326_v63  }
 0x7ec   :  { %v5785_v29 = vpop.permute.xlu2 %5784 }
 0x7ed   :  { %v5895_v44 = vmul.f32 %v13472_v54, %v5785_v29  ;;  %v6269_v10 = vpop.permute.xlu1 %6268  ;;  %v6017_v52 = vpop.permute.xlu0 %6016  ;;  %v8298_v29 = vld [vmem:[%s15535_s0 + $0x199] sm:$0xff] }
 0x7ee   :  { %v6403_v32 = vmul.f32 %v13767_v26, %v6269_v10  ;;  %v6147_v37 = vmul.f32 %v13526_v61, %v6017_v52  ;;  %v8390_v10 = vld [vmem:[%s15535_s0 + $0x16c] sm:$0xff] }
 0x7ef   :  { %v13955_v49 = vadd.f32 %v5895_v44, %v5670_v30  ;;  %v8359_v52 = vld [vmem:[%s15535_s0 + $0x173] sm:$0xff] }
 0x7f0   :  { %v13960_v56 = vadd.f32 %v6403_v32, %v6178_v12  ;;  %v6179_v11 = vadd.f32 %v6147_v37, %v13787_v19  ;;  %v8389_v12 = vld [vmem:[%s15535_s0 + $0x15c] sm:$0xff] }
 0x7f2   :  { %16672 = vst [vmem:[#allocation110_spill] sm:$0xff] %v13960_v56  ;;  %6091 = vperm.xlu2 %8522, %v8358_v6   ;;  %v16767_v56 = vld [vmem:[#allocation497_spill] sm:$0xff] }
 0x7f3   :  { %5839 = vperm.xlu1 %8521, %v8327_v0   ;;  %5587 = vperm.xlu0 %8520, %v8296_v53   ;;  %v8391_v53 = vld [vmem:[%s15535_s0 + $0x174] sm:$0xff] }
 0x7f4   :  { %v5790_v23 = vpop.permute.xlu2 %5789 }
 0x7f5   :  { %v5896_v25 = vmul.f32 %v13472_v54, %v5790_v23  ;;  %v6274_v51 = vpop.permute.xlu1 %6273  ;;  %v6022_v47 = vpop.permute.xlu0 %6021 }
 0x7f6   :  { %v6404_v22 = vmul.f32 %v13767_v26, %v6274_v51  ;;  %v6148_v19 = vmul.f32 %v13526_v61, %v6022_v47  ;;  %v8360_v51 = vld [vmem:[%s15535_s0 + $0x183] sm:$0xff] }
 0x7f7   :  { %v13973_v36 = vadd.f32 %v5896_v25, %v13512_v59  ;;  %v8329_v47 = vld [vmem:[%s15535_s0 + $0x18a] sm:$0xff] }
 0x7f8   :  { %v13978_v34 = vadd.f32 %v6404_v22, %v6179_v11  ;;  %v6180_v17 = vadd.f32 %v6148_v19, %v13833_v28 }
 0x7fa   :  { %16673 = vst [vmem:[#allocation111_spill] sm:$0xff] %v13978_v34  ;;  %5844 = vperm.xlu2 %8522, %v8328_v43   ;;  %v16753_v34 = vld [vmem:[#allocation14_spill] sm:$0xff] }
 0x7fb   :  { %5592 = vperm.xlu1 %8521, %v8297_v18   ;;  %6343 = vperm.xlu0 %8520, %v8389_v12   ;;  %v8361_v12 = vld [vmem:[%s15535_s0 + $0x18b] sm:$0xff] }
 0x7fc   :  { %v5795_v59 = vpop.permute.xlu2 %5794 }
 0x7fd   :  { %v5897_v48 = vmul.f32 %v13472_v54, %v5795_v59  ;;  %v6279_v63 = vpop.permute.xlu1 %6278  ;;  %v6027_v7 = vpop.permute.xlu0 %6026 }
 0x7fe   :  { %v6405_v13 = vmul.f32 %v13767_v26, %v6279_v63  ;;  %v6149_v28 = vmul.f32 %v13526_v61, %v6027_v7  ;;  %v8330_v63 = vld [vmem:[%s15535_s0 + $0x19a] sm:$0xff] }
 0x7ff   :  { %v13991_v4 = vadd.f32 %v5897_v48, %v13323_v2  ;;  %v8299_v7 = vld [vmem:[%s15535_s0 + $0x1a1] sm:$0xff] }
 0x800   :  { %v13996_v30 = vadd.f32 %v6405_v13, %v6180_v17  ;;  %v6181_v44 = vadd.f32 %v6149_v28, %v13874_v39  ;;  %v16677_v13 = vld [vmem:[#allocation19_spill] sm:$0xff] }
 0x802   :  { %16674 = vst [vmem:[#allocation114_spill] sm:$0xff] %v13996_v30  ;;  %5597 = vperm.xlu2 %8522, %v8298_v29   ;;  %v16749_v30 = vld [vmem:[#allocation367_spill] sm:$0xff] }
 0x803   :  { %6348 = vperm.xlu1 %8521, %v8390_v10   ;;  %6096 = vperm.xlu0 %8520, %v8359_v52   ;;  %v16680_v10 = vld [vmem:[#allocation570_spill] sm:$0xff] }
 0x804   :  { %v5800_v2 = vpop.permute.xlu2 %5799 }
 0x805   :  { %v5898_v32 = vmul.f32 %v13472_v54, %v5800_v2  ;;  %v6284_v37 = vpop.permute.xlu1 %6283  ;;  %v6032_v6 = vpop.permute.xlu0 %6031  ;;  %v16681_v2 = vld [vmem:[#allocation47_spill] sm:$0xff] }
 0x806   :  { %v6406_v11 = vmul.f32 %v13767_v26, %v6284_v37  ;;  %v6150_v39 = vmul.f32 %v13526_v61, %v6032_v6 }
 0x807   :  { %v14009_v0 = vadd.f32 %v5898_v32, %v13563_v16 }
 0x808   :  { %v14014_v23 = vadd.f32 %v6406_v11, %v6181_v44  ;;  %v6182_v25 = vadd.f32 %v6150_v39, %v13909_v35  ;;  %v16679_v44 = vld [vmem:[#allocation7_spill] sm:$0xff] }
 0x809   :  { %v249_v52 = vmul.f32 %v16680_v10, %v16679_v44 }
 0x80a   :  { %16675 = vst [vmem:[#allocation117_spill] sm:$0xff] %v14014_v23  ;;  %6353 = vperm.xlu2 %8522, %v8391_v53   ;;  %v16734_v23 = vld [vmem:[#allocation209_spill] sm:$0xff] }
 0x80b   :  { %6101 = vperm.xlu1 %8521, %v8360_v51   ;;  %5849 = vperm.xlu0 %8520, %v8329_v47   ;;  %v16683_v51 = vld [vmem:[#allocation66_spill] sm:$0xff]  ;;  %v16684_v47 = vld [vmem:[#allocation576_spill] sm:$0xff] }
 0x80c   :  { %v5805_v16 = vpop.permute.xlu2 %5804 }
 0x80d   :  { %v5899_v22 = vmul.f32 %v13472_v54, %v5805_v16  ;;  %v6289_v19 = vpop.permute.xlu1 %6288  ;;  %v6037_v43 = vpop.permute.xlu0 %6036  ;;  %v1020_v16 = vmul.f32 %v16684_v47, %v16683_v51 }
 0x80e   :  { %v6407_v17 = vmul.f32 %v13767_v26, %v6289_v19  ;;  %v6151_v35 = vmul.f32 %v13526_v61, %v6037_v43  ;;  %v8331_v43 = vld [vmem:[%s15535_s0 + $0x1a2] sm:$0xff] }
 0x80f   :  { %v14027_v18 = vadd.f32 %v5899_v22, %v13561_v45  ;;  %v16678_v45 = vld [vmem:[#allocation571_spill] sm:$0xff] }
 0x810   :  { %v14032_v59 = vadd.f32 %v6407_v17, %v6182_v25  ;;  %v6183_v48 = vadd.f32 %v6151_v35, %v13936_v15  ;;  %v506_v28 = vmul.f32 %v16678_v45, %v16677_v13  ;;  %v16682_v15 = vld [vmem:[#allocation579_spill] sm:$0xff]  ;;  %v16687_v13 = vld [vmem:[#allocation109_spill] sm:$0xff] }
 0x811   :  { %v763_v32 = vmul.f32 %v16682_v15, %v16681_v2  ;;  %v16685_v22 = vld [vmem:[#allocation103_spill] sm:$0xff]  ;;  %v16690_v2 = vld [vmem:[#allocation29_spill] sm:$0xff] }
 0x812   :  { %16676 = vst [vmem:[#allocation118_spill] sm:$0xff] %v14032_v59  ;;  %6106 = vperm.xlu2 %8522, %v8361_v12   ;;  %v538_v25 = vadd.f32 %v506_v28, %v249_v52  ;;  %v8300_v12 = vld [vmem:[%s15535_s0 + $0x1b1] sm:$0xff]  ;;  %v16689_v52 = vld [vmem:[#allocation143_spill] sm:$0xff] }
 0x813   :  { %5854 = vperm.xlu1 %8521, %v8330_v63   ;;  %5602 = vperm.xlu0 %8520, %v8299_v7   ;;  %v8392_v63 = vld [vmem:[%s15535_s0 + $0x184] sm:$0xff]  ;;  %v16688_v28 = vld [vmem:[#allocation26_spill] sm:$0xff] }
 0x814   :  { %v5810_v29 = vpop.permute.xlu2 %5809  ;;  %v795_v7 = vadd.f32 %v763_v32, %v538_v25 }
 0x815   :  { %v5900_v37 = vmul.f32 %v13472_v54, %v5810_v29  ;;  %v6294_v6 = vpop.permute.xlu1 %6293  ;;  %v6042_v11 = vpop.permute.xlu0 %6041  ;;  %v1277_v29 = vmul.f32 %v16688_v28, %v16687_v13 }
 0x816   :  { %v6408_v39 = vmul.f32 %v13767_v26, %v6294_v6  ;;  %v6152_v53 = vmul.f32 %v13526_v61, %v6042_v11  ;;  %v1052_v44 = vadd.f32 %v1020_v16, %v795_v7  ;;  %v16691_v6 = vld [vmem:[#allocation162_spill] sm:$0xff]  ;;  %v16693_v16 = vld [vmem:[#allocation205_spill] sm:$0xff]  ;;  %v16694_v7 = vld [vmem:[#allocation40_spill] sm:$0xff] }
 0x817   :  { %v14053_v19 = vadd.f32 %v5900_v37, %v16685_v22  ;;  %v16692_v11 = vld [vmem:[#allocation34_spill] sm:$0xff]  ;;  %v2048_v13 = vmul.f32 %v16694_v7, %v16693_v16 }
 0x818   :  { %v14058_v17 = vadd.f32 %v6408_v39, %v6183_v48  ;;  %v6184_v35 = vadd.f32 %v6152_v53, %v13955_v49  ;;  %v1534_v48 = vmul.f32 %v16690_v2, %v16689_v52  ;;  %v1309_v37 = vadd.f32 %v1277_v29, %v1052_v44  ;;  %v8393_v52 = vld [vmem:[%s15535_s0 + $0x18c] sm:$0xff] }
 0x819   :  { %v1791_v39 = vmul.f32 %v16692_v11, %v16691_v6 }
 0x81a   :  { %16686 = vst [vmem:[#allocation120_spill] sm:$0xff] %v14058_v17  ;;  %5859 = vperm.xlu2 %8522, %v8331_v43   ;;  %v1566_v43 = vadd.f32 %v1534_v48, %v1309_v37  ;;  %v8362_v48 = vld [vmem:[%s15535_s0 + $0x19b] sm:$0xff] }
 0x81b   :  { %5607 = vperm.xlu1 %8521, %v8300_v12   ;;  %6358 = vperm.xlu0 %8520, %v8392_v63   ;;  %v8301_v63 = vld [vmem:[%s15535_s0 + $0x1b9] sm:$0xff] }
 0x81c   :  { %v5815_v49 = vpop.permute.xlu2 %5814  ;;  %v16696_v37 = vld [vmem:[#allocation239_spill] sm:$0xff] }
 0x81d   :  { %v5901_v53 = vmul.f32 %v13472_v54, %v5815_v49  ;;  %v6299_v51 = vpop.permute.xlu1 %6298  ;;  %v6047_v22 = vpop.permute.xlu0 %6046  ;;  %v1823_v49 = vadd.f32 %v1791_v39, %v1566_v43 }
 0x81e   :  { %v6409_v32 = vmul.f32 %v13767_v26, %v6299_v51  ;;  %v6153_v25 = vmul.f32 %v13526_v61, %v6047_v22  ;;  %v16698_v51 = vld [vmem:[#allocation258_spill] sm:$0xff] }
 0x81f   :  { %v14079_v12 = vadd.f32 %v5901_v53, %v13616_v33  ;;  %v16697_v33 = vld [vmem:[#allocation48_spill] sm:$0xff]  ;;  %v2080_v53 = vadd.f32 %v2048_v13, %v1823_v49  ;;  %v16700_v13 = vld [vmem:[#allocation335_spill] sm:$0xff] }
 0x820   :  { %v14084_v29 = vadd.f32 %v6409_v32, %v6184_v35  ;;  %v6185_v44 = vadd.f32 %v6153_v25, %v13973_v36  ;;  %v2305_v6 = vmul.f32 %v16697_v33, %v16696_v37  ;;  %v2562_v35 = vmul.f32 %v16634_v14, %v16698_v51  ;;  %v16699_v32 = vld [vmem:[#allocation301_spill] sm:$0xff]  ;;  %v16702_v51 = vld [vmem:[#allocation354_spill] sm:$0xff] }
 0x821   :  { %v2820_v25 = vmul.f32 %v16619_v62, %v16699_v32  ;;  %v3077_v49 = vmul.f32 %v16624_v50, %v16700_v13  ;;  %v16704_v32 = vld [vmem:[#allocation431_spill] sm:$0xff] }
 0x822   :  { %16695 = vst [vmem:[#allocation121_spill] sm:$0xff] %v14084_v29  ;;  %5612 = vperm.xlu2 %8522, %v8301_v63   ;;  %v2337_v22 = vadd.f32 %v2305_v6, %v2080_v53 }
 0x823   :  { %6363 = vperm.xlu1 %8521, %v8393_v52   ;;  %6111 = vperm.xlu0 %8520, %v8362_v48   ;;  %v8394_v48 = vld [vmem:[%s15535_s0 + $0x19c] sm:$0xff] }
 0x824   :  { %v5820_v36 = vpop.permute.xlu2 %5819  ;;  %v2594_v63 = vadd.f32 %v2562_v35, %v2337_v22 }
 0x825   :  { %v5902_v16 = vmul.f32 %v13472_v54, %v5820_v36  ;;  %v6304_v29 = vpop.permute.xlu1 %6303  ;;  %v6052_v17 = vpop.permute.xlu0 %6051  ;;  %v16703_v36 = vld [vmem:[#allocation397_spill] sm:$0xff] }
 0x826   :  { %v6410_v39 = vmul.f32 %v13767_v26, %v6304_v29  ;;  %v6154_v43 = vmul.f32 %v13526_v61, %v6052_v17  ;;  %v8363_v29 = vld [vmem:[%s15535_s0 + $0x1a3] sm:$0xff]  ;;  %v8332_v17 = vld [vmem:[%s15535_s0 + $0x1b2] sm:$0xff]  ;;  %v2852_v53 = vadd.f32 %v2820_v25, %v2594_v63 }
 0x827   :  { %v14105_v52 = vadd.f32 %v5902_v16, %v13614_v46  ;;  %v3334_v46 = vmul.f32 %v16604_v31, %v16702_v51  ;;  %v3848_v16 = vmul.f32 %v16600_v42, %v16704_v32  ;;  %v16706_v51 = vld [vmem:[#allocation104_spill] sm:$0xff] }
 0x828   :  { %v14110_v37 = vadd.f32 %v6410_v39, %v6185_v44  ;;  %v6186_v6 = vadd.f32 %v6154_v43, %v13991_v4  ;;  %v3109_v35 = vadd.f32 %v3077_v49, %v2852_v53  ;;  %v3591_v44 = vmul.f32 %v16614_v9, %v16703_v36  ;;  %v16705_v49 = vld [vmem:[#allocation450_spill] sm:$0xff] }
 0x829   :  { %v4106_v53 = vmul.f32 %v13172_v40, %v16705_v49  ;;  %v8333_v36 = vld [vmem:[%s15535_s0 + $0x1ba] sm:$0xff] }
 0x82a   :  { %16701 = vst [vmem:[#allocation122_spill] sm:$0xff] %v14110_v37  ;;  %6368 = vperm.xlu2 %8522, %v8394_v48   ;;  %v3366_v22 = vadd.f32 %v3334_v46, %v3109_v35 }
 0x82b   :  { %6116 = vperm.xlu1 %8521, %v8363_v29   ;;  %5864 = vperm.xlu0 %8520, %v8332_v17   ;;  %v8364_v17 = vld [vmem:[%s15535_s0 + $0x1b3] sm:$0xff] }
 0x82c   :  { %v5825_v4 = vpop.permute.xlu2 %5824  ;;  %v3623_v48 = vadd.f32 %v3591_v44, %v3366_v22  ;;  %v8302_v44 = vld [vmem:[%s15535_s0 + $0x1c9] sm:$0xff] }
 0x82d   :  { %v5903_v39 = vmul.f32 %v13472_v54, %v5825_v4  ;;  %v6309_v43 = vpop.permute.xlu1 %6308  ;;  %v6057_v13 = vpop.permute.xlu0 %6056  ;;  %v16708_v22 = vld [vmem:[#allocation493_spill] sm:$0xff] }
 0x82e   :  { %v6411_v25 = vmul.f32 %v13767_v26, %v6309_v43  ;;  %v6155_v63 = vmul.f32 %v13526_v61, %v6057_v13  ;;  %v3880_v4 = vadd.f32 %v3848_v16, %v3623_v48  ;;  %v4363_v32 = vmul.f32 %v13188_v38, %v16708_v22  ;;  %v16709_v43 = vld [vmem:[#allocation527_spill] sm:$0xff] }
 0x82f   :  { %v14131_v29 = vadd.f32 %v5903_v39, %v16706_v51 }
 0x830   :  { %v14136_v46 = vadd.f32 %v6411_v25, %v6186_v6  ;;  %v6187_v35 = vadd.f32 %v6155_v63, %v14009_v0  ;;  %v4138_v39 = vadd.f32 %v4106_v53, %v3880_v4  ;;  %v4620_v6 = vmul.f32 %v13209_v8, %v16709_v43  ;;  %v16710_v25 = vld [vmem:[#allocation546_spill] sm:$0xff] }
 0x831   :  { %v4877_v63 = vmul.f32 %v13224_v58, %v16710_v25  ;;  %v16711_v53 = vld [vmem:[#allocation30_spill] sm:$0xff]  ;;  %v16715_v25 = vld [vmem:[#allocation11_spill] sm:$0xff] }
 0x832   :  { %16707 = vst [vmem:[#allocation123_spill] sm:$0xff] %v14136_v46  ;;  %6121 = vperm.xlu2 %8522, %v8364_v17   ;;  %v4395_v13 = vadd.f32 %v4363_v32, %v4138_v39  ;;  %v5134_v4 = vmul.f32 %v13241_v27, %v16711_v53  ;;  %v8303_v39 = vld [vmem:[%s15535_s0 + $0x1d1] sm:$0xff] }
 0x833   :  { %5869 = vperm.xlu1 %8521, %v8333_v36   ;;  %5617 = vperm.xlu0 %8520, %v8302_v44   ;;  %v8334_v44 = vld [vmem:[%s15535_s0 + $0x1ca] sm:$0xff] }
 0x834   :  { %v5830_v0 = vpop.permute.xlu2 %5829  ;;  %v4652_v17 = vadd.f32 %v4620_v6, %v4395_v13  ;;  %v16713_v6 = vld [vmem:[#allocation84_spill] sm:$0xff] }
 0x835   :  { %v5904_v49 = vmul.f32 %v13472_v54, %v5830_v0  ;;  %v6314_v51 = vpop.permute.xlu1 %6313  ;;  %v6062_v46 = vpop.permute.xlu0 %6061  ;;  %v16714_v0 = vld [vmem:[#allocation16_spill] sm:$0xff] }
 0x836   :  { %v6412_v16 = vmul.f32 %v13767_v26, %v6314_v51  ;;  %v6156_v48 = vmul.f32 %v13526_v61, %v6062_v46  ;;  %v8395_v46 = vld [vmem:[%s15535_s0 + $0x1a4] sm:$0xff]  ;;  %v4909_v43 = vadd.f32 %v4877_v63, %v4652_v17  ;;  %v507_v13 = vmul.f32 %v16678_v45, %v16714_v0  ;;  %v16716_v51 = vld [vmem:[#allocation46_spill] sm:$0xff] }
 0x837   :  { %v14157_v36 = vadd.f32 %v5904_v49, %v13660_v5  ;;  %v5392_v5 = vmul.f32 %v13261_v41, %v16713_v6  ;;  %v250_v49 = vmul.f32 %v16680_v10, %v16715_v25 }
 0x838   :  { %v14162_v22 = vadd.f32 %v6412_v16, %v6187_v35  ;;  %v6188_v32 = vadd.f32 %v6156_v48, %v14027_v18  ;;  %v5166_v35 = vadd.f32 %v5134_v4, %v4909_v43  ;;  %v764_v16 = vmul.f32 %v16682_v15, %v16716_v51  ;;  %v16717_v4 = vld [vmem:[#allocation80_spill] sm:$0xff]  ;;  %v8335_v43 = vld [vmem:[%s15535_s0 + $0x1d2] sm:$0xff] }
 0x839   :  { %v539_v0 = vadd.f32 %v507_v13, %v250_v49  ;;  %v8365_v13 = vld [vmem:[%s15535_s0 + $0x1bb] sm:$0xff] }
 0x83a   :  { %16712 = vst [vmem:[#allocation124_spill] sm:$0xff] %v14162_v22  ;;  %5874 = vperm.xlu2 %8522, %v8334_v44   ;;  %v5424_v48 = vadd.f32 %v5392_v5, %v5166_v35  ;;  %v8396_v35 = vld [vmem:[%s15535_s0 + $0x1b4] sm:$0xff]  ;;  %v16719_v49 = vld [vmem:[#allocation99_spill] sm:$0xff] }
 0x83b   :  { %5622 = vperm.xlu1 %8521, %v8303_v39   ;;  %6373 = vperm.xlu0 %8520, %v8395_v46   ;;  %v1021_v39 = vmul.f32 %v16684_v47, %v16717_v4  ;;  %v1278_v51 = vmul.f32 %v16688_v28, %v16719_v49 }
 0x83c   :  { %v5583_v18 = vpop.permute.xlu2 %5582 }
 0x83d   :  { %v5649_v63 = vmul.f32 %v13295_v20, %v5583_v18  ;;  %v6319_v17 = vpop.permute.xlu1 %6318  ;;  %v6067_v53 = vpop.permute.xlu0 %6066  ;;  %v796_v18 = vadd.f32 %v764_v16, %v539_v0  ;;  %v16724_v0 = vld [vmem:[#allocation176_spill] sm:$0xff] }
 0x83e   :  { %v6413_v44 = vmul.f32 %v13767_v26, %v6319_v17  ;;  %v6157_v6 = vmul.f32 %v13526_v61, %v6067_v53  ;;  %v16721_v17 = vld [vmem:[#allocation142_spill] sm:$0xff]  ;;  %v1792_v49 = vmul.f32 %v16692_v11, %v16724_v0 }
 0x83f   :  { %v14184_v46 = vadd.f32 %v5649_v63, %v5424_v48  ;;  %v16720_v48 = vld [vmem:[#allocation21_spill] sm:$0xff]  ;;  %v16722_v53 = vld [vmem:[#allocation10_spill] sm:$0xff] }
 0x840   :  { %v14189_v25 = vadd.f32 %v6413_v44, %v6188_v32  ;;  %v6189_v5 = vadd.f32 %v6157_v6, %v14053_v19  ;;  %v508_v63 = vmul.f32 %v16678_v45, %v16720_v48  ;;  %v1053_v32 = vadd.f32 %v1021_v39, %v796_v18  ;;  %v16723_v6 = vld [vmem:[#allocation36_spill] sm:$0xff] }
 0x841   :  { %v1535_v19 = vmul.f32 %v16690_v2, %v16721_v17  ;;  %v251_v44 = vmul.f32 %v16680_v10, %v16722_v53  ;;  %v765_v4 = vmul.f32 %v16682_v15, %v16723_v6  ;;  %v16726_v17 = vld [vmem:[#allocation195_spill] sm:$0xff]  ;;  %v16727_v6 = vld [vmem:[#allocation113_spill] sm:$0xff] }
 0x842   :  { %16718 = vst [vmem:[#allocation125_spill] sm:$0xff] %v14189_v25  ;;  %5879 = vperm.xlu2 %8522, %v8335_v43   ;;  %v1310_v16 = vadd.f32 %v1278_v51, %v1053_v32  ;;  %v16725_v43 = vld [vmem:[#allocation79_spill] sm:$0xff]  ;;  %v2049_v53 = vmul.f32 %v16694_v7, %v16726_v17  ;;  %v8367_v51 = vld [vmem:[%s15535_s0 + $0x1d3] sm:$0xff]  ;;  %v1279_v0 = vmul.f32 %v16688_v28, %v16727_v6  ;;  %v16730_v17 = vld [vmem:[#allocation132_spill] sm:$0xff] }
 0x843   :  { %6378 = vperm.xlu1 %8521, %v8396_v35   ;;  %6126 = vperm.xlu0 %8520, %v8365_v13   ;;  %v540_v48 = vadd.f32 %v508_v63, %v251_v44  ;;  %v1022_v39 = vmul.f32 %v16684_v47, %v16725_v43  ;;  %v1536_v6 = vmul.f32 %v16690_v2, %v16730_v17  ;;  %v8399_v17 = vld [vmem:[%s15535_s0 + $0x1d4] sm:$0xff] }
 0x844   :  { %v1567_v13 = vadd.f32 %v1535_v19, %v1310_v16  ;;  %v6339_v63 = vpop.permute.xlu2 %6338  ;;  %v16729_v16 = vld [vmem:[#allocation238_spill] sm:$0xff] }
 0x845   :  { %v6324_v25 = vpop.permute.xlu1 %6323  ;;  %v6072_v22 = vpop.permute.xlu0 %6071  ;;  %v797_v32 = vadd.f32 %v765_v4, %v540_v48  ;;  %v2306_v4 = vmul.f32 %v16697_v33, %v16729_v16 }
 0x846   :  { %v6414_v18 = vmul.f32 %v13767_v26, %v6324_v25  ;;  %v6158_v35 = vmul.f32 %v13526_v61, %v6072_v22  ;;  %v8397_v22 = vld [vmem:[%s15535_s0 + $0x1bc] sm:$0xff]  ;;  %v8366_v25 = vld [vmem:[%s15535_s0 + $0x1cb] sm:$0xff]  ;;  %v1824_v19 = vadd.f32 %v1792_v49, %v1567_v13 }
 0x847   :  { %v1054_v48 = vadd.f32 %v1022_v39, %v797_v32  ;;  %v16733_v49 = vld [vmem:[#allocation291_spill] sm:$0xff] }
 0x848   :  { %v14221_v44 = vadd.f32 %v6414_v18, %v6189_v5  ;;  %v6190_v43 = vadd.f32 %v6158_v35, %v14079_v12  ;;  %v2081_v5 = vadd.f32 %v2049_v53, %v1824_v19  ;;  %v16731_v18 = vld [vmem:[#allocation272_spill] sm:$0xff]  ;;  %v2821_v13 = vmul.f32 %v16619_v62, %v16733_v49 }
 0x849   :  { %v2563_v12 = vmul.f32 %v16634_v14, %v16731_v18  ;;  %v1311_v35 = vadd.f32 %v1279_v0, %v1054_v48  ;;  %v16738_v18 = vld [vmem:[#allocation368_spill] sm:$0xff] }
 0x84a   :  { %16728 = vst [vmem:[#allocation126_spill] sm:$0xff] %v14221_v44  ;;  %6136 = vperm.xlu2 %8522, %v8367_v51   ;;  %v16732_v44 = vld [vmem:[#allocation175_spill] sm:$0xff]  ;;  %v2338_v59 = vadd.f32 %v2306_v4, %v2081_v5  ;;  %v2050_v51 = vmul.f32 %v16694_v7, %v16734_v23  ;;  %v8398_v23 = vld [vmem:[%s15535_s0 + $0x1cc] sm:$0xff] }
 0x84b   :  { %6383 = vperm.xlu1 %8521, %v8397_v22   ;;  %6131 = vperm.xlu0 %8520, %v8366_v25   ;;  %v1793_v37 = vmul.f32 %v16692_v11, %v16732_v44  ;;  %v1568_v32 = vadd.f32 %v1536_v6, %v1311_v35  ;;  %v16735_v25 = vld [vmem:[#allocation334_spill] sm:$0xff]  ;;  %v16737_v6 = vld [vmem:[#allocation228_spill] sm:$0xff]  ;;  %v16739_v35 = vld [vmem:[#allocation271_spill] sm:$0xff] }
 0x84c   :  { %v2595_v22 = vadd.f32 %v2563_v12, %v2338_v59  ;;  %v3078_v0 = vmul.f32 %v16624_v50, %v16735_v25  ;;  %v2307_v5 = vmul.f32 %v16697_v33, %v16737_v6  ;;  %v3335_v12 = vmul.f32 %v16604_v31, %v16738_v18 }
 0x84d   :  { %v6329_v16 = vpop.permute.xlu1 %6328  ;;  %v6077_v39 = vpop.permute.xlu0 %6076  ;;  %v1825_v48 = vadd.f32 %v1793_v37, %v1568_v32 }
 0x84e   :  { %v6415_v53 = vmul.f32 %v13767_v26, %v6329_v16  ;;  %v6159_v19 = vmul.f32 %v13526_v61, %v6077_v39  ;;  %v2853_v59 = vadd.f32 %v2821_v13, %v2595_v22  ;;  %v16740_v16 = vld [vmem:[#allocation387_spill] sm:$0xff]  ;;  %v16742_v13 = vld [vmem:[#allocation430_spill] sm:$0xff] }
 0x84f   :  { %v2082_v37 = vadd.f32 %v2050_v51, %v1825_v48  ;;  %v3592_v39 = vmul.f32 %v16614_v9, %v16740_v16  ;;  %v3849_v22 = vmul.f32 %v16600_v42, %v16742_v13  ;;  %v16743_v48 = vld [vmem:[#allocation8_spill] sm:$0xff] }
 0x850   :  { %v14246_v44 = vadd.f32 %v6415_v53, %v6190_v43  ;;  %v6191_v4 = vadd.f32 %v6159_v19, %v14105_v52  ;;  %v6092_v43 = vpop.permute.xlu2 %6091  ;;  %v2564_v52 = vmul.f32 %v16634_v14, %v16739_v35  ;;  %v3110_v49 = vadd.f32 %v3078_v0, %v2853_v59  ;;  %v16741_v53 = vld [vmem:[#allocation305_spill] sm:$0xff] }
 0x851   :  { %v2339_v32 = vadd.f32 %v2307_v5, %v2082_v37  ;;  %v2822_v19 = vmul.f32 %v16619_v62, %v16741_v53  ;;  %v252_v18 = vmul.f32 %v16680_v10, %v16743_v48  ;;  %v16744_v35 = vld [vmem:[#allocation9_spill] sm:$0xff]  ;;  %v16745_v5 = vld [vmem:[#allocation324_spill] sm:$0xff]  ;;  %v6417_v48 = vmul.f32 %v13767_v26, %v6339_v63 }
 0x852   :  { %16736 = vst [vmem:[#allocation127_spill] sm:$0xff] %v14246_v44  ;;  %v3367_v25 = vadd.f32 %v3335_v12, %v3110_v49  ;;  %v255_v0 = vmul.f32 %v16680_v10, %v16744_v35  ;;  %v3079_v37 = vmul.f32 %v16624_v50, %v16745_v5  ;;  %v16746_v49 = vld [vmem:[#allocation464_spill] sm:$0xff]  ;;  %v16747_v53 = vld [vmem:[#allocation17_spill] sm:$0xff] }
 0x853   :  { %6393 = vperm.xlu1 %8521, %v8399_v17   ;;  %6388 = vperm.xlu0 %8520, %v8398_v23   ;;  %v2596_v23 = vadd.f32 %v2564_v52, %v2339_v32  ;;  %v4107_v16 = vmul.f32 %v13172_v40, %v16746_v49  ;;  %v510_v13 = vmul.f32 %v16678_v45, %v16747_v53  ;;  %v16752_v49 = vld [vmem:[#allocation13_spill] sm:$0xff] }
 0x854   :  { %v3624_v12 = vadd.f32 %v3592_v39, %v3367_v25  ;;  %v3336_v52 = vmul.f32 %v16604_v31, %v16749_v30  ;;  %v16751_v25 = vld [vmem:[#allocation12_spill] sm:$0xff]  ;;  %v253_v53 = vmul.f32 %v16680_v10, %v16752_v49 }
 0x855   :  { %v6334_v6 = vpop.permute.xlu1 %6333  ;;  %v6082_v51 = vpop.permute.xlu0 %6081  ;;  %v254_v5 = vmul.f32 %v16680_v10, %v16751_v25  ;;  %v16759_v49 = vld [vmem:[#allocation20_spill] sm:$0xff] }
 0x856   :  { %v6416_v59 = vmul.f32 %v13767_v26, %v6334_v6  ;;  %v6160_v17 = vmul.f32 %v13526_v61, %v6082_v51  ;;  %v2854_v6 = vadd.f32 %v2822_v19, %v2596_v23  ;;  %v3881_v32 = vadd.f32 %v3849_v22, %v3624_v12  ;;  %v16750_v51 = vld [vmem:[#allocation483_spill] sm:$0xff]  ;;  %v16756_v22 = vld [vmem:[#allocation526_spill] sm:$0xff] }
 0x857   :  { %v4364_v39 = vmul.f32 %v13188_v38, %v16750_v51  ;;  %v257_v26 = vmul.f32 %v16680_v10, %v16753_v34  ;;  %v14301_v12 = vadd.f32 %v510_v13, %v253_v53  ;;  %v16758_v51 = vld [vmem:[#allocation18_spill] sm:$0xff]  ;;  %v509_v34 = vmul.f32 %v16678_v45, %v16759_v49  ;;  %v16763_v53 = vld [vmem:[#allocation560_spill] sm:$0xff] }
 0x858   :  { %v14280_v44 = vadd.f32 %v6416_v59, %v6191_v4  ;;  %v6192_v35 = vadd.f32 %v6160_v17, %v14131_v29  ;;  %v3111_v29 = vadd.f32 %v3079_v37, %v2854_v6  ;;  %v16755_v4 = vld [vmem:[#allocation401_spill] sm:$0xff]  ;;  %v4139_v30 = vadd.f32 %v4107_v16, %v3881_v32  ;;  %v16757_v17 = vld [vmem:[#allocation15_spill] sm:$0xff]  ;;  %v16760_v37 = vld [vmem:[#allocation22_spill] sm:$0xff] }
 0x859   :  { %v3593_v19 = vmul.f32 %v16614_v9, %v16755_v4  ;;  %v4621_v59 = vmul.f32 %v13209_v8, %v16756_v22  ;;  %v256_v23 = vmul.f32 %v16680_v10, %v16757_v17  ;;  %v513_v25 = vmul.f32 %v16678_v45, %v16758_v51  ;;  %v16761_v16 = vld [vmem:[#allocation420_spill] sm:$0xff]  ;;  %v16762_v10 = vld [vmem:[#allocation23_spill] sm:$0xff] }
 0x85a   :  { %16748 = vst [vmem:[#allocation128_spill] sm:$0xff] %v14280_v44  ;;  %v14293_v63 = vadd.f32 %v6417_v48, %v6192_v35  ;;  %v5845_v48 = vpop.permute.xlu2 %5844  ;;  %v512_v35 = vmul.f32 %v16678_v45, %v16760_v37  ;;  %v3368_v6 = vadd.f32 %v3336_v52, %v3111_v29  ;;  %v3850_v32 = vmul.f32 %v16600_v42, %v16761_v16  ;;  %v16764_v44 = vld [vmem:[#allocation24_spill] sm:$0xff]  ;;  %v16765_v29 = vld [vmem:[#allocation463_spill] sm:$0xff] }
 0x85b   :  { %v4396_v4 = vadd.f32 %v4364_v39, %v4139_v30  ;;  %v511_v13 = vmul.f32 %v16678_v45, %v16762_v10  ;;  %v4878_v17 = vmul.f32 %v13224_v58, %v16763_v53  ;;  %v514_v37 = vmul.f32 %v16678_v45, %v16764_v44  ;;  %v16766_v30 = vld [vmem:[#allocation575_spill] sm:$0xff] }
 0x85c   :  { %16754 = vst [vmem:[#allocation129_spill] sm:$0xff] %v14293_v63  ;;  %v3625_v52 = vadd.f32 %v3593_v19, %v3368_v6  ;;  %v4108_v16 = vmul.f32 %v13172_v40, %v16765_v29  ;;  %v5135_v42 = vmul.f32 %v13241_v27, %v16766_v30  ;;  %v6162_v10 = vmul.f32 %v13526_v61, %v6092_v43  ;;  %v16768_v6 = vld [vmem:[#allocation81_spill] sm:$0xff] }
 0x85d   :  { %v6087_v22 = vpop.permute.xlu1 %6086  ;;  %v5835_v63 = vpop.permute.xlu0 %5834  ;;  %v4653_v39 = vadd.f32 %v4621_v59, %v4396_v4  ;;  %v545_v53 = vadd.f32 %v513_v25, %v256_v23  ;;  %v4365_v45 = vmul.f32 %v13188_v38, %v16767_v56  ;;  %v544_v44 = vadd.f32 %v512_v35, %v255_v0  ;;  %v16772_v23 = vld [vmem:[#allocation42_spill] sm:$0xff]  ;;  %v16773_v56 = vld [vmem:[#allocation49_spill] sm:$0xff] }
 0x85e   :  { %v6161_v51 = vmul.f32 %v13526_v61, %v6087_v22  ;;  %v5905_v49 = vmul.f32 %v13472_v54, %v5835_v63  ;;  %v541_v63 = vadd.f32 %v509_v34, %v252_v18  ;;  %v3882_v31 = vadd.f32 %v3850_v32, %v3625_v52  ;;  %v16774_v35 = vld [vmem:[#allocation50_spill] sm:$0xff]  ;;  %v16777_v52 = vld [vmem:[#allocation559_spill] sm:$0xff] }
 0x85f   :  { %v4910_v19 = vadd.f32 %v4878_v17, %v4653_v39  ;;  %v5393_v59 = vmul.f32 %v13261_v41, %v16768_v6  ;;  %v543_v29 = vadd.f32 %v511_v13, %v254_v5  ;;  %v546_v43 = vadd.f32 %v514_v37, %v257_v26  ;;  %v16775_v17 = vld [vmem:[#allocation52_spill] sm:$0xff] }
 0x860   :  { %v14325_v9 = vadd.f32 %v6161_v51, %v14157_v36  ;;  %v5937_v22 = vadd.f32 %v5905_v49, %v13658_v24  ;;  %v4140_v30 = vadd.f32 %v4108_v16, %v3882_v31  ;;  %v16770_v36 = vld [vmem:[#allocation516_spill] sm:$0xff]  ;;  %v16771_v24 = vld [vmem:[#allocation39_spill] sm:$0xff]  ;;  %v771_v25 = vmul.f32 %v16682_v15, %v16772_v23  ;;  %v16776_v31 = vld [vmem:[#allocation53_spill] sm:$0xff] }
 0x861   :  { %v4622_v51 = vmul.f32 %v13209_v8, %v16770_v36  ;;  %v768_v18 = vmul.f32 %v16682_v15, %v16771_v24  ;;  %v767_v0 = vmul.f32 %v16682_v15, %v16773_v56  ;;  %v5167_v34 = vadd.f32 %v5135_v42, %v4910_v19  ;;  %v16778_v19 = vld [vmem:[#allocation69_spill] sm:$0xff]  ;;  %v16779_v36 = vld [vmem:[#allocation72_spill] sm:$0xff] }
 0x862   :  { %v14332_v4 = vadd.f32 %v6162_v10, %v5937_v22  ;;  %v766_v32 = vmul.f32 %v16682_v15, %v16774_v35  ;;  %v770_v5 = vmul.f32 %v16682_v15, %v16775_v17  ;;  %v769_v26 = vmul.f32 %v16682_v15, %v16776_v31  ;;  %v14350_v10 = vpop.permute.xlu2 %5597  ;;  %v16780_v15 = vld [vmem:[#allocation82_spill] sm:$0xff]  ;;  %v16781_v23 = vld [vmem:[#allocation33_spill] sm:$0xff] }
 0x863   :  { %v4397_v13 = vadd.f32 %v4365_v45, %v4140_v30  ;;  %v4879_v16 = vmul.f32 %v13224_v58, %v16777_v52  ;;  %v5425_v39 = vadd.f32 %v5393_v59, %v5167_v34  ;;  %v1023_v6 = vmul.f32 %v16684_v47, %v16778_v19 }
 0x864   :  { %16769 = vst [vmem:[#allocation130_spill] sm:$0xff] %v14332_v4  ;;  %v1026_v24 = vmul.f32 %v16684_v47, %v16779_v36  ;;  %v1025_v45 = vmul.f32 %v16684_v47, %v16780_v15  ;;  %v5136_v56 = vmul.f32 %v13241_v27, %v16781_v23  ;;  %v5907_v59 = vmul.f32 %v13472_v54, %v5845_v48  ;;  %v16783_v4 = vld [vmem:[#allocation67_spill] sm:$0xff] }
 0x865   :  { %v5840_v49 = vpop.permute.xlu1 %5839  ;;  %v5588_v37 = vpop.permute.xlu0 %5587  ;;  %v4654_v30 = vadd.f32 %v4622_v51, %v4397_v13  ;;  %v800_v17 = vadd.f32 %v768_v18, %v543_v29  ;;  %v803_v31 = vadd.f32 %v771_v25, %v546_v43  ;;  %v801_v19 = vadd.f32 %v769_v26, %v544_v44 }
 0x866   :  { %v5906_v42 = vmul.f32 %v13472_v54, %v5840_v49  ;;  %v5650_v22 = vmul.f32 %v13295_v20, %v5588_v37  ;;  %v798_v49 = vadd.f32 %v766_v32, %v541_v63  ;;  %v16782_v37 = vld [vmem:[#allocation83_spill] sm:$0xff]  ;;  %v5394_v51 = vmul.f32 %v13261_v41, %v16783_v4  ;;  %v16785_v63 = vld [vmem:[#allocation86_spill] sm:$0xff]  ;;  %v16787_v4 = vld [vmem:[#allocation105_spill] sm:$0xff] }
 0x867   :  { %v1024_v52 = vmul.f32 %v16684_v47, %v16782_v37  ;;  %v4911_v36 = vadd.f32 %v4879_v16, %v4654_v30  ;;  %v799_v15 = vadd.f32 %v767_v0, %v14301_v12  ;;  %v802_v48 = vadd.f32 %v770_v5, %v545_v53  ;;  %v16786_v32 = vld [vmem:[#allocation102_spill] sm:$0xff]  ;;  %v16789_v5 = vld [vmem:[#allocation119_spill] sm:$0xff] }
 0x868   :  { %v14364_v34 = vadd.f32 %v5906_v42, %v14184_v46  ;;  %v5682_v35 = vadd.f32 %v5650_v22, %v5425_v39  ;;  %v1055_v23 = vadd.f32 %v1023_v6, %v798_v49  ;;  %v16784_v46 = vld [vmem:[#allocation85_spill] sm:$0xff]  ;;  %v1058_v29 = vadd.f32 %v1026_v24, %v801_v19  ;;  %v16788_v42 = vld [vmem:[#allocation116_spill] sm:$0xff]  ;;  %v16792_v49 = vld [vmem:[#allocation135_spill] sm:$0xff] }
 0x869   :  { %v1028_v39 = vmul.f32 %v16684_v47, %v16784_v46  ;;  %v1057_v43 = vadd.f32 %v1025_v45, %v800_v17  ;;  %v1027_v18 = vmul.f32 %v16684_v47, %v16785_v63  ;;  %v5168_v25 = vadd.f32 %v5136_v56, %v4911_v36  ;;  %v14389_v47 = vld [vmem:[%s15536_s2 + $0x18] ss:$0 sm:$0xff]  ;;  %v16790_v56 = vld [vmem:[#allocation112_spill] sm:$0xff] }
 0x86a   :  { %v14370_v13 = vadd.f32 %v5907_v59, %v5682_v35  ;;  %v1056_v44 = vadd.f32 %v1024_v52, %v799_v15  ;;  %v1281_v26 = vmul.f32 %v16688_v28, %v16786_v32  ;;  %v1284_v16 = vmul.f32 %v16688_v28, %v16787_v4  ;;  %v16791_v35 = vld [vmem:[#allocation115_spill] sm:$0xff]  ;;  %v16793_v19 = vld [vmem:[#allocation138_spill] sm:$0xff]  ;;  %v16796_v32 = vld [vmem:[#allocation148_spill] sm:$0xff] }
 0x86b   :  { %v1282_v12 = vmul.f32 %v16688_v28, %v16788_v42  ;;  %v1285_v22 = vmul.f32 %v16688_v28, %v16789_v5  ;;  %v5426_v6 = vadd.f32 %v5394_v51, %v5168_v25  ;;  %v1060_v30 = vadd.f32 %v1028_v39, %v803_v31  ;;  %v14400_v51 = vpop.permute.xlu2 %6353  ;;  %v16794_v39 = vld [vmem:[#allocation145_spill] sm:$0xff]  ;;  %v16795_v25 = vld [vmem:[#allocation146_spill] sm:$0xff] }
 0x86c   :  { %v1280_v59 = vmul.f32 %v16688_v28, %v16790_v56  ;;  %v1283_v17 = vmul.f32 %v16688_v28, %v16791_v35  ;;  %v1539_v37 = vmul.f32 %v16690_v2, %v16792_v49  ;;  %v1059_v52 = vadd.f32 %v1027_v18, %v802_v48  ;;  %v16800_v35 = vld [vmem:[#allocation179_spill] sm:$0xff] }
 0x86d   :  { %v5593_v53 = vpop.permute.xlu1 %5592  ;;  %v6344_v0 = vpop.permute.xlu0 %6343  ;;  %v1542_v36 = vmul.f32 %v16690_v2, %v16793_v19  ;;  %v1314_v31 = vadd.f32 %v1282_v12, %v1057_v43  ;;  %v1538_v63 = vmul.f32 %v16690_v2, %v16794_v39  ;;  %v1537_v28 = vmul.f32 %v16690_v2, %v16795_v25  ;;  %v16798_v43 = vld [vmem:[#allocation165_spill] sm:$0xff]  ;;  %v16806_v25 = vld [vmem:[#allocation208_spill] sm:$0xff] }
 0x86e   :  { %v5651_v24 = vmul.f32 %v13295_v20, %v5593_v53  ;;  %v6418_v45 = vmul.f32 %v14389_v47, %v6344_v0  ;;  %v1541_v48 = vmul.f32 %v16690_v2, %v16796_v32  ;;  %v1313_v18 = vadd.f32 %v1281_v26, %v1056_v44  ;;  %v16805_v39 = vld [vmem:[#allocation201_spill] sm:$0xff]  ;;  %v16807_v32 = vld [vmem:[#allocation212_spill] sm:$0xff] }
 0x86f   :  { %v1316_v4 = vadd.f32 %v1284_v16, %v1059_v52  ;;  %v1317_v42 = vadd.f32 %v1285_v22, %v1060_v30  ;;  %v1312_v53 = vadd.f32 %v1280_v59, %v1055_v23  ;;  %v1315_v0 = vadd.f32 %v1283_v17, %v1058_v29  ;;  %v16801_v16 = vld [vmem:[#allocation182_spill] sm:$0xff]  ;;  %v16803_v59 = vld [vmem:[#allocation181_spill] sm:$0xff] }
 0x870   :  { %v14402_v15 = vadd.f32 %v5651_v24, %v5426_v6  ;;  %v14405_v46 = vadd.f32 %v6418_v45, %v14325_v9  ;;  %v1571_v5 = vadd.f32 %v1539_v37, %v1314_v31  ;;  %v16797_v6 = vld [vmem:[#allocation149_spill] sm:$0xff]  ;;  %v1794_v12 = vmul.f32 %v16692_v11, %v16798_v43  ;;  %v16799_v45 = vld [vmem:[#allocation178_spill] sm:$0xff] }
 0x871   :  { %v1540_v9 = vmul.f32 %v16690_v2, %v16797_v6  ;;  %v1574_v24 = vadd.f32 %v1542_v36, %v1317_v42  ;;  %v1796_v56 = vmul.f32 %v16692_v11, %v16799_v45  ;;  %v1795_v49 = vmul.f32 %v16692_v11, %v16800_v35  ;;  %v16802_v2 = vld [vmem:[#allocation168_spill] sm:$0xff]  ;;  %v16804_v37 = vld [vmem:[#allocation198_spill] sm:$0xff]  ;;  %v16808_v6 = vld [vmem:[#allocation211_spill] sm:$0xff] }
 0x872   :  { %v1570_v19 = vadd.f32 %v1538_v63, %v1313_v18  ;;  %v1569_v44 = vadd.f32 %v1537_v28, %v1312_v53  ;;  %v1573_v26 = vadd.f32 %v1541_v48, %v1316_v4  ;;  %v1798_v23 = vmul.f32 %v16692_v11, %v16801_v16 }
 0x873   :  { %v1797_v30 = vmul.f32 %v16692_v11, %v16802_v2  ;;  %v1799_v17 = vmul.f32 %v16692_v11, %v16803_v59  ;;  %v2052_v52 = vmul.f32 %v16694_v7, %v16804_v37  ;;  %v1572_v31 = vadd.f32 %v1540_v9, %v1315_v0  ;;  %v16809_v0 = vld [vmem:[#allocation215_spill] sm:$0xff]  ;;  %v16814_v37 = vld [vmem:[#allocation241_spill] sm:$0xff] }
 0x874   :  { %v2055_v63 = vmul.f32 %v16694_v7, %v16805_v39  ;;  %v2051_v28 = vmul.f32 %v16694_v7, %v16806_v25  ;;  %v2053_v48 = vmul.f32 %v16694_v7, %v16807_v32  ;;  %v1826_v18 = vadd.f32 %v1794_v12, %v1569_v44  ;;  %v14447_v12 = vpop.permute.xlu2 %6106  ;;  %v16812_v44 = vld [vmem:[#allocation242_spill] sm:$0xff] }
 0x875   :  { %v14423_v29 = vpop.permute.xlu1 %6348  ;;  %v6097_v22 = vpop.permute.xlu0 %6096  ;;  %v1828_v4 = vadd.f32 %v1796_v56, %v1571_v5  ;;  %v1827_v42 = vadd.f32 %v1795_v49, %v1570_v19  ;;  %v1830_v53 = vadd.f32 %v1798_v23, %v1573_v26  ;;  %v2054_v43 = vmul.f32 %v16694_v7, %v16808_v6  ;;  %v16811_v49 = vld [vmem:[#allocation234_spill] sm:$0xff]  ;;  %v16813_v23 = vld [vmem:[#allocation245_spill] sm:$0xff] }
 0x876   :  { %v6163_v36 = vmul.f32 %v13526_v61, %v6097_v22  ;;  %v2056_v9 = vmul.f32 %v16694_v7, %v16809_v0  ;;  %v1829_v45 = vadd.f32 %v1797_v30, %v1572_v31  ;;  %v1831_v35 = vadd.f32 %v1799_v17, %v1574_v24  ;;  %v16810_v22 = vld [vmem:[#allocation231_spill] sm:$0xff] }
 0x877   :  { %v2084_v16 = vadd.f32 %v2052_v52, %v1827_v42  ;;  %v2310_v2 = vmul.f32 %v16697_v33, %v16810_v22  ;;  %v2087_v5 = vadd.f32 %v2055_v63, %v1830_v53  ;;  %v2083_v56 = vadd.f32 %v2051_v28, %v1826_v18  ;;  %v16816_v28 = vld [vmem:[#allocation261_spill] sm:$0xff]  ;;  %v16818_v53 = vld [vmem:[#allocation274_spill] sm:$0xff] }
 0x878   :  { %v14439_v11 = vadd.f32 %v6163_v36, %v14364_v34  ;;  %v2085_v34 = vadd.f32 %v2053_v48, %v1828_v4  ;;  %v2313_v19 = vmul.f32 %v16697_v33, %v16811_v49  ;;  %v2308_v26 = vmul.f32 %v16697_v33, %v16812_v44  ;;  %v16815_v36 = vld [vmem:[#allocation244_spill] sm:$0xff]  ;;  %v16821_v44 = vld [vmem:[#allocation278_spill] sm:$0xff] }
 0x879   :  { %v2311_v7 = vmul.f32 %v16697_v33, %v16813_v23  ;;  %v6465_v24 = vsel %vm6463_vm0, %v13794_v1, 0.0  ;;  %v6464_v30 = vsel %vm6463_vm0, %v13797_v21, 0.0  ;;  %v2086_v59 = vadd.f32 %v2054_v43, %v1829_v45  ;;  %v16817_v48 = vld [vmem:[#allocation264_spill] sm:$0xff]  ;;  %v16819_v43 = vld [vmem:[#allocation275_spill] sm:$0xff] }
 0x87a   :  { %v2088_v17 = vadd.f32 %v2056_v9, %v1831_v35  ;;  %v2309_v52 = vmul.f32 %v16697_v33, %v16814_v37  ;;  %v2312_v31 = vmul.f32 %v16697_v33, %v16815_v36  ;;  %v2342_v25 = vadd.f32 %v2310_v2, %v2085_v34  ;;  %v16820_v35 = vld [vmem:[#allocation277_spill] sm:$0xff]  ;;  %v16822_v36 = vld [vmem:[#allocation294_spill] sm:$0xff] }
 0x87b   :  { %v2565_v32 = vmul.f32 %v16634_v14, %v16816_v28  ;;  %v2568_v18 = vmul.f32 %v16634_v14, %v16817_v48  ;;  %v6467_v4 = vsel %vm6463_vm0, %v13841_v60, 0.0  ;;  %v2567_v6 = vmul.f32 %v16634_v14, %v16818_v53  ;;  %v16827_v53 = vld [vmem:[#allocation307_spill] sm:$0xff] }
 0x87c   :  { %v2345_v42 = vadd.f32 %v2313_v19, %v2088_v17  ;;  %v2566_v33 = vmul.f32 %v16634_v14, %v16819_v43  ;;  %v6466_v0 = vadd.f32 %v6465_v24, %v6464_v30  ;;  %v2340_v9 = vadd.f32 %v2308_v26, %v2083_v56  ;;  %v16823_v24 = vld [vmem:[#allocation297_spill] sm:$0xff]  ;;  %v14495_v48 = vpop.permute.xlu2 %5859 }
 0x87d   :  { %v14463_v39 = vpop.permute.xlu1 %6101  ;;  %v14465_v63 = vpop.permute.xlu0 %5849  ;;  %v2343_v45 = vadd.f32 %v2311_v7, %v2086_v59  ;;  %v2570_v22 = vmul.f32 %v16634_v14, %v16820_v35  ;;  %v6469_v2 = vsel %vm6463_vm0, %v13881_v55, 0.0  ;;  %v2341_v34 = vadd.f32 %v2309_v52, %v2084_v16  ;;  %v16829_v35 = vld [vmem:[#allocation330_spill] sm:$0xff]  ;;  %v16855_v55 = vld [vmem:[#allocation92_spill] sm:$0xff] }
 0x87e   :  { %v2344_v49 = vadd.f32 %v2312_v31, %v2087_v5  ;;  %v2569_v19 = vmul.f32 %v16634_v14, %v16821_v44  ;;  %v6468_v23 = vadd.f32 %v6467_v4, %v6466_v0  ;;  %v2597_v17 = vadd.f32 %v2565_v32, %v2340_v9  ;;  %v16824_v5 = vld [vmem:[#allocation308_spill] sm:$0xff]  ;;  %v16825_v14 = vld [vmem:[#allocation311_spill] sm:$0xff]  ;;  %v16831_v44 = vld [vmem:[#allocation337_spill] sm:$0xff] }
 0x87f   :  { %v2600_v37 = vadd.f32 %v2568_v18, %v2343_v45  ;;  %v2824_v28 = vmul.f32 %v16619_v62, %v16822_v36  ;;  %v6471_v56 = vsel %vm6463_vm0, %v13914_v57, 0.0  ;;  %v2599_v26 = vadd.f32 %v2567_v6, %v2342_v25  ;;  %v16826_v4 = vld [vmem:[#allocation304_spill] sm:$0xff]  ;;  %v16828_v9 = vld [vmem:[#allocation327_spill] sm:$0xff] }
 0x880   :  { %v2598_v7 = vadd.f32 %v2566_v33, %v2341_v34  ;;  %v2827_v30 = vmul.f32 %v16619_v62, %v16823_v24  ;;  %v6470_v59 = vadd.f32 %v6469_v2, %v6468_v23  ;;  %v2602_v16 = vadd.f32 %v2570_v22, %v2345_v42  ;;  %v16830_v2 = vld [vmem:[#allocation110_spill] sm:$0xff]  ;;  %v16854_v57 = vld [vmem:[#allocation423_spill] sm:$0xff] }
 0x881   :  { %v2825_v52 = vmul.f32 %v16619_v62, %v16824_v5  ;;  %v2828_v31 = vmul.f32 %v16619_v62, %v16825_v14  ;;  %v6473_v32 = vsel %vm6463_vm0, %v13941_v3, 0.0  ;;  %v2601_v18 = vadd.f32 %v2569_v19, %v2344_v49 }
 0x882   :  { %v2823_v25 = vmul.f32 %v16619_v62, %v16826_v4  ;;  %v2826_v6 = vmul.f32 %v16619_v62, %v16827_v53  ;;  %v6472_v43 = vadd.f32 %v6471_v56, %v6470_v59  ;;  %v2856_v0 = vadd.f32 %v2824_v28, %v2598_v7  ;;  %v16832_v62 = vld [vmem:[#allocation338_spill] sm:$0xff]  ;;  %v16833_v28 = vld [vmem:[#allocation340_spill] sm:$0xff]  ;;  %v16834_v59 = vld [vmem:[#allocation111_spill] sm:$0xff] }
 0x883   :  { %v3082_v45 = vmul.f32 %v16624_v50, %v16828_v9  ;;  %v3085_v22 = vmul.f32 %v16624_v50, %v16829_v35  ;;  %v6475_v34 = vsel %vm6463_vm0, %v16830_v2, 0.0  ;;  %v2859_v49 = vadd.f32 %v2827_v30, %v2601_v18  ;;  %v16835_v53 = vld [vmem:[#allocation341_spill] sm:$0xff]  ;;  %v16837_v2 = vld [vmem:[#allocation75_spill] sm:$0xff] }
 0x884   :  { %v3081_v19 = vmul.f32 %v16624_v50, %v16831_v44  ;;  %v3080_v23 = vmul.f32 %v16624_v50, %v16832_v62  ;;  %v6474_v36 = vadd.f32 %v6473_v32, %v6472_v43  ;;  %v2857_v56 = vadd.f32 %v2825_v52, %v2599_v26  ;;  %v16836_v44 = vld [vmem:[#allocation357_spill] sm:$0xff]  ;;  %v16838_v32 = vld [vmem:[#allocation114_spill] sm:$0xff] }
 0x885   :  { %v14501_v42 = vpop.permute.xlu1 %5854  ;;  %v14503_v33 = vpop.permute.xlu0 %5602  ;;  %v2860_v24 = vadd.f32 %v2828_v31, %v2602_v16  ;;  %v3084_v7 = vmul.f32 %v16624_v50, %v16833_v28  ;;  %v6477_v5 = vsel %vm6463_vm0, %v16834_v59, 0.0  ;;  %v2855_v14 = vadd.f32 %v2823_v25, %v2597_v17  ;;  %v16839_v31 = vld [vmem:[#allocation360_spill] sm:$0xff]  ;;  %v16853_v59 = vld [vmem:[#allocation407_spill] sm:$0xff] }
 0x886   :  { %v2858_v4 = vadd.f32 %v2826_v6, %v2600_v37  ;;  %v3083_v30 = vmul.f32 %v16624_v50, %v16835_v53  ;;  %v6476_v18 = vadd.f32 %v6475_v34, %v6474_v36  ;;  %v3114_v9 = vadd.f32 %v3082_v45, %v2857_v56  ;;  %v16840_v37 = vld [vmem:[#allocation371_spill] sm:$0xff]  ;;  %v16841_v50 = vld [vmem:[#allocation374_spill] sm:$0xff]  ;;  %v16842_v45 = vld [vmem:[#allocation117_spill] sm:$0xff] }
 0x887   :  { %v3117_v35 = vadd.f32 %v3085_v22, %v2860_v24  ;;  %v3337_v62 = vmul.f32 %v16837_v2, %v16836_v44  ;;  %v6479_v26 = vsel %vm6463_vm0, %v16838_v32, 0.0  ;;  %v3113_v16 = vadd.f32 %v3081_v19, %v2856_v0  ;;  %v16843_v36 = vld [vmem:[#allocation370_spill] sm:$0xff]  ;;  %v16844_v0 = vld [vmem:[#allocation373_spill] sm:$0xff] }
 0x888   :  { %v3112_v52 = vadd.f32 %v3080_v23, %v2855_v14  ;;  %v3340_v43 = vmul.f32 %v16837_v2, %v16839_v31  ;;  %v6478_v28 = vadd.f32 %v6477_v5, %v6476_v18  ;;  %v3116_v17 = vadd.f32 %v3084_v7, %v2859_v49  ;;  %v16845_v5 = vld [vmem:[#allocation390_spill] sm:$0xff]  ;;  %v16846_v14 = vld [vmem:[#allocation87_spill] sm:$0xff]  ;;  %v16847_v18 = vld [vmem:[#allocation393_spill] sm:$0xff] }
 0x889   :  { %v3338_v25 = vmul.f32 %v16837_v2, %v16840_v37  ;;  %v3341_v6 = vmul.f32 %v16837_v2, %v16841_v50  ;;  %v6481_v22 = vsel %vm6463_vm0, %v16842_v45, 0.0  ;;  %v3115_v34 = vadd.f32 %v3083_v30, %v2858_v4  ;;  %v16848_v31 = vld [vmem:[#allocation118_spill] sm:$0xff]  ;;  %v14547_v30 = vpop.permute.xlu2 %5612  ;;  %v16849_v50 = vld [vmem:[#allocation400_spill] sm:$0xff] }
 0x88a   :  { %v3339_v56 = vmul.f32 %v16837_v2, %v16843_v36  ;;  %v3342_v19 = vmul.f32 %v16837_v2, %v16844_v0  ;;  %v6480_v23 = vadd.f32 %v6479_v26, %v6478_v28  ;;  %v3369_v7 = vadd.f32 %v3337_v62, %v3112_v52  ;;  %v16850_v26 = vld [vmem:[#allocation403_spill] sm:$0xff]  ;;  %v16851_v0 = vld [vmem:[#allocation404_spill] sm:$0xff] }
 0x88b   :  { %v3595_v53 = vmul.f32 %v16846_v14, %v16845_v5  ;;  %v3598_v44 = vmul.f32 %v16846_v14, %v16847_v18  ;;  %v6483_v4 = vsel %vm6463_vm0, %v16848_v31, 0.0  ;;  %v3372_v37 = vadd.f32 %v3340_v43, %v3115_v34  ;;  %v16852_v45 = vld [vmem:[#allocation120_spill] sm:$0xff] }
 0x88c   :  { %v3594_v2 = vmul.f32 %v16846_v14, %v16849_v50  ;;  %v3597_v28 = vmul.f32 %v16846_v14, %v16850_v26  ;;  %v6482_v36 = vadd.f32 %v6481_v22, %v6480_v23  ;;  %v3370_v62 = vadd.f32 %v3338_v25, %v3113_v16  ;;  %v16856_v22 = vld [vmem:[#allocation121_spill] sm:$0xff] }
 0x88d   :  { %v14537_v24 = vpop.permute.xlu1 %5607  ;;  %v14539_v49 = vpop.permute.xlu0 %6358  ;;  %v3373_v52 = vadd.f32 %v3341_v6, %v3116_v17  ;;  %v3596_v5 = vmul.f32 %v16846_v14, %v16851_v0  ;;  %v6485_v18 = vsel %vm6463_vm0, %v16852_v45, 0.0  ;;  %v3371_v32 = vadd.f32 %v3339_v56, %v3114_v9  ;;  %v16857_v6 = vld [vmem:[#allocation426_spill] sm:$0xff]  ;;  %v16884_v45 = vld [vmem:[#allocation128_spill] sm:$0xff] }
 0x88e   :  { %v3374_v31 = vadd.f32 %v3342_v19, %v3117_v35  ;;  %v3599_v43 = vmul.f32 %v16846_v14, %v16853_v59  ;;  %v6484_v34 = vadd.f32 %v6483_v4, %v6482_v36  ;;  %v3627_v3 = vadd.f32 %v3595_v53, %v3370_v62  ;;  %v16858_v35 = vld [vmem:[#allocation434_spill] sm:$0xff]  ;;  %v16859_v59 = vld [vmem:[#allocation437_spill] sm:$0xff] }
 0x88f   :  { %v3630_v50 = vadd.f32 %v3598_v44, %v3373_v52  ;;  %v3853_v26 = vmul.f32 %v16855_v55, %v16854_v57  ;;  %v6487_v16 = vsel %vm6463_vm0, %v16856_v22, 0.0  ;;  %v3626_v17 = vadd.f32 %v3594_v2, %v3369_v7  ;;  %v16860_v14 = vld [vmem:[#allocation122_spill] sm:$0xff]  ;;  %v16861_v44 = vld [vmem:[#allocation433_spill] sm:$0xff]  ;;  %v16862_v7 = vld [vmem:[#allocation436_spill] sm:$0xff] }
 0x890   :  { %v3629_v25 = vadd.f32 %v3597_v28, %v3372_v37  ;;  %v3856_v23 = vmul.f32 %v16855_v55, %v16857_v6  ;;  %v6486_v0 = vadd.f32 %v6485_v18, %v6484_v34  ;;  %v3628_v9 = vadd.f32 %v3596_v5, %v3371_v32  ;;  %v16863_v62 = vld [vmem:[#allocation453_spill] sm:$0xff]  ;;  %v16864_v5 = vld [vmem:[#allocation456_spill] sm:$0xff]  ;;  %v16865_v34 = vld [vmem:[#allocation123_spill] sm:$0xff] }
 0x891   :  { %v3851_v56 = vmul.f32 %v16855_v55, %v16858_v35  ;;  %v3854_v19 = vmul.f32 %v16855_v55, %v16859_v59  ;;  %v6489_v53 = vsel %vm6463_vm0, %v16860_v14, 0.0  ;;  %v3631_v57 = vadd.f32 %v3599_v43, %v3374_v31  ;;  %v16866_v6 = vld [vmem:[#allocation466_spill] sm:$0xff] }
 0x892   :  { %v3852_v4 = vmul.f32 %v16855_v55, %v16861_v44  ;;  %v3855_v37 = vmul.f32 %v16855_v55, %v16862_v7  ;;  %v6488_v2 = vadd.f32 %v6487_v16, %v6486_v0  ;;  %v3885_v36 = vadd.f32 %v3853_v26, %v3628_v9  ;;  %v16867_v55 = vld [vmem:[#allocation467_spill] sm:$0xff]  ;;  %v16868_v26 = vld [vmem:[#allocation496_spill] sm:$0xff] }
 0x893   :  { %v4109_v52 = vmul.f32 %v13172_v40, %v16863_v62  ;;  %v4112_v18 = vmul.f32 %v13172_v40, %v16864_v5  ;;  %v6491_v31 = vsel %vm6463_vm0, %v16865_v34, 0.0  ;;  %v3888_v43 = vadd.f32 %v3856_v23, %v3631_v57  ;;  %v16869_v7 = vld [vmem:[#allocation124_spill] sm:$0xff]  ;;  %v14593_v5 = vpop.permute.xlu2 %6368  ;;  %v16870_v23 = vld [vmem:[#allocation486_spill] sm:$0xff] }
 0x894   :  { %v4111_v35 = vmul.f32 %v13172_v40, %v16866_v6  ;;  %v4110_v16 = vmul.f32 %v13172_v40, %v16867_v55  ;;  %v6490_v0 = vadd.f32 %v6489_v53, %v6488_v2  ;;  %v3883_v59 = vadd.f32 %v3851_v56, %v3626_v17  ;;  %v16871_v17 = vld [vmem:[#allocation530_spill] sm:$0xff]  ;;  %v16872_v56 = vld [vmem:[#allocation125_spill] sm:$0xff] }
 0x895   :  { %v14575_v28 = vpop.permute.xlu1 %6363  ;;  %v14577_v32 = vpop.permute.xlu0 %6111  ;;  %v3886_v44 = vadd.f32 %v3854_v19, %v3629_v25  ;;  %v4366_v9 = vmul.f32 %v13188_v38, %v16868_v26  ;;  %v6493_v62 = vsel %vm6463_vm0, %v16869_v7, 0.0  ;;  %v3884_v14 = vadd.f32 %v3852_v4, %v3627_v3  ;;  %v16873_v26 = vld [vmem:[#allocation529_spill] sm:$0xff] }
 0x896   :  { %v14595_v34 = vadd.f32 %v3855_v37, %v3630_v50  ;;  %v4367_v57 = vmul.f32 %v13188_v38, %v16870_v23  ;;  %v6492_v6 = vadd.f32 %v6491_v31, %v6490_v0  ;;  %v4141_v22 = vadd.f32 %v4109_v52, %v3883_v59  ;;  %v16874_v37 = vld [vmem:[#allocation500_spill] sm:$0xff]  ;;  %v16875_v31 = vld [vmem:[#allocation549_spill] sm:$0xff] }
 0x897   :  { %v14599_v55 = vadd.f32 %v4112_v18, %v3886_v44  ;;  %v4623_v25 = vmul.f32 %v13209_v8, %v16871_v17  ;;  %v6495_v19 = vsel %vm6463_vm0, %v16872_v56, 0.0  ;;  %v4143_v53 = vadd.f32 %v4111_v35, %v3885_v36  ;;  %v16876_v18 = vld [vmem:[#allocation126_spill] sm:$0xff]  ;;  %v16877_v59 = vld [vmem:[#allocation469_spill] sm:$0xff]  ;;  %v16878_v36 = vld [vmem:[#allocation563_spill] sm:$0xff] }
 0x898   :  { %v4142_v2 = vadd.f32 %v4110_v16, %v3884_v14  ;;  %v4624_v3 = vmul.f32 %v13209_v8, %v16873_v26  ;;  %v6494_v50 = vadd.f32 %v6493_v62, %v6492_v6  ;;  %v4398_v4 = vadd.f32 %v4366_v9, %v4141_v22  ;;  %v16879_v9 = vld [vmem:[#allocation470_spill] sm:$0xff]  ;;  %v16880_v6 = vld [vmem:[#allocation519_spill] sm:$0xff] }
 0x899   :  { %v4368_v23 = vmul.f32 %v13188_v38, %v16874_v37  ;;  %v4880_v52 = vmul.f32 %v13224_v58, %v16875_v31  ;;  %v6497_v0 = vsel %vm6463_vm0, %v16876_v18, 0.0  ;;  %v4114_v44 = vmul.f32 %v13172_v40, %v16877_v59  ;;  %v16881_v31 = vld [vmem:[#allocation127_spill] sm:$0xff] }
 0x89a   :  { %v4399_v17 = vadd.f32 %v4367_v57, %v4142_v2  ;;  %v4881_v14 = vmul.f32 %v13224_v58, %v16878_v36  ;;  %v6496_v35 = vadd.f32 %v6495_v19, %v6494_v50  ;;  %v14623_v62 = vmul.f32 %v13172_v40, %v16879_v9  ;;  %v16882_v2 = vld [vmem:[#allocation25_spill] sm:$0xff]  ;;  %v16883_v19 = vld [vmem:[#allocation32_spill] sm:$0xff] }
 0x89b   :  { %v4625_v26 = vmul.f32 %v13209_v8, %v16880_v6  ;;  %v4655_v37 = vadd.f32 %v4623_v25, %v4398_v4  ;;  %v6499_v59 = vsel %vm6463_vm0, %v16881_v31, 0.0  ;;  %v5138_v36 = vmul.f32 %v13241_v27, %v16882_v2  ;;  %v16885_v4 = vld [vmem:[#allocation90_spill] sm:$0xff] }
 0x89c   :  { %v4656_v57 = vadd.f32 %v4624_v3, %v4399_v17  ;;  %v5137_v50 = vmul.f32 %v13241_v27, %v16883_v19  ;;  %v6498_v18 = vadd.f32 %v6497_v0, %v6496_v35  ;;  %v4400_v56 = vadd.f32 %v4368_v23, %v4143_v53  ;;  %v16886_v3 = vld [vmem:[#allocation91_spill] sm:$0xff]  ;;  %v16887_v0 = vld [vmem:[#allocation562_spill] sm:$0xff] }
 0x89d   :  { %v14617_v16 = vpop.permute.xlu1 %6116  ;;  %v14619_v22 = vpop.permute.xlu0 %5864  ;;  %v4912_v7 = vadd.f32 %v4880_v52, %v4655_v37  ;;  %v6501_v40 = vsel %vm6463_vm0, %v16884_v45, 0.0  ;;  %v6419_v9 = vmul.f32 %v14389_v47, %v14423_v29  ;;  %v5396_v6 = vmul.f32 %v13261_v41, %v16885_v4 }
 0x89e   :  { %v4913_v25 = vadd.f32 %v4881_v14, %v4656_v57  ;;  %v5395_v17 = vmul.f32 %v13261_v41, %v16886_v3  ;;  %v6500_v2 = vadd.f32 %v6499_v59, %v6498_v18  ;;  %v14641_v31 = vadd.f32 %v4114_v44, %v3888_v43  ;;  %v14647_v52 = vpop.permute.xlu2 %6121  ;;  %v16888_v57 = vld [vmem:[#allocation38_spill] sm:$0xff]  ;;  %v16889_v43 = vld [vmem:[#allocation129_spill] sm:$0xff] }
 0x89f   :  { %v4657_v19 = vadd.f32 %v4625_v26, %v4400_v56  ;;  %v4882_v53 = vmul.f32 %v13224_v58, %v16887_v0  ;;  %v5908_v23 = vmul.f32 %v13472_v54, %v14465_v63  ;;  %v5169_v14 = vadd.f32 %v5137_v50, %v4912_v7  ;;  %v16890_v44 = vld [vmem:[#allocation130_spill] sm:$0xff] }
 0x8a0   :  { %v5170_v29 = vadd.f32 %v5138_v36, %v4913_v25  ;;  %v6502_v35 = vadd.f32 %v6501_v40, %v6500_v2  ;;  %v5652_v37 = vmul.f32 %v13295_v20, %v14350_v10  ;;  %v5139_v18 = vmul.f32 %v13241_v27, %v16888_v57 }
 0x8a1   :  { %v6503_v56 = vsel %vm6463_vm0, %v16889_v43, 0.0  ;;  %v14656_v26 = vadd.f32 %v6419_v9, %v16890_v44  ;;  %v6164_v63 = vmul.f32 %v13526_v61, %v14463_v39  ;;  %v5427_v4 = vadd.f32 %v5395_v17, %v5169_v14 }
 0x8a2   :  { %v5428_v59 = vadd.f32 %v5396_v6, %v5170_v29  ;;  %v6420_v7 = vmul.f32 %v14389_v47, %v14400_v51  ;;  %v6505_v10 = vsel %vm6463_vm0, %v14405_v46, 0.0  ;;  %v5940_v40 = vadd.f32 %v5908_v23, %v14402_v15 }
 0x8a3   :  { %v5909_v9 = vmul.f32 %v13472_v54, %v14501_v42  ;;  %v5653_v39 = vmul.f32 %v13295_v20, %v14503_v33  ;;  %v6421_v25 = vmul.f32 %v14389_v47, %v14539_v49  ;;  %v5684_v6 = vadd.f32 %v5652_v37, %v5427_v4  ;;  %v16891_v49 = vld [vmem:[#allocation499_spill] sm:$0xff] }
 0x8a4   :  { %v6165_v51 = vmul.f32 %v13526_v61, %v14447_v12  ;;  %v6504_v3 = vadd.f32 %v6503_v56, %v6502_v35  ;;  %v14678_v17 = vadd.f32 %v6420_v7, %v14439_v11  ;;  %v6507_v15 = vsel %vm6463_vm0, %v14656_v26, 0.0  ;;  %v16892_v12 = vld [vmem:[#allocation71_spill] sm:$0xff]  ;;  %v16894_v7 = vld [vmem:[#allocation533_spill] sm:$0xff] }
 0x8a5   :  { %v14664_v36 = vpop.permute.xlu1 %5869  ;;  %v14666_v50 = vpop.permute.xlu0 %5617  ;;  %v6196_v2 = vadd.f32 %v6164_v63, %v14370_v13  ;;  %v6422_v42 = vmul.f32 %v14389_v47, %v14575_v28  ;;  %v6166_v33 = vmul.f32 %v13526_v61, %v14577_v32  ;;  %v4369_v0 = vmul.f32 %v13188_v38, %v16891_v49  ;;  %v16893_v4 = vld [vmem:[#allocation503_spill] sm:$0xff] }
 0x8a6   :  { %v4914_v23 = vadd.f32 %v4882_v53, %v4657_v19  ;;  %v5397_v29 = vmul.f32 %v13261_v41, %v16892_v12  ;;  %v6506_v11 = vadd.f32 %v6505_v10, %v6504_v3  ;;  %v5941_v14 = vadd.f32 %v5909_v9, %v5684_v6  ;;  %v14699_v53 = vpop.permute.xlu2 %5874 }
 0x8a7   :  { %v5685_v35 = vadd.f32 %v5653_v39, %v5428_v59  ;;  %v14691_v37 = vadd.f32 %v6421_v25, %v6196_v2  ;;  %v6197_v57 = vadd.f32 %v6165_v51, %v5940_v40  ;;  %v5910_v28 = vmul.f32 %v13472_v54, %v14495_v48  ;;  %v16895_v51 = vld [vmem:[#allocation489_spill] sm:$0xff]  ;;  %v16896_v2 = vld [vmem:[#allocation552_spill] sm:$0xff] }
 0x8a8   :  { %v5171_v13 = vadd.f32 %v5139_v18, %v4914_v23  ;;  %v6508_v56 = vadd.f32 %v6507_v15, %v6506_v11  ;;  %v6509_v32 = vsel %vm6463_vm0, %v14678_v17, 0.0  ;;  %v5654_v19 = vmul.f32 %v13295_v20, %v14537_v24 }
 0x8a9   :  { %v14701_v44 = vadd.f32 %v6422_v42, %v6197_v57  ;;  %v6198_v63 = vadd.f32 %v6166_v33, %v5941_v14  ;;  %v6167_v59 = vmul.f32 %v13526_v61, %v14617_v16  ;;  %v4371_v18 = vmul.f32 %v13188_v38, %v16893_v4  ;;  %v16898_v14 = vld [vmem:[#allocation37_spill] sm:$0xff] }
 0x8aa   :  { %v4626_v48 = vmul.f32 %v13209_v8, %v16894_v7  ;;  %v5429_v10 = vadd.f32 %v5397_v29, %v5171_v13  ;;  %v6423_v40 = vmul.f32 %v14389_v47, %v14593_v5  ;;  %v6511_v39 = vsel %vm6463_vm0, %v14691_v37, 0.0  ;;  %v16897_v29 = vld [vmem:[#allocation522_spill] sm:$0xff]  ;;  %v16901_v7 = vld [vmem:[#allocation96_spill] sm:$0xff] }
 0x8ab   :  { %v5942_v25 = vadd.f32 %v5910_v28, %v5685_v35  ;;  %v5911_v6 = vmul.f32 %v13472_v54, %v14619_v22  ;;  %v4370_v3 = vmul.f32 %v13188_v38, %v16895_v51  ;;  %v4401_v15 = vadd.f32 %v4369_v0, %v14599_v55  ;;  %v16899_v28 = vld [vmem:[#allocation532_spill] sm:$0xff] }
 0x8ac   :  { %v4883_v42 = vmul.f32 %v13224_v58, %v16896_v2  ;;  %v6510_v5 = vadd.f32 %v6509_v32, %v6508_v56  ;;  %v5686_v33 = vadd.f32 %v5654_v19, %v5429_v10  ;;  %v6513_v49 = vsel %vm6463_vm0, %v14701_v44, 0.0  ;;  %v16900_v19 = vld [vmem:[#allocation565_spill] sm:$0xff]  ;;  %v16904_v2 = vld [vmem:[#allocation27_spill] sm:$0xff] }
 0x8ad   :  { %v5623_v9 = vpop.permute.xlu1 %5622  ;;  %v6374_v24 = vpop.permute.xlu0 %6373  ;;  %v14723_v23 = vadd.f32 %v6423_v40, %v6198_v63  ;;  %v6199_v12 = vadd.f32 %v6167_v59, %v5942_v25  ;;  %v4628_v22 = vmul.f32 %v13209_v8, %v16897_v29  ;;  %v4658_v11 = vadd.f32 %v4626_v48, %v4401_v15  ;;  %v16903_v40 = vld [vmem:[#allocation43_spill] sm:$0xff] }
 0x8ae   :  { %v6424_v16 = vmul.f32 %v14389_v47, %v6374_v24  ;;  %v5140_v38 = vmul.f32 %v13241_v27, %v16898_v14  ;;  %v6512_v35 = vadd.f32 %v6511_v39, %v6510_v5  ;;  %v4145_v55 = vadd.f32 %v14623_v62, %v14595_v34  ;;  %v16906_v14 = vld [vmem:[#allocation95_spill] sm:$0xff] }
 0x8af   :  { %v4403_v0 = vadd.f32 %v4371_v18, %v14641_v31  ;;  %v5943_v57 = vadd.f32 %v5911_v6, %v5686_v33  ;;  %v4627_v56 = vmul.f32 %v13209_v8, %v16899_v28  ;;  %v4915_v32 = vadd.f32 %v4883_v42, %v4658_v11  ;;  %v16902_v18 = vld [vmem:[#allocation566_spill] sm:$0xff]  ;;  %v5880_v42 = vpop.permute.xlu2 %5879 }
 0x8b0   :  { %v14732_v13 = vadd.f32 %v6424_v16, %v6199_v12  ;;  %v4885_v63 = vmul.f32 %v13224_v58, %v16900_v19  ;;  %v6514_v59 = vadd.f32 %v6513_v49, %v6512_v35  ;;  %v4402_v4 = vadd.f32 %v4370_v3, %v4145_v55  ;;  %v16905_v33 = vld [vmem:[#allocation74_spill] sm:$0xff] }
 0x8b1   :  { %v5398_v48 = vmul.f32 %v13261_v41, %v16901_v7  ;;  %v6168_v34 = vmul.f32 %v13526_v61, %v14647_v52  ;;  %v6515_v62 = vsel %vm6463_vm0, %v14723_v23, 0.0  ;;  %v4660_v31 = vadd.f32 %v4628_v22, %v4403_v0 }
 0x8b2   :  { %v4884_v10 = vmul.f32 %v13224_v58, %v16902_v18  ;;  %v5172_v8 = vadd.f32 %v5140_v38, %v4915_v32  ;;  %v5142_v24 = vmul.f32 %v13241_v27, %v16903_v40  ;;  %v5655_v6 = vmul.f32 %v13295_v20, %v14547_v30 }
 0x8b3   :  { %v6517_v16 = vsel %vm6463_vm0, %v14732_v13, 0.0  ;;  %v6200_v52 = vadd.f32 %v6168_v34, %v5943_v57  ;;  %v4659_v3 = vadd.f32 %v4627_v56, %v4402_v4  ;;  %v4917_v15 = vadd.f32 %v4885_v63, %v4660_v31 }
 0x8b4   :  { %v5141_v58 = vmul.f32 %v13241_v27, %v16904_v2  ;;  %v6516_v5 = vadd.f32 %v6515_v62, %v6514_v59  ;;  %v5400_v49 = vmul.f32 %v13261_v41, %v16905_v33  ;;  %v5430_v12 = vadd.f32 %v5398_v48, %v5172_v8 }
 0x8b5   :  { %v6379_v39 = vpop.permute.xlu1 %6378  ;;  %v6127_v25 = vpop.permute.xlu0 %6126  ;;  %v5912_v30 = vmul.f32 %v13472_v54, %v14664_v36  ;;  %v4916_v22 = vadd.f32 %v4884_v10, %v4659_v3  ;;  %v5174_v11 = vadd.f32 %v5142_v24, %v4917_v15  ;;  %v5399_v38 = vmul.f32 %v13261_v41, %v16906_v14 }
 0x8b6   :  { %v6425_v51 = vmul.f32 %v14389_v47, %v6379_v39  ;;  %v6518_v35 = vadd.f32 %v6517_v16, %v6516_v5  ;;  %v5687_v55 = vadd.f32 %v5655_v6, %v5430_v12  ;;  %v5657_v0 = vmul.f32 %v13295_v20, %v5623_v9 }
 0x8b7   :  { %v6169_v57 = vmul.f32 %v13526_v61, %v6127_v25  ;;  %v5173_v56 = vadd.f32 %v5141_v58, %v4916_v22  ;;  %v5432_v32 = vadd.f32 %v5400_v49, %v5174_v11  ;;  %v5656_v36 = vmul.f32 %v13295_v20, %v14666_v50  ;;  %v6137_v31 = vpop.permute.xlu2 %6136 }
 0x8b8   :  { %v6457_v29 = vadd.f32 %v6425_v51, %v6200_v52  ;;  %v5944_v19 = vadd.f32 %v5912_v30, %v5687_v55  ;;  %v5914_v9 = vmul.f32 %v13472_v54, %v5880_v42  ;;  %v5913_v18 = vmul.f32 %v13472_v54, %v14699_v53 }
 0x8b9   :  { %v5431_v4 = vadd.f32 %v5399_v38, %v5173_v56  ;;  %v5689_v7 = vadd.f32 %v5657_v0, %v5432_v32  ;;  %v8538_v40 = vmov 256.0   ;;  %v6171_v24 = vmul.f32 %v13526_v61, %v6137_v31 }
 0x8ba   :  { %v6519_v27 = vsel %vm6463_vm0, %v6457_v29, 0.0  ;;  %v6201_v41 = vadd.f32 %v6169_v57, %v5944_v19  ;;  %8528 = vrcp.f32 %v8538_v40  ;;  %v16907_v19 = vld [vmem:[#allocation106_spill] sm:$0xff] }
 0x8bb   :  { %v6520_v28 = vadd.f32 %v6519_v27, %v6518_v35  ;;  %v5688_v34 = vadd.f32 %v5656_v36, %v5431_v4  ;;  %v5946_v10 = vadd.f32 %v5914_v9, %v5689_v7 }
 0x8bd   :  { %v6384_v63 = vpop.permute.xlu1 %6383  ;;  %v6132_v59 = vpop.permute.xlu0 %6131  ;;  %v5945_v39 = vadd.f32 %v5913_v18, %v5688_v34  ;;  %v6203_v52 = vadd.f32 %v6171_v24, %v5946_v10 }
 0x8be   :  { %v6426_v48 = vmul.f32 %v14389_v47, %v6384_v63  ;;  %v6170_v20 = vmul.f32 %v13526_v61, %v6132_v59 }
 0x8c0   :  { %v6458_v62 = vadd.f32 %v6426_v48, %v6201_v41  ;;  %v6202_v16 = vadd.f32 %v6170_v20, %v5945_v39  ;;  %v8529_v15 = vpop.eup %8528  ;;  %v16911_v20 = vld [vmem:[#allocation111_spill] sm:$0xff] }
 0x8c1   :  { %v6534_v5 = vmul.f32 256.0, %v8529_v15  ;;  %vm6538_vm1 = vweird.f32 %v8529_v15 }
 0x8c2   :  { %v6521_v8 = vsel %vm6463_vm0, %v6458_v62, 0.0 }
 0x8c3   :  { %v6522_v50 = vadd.f32 %v6521_v8, %v6520_v28  ;;  %v6535_v49 = vsub.f32 1.0, %v6534_v5 }
 0x8c5   :  { %v6394_v25 = vpop.permute.xlu1 %6393  ;;  %v6389_v6 = vpop.permute.xlu0 %6388  ;;  %v6536_v22 = vmul.f32 %v8529_v15, %v6535_v49  ;;  %v16915_v49 = vld [vmem:[#allocation120_spill] sm:$0xff] }
 0x8c6   :  { %v6428_v51 = vmul.f32 %v14389_v47, %v6394_v25  ;;  %v6427_v3 = vmul.f32 %v14389_v47, %v6389_v6  ;;  %v16912_v25 = vld [vmem:[#allocation114_spill] sm:$0xff] }
 0x8c7   :  { %v6537_v38 = vadd.f32 %v8529_v15, %v6536_v22 }
 0x8c8   :  { %v6460_v54 = vadd.f32 %v6428_v51, %v6203_v52  ;;  %v6459_v53 = vadd.f32 %v6427_v3, %v6202_v16  ;;  %v16913_v3 = vld [vmem:[#allocation117_spill] sm:$0xff] }
 0x8c9   :  { %v14777_v35 = vsel %vm6538_vm1, %v8529_v15, %v6537_v38 }
 0x8ca   :  { %v6523_v2 = vsel %vm6463_vm0, %v6459_v53, 0.0  ;;  %v6525_v42 = vsel %vm6463_vm0, %v6460_v54, 0.0 }
 0x8cb   :  { %v6524_v58 = vadd.f32 %v6523_v2, %v6522_v50 }
 0x8cd   :  { %v6526_v33 = vadd.f32 %v6525_v42, %v6524_v58  ;;  %v16914_v58 = vld [vmem:[#allocation118_spill] sm:$0xff] }
 0x8cf   :  { %v6527_v61 = vrot.slane %v6526_v33, 4 }
 0x8d1   :  { %v6528_v12 = vadd.f32 %v6527_v61, %v6526_v33 }
 0x8d3   :  { %v6529_v30 = vrot.slane %v6528_v12, 2 }
 0x8d5   :  { %v6530_v11 = vadd.f32 %v6529_v30, %v6528_v12 }
 0x8d7   :  { %v6531_v14 = vrot.slane %v6530_v11, 1 }
 0x8d9   :  { %v6532_v47 = vadd.f32 %v6531_v14, %v6530_v11  ;;  %v16916_v14 = vld [vmem:[#allocation121_spill] sm:$0xff] }
 0x8db   :  { %v14780_v55 = vmul.f32 %v14777_v35, %v6532_v47 }
 0x8dd   :  { %v14784_v0 = vsub.f32 %v14732_v13, %v14780_v55  ;;  %v14787_v27 = vsub.f32 %v6457_v29, %v14780_v55  ;;  %v14790_v57 = vsub.f32 %v6458_v62, %v14780_v55  ;;  %v14793_v28 = vsub.f32 %v6459_v53, %v14780_v55  ;;  %v16910_v62 = vld [vmem:[#allocation110_spill] sm:$0xff] }
 0x8de   :  { %v14796_v56 = vsub.f32 %v6460_v54, %v14780_v55  ;;  %v14800_v32 = vsub.f32 %v13797_v21, %v14780_v55  ;;  %v14804_v13 = vsub.f32 %v13794_v1, %v14780_v55  ;;  %v14808_v29 = vsub.f32 %v13841_v60, %v14780_v55  ;;  %v16908_v21 = vld [vmem:[#allocation107_spill] sm:$0xff]  ;;  %v16909_v60 = vld [vmem:[#allocation108_spill] sm:$0xff] }
 0x8df   :  { %v14812_v36 = vsub.f32 %v16907_v19, %v14780_v55  ;;  %v14820_v4 = vsub.f32 %v16908_v21, %v14780_v55  ;;  %v14826_v7 = vsub.f32 %v16909_v60, %v14780_v55  ;;  %v14834_v31 = vsub.f32 %v16910_v62, %v14780_v55 }
 0x8e0   :  { %v6573_v63 = vmul.f32 %v14800_v32, %v14800_v32  ;;  %v6574_v59 = vmul.f32 %v14804_v13, %v14804_v13  ;;  %v6575_v1 = vmul.f32 %v14808_v29, %v14808_v29  ;;  %v14841_v50 = vsub.f32 %v16911_v20, %v14780_v55 }
 0x8e1   :  { %v6576_v41 = vmul.f32 %v14812_v36, %v14812_v36  ;;  %v6577_v18 = vmul.f32 %v14820_v4, %v14820_v4  ;;  %v6578_v40 = vmul.f32 %v14826_v7, %v14826_v7  ;;  %v14848_v6 = vsub.f32 %v16912_v25, %v14780_v55 }
 0x8e2   :  { %v6605_v48 = vsel %vm6463_vm0, %v6573_v63, 0.0  ;;  %v6606_v9 = vsel %vm6463_vm0, %v6574_v59, 0.0  ;;  %v6608_v10 = vsel %vm6463_vm0, %v6575_v1, 0.0  ;;  %v6579_v16 = vmul.f32 %v14834_v31, %v14834_v31  ;;  %v16917_v59 = vld [vmem:[#allocation122_spill] sm:$0xff] }
 0x8e3   :  { %v6607_v34 = vadd.f32 %v6606_v9, %v6605_v48  ;;  %v6610_v24 = vsel %vm6463_vm0, %v6576_v41, 0.0  ;;  %v6612_v52 = vsel %vm6463_vm0, %v6577_v18, 0.0  ;;  %v14855_v54 = vsub.f32 %v16913_v3, %v14780_v55  ;;  %v16918_v48 = vld [vmem:[#allocation123_spill] sm:$0xff]  ;;  %v16921_v3 = vld [vmem:[#allocation126_spill] sm:$0xff] }
 0x8e4   :  { %v6580_v53 = vmul.f32 %v14841_v50, %v14841_v50  ;;  %v6614_v15 = vsel %vm6463_vm0, %v6578_v40, 0.0  ;;  %v14862_v42 = vsub.f32 %v16914_v58, %v14780_v55  ;;  %v6581_v5 = vmul.f32 %v14848_v6, %v14848_v6 }
 0x8e5   :  { %v6609_v8 = vadd.f32 %v6608_v10, %v6607_v34  ;;  %v6616_v33 = vsel %vm6463_vm0, %v6579_v16, 0.0  ;;  %v14869_v12 = vsub.f32 %v16915_v49, %v14780_v55  ;;  %v6582_v30 = vmul.f32 %v14855_v54, %v14855_v54  ;;  %v16919_v10 = vld [vmem:[#allocation124_spill] sm:$0xff] }
 0x8e6   :  { %v6618_v22 = vsel %vm6463_vm0, %v6580_v53, 0.0  ;;  %v14876_v38 = vsub.f32 %v16916_v14, %v14780_v55  ;;  %v6583_v47 = vmul.f32 %v14862_v42, %v14862_v42  ;;  %v6620_v19 = vsel %vm6463_vm0, %v6581_v5, 0.0  ;;  %v16922_v5 = vld [vmem:[#allocation127_spill] sm:$0xff] }
 0x8e7   :  { %v6611_v39 = vadd.f32 %v6610_v24, %v6609_v8  ;;  %v14883_v21 = vsub.f32 %v16917_v59, %v14780_v55  ;;  %v6584_v1 = vmul.f32 %v14869_v12, %v14869_v12  ;;  %v6622_v60 = vsel %vm6463_vm0, %v6582_v30, 0.0 }
 0x8e8   :  { %v14890_v9 = vsub.f32 %v16918_v48, %v14780_v55  ;;  %v6585_v34 = vmul.f32 %v14876_v38, %v14876_v38  ;;  %v6624_v62 = vsel %vm6463_vm0, %v6583_v47, 0.0  ;;  %v14897_v8 = vsub.f32 %v16919_v10, %v14780_v55 }
 0x8e9   :  { %v6613_v51 = vadd.f32 %v6612_v52, %v6611_v39  ;;  %v6586_v20 = vmul.f32 %v14883_v21, %v14883_v21  ;;  %v6626_v40 = vsel %vm6463_vm0, %v6584_v1, 0.0  ;;  %v16920_v39 = vld [vmem:[#allocation125_spill] sm:$0xff]  ;;  %v14911_v53 = vsub.f32 %v16921_v3, %v14780_v55 }
 0x8ea   :  { %v14904_v25 = vsub.f32 %v16920_v39, %v14780_v55  ;;  %v6587_v16 = vmul.f32 %v14890_v9, %v14890_v9  ;;  %v6628_v52 = vsel %vm6463_vm0, %v6585_v34, 0.0 }
 0x8eb   :  { %v6615_v2 = vadd.f32 %v6614_v15, %v6613_v51  ;;  %v6588_v15 = vmul.f32 %v14897_v8, %v14897_v8 }
 0x8ec   :  { %v6632_v49 = vsel %vm6463_vm0, %v6587_v16, 0.0 }
 0x8ed   :  { %v6617_v61 = vadd.f32 %v6616_v33, %v6615_v2  ;;  %v6630_v2 = vsel %vm6463_vm0, %v6586_v20, 0.0  ;;  %v14918_v33 = vsub.f32 %v16922_v5, %v14780_v55  ;;  %v6634_v14 = vsel %vm6463_vm0, %v6588_v15, 0.0 }
 0x8ef   :  { %v6619_v11 = vadd.f32 %v6618_v22, %v6617_v61  ;;  %v6589_v61 = vmul.f32 %v14904_v25, %v14904_v25  ;;  %v14925_v22 = vsub.f32 %v16884_v45, %v14780_v55  ;;  %v14939_v45 = vsub.f32 %v14405_v46, %v14780_v55 }
 0x8f0   :  { %v14953_v46 = vsub.f32 %v14678_v17, %v14780_v55  ;;  %v14967_v17 = vsub.f32 %v14701_v44, %v14780_v55 }
 0x8f1   :  { %v6621_v63 = vadd.f32 %v6620_v19, %v6619_v11  ;;  %v6590_v11 = vmul.f32 %v14911_v53, %v14911_v53  ;;  %v14932_v19 = vsub.f32 %v16889_v43, %v14780_v55  ;;  %v6636_v59 = vsel %vm6463_vm0, %v6589_v61, 0.0 }
 0x8f2   :  { %v14946_v43 = vsub.f32 %v14656_v26, %v14780_v55  ;;  %v6594_v10 = vmul.f32 %v14939_v45, %v14939_v45  ;;  %v14960_v26 = vsub.f32 %v14691_v37, %v14780_v55  ;;  %v14974_v37 = vsub.f32 %v14723_v23, %v14780_v55 }
 0x8f3   :  { %v6623_v41 = vadd.f32 %v6622_v60, %v6621_v63  ;;  %v6591_v63 = vmul.f32 %v14918_v33, %v14918_v33  ;;  %v6592_v60 = vmul.f32 %v14925_v22, %v14925_v22  ;;  %v6593_v34 = vmul.f32 %v14932_v19, %v14932_v19 }
 0x8f4   :  { %v6597_v15 = vmul.f32 %v14960_v26, %v14960_v26  ;;  %v6598_v44 = vmul.f32 %v14967_v17, %v14967_v17  ;;  %v6600_v23 = vmul.f32 %v14784_v0, %v14784_v0 }
 0x8f5   :  { %v6625_v18 = vadd.f32 %v6624_v62, %v6623_v41  ;;  %v6638_v41 = vsel %vm6463_vm0, %v6590_v11, 0.0  ;;  %v6640_v62 = vsel %vm6463_vm0, %v6591_v63, 0.0  ;;  %v6642_v20 = vsel %vm6463_vm0, %v6592_v60, 0.0 }
 0x8f6   :  { %v6644_v39 = vsel %vm6463_vm0, %v6593_v34, 0.0  ;;  %v6654_v55 = vsel %vm6463_vm0, %v6598_v44, 0.0  ;;  %v6658_v60 = vsel %vm6463_vm0, %v6600_v23, 0.0 }
 0x8f7   :  { %v6627_v24 = vadd.f32 %v6626_v40, %v6625_v18 }
 0x8f9   :  { %v6629_v51 = vadd.f32 %v6628_v52, %v6627_v24  ;;  %v6595_v24 = vmul.f32 %v14946_v43, %v14946_v43  ;;  %v6596_v52 = vmul.f32 %v14953_v46, %v14953_v46 }
 0x8fb   :  { %v6631_v58 = vadd.f32 %v6630_v2, %v6629_v51  ;;  %v6646_v51 = vsel %vm6463_vm0, %v6594_v10, 0.0  ;;  %v6648_v2 = vsel %vm6463_vm0, %v6595_v24, 0.0  ;;  %v6650_v5 = vsel %vm6463_vm0, %v6596_v52, 0.0 }
 0x8fd   :  { %v6633_v30 = vadd.f32 %v6632_v49, %v6631_v58  ;;  %v6599_v49 = vmul.f32 %v14974_v37, %v14974_v37 }
 0x8ff   :  { %v6635_v47 = vadd.f32 %v6634_v14, %v6633_v30  ;;  %v6652_v30 = vsel %vm6463_vm0, %v6597_v15, 0.0  ;;  %v6656_v63 = vsel %vm6463_vm0, %v6599_v49, 0.0 }
 0x901   :  { %v6637_v1 = vadd.f32 %v6636_v59, %v6635_v47  ;;  %v6601_v47 = vmul.f32 %v14787_v27, %v14787_v27 }
 0x903   :  { %v6639_v48 = vadd.f32 %v6638_v41, %v6637_v1  ;;  %v6602_v1 = vmul.f32 %v14790_v57, %v14790_v57  ;;  %v6660_v34 = vsel %vm6463_vm0, %v6601_v47, 0.0 }
 0x905   :  { %v6641_v18 = vadd.f32 %v6640_v62, %v6639_v48  ;;  %v6603_v48 = vmul.f32 %v14793_v28, %v14793_v28  ;;  %v6662_v10 = vsel %vm6463_vm0, %v6602_v1, 0.0 }
 0x907   :  { %v6643_v40 = vadd.f32 %v6642_v20, %v6641_v18  ;;  %v6604_v18 = vmul.f32 %v14796_v56, %v14796_v56 }
 0x909   :  { %v6645_v16 = vadd.f32 %v6644_v39, %v6643_v40  ;;  %v6664_v40 = vsel %vm6463_vm0, %v6603_v48, 0.0  ;;  %v6666_v39 = vsel %vm6463_vm0, %v6604_v18, 0.0 }
 0x90b   :  { %v6647_v3 = vadd.f32 %v6646_v51, %v6645_v16 }
 0x90d   :  { %v6649_v58 = vadd.f32 %v6648_v2, %v6647_v3 }
 0x90f   :  { %v6651_v61 = vadd.f32 %v6650_v5, %v6649_v58 }
 0x911   :  { %v6653_v11 = vadd.f32 %v6652_v30, %v6651_v61 }
 0x913   :  { %v6655_v14 = vadd.f32 %v6654_v55, %v6653_v11 }
 0x915   :  { %v6657_v59 = vadd.f32 %v6656_v63, %v6655_v14  ;;  %v15006_v14 = vld [vmem:[%s15538_s3] ss:$0 sm:$0xff] }
 0x917   :  { %v6659_v41 = vadd.f32 %v6658_v60, %v6657_v59 }
 0x919   :  { %v6661_v62 = vadd.f32 %v6660_v34, %v6659_v41 }
 0x91b   :  { %v6663_v20 = vadd.f32 %v6662_v10, %v6661_v62 }
 0x91d   :  { %v6665_v24 = vadd.f32 %v6664_v40, %v6663_v20 }
 0x91f   :  { %v6667_v16 = vadd.f32 %v6666_v39, %v6665_v24 }
 0x921   :  { %v6668_v52 = vrot.slane %v6667_v16, 4 }
 0x923   :  { %v6669_v51 = vadd.f32 %v6668_v52, %v6667_v16 }
 0x925   :  { %v6670_v3 = vrot.slane %v6669_v51, 2 }
 0x927   :  { %v6671_v15 = vadd.f32 %v6670_v3, %v6669_v51 }
 0x929   :  { %v6672_v2 = vrot.slane %v6671_v15, 1 }
 0x92b   :  { %v6673_v58 = vadd.f32 %v6672_v2, %v6671_v15 }
 0x92d   :  { %v6674_v44 = vmul.f32 %v6673_v58, %v14777_v35  ;;  %v15013_v35 = vld [vmem:[%s15539_s4] ss:$0 sm:$0xff] }
 0x92f   :  { %v6675_v5 = vadd.f32 1e-05, %v6674_v44 }
 0x931   :  { %8530 = vrsqrt.f32 %v6675_v5  ;;  %vm6682_vm3 = vweird.f32 %v6675_v5 }
 0x937   :  { %v8531_v61 = vpop.eup %8530 }
 0x938   :  { %v6677_v49 = vmul.f32 %v8531_v61, %v6675_v5  ;;  %vm6683_vm2 = vweird.f32 %v8531_v61 }
 0x939   :  { %vm6684_vm4 = vmor %vm6682_vm3, %vm6683_vm2 }
 0x93a   :  { %v6678_v30 = vmul.f32 %v8531_v61, %v6677_v49 }
 0x93c   :  { %v6679_v11 = vmul.f32 0.5, %v6678_v30 }
 0x93e   :  { %v6680_v23 = vsub.f32 1.5, %v6679_v11 }
 0x940   :  { %v6681_v55 = vmul.f32 %v8531_v61, %v6680_v23 }
 0x942   :  { %v15008_v47 = vsel %vm6684_vm4, %v8531_v61, %v6681_v55 }
 0x943   :  { %v6714_v63 = vmul.f32 %v15008_v47, %v14787_v27  ;;  %v6716_v59 = vmul.f32 %v15008_v47, %v14793_v28  ;;  %v6686_v27 = vmul.f32 %v15008_v47, %v14800_v32  ;;  %v6687_v28 = vmul.f32 %v15008_v47, %v14804_v13 }
 0x944   :  { %v6688_v18 = vmul.f32 %v15008_v47, %v14808_v29  ;;  %v6689_v10 = vmul.f32 %v15008_v47, %v14812_v36  ;;  %v6690_v20 = vmul.f32 %v15008_v47, %v14820_v4  ;;  %v6691_v24 = vmul.f32 %v15008_v47, %v14826_v7 }
 0x945   :  { %v6749_v1 = vmul.f32 %v15006_v14, %v6714_v63  ;;  %v6751_v60 = vmul.f32 %v15006_v14, %v6716_v59  ;;  %v6692_v32 = vmul.f32 %v15008_v47, %v14834_v31  ;;  %v6693_v13 = vmul.f32 %v15008_v47, %v14841_v50 }
 0x946   :  { %v6721_v16 = vmul.f32 %v15006_v14, %v6686_v27  ;;  %v6722_v52 = vmul.f32 %v15006_v14, %v6687_v28  ;;  %v6723_v36 = vmul.f32 %v15006_v14, %v6688_v18  ;;  %v6724_v4 = vmul.f32 %v15006_v14, %v6689_v10 }
 0x947   :  { %v6784_v41 = vadd.f32 %v15013_v35, %v6749_v1  ;;  %v6786_v48 = vadd.f32 %v15013_v35, %v6751_v60  ;;  %v6694_v51 = vmul.f32 %v15008_v47, %v14848_v6  ;;  %v6725_v7 = vmul.f32 %v15006_v14, %v6690_v20 }
 0x948   :  { %v6695_v31 = vmul.f32 %v15008_v47, %v14855_v54  ;;  %v6696_v50 = vmul.f32 %v15008_v47, %v14862_v42  ;;  %v6726_v3 = vmul.f32 %v15006_v14, %v6691_v24  ;;  %v6697_v15 = vmul.f32 %v15008_v47, %v14869_v12 }
 0x949   :  { %v6816_v34 = vmax.f32 %v6784_v41, 0.0  ;;  %v6818_v62 = vmax.f32 %v6786_v48, 0.0  ;;  %v6698_v2 = vmul.f32 %v15008_v47, %v14876_v38  ;;  %v6727_v6 = vmul.f32 %v15006_v14, %v6692_v32 }
 0x94a   :  { %v6756_v58 = vadd.f32 %v15013_v35, %v6721_v16  ;;  %v6728_v44 = vmul.f32 %v15006_v14, %v6693_v13  ;;  %v6757_v5 = vadd.f32 %v15013_v35, %v6722_v52  ;;  %v6758_v54 = vadd.f32 %v15013_v35, %v6723_v36 }
 0x94b   :  { %6848 = vst.msk [vmem:[#allocation2 + $0xe0] sm:$0xff] %vm6463_vm0, %v6816_v34  ;;  %v6759_v42 = vadd.f32 %v15013_v35, %v6724_v4  ;;  %v6699_v61 = vmul.f32 %v15008_v47, %v14883_v21  ;;  %v6700_v12 = vmul.f32 %v15008_v47, %v14890_v9  ;;  %v6729_v38 = vmul.f32 %v15006_v14, %v6694_v51 }
 0x94c   :  { %6850 = vst.msk [vmem:[#allocation2 + $0xf0] sm:$0xff] %vm6463_vm0, %v6818_v62  ;;  %v6760_v49 = vadd.f32 %v15013_v35, %v6725_v7  ;;  %v6701_v30 = vmul.f32 %v15008_v47, %v14897_v8  ;;  %v6702_v11 = vmul.f32 %v15008_v47, %v14904_v25  ;;  %v6730_v23 = vmul.f32 %v15006_v14, %v6695_v31 }
 0x94d   :  { %v6761_v55 = vadd.f32 %v15013_v35, %v6726_v3  ;;  %v6731_v63 = vmul.f32 %v15006_v14, %v6696_v50  ;;  %v6732_v21 = vmul.f32 %v15006_v14, %v6697_v15  ;;  %v6762_v9 = vadd.f32 %v15013_v35, %v6727_v6 }
 0x94e   :  { %v6788_v59 = vmax.f32 %v6756_v58, 0.0  ;;  %v6763_v1 = vadd.f32 %v15013_v35, %v6728_v44  ;;  %v6789_v60 = vmax.f32 %v6757_v5, 0.0  ;;  %v6790_v41 = vmax.f32 %v6758_v54, 0.0 }
 0x94f   :  { %v6791_v48 = vmax.f32 %v6759_v42, 0.0  ;;  %v6703_v8 = vmul.f32 %v15008_v47, %v14911_v53  ;;  %v6733_v25 = vmul.f32 %v15006_v14, %v6698_v2  ;;  %v6764_v34 = vadd.f32 %v15013_v35, %v6729_v38 }
 0x950   :  { %v6792_v62 = vmax.f32 %v6760_v49, 0.0  ;;  %6820 = vst.msk [vmem:[#allocation2] sm:$0xff] %vm6463_vm0, %v6788_v59  ;;  %v6704_v27 = vmul.f32 %v15008_v47, %v14918_v33  ;;  %v6734_v28 = vmul.f32 %v15006_v14, %v6699_v61  ;;  %v6765_v18 = vadd.f32 %v15013_v35, %v6730_v23 }
 0x951   :  { %v6793_v10 = vmax.f32 %v6761_v55, 0.0  ;;  %6821 = vst.msk [vmem:[#allocation2 + $0x8] sm:$0xff] %vm6463_vm0, %v6789_v60  ;;  %v6705_v53 = vmul.f32 %v15008_v47, %v14925_v22  ;;  %v6735_v20 = vmul.f32 %v15006_v14, %v6700_v12  ;;  %v6794_v24 = vmax.f32 %v6762_v9, 0.0 }
 0x952   :  { %v6866_v40 = vld [vmem:[#allocation2 + $0xe0] sm:$0xff]  ;;  %6822 = vst.msk [vmem:[#allocation2 + $0x10] sm:$0xff] %vm6463_vm0, %v6790_v41  ;;  %v6706_v33 = vmul.f32 %v15008_v47, %v14932_v19  ;;  %v6767_v32 = vadd.f32 %v15013_v35, %v6732_v21  ;;  %v6795_v13 = vmax.f32 %v6763_v1, 0.0  ;;  %v6707_v22 = vmul.f32 %v15008_v47, %v14939_v45  ;;  %v8402_v21 = vld [vmem:[%s15540_s5 + $0x30] sm:$0xff]  ;;  %v8401_v41 = vld [vmem:[%s15540_s5 + $0x28] sm:$0xff] }
 0x953   :  { %v6883_v39 = vld [vmem:[#allocation2 + $0xf0] sm:$0xff]  ;;  %6823 = vst.msk [vmem:[#allocation2 + $0x18] sm:$0xff] %vm6463_vm0, %v6791_v48  ;;  %v6737_v16 = vmul.f32 %v15006_v14, %v6702_v11  ;;  %v6796_v52 = vmax.f32 %v6764_v34, 0.0  ;;  %v6708_v19 = vmul.f32 %v15008_v47, %v14946_v43  ;;  %v6738_v36 = vmul.f32 %v15006_v14, %v6703_v8 }
 0x954   :  { %v6899_v29 = vmax.f32 %v6866_v40, %v6883_v39  ;;  %v6766_v40 = vadd.f32 %v15013_v35, %v6731_v63  ;;  %v6736_v39 = vmul.f32 %v15006_v14, %v6701_v30  ;;  %6824 = vst.msk [vmem:[#allocation2 + $0x20] sm:$0xff] %vm6463_vm0, %v6792_v62  ;;  %v6769_v4 = vadd.f32 %v15013_v35, %v6734_v28  ;;  %v8400_v28 = vld [vmem:[%s15540_s5 + $0x20] sm:$0xff] }
 0x955   :  { %v6797_v51 = vmax.f32 %v6765_v18, 0.0  ;;  %6825 = vst.msk [vmem:[#allocation2 + $0x28] sm:$0xff] %vm6463_vm0, %v6793_v10  ;;  %v6709_v45 = vmul.f32 %v15008_v47, %v14953_v46  ;;  %v6739_v7 = vmul.f32 %v15006_v14, %v6704_v27  ;;  %v6770_v31 = vadd.f32 %v15013_v35, %v6735_v20 }
 0x956   :  { %6915 = vst.msk [vmem:[#allocation3 + $0x70] sm:$0xff] %vm6463_vm0, %v6899_v29  ;;  %v6768_v29 = vadd.f32 %v15013_v35, %v6733_v25  ;;  %v6798_v50 = vmax.f32 %v6766_v40, 0.0  ;;  %v6710_v43 = vmul.f32 %v15008_v47, %v14960_v26  ;;  %v6740_v3 = vmul.f32 %v15006_v14, %v6705_v53 }
 0x957   :  { %6826 = vst.msk [vmem:[#allocation2 + $0x30] sm:$0xff] %vm6463_vm0, %v6794_v24  ;;  %v6771_v15 = vadd.f32 %v15013_v35, %v6736_v39  ;;  %v6799_v2 = vmax.f32 %v6767_v32, 0.0  ;;  %v6711_v46 = vmul.f32 %v15008_v47, %v14967_v17  ;;  %v6741_v6 = vmul.f32 %v15006_v14, %v6706_v33 }
 0x958   :  { %6827 = vst.msk [vmem:[#allocation2 + $0x38] sm:$0xff] %vm6463_vm0, %v6795_v13  ;;  %v6772_v58 = vadd.f32 %v15013_v35, %v6737_v16  ;;  %v6800_v44 = vmax.f32 %v6768_v29, 0.0  ;;  %v6712_v26 = vmul.f32 %v15008_v47, %v14974_v37  ;;  %v6742_v5 = vmul.f32 %v15006_v14, %v6707_v22  ;;  %v6852_v29 = vld [vmem:[#allocation2] sm:$0xff] }
 0x959   :  { %6828 = vst.msk [vmem:[#allocation2 + $0x40] sm:$0xff] %vm6463_vm0, %v6796_v52  ;;  %v6773_v54 = vadd.f32 %v15013_v35, %v6738_v36  ;;  %v6801_v42 = vmax.f32 %v6769_v4, 0.0  ;;  %v6713_v17 = vmul.f32 %v15008_v47, %v14784_v0  ;;  %v6743_v61 = vmul.f32 %v15006_v14, %v6708_v19  ;;  %v6869_v52 = vld [vmem:[#allocation2 + $0x10] sm:$0xff]  ;;  %v6853_v36 = vld [vmem:[#allocation2 + $0x8] sm:$0xff] }
 0x95a   :  { %6829 = vst.msk [vmem:[#allocation2 + $0x48] sm:$0xff] %vm6463_vm0, %v6797_v51  ;;  %v6774_v12 = vadd.f32 %v15013_v35, %v6739_v7  ;;  %v6802_v38 = vmax.f32 %v6770_v31, 0.0  ;;  %v6715_v37 = vmul.f32 %v15008_v47, %v14790_v57  ;;  %v6744_v49 = vmul.f32 %v15006_v14, %v6709_v45  ;;  %v8403_v57 = vld [vmem:[%s15540_s5 + $0x38] sm:$0xff] }
 0x95b   :  { %6830 = vst.msk [vmem:[#allocation2 + $0x50] sm:$0xff] %vm6463_vm0, %v6798_v50  ;;  %v6775_v30 = vadd.f32 %v15013_v35, %v6740_v3  ;;  %v6803_v11 = vmax.f32 %v6771_v15, 0.0  ;;  %v6717_v0 = vmul.f32 %v15008_v47, %v14796_v56  ;;  %v6745_v23 = vmul.f32 %v15006_v14, %v6710_v43  ;;  %7051 = vmatpush.msra.mxu0 %v8403_v57  ;;  %v6870_v4 = vld [vmem:[#allocation2 + $0x18] sm:$0xff] }
 0x95c   :  { %6831 = vst.msk [vmem:[#allocation2 + $0x58] sm:$0xff] %vm6463_vm0, %v6799_v2  ;;  %v6776_v55 = vadd.f32 %v15013_v35, %v6741_v6  ;;  %v6804_v63 = vmax.f32 %v6772_v58, 0.0  ;;  %v6746_v9 = vmul.f32 %v15006_v14, %v6711_v46  ;;  %v6777_v59 = vadd.f32 %v15013_v35, %v6742_v5  ;;  %8505 = vmatpush.msra.mxu2 %v8403_v57  ;;  %v6855_v7 = vld [vmem:[#allocation2 + $0x28] sm:$0xff] }
 0x95d   :  { %6832 = vst.msk [vmem:[#allocation2 + $0x60] sm:$0xff] %vm6463_vm0, %v6800_v44  ;;  %v6805_v56 = vmax.f32 %v6773_v54, 0.0  ;;  %v6747_v47 = vmul.f32 %v15006_v14, %v6712_v26  ;;  %v6778_v1 = vadd.f32 %v15013_v35, %v6743_v61  ;;  %v6806_v60 = vmax.f32 %v6774_v12, 0.0  ;;  %8504 = vmatpush.msra.mxu1 %v8403_v57  ;;  %8506 = vmatpush.msra.mxu3 %v8403_v57 }
 0x95e   :  { %6833 = vst.msk [vmem:[#allocation2 + $0x68] sm:$0xff] %vm6463_vm0, %v6801_v42  ;;  %v6748_v48 = vmul.f32 %v15006_v14, %v6713_v17  ;;  %v6779_v8 = vadd.f32 %v15013_v35, %v6744_v49  ;;  %v6807_v25 = vmax.f32 %v6775_v30, 0.0  ;;  %7052 = vmatpush.msra.mxu0 %v8402_v21  ;;  %8508 = vmatpush.msra.mxu2 %v8402_v21  ;;  %v6808_v27 = vmax.f32 %v6776_v55, 0.0  ;;  %v6871_v45 = vld [vmem:[#allocation2 + $0x30] sm:$0xff] }
 0x95f   :  { %6834 = vst.msk [vmem:[#allocation2 + $0x70] sm:$0xff] %vm6463_vm0, %v6802_v38  ;;  %v6750_v34 = vmul.f32 %v15006_v14, %v6715_v37  ;;  %v6780_v62 = vadd.f32 %v15013_v35, %v6745_v23  ;;  %8507 = vmatpush.msra.mxu1 %v8402_v21  ;;  %8509 = vmatpush.msra.mxu3 %v8402_v21  ;;  %v6809_v53 = vmax.f32 %v6777_v59, 0.0  ;;  %v6810_v40 = vmax.f32 %v6778_v1, 0.0  ;;  %v6872_v31 = vld [vmem:[#allocation2 + $0x38] sm:$0xff] }
 0x960   :  { %6835 = vst.msk [vmem:[#allocation2 + $0x78] sm:$0xff] %vm6463_vm0, %v6803_v11  ;;  %v6752_v18 = vmul.f32 %v15006_v14, %v6717_v0  ;;  %v6781_v10 = vadd.f32 %v15013_v35, %v6746_v9  ;;  %7053 = vmatpush.msra.mxu0 %v8401_v41  ;;  %8511 = vmatpush.msra.mxu2 %v8401_v41  ;;  %v6811_v33 = vmax.f32 %v6779_v8, 0.0  ;;  %v6856_v43 = vld [vmem:[#allocation2 + $0x40] sm:$0xff]  ;;  %v8423_v1 = vld [vmem:[%s15540_s5 + $0x58] sm:$0xff] }
 0x961   :  { %6836 = vst.msk [vmem:[#allocation2 + $0x80] sm:$0xff] %vm6463_vm0, %v6804_v63  ;;  %v6782_v20 = vadd.f32 %v15013_v35, %v6747_v47  ;;  %8510 = vmatpush.msra.mxu1 %v8401_v41  ;;  %8512 = vmatpush.msra.mxu3 %v8401_v41  ;;  %v6783_v24 = vadd.f32 %v15013_v35, %v6748_v48  ;;  %v6812_v39 = vmax.f32 %v6780_v62, 0.0  ;;  %v6857_v2 = vld [vmem:[#allocation2 + $0x48] sm:$0xff]  ;;  %v8539_v62 = vmov 0.0  }
 0x962   :  { %6837 = vst.msk [vmem:[#allocation2 + $0x88] sm:$0xff] %vm6463_vm0, %v6805_v56  ;;  %7054 = vmatpush.msra.mxu0 %v8400_v28  ;;  %8514 = vmatpush.msra.mxu2 %v8400_v28  ;;  %v6785_v14 = vadd.f32 %v15013_v35, %v6750_v34  ;;  %v6787_v32 = vadd.f32 %v15013_v35, %v6752_v18  ;;  %v6813_v13 = vmax.f32 %v6781_v10, 0.0  ;;  %v6854_v35 = vld [vmem:[#allocation2 + $0x20] sm:$0xff]  ;;  %v6873_v3 = vld [vmem:[#allocation2 + $0x50] sm:$0xff]  ;;  %v7001_v18 = vld [vmem:[%s15540_s5 + $0x18] sm:$0xff] }
 0x963   :  { %6838 = vst.msk [vmem:[#allocation2 + $0x90] sm:$0xff] %vm6463_vm0, %v6806_v60  ;;  %8513 = vmatpush.msra.mxu1 %v8400_v28  ;;  %8515 = vmatpush.msra.mxu3 %v8400_v28  ;;  %v6814_v22 = vmax.f32 %v6782_v20, 0.0  ;;  %v6815_v16 = vmax.f32 %v6783_v24, 0.0  ;;  %v6885_v50 = vmax.f32 %v6852_v29, %v6869_v52  ;;  %v6886_v15 = vmax.f32 %v6853_v36, %v6870_v4  ;;  %v6874_v46 = vld [vmem:[#allocation2 + $0x58] sm:$0xff]  ;;  %v8422_v10 = vld [vmem:[%s15540_s5 + $0x50] sm:$0xff]  ;;  %v6998_v29 = vld [vmem:[%s15540_s5] sm:$0xff] }
 0x964   :  { %6839 = vst.msk [vmem:[#allocation2 + $0x98] sm:$0xff] %vm6463_vm0, %v6807_v25  ;;  %v6817_v19 = vmax.f32 %v6785_v14, 0.0  ;;  %v6819_v51 = vmax.f32 %v6787_v32, 0.0  ;;  %v6887_v6 = vmax.f32 %v6854_v35, %v6871_v45  ;;  %v6858_v58 = vld [vmem:[#allocation2 + $0x60] sm:$0xff]  ;;  %v6888_v26 = vmax.f32 %v6855_v7, %v6872_v31  ;;  %7194 = vmatpush.msrb.mxu2 %v8423_v1  ;;  %v8447_v28 = vld [vmem:[%s15540_s5 + $0x98] sm:$0xff]  ;;  %v8434_v20 = vld [vmem:[%s15540_s5 + $0x70] sm:$0xff] }
 0x965   :  { %6840 = vst.msk [vmem:[#allocation2 + $0xa0] sm:$0xff] %vm6463_vm0, %v6808_v27  ;;  %v6859_v5 = vld [vmem:[#allocation2 + $0x68] sm:$0xff]  ;;  %v6889_v42 = vmax.f32 %v6856_v43, %v6873_v3  ;;  %v6890_v12 = vmax.f32 %v6857_v2, %v6874_v46  ;;  %v8435_v27 = vld [vmem:[%s15540_s5 + $0x78] sm:$0xff]  ;;  %7366 = vmatpush.msrb.mxu0 %v8447_v28  ;;  %7116 = vmatpush.msrb.mxu1 %v7001_v18  ;;  %v7000_v24 = vld [vmem:[%s15540_s5 + $0x10] sm:$0xff] }
 0x966   :  { %6841 = vst.msk [vmem:[#allocation2 + $0xa8] sm:$0xff] %vm6463_vm0, %v6809_v53  ;;  %v6875_v44 = vld [vmem:[#allocation2 + $0x70] sm:$0xff]  ;;  %7280 = vmatpush.msrb.mxu3 %v8435_v27  ;;  %7195 = vmatpush.msrb.mxu2 %v8422_v10  ;;  %v8420_v14 = vld [vmem:[%s15540_s5 + $0x40] sm:$0xff]  ;;  %v8471_v45 = vld [vmem:[%s15540_s5 + $0xd8] sm:$0xff] }
 0x967   :  { %6842 = vst.msk [vmem:[#allocation2 + $0xb0] sm:$0xff] %vm6463_vm0, %v6810_v40  ;;  %v6876_v54 = vld [vmem:[#allocation2 + $0x78] sm:$0xff]  ;;  %v6891_v49 = vmax.f32 %v6858_v58, %v6875_v44  ;;  %v8446_v53 = vld [vmem:[%s15540_s5 + $0x90] sm:$0xff]  ;;  %v8421_v40 = vld [vmem:[%s15540_s5 + $0x48] sm:$0xff]  ;;  %7117 = vmatpush.msrb.mxu1 %v7000_v24 }
 0x968   :  { %6843 = vst.msk [vmem:[#allocation2 + $0xb8] sm:$0xff] %vm6463_vm0, %v6811_v33  ;;  %v6860_v17 = vld [vmem:[#allocation2 + $0x80] sm:$0xff]  ;;  %v6892_v0 = vmax.f32 %v6859_v5, %v6876_v54  ;;  %7367 = vmatpush.msrb.mxu0 %v8446_v53  ;;  %7281 = vmatpush.msrb.mxu3 %v8434_v20  ;;  %v8445_v33 = vld [vmem:[%s15540_s5 + $0x88] sm:$0xff] }
 0x969   :  { %6844 = vst.msk [vmem:[#allocation2 + $0xc0] sm:$0xff] %vm6463_vm0, %v6812_v39  ;;  %v6861_v38 = vld [vmem:[#allocation2 + $0x88] sm:$0xff]  ;;  %7196 = vmatpush.msrb.mxu2 %v8421_v40  ;;  %v8444_v32 = vld [vmem:[%s15540_s5 + $0x80] sm:$0xff] }
 0x96a   :  { %6845 = vst.msk [vmem:[#allocation2 + $0xc8] sm:$0xff] %vm6463_vm0, %v6813_v13  ;;  %v6877_v61 = vld [vmem:[#allocation2 + $0x90] sm:$0xff]  ;;  %7368 = vmatpush.msrb.mxu0 %v8445_v33  ;;  %v8433_v13 = vld [vmem:[%s15540_s5 + $0x68] sm:$0xff]  ;;  %v8468_v28 = vld [vmem:[%s15540_s5 + $0xc0] sm:$0xff] }
 0x96b   :  { %6846 = vst.msk [vmem:[#allocation2 + $0xd0] sm:$0xff] %vm6463_vm0, %v6814_v22  ;;  %v6878_v37 = vld [vmem:[#allocation2 + $0x98] sm:$0xff]  ;;  %v6893_v63 = vmax.f32 %v6860_v17, %v6877_v61  ;;  %7197 = vmatpush.msrb.mxu2 %v8420_v14  ;;  %v6999_v22 = vld [vmem:[%s15540_s5 + $0x8] sm:$0xff]  ;;  %7282 = vmatpush.msrb.mxu3 %v8433_v13  ;;  %v8480_v20 = vld [vmem:[%s15540_s5 + $0xe0] sm:$0xff] }
 0x96c   :  { %6847 = vst.msk [vmem:[#allocation2 + $0xd8] sm:$0xff] %vm6463_vm0, %v6815_v16  ;;  %v6862_v30 = vld [vmem:[#allocation2 + $0xa0] sm:$0xff]  ;;  %v6894_v9 = vmax.f32 %v6861_v38, %v6878_v37  ;;  %7369 = vmatpush.msrb.mxu0 %v8444_v32  ;;  %7118 = vmatpush.msrb.mxu1 %v6999_v22  ;;  %v8495_v38 = vld [vmem:[%s15540_s5 + $0x118] sm:$0xff]  ;;  %v8470_v37 = vld [vmem:[%s15540_s5 + $0xd0] sm:$0xff] }
 0x96d   :  { %6849 = vst.msk [vmem:[#allocation2 + $0xe8] sm:$0xff] %vm6463_vm0, %v6817_v19  ;;  %v6863_v23 = vld [vmem:[#allocation2 + $0xa8] sm:$0xff]  ;;  %v8432_v16 = vld [vmem:[%s15540_s5 + $0x60] sm:$0xff] }
 0x96e   :  { %6851 = vst.msk [vmem:[#allocation2 + $0xf8] sm:$0xff] %vm6463_vm0, %v6819_v51  ;;  %v6879_v11 = vld [vmem:[#allocation2 + $0xb0] sm:$0xff]  ;;  %7283 = vmatpush.msrb.mxu3 %v8432_v16  ;;  %7119 = vmatpush.msrb.mxu1 %v6998_v29  ;;  %v8469_v1 = vld [vmem:[%s15540_s5 + $0xc8] sm:$0xff]  ;;  %v8456_v40 = vld [vmem:[%s15540_s5 + $0xa0] sm:$0xff] }
 0x96f   :  { %6901 = vst.msk [vmem:[#allocation3] sm:$0xff] %vm6463_vm0, %v6885_v50  ;;  %v6880_v55 = vld [vmem:[#allocation2 + $0xb8] sm:$0xff]  ;;  %v6895_v47 = vmax.f32 %v6862_v30, %v6879_v11  ;;  %v8493_v27 = vld [vmem:[%s15540_s5 + $0x108] sm:$0xff]  ;;  %v8492_v24 = vld [vmem:[%s15540_s5 + $0x100] sm:$0xff] }
 0x970   :  { %6902 = vst.msk [vmem:[#allocation3 + $0x8] sm:$0xff] %vm6463_vm0, %v6886_v15  ;;  %v6864_v57 = vld [vmem:[#allocation2 + $0xc0] sm:$0xff]  ;;  %v6896_v48 = vmax.f32 %v6863_v23, %v6880_v55  ;;  %v8459_v11 = vld [vmem:[%s15540_s5 + $0xb8] sm:$0xff] }
 0x971   :  { %6903 = vst.msk [vmem:[#allocation3 + $0x10] sm:$0xff] %vm6463_vm0, %v6887_v6  ;;  %v6865_v59 = vld [vmem:[#allocation2 + $0xc8] sm:$0xff]  ;;  %v8483_v55 = vld [vmem:[%s15540_s5 + $0xf8] sm:$0xff] }
 0x972   :  { %6904 = vst.msk [vmem:[#allocation3 + $0x18] sm:$0xff] %vm6463_vm0, %v6888_v26  ;;  %v6881_v21 = vld [vmem:[#allocation2 + $0xd0] sm:$0xff] }
 0x973   :  { %6905 = vst.msk [vmem:[#allocation3 + $0x20] sm:$0xff] %vm6463_vm0, %v6889_v42  ;;  %v6882_v56 = vld [vmem:[#allocation2 + $0xd8] sm:$0xff]  ;;  %v6897_v8 = vmax.f32 %v6864_v57, %v6881_v21  ;;  %v8482_v57 = vld [vmem:[%s15540_s5 + $0xf0] sm:$0xff] }
 0x974   :  { %6906 = vst.msk [vmem:[#allocation3 + $0x28] sm:$0xff] %vm6463_vm0, %v6890_v12  ;;  %v6867_v60 = vld [vmem:[#allocation2 + $0xe8] sm:$0xff]  ;;  %v6898_v25 = vmax.f32 %v6865_v59, %v6882_v56  ;;  %v8458_v21 = vld [vmem:[%s15540_s5 + $0xb0] sm:$0xff] }
 0x975   :  { %6907 = vst.msk [vmem:[#allocation3 + $0x30] sm:$0xff] %vm6463_vm0, %v6891_v49  ;;  %v6884_v41 = vld [vmem:[#allocation2 + $0xf8] sm:$0xff] }
 0x976   :  { %6908 = vst.msk [vmem:[#allocation3 + $0x38] sm:$0xff] %vm6463_vm0, %v6892_v0  ;;  %v6900_v34 = vmax.f32 %v6867_v60, %v6884_v41 }
 0x977   :  { %6909 = vst.msk [vmem:[#allocation3 + $0x40] sm:$0xff] %vm6463_vm0, %v6893_v63  ;;  %v6917_v52 = vld [vmem:[#allocation3] ss:$2 sm:$0xff]  ;;  %v6933_v19 = vld [vmem:[#allocation3 + $0x1] ss:$2 sm:$0xff] }
 0x978   :  { %6910 = vst.msk [vmem:[#allocation3 + $0x48] sm:$0xff] %vm6463_vm0, %v6894_v9  ;;  %v6948_v31 = vmax.f32 %v6917_v52, %v6933_v19 }
 0x979   :  { %6911 = vst.msk [vmem:[#allocation3 + $0x50] sm:$0xff] %vm6463_vm0, %v6895_v47  ;;  %v6919_v36 = vld [vmem:[#allocation3 + $0x10] ss:$2 sm:$0xff]  ;;  %v6935_v4 = vld [vmem:[#allocation3 + $0x11] ss:$2 sm:$0xff] }
 0x97a   :  { %6912 = vst.msk [vmem:[#allocation3 + $0x58] sm:$0xff] %vm6463_vm0, %v6896_v48  ;;  %v6949_v3 = vmax.f32 %v6919_v36, %v6935_v4  ;;  %v8494_v47 = vld [vmem:[%s15540_s5 + $0x110] sm:$0xff] }
 0x97b   :  { %6913 = vst.msk [vmem:[#allocation3 + $0x60] sm:$0xff] %vm6463_vm0, %v6897_v8  ;;  %v6921_v15 = vld [vmem:[#allocation3 + $0x20] ss:$2 sm:$0xff]  ;;  %v6937_v2 = vld [vmem:[#allocation3 + $0x21] ss:$2 sm:$0xff] }
 0x97c   :  { %6914 = vst.msk [vmem:[#allocation3 + $0x68] sm:$0xff] %vm6463_vm0, %v6898_v25  ;;  %v6950_v54 = vmax.f32 %v6921_v15, %v6937_v2  ;;  %v8481_v8 = vld [vmem:[%s15540_s5 + $0xe8] sm:$0xff] }
 0x97d   :  { %6916 = vst.msk [vmem:[#allocation3 + $0x78] sm:$0xff] %vm6463_vm0, %v6900_v34  ;;  %v6923_v26 = vld [vmem:[#allocation3 + $0x30] ss:$2 sm:$0xff]  ;;  %v6939_v5 = vld [vmem:[#allocation3 + $0x31] ss:$2 sm:$0xff]  ;;  %v8457_v25 = vld [vmem:[%s15540_s5 + $0xa8] sm:$0xff] }
 0x97e   :  { %6956 = vst.msk [vmem:[#allocation4] sm:$0xff] %vm6463_vm0, %v8539_v62  ;;  %v6951_v12 = vmax.f32 %v6923_v26, %v6939_v5 }
 0x97f   :  { %6958 = vst.msk [vmem:[#allocation4 + $0x8] sm:$0x3] %vm6957_vm5, %v8539_v62  ;;  %v6925_v51 = vld [vmem:[#allocation3 + $0x40] ss:$2 sm:$0xff]  ;;  %v6941_v35 = vld [vmem:[#allocation3 + $0x41] ss:$2 sm:$0xff] }
 0x980   :  { %6959 = vst.msk [vmem:[#allocation4 + $0x10] sm:$0xff] %vm6463_vm0, %v8539_v62  ;;  %v6952_v46 = vmax.f32 %v6925_v51, %v6941_v35 }
 0x981   :  { %6960 = vst.msk [vmem:[#allocation4 + $0x18] sm:$0x3] %vm6957_vm5, %v8539_v62  ;;  %v6927_v50 = vld [vmem:[#allocation3 + $0x50] ss:$2 sm:$0xff]  ;;  %v6943_v43 = vld [vmem:[#allocation3 + $0x51] ss:$2 sm:$0xff] }
 0x982   :  { %6961 = vst.msk [vmem:[#allocation4 + $0x20] sm:$0xff] %vm6463_vm0, %v8539_v62  ;;  %v6953_v44 = vmax.f32 %v6927_v50, %v6943_v43 }
 0x983   :  { %6962 = vst.msk [vmem:[#allocation4 + $0x28] sm:$0x3] %vm6957_vm5, %v8539_v62  ;;  %v6929_v6 = vld [vmem:[#allocation3 + $0x60] ss:$2 sm:$0xff]  ;;  %v6945_v58 = vld [vmem:[#allocation3 + $0x61] ss:$2 sm:$0xff] }
 0x984   :  { %6963 = vst.msk [vmem:[#allocation4 + $0x30] sm:$0xff] %vm6463_vm0, %v8539_v62  ;;  %v6931_v42 = vld [vmem:[#allocation3 + $0x70] ss:$2 sm:$0xff]  ;;  %v6947_v17 = vld [vmem:[#allocation3 + $0x71] ss:$2 sm:$0xff]  ;;  %v6954_v61 = vmax.f32 %v6929_v6, %v6945_v58 }
 0x985   :  { %6964 = vst.msk [vmem:[#allocation4 + $0x38] sm:$0x3] %vm6957_vm5, %v8539_v62  ;;  %v6955_v49 = vmax.f32 %v6931_v42, %v6947_v17  ;;  %v6990_v60 = vld [vmem:[#allocation4] sm:$0xff] }
 0x986   :  { %v7002_v39 = vld [vmem:[#allocation4 + $0x1] sm:$0xff]  ;;  %6965 = vst.msk [vmem:[#allocation4 + $0x40] sm:$0xff] %vm6463_vm0, %v8539_v62 }
 0x987   :  { %8404 = vmatmul.msk.f32.vlgmr.msra.gmra.mxu0 %vm6463_vm0, %v7002_v39  ;;  %6966 = vst.msk [vmem:[#allocation4 + $0x48] sm:$0x3] %vm6957_vm5, %v8539_v62  ;;  %v7145_v9 = vld [vmem:[#allocation4 + $0x2] sm:$0xff] }
 0x988   :  { %6967 = vst.msk [vmem:[#allocation4 + $0x50] sm:$0xff] %vm6463_vm0, %v8539_v62  ;;  %7711 = vmatpush.msra.mxu0 %v8495_v38 }
 0x989   :  { %6968 = vst.msk [vmem:[#allocation4 + $0x58] sm:$0x3] %vm6957_vm5, %v8539_v62 }
 0x98a   :  { %6969 = vst.msk [vmem:[#allocation4 + $0x60] sm:$0xff] %vm6463_vm0, %v8539_v62  ;;  %7712 = vmatpush.msra.mxu0 %v8494_v47 }
 0x98b   :  { %6970 = vst.msk [vmem:[#allocation4 + $0x68] sm:$0x3] %vm6957_vm5, %v8539_v62 }
 0x98c   :  { %6971 = vst.msk [vmem:[#allocation4 + $0x70] sm:$0xff] %vm6463_vm0, %v8539_v62  ;;  %7713 = vmatpush.msra.mxu0 %v8493_v27 }
 0x98d   :  { %6972 = vst.msk [vmem:[#allocation4 + $0x78] sm:$0x3] %vm6957_vm5, %v8539_v62 }
 0x98e   :  { %6973 = vst.msk [vmem:[#allocation4 + $0x80] sm:$0xff] %vm6463_vm0, %v8539_v62  ;;  %7714 = vmatpush.msra.mxu0 %v8492_v24 }
 0x98f   :  { %6974 = vst.msk [vmem:[#allocation4 + $0x88] sm:$0x3] %vm6957_vm5, %v8539_v62  ;;  %v7493_v35 = vld [vmem:[#allocation4 + $0x50] sm:$0xff] }
 0x990   :  { %6975 = vst.msk [vmem:[#allocation4 + $0x90] sm:$0xff] %vm6463_vm0, %v8539_v62  ;;  %v7665_v51 = vld [vmem:[#allocation4 + $0x52] sm:$0xff] }
 0x991   :  { %6976 = vst.msk [vmem:[#allocation4 + $0x98] sm:$0x3] %vm6957_vm5, %v8539_v62  ;;  %v6994_v39 = vld [vmem:[#allocation4 + $0x60] sm:$0xff] }
 0x992   :  { %6977 = vst.msk [vmem:[#allocation4 + $0xa0] sm:$0xff] %vm6463_vm0, %v8539_v62  ;;  %v7006_v7 = vld [vmem:[#allocation4 + $0x61] sm:$0xff] }
 0x993   :  { %6978 = vst.msk [vmem:[#allocation4 + $0xa8] sm:$0x3] %vm6957_vm5, %v8539_v62  ;;  %8408 = vmatmul.msk.f32.vlgmr.msra.gmra.mxu2 %vm6463_vm0, %v7006_v7  ;;  %v7149_v33 = vld [vmem:[#allocation4 + $0x62] sm:$0xff] }
 0x994   :  { %6979 = vst.msk [vmem:[#allocation4 + $0xb0] sm:$0xff] %vm6463_vm0, %v8539_v62  ;;  %7539 = vmatpush.msra.mxu2 %v8471_v45  ;;  %v7579_v45 = vld [vmem:[#allocation4 + $0x51] sm:$0xff] }
 0x995   :  { %6980 = vst.msk [vmem:[#allocation4 + $0xb8] sm:$0x3] %vm6957_vm5, %v8539_v62 }
 0x996   :  { %6982 = vst.msk [vmem:[#allocation4 + $0x11] sm:$0xff] %vm6463_vm0, %v6948_v31  ;;  %7540 = vmatpush.msra.mxu2 %v8470_v37 }
 0x997   :  { %6983 = vst.msk [vmem:[#allocation4 + $0x21] sm:$0xff] %vm6463_vm0, %v6949_v3 }
 0x998   :  { %6986 = vst.msk [vmem:[#allocation4 + $0x71] sm:$0xff] %vm6463_vm0, %v6952_v46  ;;  %7541 = vmatpush.msra.mxu2 %v8469_v1 }
 0x999   :  { %6987 = vst.msk [vmem:[#allocation4 + $0x81] sm:$0xff] %vm6463_vm0, %v6953_v44 }
 0x99a   :  { %6984 = vst.msk [vmem:[#allocation4 + $0x31] sm:$0xff] %vm6463_vm0, %v6950_v54  ;;  %7542 = vmatpush.msra.mxu2 %v8468_v28 }
 0x99b   :  { %6988 = vst.msk [vmem:[#allocation4 + $0x91] sm:$0xff] %vm6463_vm0, %v6954_v61  ;;  %v7497_v2 = vld [vmem:[#allocation4 + $0xb0] sm:$0xff] }
 0x99c   :  { %6985 = vst.msk [vmem:[#allocation4 + $0x41] sm:$0xff] %vm6463_vm0, %v6951_v12  ;;  %v7669_v3 = vld [vmem:[#allocation4 + $0xb2] sm:$0xff] }
 0x99d   :  { %v7003_v30 = vld [vmem:[#allocation4 + $0x11] sm:$0xff]  ;;  %6989 = vst.msk [vmem:[#allocation4 + $0xa1] sm:$0xff] %vm6463_vm0, %v6955_v49 }
 0x99e   :  { %8405 = vmatmul.msk.f32.gmra.mxu0 %vm6463_vm0, %v7003_v30  ;;  %v15322_v0 = vld [vmem:[#allocation4 + $0x21] sm:$0xff]  ;;  %v15359_v41 = vld [vmem:[#allocation4 + $0x12] sm:$0xff] }
 0x99f   :  { %8406 = vmatmul.msk.f32.vlgmr.msra.gmra.mxu1 %vm6463_vm0, %v15322_v0  ;;  %v7007_v23 = vld [vmem:[#allocation4 + $0x71] sm:$0xff]  ;;  %v7147_v34 = vld [vmem:[#allocation4 + $0x22] sm:$0xff] }
 0x9a0   :  { %8409 = vmatmul.msk.f32.gmra.mxu2 %vm6463_vm0, %v7007_v23  ;;  %v15330_v63 = vld [vmem:[#allocation4 + $0x81] sm:$0xff]  ;;  %7452 = vmatpush.msra.mxu1 %v8459_v11  ;;  %v7231_v48 = vld [vmem:[#allocation4 + $0x10] sm:$0xff] }
 0x9a1   :  { %8410 = vmatmul.msk.f32.vlgmr.msra.gmra.mxu3 %vm6463_vm0, %v15330_v63  ;;  %v15340_v59 = vld [vmem:[#allocation4 + $0x31] sm:$0xff]  ;;  %v7232_v62 = vld [vmem:[#allocation4 + $0x20] sm:$0xff] }
 0x9a2   :  { %7625 = vmatpush.msra.mxu3 %v8483_v55  ;;  %7453 = vmatpush.msra.mxu1 %v8458_v21  ;;  %v15345_v56 = vld [vmem:[#allocation4 + $0x91] sm:$0xff]  ;;  %v7151_v22 = vld [vmem:[#allocation4 + $0x82] sm:$0xff] }
 0x9a3   :  { %v7320_v18 = vld [vmem:[#allocation4 + $0x41] sm:$0xff]  ;;  %v7148_v10 = vld [vmem:[#allocation4 + $0x32] sm:$0xff] }
 0x9a4   :  { %7626 = vmatpush.msra.mxu3 %v8482_v57  ;;  %7454 = vmatpush.msra.mxu1 %v8457_v25  ;;  %v7233_v53 = vld [vmem:[#allocation4 + $0x30] sm:$0xff]  ;;  %v7234_v14 = vld [vmem:[#allocation4 + $0x40] sm:$0xff] }
 0x9a5   :  { %v7150_v32 = vld [vmem:[#allocation4 + $0x72] sm:$0xff]  ;;  %v7236_v16 = vld [vmem:[#allocation4 + $0x80] sm:$0xff] }
 0x9a6   :  { %8448 = vmatmul.msk.f32.vlgmr.msrb.gmra.mxu0 %vm6463_vm0, %v7003_v30  ;;  %7627 = vmatpush.msra.mxu3 %v8481_v8  ;;  %v7235_v13 = vld [vmem:[#allocation4 + $0x70] sm:$0xff]  ;;  %v7324_v29 = vld [vmem:[#allocation4 + $0xa1] sm:$0xff] }
 0x9a7   :  { %8407 = vmatmul.msk.f32.gmra.mxu1 %vm6463_vm0, %v15340_v59  ;;  %v7152_v52 = vld [vmem:[#allocation4 + $0x92] sm:$0xff]  ;;  %v7238_v36 = vld [vmem:[#allocation4 + $0xa0] sm:$0xff] }
 0x9a8   :  { %8424 = vmatmul.msk.f32.vlgmr.msrb.gmra.mxu2 %vm6463_vm0, %v7145_v9  ;;  %7628 = vmatpush.msra.mxu3 %v8480_v20  ;;  %v7237_v19 = vld [vmem:[#allocation4 + $0x90] sm:$0xff]  ;;  %v7664_v4 = vld [vmem:[#allocation4 + $0x42] sm:$0xff] }
 0x9a9   :  { %8411 = vmatmul.msk.f32.gmra.mxu3 %vm6463_vm0, %v15345_v56  ;;  %7455 = vmatpush.msra.mxu1 %v8456_v40  ;;  %v7668_v31 = vld [vmem:[#allocation4 + $0xa2] sm:$0xff]  ;;  %v7583_v26 = vld [vmem:[#allocation4 + $0xb1] sm:$0xff] }
 0x9ae   :  { %8449 = vmatmul.msk.f32.gmra.mxu0 %vm6463_vm0, %v15322_v0 }
 0x9af   :  { %8412 = vmatmul.msk.f32.vlgmr.msrb.gmra.mxu1 %vm6463_vm0, %v6990_v60 }
 0x9b0   :  { %8425 = vmatmul.msk.f32.gmra.mxu2 %vm6463_vm0, %v15359_v41 }
 0x9b1   :  { %8436 = vmatmul.msk.f32.vlgmr.msrb.gmra.mxu3 %vm6463_vm0, %v7231_v48 }
 0x9b6   :  { %8450 = vmatmul.msk.f32.gmra.mxu0 %vm6463_vm0, %v15340_v59 }
 0x9b7   :  { %8413 = vmatmul.msk.f32.gmra.mxu1 %vm6463_vm0, %v7231_v48 }
 0x9b8   :  { %8426 = vmatmul.msk.f32.gmra.mxu2 %vm6463_vm0, %v7147_v34 }
 0x9b9   :  { %8437 = vmatmul.msk.f32.gmra.mxu3 %vm6463_vm0, %v7232_v62 }
 0x9be   :  { %8451 = vmatmul.msk.f32.gmra.mxu0 %vm6463_vm0, %v7320_v18 }
 0x9bf   :  { %8414 = vmatmul.msk.f32.gmra.mxu1 %vm6463_vm0, %v7232_v62 }
 0x9c0   :  { %8427 = vmatmul.msk.f32.gmra.mxu2 %vm6463_vm0, %v7148_v10 }
 0x9c1   :  { %8438 = vmatmul.msk.f32.gmra.mxu3 %vm6463_vm0, %v7233_v53 }
 0x9c6   :  { %8452 = vmatmul.msk.f32.gmra.mxu0 %vm6463_vm0, %v7007_v23 }
 0x9c7   :  { %8415 = vmatmul.msk.f32.gmra.mxu1 %vm6463_vm0, %v7233_v53 }
 0x9c8   :  { %8428 = vmatmul.msk.f32.gmra.mxu2 %vm6463_vm0, %v7149_v33 }
 0x9c9   :  { %8439 = vmatmul.msk.f32.gmra.mxu3 %vm6463_vm0, %v7234_v14 }
 0x9ce   :  { %8453 = vmatmul.msk.f32.gmra.mxu0 %vm6463_vm0, %v15330_v63 }
 0x9cf   :  { %8416 = vmatmul.msk.f32.gmra.mxu1 %vm6463_vm0, %v6994_v39 }
 0x9d0   :  { %8429 = vmatmul.msk.f32.gmra.mxu2 %vm6463_vm0, %v7150_v32 }
 0x9d1   :  { %8440 = vmatmul.msk.f32.gmra.mxu3 %vm6463_vm0, %v7235_v13 }
 0x9d6   :  { %8454 = vmatmul.msk.f32.gmra.mxu0 %vm6463_vm0, %v15345_v56 }
 0x9d7   :  { %8417 = vmatmul.msk.f32.gmra.mxu1 %vm6463_vm0, %v7235_v13 }
 0x9d8   :  { %8430 = vmatmul.msk.f32.gmra.mxu2 %vm6463_vm0, %v7151_v22 }
 0x9d9   :  { %8441 = vmatmul.msk.f32.gmra.mxu3 %vm6463_vm0, %v7236_v16 }
 0x9de   :  { %8455 = vmatmul.msk.f32.gmra.mxu0 %vm6463_vm0, %v7324_v29 }
 0x9df   :  { %8418 = vmatmul.msk.f32.gmra.mxu1 %vm6463_vm0, %v7236_v16 }
 0x9e0   :  { %8431 = vmatmul.msk.f32.gmra.mxu2 %vm6463_vm0, %v7152_v52 }
 0x9e1   :  { %8442 = vmatmul.msk.f32.gmra.mxu3 %vm6463_vm0, %v7237_v19 }
 0x9e6   :  { %8496 = vmatmul.msk.f32.vlgmr.msra.gmra.mxu0 %vm6463_vm0, %v7147_v34 }
 0x9e7   :  { %8419 = vmatmul.msk.f32.gmra.mxu1 %vm6463_vm0, %v7237_v19 }
 0x9e8   :  { %8472 = vmatmul.msk.f32.vlgmr.msra.gmra.mxu2 %vm6463_vm0, %v7232_v62 }
 0x9e9   :  { %8443 = vmatmul.msk.f32.gmra.mxu3 %vm6463_vm0, %v7238_v36 }
 0x9ee   :  { %8497 = vmatmul.msk.f32.gmra.mxu0 %vm6463_vm0, %v7148_v10 }
 0x9ef   :  { %8460 = vmatmul.msk.f32.vlgmr.msra.gmra.mxu1 %vm6463_vm0, %v15359_v41 }
 0x9f0   :  { %8473 = vmatmul.msk.f32.gmra.mxu2 %vm6463_vm0, %v7233_v53 }
 0x9f1   :  { %8484 = vmatmul.msk.f32.vlgmr.msra.gmra.mxu3 %vm6463_vm0, %v15322_v0 }
 0x9f6   :  { %8498 = vmatmul.msk.f32.gmra.mxu0 %vm6463_vm0, %v7664_v4 }
 0x9f7   :  { %8461 = vmatmul.msk.f32.gmra.mxu1 %vm6463_vm0, %v7147_v34 }
 0x9f8   :  { %8474 = vmatmul.msk.f32.gmra.mxu2 %vm6463_vm0, %v7234_v14 }
 0x9f9   :  { %8485 = vmatmul.msk.f32.gmra.mxu3 %vm6463_vm0, %v15340_v59 }
 0x9fe   :  { %8499 = vmatmul.msk.f32.gmra.mxu0 %vm6463_vm0, %v7665_v51 }
 0x9ff   :  { %8462 = vmatmul.msk.f32.gmra.mxu1 %vm6463_vm0, %v7148_v10 }
 0xa00   :  { %8475 = vmatmul.msk.f32.gmra.mxu2 %vm6463_vm0, %v7493_v35 }
 0xa01   :  { %8486 = vmatmul.msk.f32.gmra.mxu3 %vm6463_vm0, %v7320_v18 }
 0xa04   :  { %v7056_v7 = vpop.f32.mrf.mxu0 }
 0xa06   :  { %8500 = vmatmul.msk.f32.gmra.mxu0 %vm6463_vm0, %v7151_v22 }
 0xa07   :  { %8463 = vmatmul.msk.f32.gmra.mxu1 %vm6463_vm0, %v7664_v4 }
 0xa08   :  { %8476 = vmatmul.msk.f32.gmra.mxu2 %vm6463_vm0, %v7236_v16 }
 0xa09   :  { %8487 = vmatmul.msk.f32.gmra.mxu3 %vm6463_vm0, %v7579_v45 }
 0xa0e   :  { %8501 = vmatmul.msk.f32.gmra.mxu0 %vm6463_vm0, %v7152_v52 }
 0xa0f   :  { %8464 = vmatmul.msk.f32.gmra.mxu1 %vm6463_vm0, %v7150_v32 }
 0xa10   :  { %8477 = vmatmul.msk.f32.gmra.mxu2 %vm6463_vm0, %v7237_v19 }
 0xa11   :  { %8488 = vmatmul.msk.f32.gmra.mxu3 %vm6463_vm0, %v15330_v63 }
 0xa16   :  { %8502 = vmatmul.msk.f32.gmra.mxu0 %vm6463_vm0, %v7668_v31  ;;  %v7068_v50 = vpop.f32.mrf.mxu2 }
 0xa17   :  { %8465 = vmatmul.msk.f32.gmra.mxu1 %vm6463_vm0, %v7151_v22 }
 0xa18   :  { %8478 = vmatmul.msk.f32.gmra.mxu2 %vm6463_vm0, %v7238_v36 }
 0xa19   :  { %8489 = vmatmul.msk.f32.gmra.mxu3 %vm6463_vm0, %v15345_v56 }
 0xa1b   :  { %v7059_v43 = vpop.f32.mrf.mxu0 }
 0xa1c   :  { %v7062_v15 = vpop.f32.mrf.mxu1 }
 0xa1e   :  { %8503 = vmatmul.msk.f32.gmra.mxu0 %vm6463_vm0, %v7669_v3 }
 0xa1f   :  { %8466 = vmatmul.msk.f32.gmra.mxu1 %vm6463_vm0, %v7152_v52 }
 0xa20   :  { %8479 = vmatmul.msk.f32.gmra.mxu2 %vm6463_vm0, %v7497_v2 }
 0xa21   :  { %8490 = vmatmul.msk.f32.gmra.mxu3 %vm6463_vm0, %v7324_v29 }
 0xa23   :  { %v7071_v46 = vpop.f32.mrf.mxu2  ;;  %v7371_v6 = vpop.f32.mrf.mxu0 }
 0xa24   :  { %v15449_v58 = vpop.f32.mrf.mxu3  ;;  %v7065_v44 = vpop.f32.mrf.mxu1 }
 0xa27   :  { %8467 = vmatmul.msk.f32.gmra.mxu1 %vm6463_vm0, %v7668_v31 }
 0xa29   :  { %8491 = vmatmul.msk.f32.gmra.mxu3 %vm6463_vm0, %v7583_v26 }
 0xa2b   :  { %v7199_v5 = vpop.f32.mrf.mxu2  ;;  %v7374_v54 = vpop.f32.mrf.mxu0 }
 0xa2c   :  { %v15453_v42 = vpop.f32.mrf.mxu3  ;;  %v7121_v17 = vpop.f32.mrf.mxu1 }
 0xa2d   :  { %v7122_v61 = vadd.f32 %v7121_v17, %v7056_v7 }
 0xa2f   :  { %v7223_v12 = vadd.f32 %v7199_v5, %v7122_v61 }
 0xa33   :  { %v7202_v38 = vpop.f32.mrf.mxu2  ;;  %v7377_v37 = vpop.f32.mrf.mxu0 }
 0xa34   :  { %v7285_v49 = vpop.f32.mrf.mxu3  ;;  %v7124_v30 = vpop.f32.mrf.mxu1 }
 0xa35   :  { %v7309_v11 = vadd.f32 %v7285_v49, %v7223_v12  ;;  %v7125_v0 = vadd.f32 %v7124_v30, %v7059_v43 }
 0xa37   :  { %v7224_v23 = vadd.f32 %v7202_v38, %v7125_v0  ;;  %v7395_v55 = vadd.f32 %v7371_v6, %v7309_v11 }
 0xa3b   :  { %v7205_v63 = vpop.f32.mrf.mxu2  ;;  %v7380_v57 = vpop.f32.mrf.mxu0 }
 0xa3c   :  { %v7288_v21 = vpop.f32.mrf.mxu3  ;;  %v7127_v9 = vpop.f32.mrf.mxu1 }
 0xa3d   :  { %v7310_v59 = vadd.f32 %v7288_v21, %v7224_v23  ;;  %v7128_v56 = vadd.f32 %v7127_v9, %v7062_v15 }
 0xa3f   :  { %v7225_v47 = vadd.f32 %v7205_v63, %v7128_v56  ;;  %v7396_v1 = vadd.f32 %v7374_v54, %v7310_v59 }
 0xa43   :  { %v7208_v60 = vpop.f32.mrf.mxu2  ;;  %v7383_v41 = vpop.f32.mrf.mxu0 }
 0xa44   :  { %v7291_v48 = vpop.f32.mrf.mxu3  ;;  %v7130_v8 = vpop.f32.mrf.mxu1 }
 0xa45   :  { %v7311_v25 = vadd.f32 %v7291_v48, %v7225_v47  ;;  %v7131_v34 = vadd.f32 %v7130_v8, %v7065_v44 }
 0xa47   :  { %v7226_v62 = vadd.f32 %v7208_v60, %v7131_v34  ;;  %v7397_v27 = vadd.f32 %v7377_v37, %v7311_v25 }
 0xa4b   :  { %v7211_v28 = vpop.f32.mrf.mxu2  ;;  %v7386_v18 = vpop.f32.mrf.mxu0 }
 0xa4c   :  { %v7294_v10 = vpop.f32.mrf.mxu3  ;;  %v7133_v53 = vpop.f32.mrf.mxu1 }
 0xa4d   :  { %v7312_v20 = vadd.f32 %v7294_v10, %v7226_v62  ;;  %v7134_v40 = vadd.f32 %v7133_v53, %v7068_v50 }
 0xa4f   :  { %v7227_v24 = vadd.f32 %v7211_v28, %v7134_v40  ;;  %v7398_v33 = vadd.f32 %v7380_v57, %v7312_v20 }
 0xa53   :  { %v7214_v14 = vpop.f32.mrf.mxu2  ;;  %v15455_v39 = vpop.f32.mrf.mxu0 }
 0xa54   :  { %v7297_v32 = vpop.f32.mrf.mxu3  ;;  %v7136_v13 = vpop.f32.mrf.mxu1 }
 0xa55   :  { %v7313_v22 = vadd.f32 %v7297_v32, %v7227_v24  ;;  %v7137_v16 = vadd.f32 %v7136_v13, %v7071_v46 }
 0xa57   :  { %v7228_v29 = vadd.f32 %v7214_v14, %v7137_v16  ;;  %v7399_v52 = vadd.f32 %v7383_v41, %v7313_v22 }
 0xa5b   :  { %v7217_v19 = vpop.f32.mrf.mxu2  ;;  %v15457_v35 = vpop.f32.mrf.mxu0 }
 0xa5c   :  { %v7300_v36 = vpop.f32.mrf.mxu3  ;;  %v7139_v4 = vpop.f32.mrf.mxu1 }
 0xa5d   :  { %v7314_v51 = vadd.f32 %v7300_v36, %v7228_v29  ;;  %v7140_v14 = vadd.f32 %v7139_v4, %v15449_v58 }
 0xa5f   :  { %v7400_v45 = vadd.f32 %v7386_v18, %v7314_v51  ;;  %v7229_v29 = vadd.f32 %v7217_v19, %v7140_v14 }
 0xa63   :  { %v15459_v7 = vpop.f32.mrf.mxu2  ;;  %v7716_v43 = vpop.f32.mrf.mxu0 }
 0xa64   :  { %v7303_v31 = vpop.f32.mrf.mxu3  ;;  %v7142_v50 = vpop.f32.mrf.mxu1 }
 0xa6b   :  { %v7544_v3 = vpop.f32.mrf.mxu2  ;;  %v7719_v6 = vpop.f32.mrf.mxu0 }
 0xa6c   :  { %v15461_v15 = vpop.f32.mrf.mxu3  ;;  %v7457_v2 = vpop.f32.mrf.mxu1 }
 0xa6d   :  { %v7481_v46 = vadd.f32 %v7457_v2, %v7395_v55 }
 0xa6f   :  { %v7568_v54 = vadd.f32 %v7544_v3, %v7481_v46 }
 0xa73   :  { %v7547_v44 = vpop.f32.mrf.mxu2  ;;  %v7722_v12 = vpop.f32.mrf.mxu0 }
 0xa74   :  { %v7630_v26 = vpop.f32.mrf.mxu3  ;;  %v7460_v5 = vpop.f32.mrf.mxu1 }
 0xa75   :  { %v7482_v17 = vadd.f32 %v7460_v5, %v7396_v1  ;;  %v7654_v61 = vadd.f32 %v7630_v26, %v7568_v54 }
 0xa77   :  { %v7569_v37 = vadd.f32 %v7547_v44, %v7482_v17  ;;  %v15463_v11 = vadd.f32 %v7716_v43, %v7654_v61  ;;  %v7315_v43 = vadd.f32 %v7303_v31, %v7229_v29 }
 0xa79   :  { %v7751_v55 = vsel %vm7750_vm6, %v15463_v11, 0.0  ;;  %v7401_v58 = vadd.f32 %v15455_v39, %v7315_v43 }
 0xa7b   :  { %v7550_v38 = vpop.f32.mrf.mxu2  ;;  %v7725_v1 = vpop.f32.mrf.mxu0 }
 0xa7c   :  { %v7633_v49 = vpop.f32.mrf.mxu3  ;;  %v7463_v30 = vpop.f32.mrf.mxu1 }
 0xa7d   :  { %v7655_v0 = vadd.f32 %v7633_v49, %v7569_v37  ;;  %v7483_v63 = vadd.f32 %v7463_v30, %v7397_v27 }
 0xa7f   :  { %v15465_v23 = vadd.f32 %v7719_v6, %v7655_v0  ;;  %v7570_v59 = vadd.f32 %v7550_v38, %v7483_v63 }
 0xa81   :  { %v7752_v57 = vsel %vm7750_vm6, %v15465_v23, 0.0 }
 0xa82   :  { %v7753_v21 = vadd.f32 %v7752_v57, %v7751_v55 }
 0xa83   :  { %v7553_v9 = vpop.f32.mrf.mxu2  ;;  %v7728_v10 = vpop.f32.mrf.mxu0 }
 0xa84   :  { %v7636_v56 = vpop.f32.mrf.mxu3  ;;  %v7466_v47 = vpop.f32.mrf.mxu1 }
 0xa85   :  { %v7656_v60 = vadd.f32 %v7636_v56, %v7570_v59  ;;  %v7484_v48 = vadd.f32 %v7466_v47, %v7398_v33 }
 0xa87   :  { %v15471_v41 = vadd.f32 %v7722_v12, %v7656_v60  ;;  %v7571_v62 = vadd.f32 %v7553_v9, %v7484_v48 }
 0xa89   :  { %v7754_v8 = vsel %vm7750_vm6, %v15471_v41, 0.0 }
 0xa8a   :  { %v7755_v25 = vadd.f32 %v7754_v8, %v7753_v21 }
 0xa8b   :  { %v7556_v34 = vpop.f32.mrf.mxu2  ;;  %v7731_v3 = vpop.f32.mrf.mxu0 }
 0xa8c   :  { %v7639_v27 = vpop.f32.mrf.mxu3  ;;  %v7469_v28 = vpop.f32.mrf.mxu1 }
 0xa8d   :  { %v7657_v18 = vadd.f32 %v7639_v27, %v7571_v62  ;;  %v7485_v20 = vadd.f32 %v7469_v28, %v7399_v52  ;;  %v7143_v52 = vadd.f32 %v7142_v50, %v15453_v42  ;;  %v8540_v50 = vmov 64.0  }
 0xa8e   :  { %8532 = vrcp.f32 %v8540_v50 }
 0xa8f   :  { %v15475_v53 = vadd.f32 %v7725_v1, %v7657_v18  ;;  %v7572_v33 = vadd.f32 %v7556_v34, %v7485_v20  ;;  %v7230_v4 = vadd.f32 %v15459_v7, %v7143_v52 }
 0xa91   :  { %v7756_v40 = vsel %vm7750_vm6, %v15475_v53, 0.0 }
 0xa92   :  { %v7757_v24 = vadd.f32 %v7756_v40, %v7755_v25 }
 0xa93   :  { %v7559_v16 = vpop.f32.mrf.mxu2  ;;  %v7734_v12 = vpop.f32.mrf.mxu0 }
 0xa94   :  { %v7642_v32 = vpop.f32.mrf.mxu3  ;;  %v7472_v13 = vpop.f32.mrf.mxu1 }
 0xa95   :  { %v7658_v22 = vadd.f32 %v7642_v32, %v7572_v33  ;;  %v7486_v51 = vadd.f32 %v7472_v13, %v7400_v45  ;;  %v7316_v45 = vadd.f32 %v15461_v15, %v7230_v4  ;;  %v8533_v55 = vpop.eup %8532 }
 0xa96   :  { %v7773_v56 = vmul.f32 64.0, %v8533_v55  ;;  %vm7777_vm7 = vweird.f32 %v8533_v55 }
 0xa97   :  { %v7744_v36 = vadd.f32 %v7728_v10, %v7658_v22  ;;  %v7573_v46 = vadd.f32 %v7559_v16, %v7486_v51  ;;  %v7402_v30 = vadd.f32 %v15457_v35, %v7316_v45 }
 0xa98   :  { %v7774_v60 = vsub.f32 1.0, %v7773_v56 }
 0xa99   :  { %v7758_v2 = vsel %vm7750_vm6, %v7744_v36, 0.0 }
 0xa9a   :  { %v7759_v6 = vadd.f32 %v7758_v2, %v7757_v24  ;;  %v7775_v25 = vmul.f32 %v8533_v55, %v7774_v60 }
 0xa9b   :  { %v7562_v19 = vpop.f32.mrf.mxu2  ;;  %v7737_v9 = vpop.f32.mrf.mxu0 }
 0xa9c   :  { %v7645_v44 = vpop.f32.mrf.mxu3  ;;  %v7475_v26 = vpop.f32.mrf.mxu1  ;;  %v7776_v62 = vadd.f32 %v8533_v55, %v7775_v25 }
 0xa9d   :  { %v7659_v5 = vadd.f32 %v7645_v44, %v7573_v46  ;;  %v7487_v17 = vadd.f32 %v7475_v26, %v7401_v58 }
 0xa9e   :  { %v7778_v18 = vsel %vm7777_vm7, %v8533_v55, %v7776_v62 }
 0xa9f   :  { %v7745_v54 = vadd.f32 %v7731_v3, %v7659_v5  ;;  %v7574_v38 = vadd.f32 %v7562_v19, %v7487_v17 }
 0xaa1   :  { %v7760_v31 = vsel %vm7750_vm6, %v7745_v54, 0.0 }
 0xaa2   :  { %v7761_v61 = vadd.f32 %v7760_v31, %v7759_v6 }
 0xaa3   :  { %v7565_v7 = vpop.f32.mrf.mxu2 }
 0xaa4   :  { %v7648_v37 = vpop.f32.mrf.mxu3  ;;  %v7478_v42 = vpop.f32.mrf.mxu1 }
 0xaa5   :  { %v7660_v49 = vadd.f32 %v7648_v37, %v7574_v38  ;;  %v7488_v0 = vadd.f32 %v7478_v42, %v7402_v30 }
 0xaa7   :  { %v7746_v39 = vadd.f32 %v7734_v12, %v7660_v49  ;;  %v7575_v15 = vadd.f32 %v7565_v7, %v7488_v0 }
 0xaa9   :  { %v7762_v63 = vsel %vm7750_vm6, %v7746_v39, 0.0 }
 0xaaa   :  { %v7763_v57 = vadd.f32 %v7762_v63, %v7761_v61 }
 0xaac   :  { %v7651_v21 = vpop.f32.mrf.mxu3 }
 0xaad   :  { %v7661_v59 = vadd.f32 %v7651_v21, %v7575_v15  ;;  %v8526_v15 = vld [vmem:[%s15541_s6] ss:$0 sm:$0xff] }
 0xaaf   :  { %v7747_v47 = vadd.f32 %v7737_v9, %v7661_v59 }
 0xab1   :  { %v7764_v1 = vsel %vm7750_vm6, %v7747_v47, 0.0 }
 0xab2   :  { %v7765_v48 = vadd.f32 %v7764_v1, %v7763_v57  ;;  %v8527_v1 = vld [vmem:[%s15542_s7] ss:$0 sm:$0xff] }
 0xab4   :  { %v7766_v8 = vrot.slane %v7765_v48, 4 }
 0xab6   :  { %v7767_v35 = vadd.f32 %v7766_v8, %v7765_v48 }
 0xab8   :  { %v7768_v34 = vrot.slane %v7767_v35, 2 }
 0xaba   :  { %v7769_v27 = vadd.f32 %v7768_v34, %v7767_v35 }
 0xabc   :  { %v7770_v28 = vrot.slane %v7769_v27, 1 }
 0xabe   :  { %v7771_v10 = vadd.f32 %v7770_v28, %v7769_v27 }
 0xac0   :  { %v7779_v20 = vmul.f32 %v7778_v18, %v7771_v10 }
 0xac2   :  { %v7780_v40 = vsub.f32 %v15463_v11, %v7779_v20  ;;  %v7781_v24 = vsub.f32 %v15465_v23, %v7779_v20  ;;  %v7782_v14 = vsub.f32 %v15471_v41, %v7779_v20  ;;  %v7783_v33 = vsub.f32 %v15475_v53, %v7779_v20 }
 0xac3   :  { %v7784_v32 = vsub.f32 %v7744_v36, %v7779_v20  ;;  %v7785_v13 = vsub.f32 %v7745_v54, %v7779_v20  ;;  %v7786_v22 = vsub.f32 %v7746_v39, %v7779_v20  ;;  %v7787_v16 = vsub.f32 %v7747_v47, %v7779_v20 }
 0xac4   :  { %v7788_v29 = vmul.f32 %v7780_v40, %v7780_v40  ;;  %v7789_v51 = vmul.f32 %v7781_v24, %v7781_v24  ;;  %v7790_v43 = vmul.f32 %v7782_v14, %v7782_v14  ;;  %v7791_v3 = vmul.f32 %v7783_v33, %v7783_v33 }
 0xac5   :  { %v7792_v11 = vmul.f32 %v7784_v32, %v7784_v32  ;;  %v7793_v41 = vmul.f32 %v7785_v13, %v7785_v13  ;;  %v7794_v44 = vmul.f32 %v7786_v22, %v7786_v22  ;;  %v7795_v58 = vmul.f32 %v7787_v16, %v7787_v16 }
 0xac6   :  { %v7796_v2 = vsel %vm7750_vm6, %v7788_v29, 0.0  ;;  %v7797_v6 = vsel %vm7750_vm6, %v7789_v51, 0.0  ;;  %v7799_v23 = vsel %vm7750_vm6, %v7790_v43, 0.0  ;;  %v7801_v53 = vsel %vm7750_vm6, %v7791_v3, 0.0 }
 0xac7   :  { %v7798_v52 = vadd.f32 %v7797_v6, %v7796_v2  ;;  %v7803_v26 = vsel %vm7750_vm6, %v7792_v11, 0.0  ;;  %v7805_v4 = vsel %vm7750_vm6, %v7793_v41, 0.0  ;;  %v7807_v17 = vsel %vm7750_vm6, %v7794_v44, 0.0 }
 0xac8   :  { %v7809_v45 = vsel %vm7750_vm6, %v7795_v58, 0.0 }
 0xac9   :  { %v7800_v46 = vadd.f32 %v7799_v23, %v7798_v52 }
 0xacb   :  { %v7802_v36 = vadd.f32 %v7801_v53, %v7800_v46 }
 0xacd   :  { %v7804_v5 = vadd.f32 %v7803_v26, %v7802_v36 }
 0xacf   :  { %v7806_v54 = vadd.f32 %v7805_v4, %v7804_v5 }
 0xad1   :  { %v7808_v19 = vadd.f32 %v7807_v17, %v7806_v54 }
 0xad3   :  { %v7810_v31 = vadd.f32 %v7809_v45, %v7808_v19 }
 0xad5   :  { %v7811_v61 = vrot.slane %v7810_v31, 4 }
 0xad7   :  { %v7812_v12 = vadd.f32 %v7811_v61, %v7810_v31 }
 0xad9   :  { %v7813_v38 = vrot.slane %v7812_v12, 2 }
 0xadb   :  { %v7814_v37 = vadd.f32 %v7813_v38, %v7812_v12 }
 0xadd   :  { %v7815_v42 = vrot.slane %v7814_v37, 1 }
 0xadf   :  { %v7816_v50 = vadd.f32 %v7815_v42, %v7814_v37 }
 0xae1   :  { %v7817_v49 = vmul.f32 %v7816_v50, %v7778_v18 }
 0xae3   :  { %v7818_v30 = vadd.f32 1e-05, %v7817_v49 }
 0xae5   :  { %8534 = vrsqrt.f32 %v7818_v30  ;;  %vm7825_vm9 = vweird.f32 %v7818_v30 }
 0xaeb   :  { %v8535_v39 = vpop.eup %8534 }
 0xaec   :  { %v7820_v0 = vmul.f32 %v8535_v39, %v7818_v30  ;;  %vm7826_vm8 = vweird.f32 %v8535_v39 }
 0xaed   :  { %vm7827_vm10 = vmor %vm7825_vm9, %vm7826_vm8 }
 0xaee   :  { %v7821_v7 = vmul.f32 %v8535_v39, %v7820_v0 }
 0xaf0   :  { %v7822_v63 = vmul.f32 0.5, %v7821_v7 }
 0xaf2   :  { %v7823_v55 = vsub.f32 1.5, %v7822_v63 }
 0xaf4   :  { %v7824_v57 = vmul.f32 %v8535_v39, %v7823_v55 }
 0xaf6   :  { %v7828_v21 = vsel %vm7827_vm10, %v8535_v39, %v7824_v57 }
 0xaf7   :  { %v7829_v9 = vmul.f32 %v7828_v21, %v7780_v40  ;;  %v7830_v59 = vmul.f32 %v7828_v21, %v7781_v24  ;;  %v7831_v56 = vmul.f32 %v7828_v21, %v7782_v14  ;;  %v7832_v47 = vmul.f32 %v7828_v21, %v7783_v33 }
 0xaf8   :  { %v7833_v60 = vmul.f32 %v7828_v21, %v7784_v32  ;;  %v7834_v48 = vmul.f32 %v7828_v21, %v7785_v13  ;;  %v7835_v8 = vmul.f32 %v7828_v21, %v7786_v22  ;;  %v7836_v25 = vmul.f32 %v7828_v21, %v7787_v16 }
 0xaf9   :  { %v7840_v35 = vmul.f32 %v8526_v15, %v7829_v9  ;;  %v7841_v34 = vmul.f32 %v8526_v15, %v7830_v59  ;;  %v7842_v62 = vmul.f32 %v8526_v15, %v7831_v56  ;;  %v7843_v27 = vmul.f32 %v8526_v15, %v7832_v47 }
 0xafa   :  { %v7844_v28 = vmul.f32 %v8526_v15, %v7833_v60  ;;  %v7845_v18 = vmul.f32 %v8526_v15, %v7834_v48  ;;  %v7846_v10 = vmul.f32 %v8526_v15, %v7835_v8  ;;  %v7847_v20 = vmul.f32 %v8526_v15, %v7836_v25 }
 0xafb   :  { %v7851_v40 = vadd.f32 %v8527_v1, %v7840_v35  ;;  %v7852_v24 = vadd.f32 %v8527_v1, %v7841_v34  ;;  %v7853_v14 = vadd.f32 %v8527_v1, %v7842_v62  ;;  %v7854_v33 = vadd.f32 %v8527_v1, %v7843_v27 }
 0xafc   :  { %v7855_v29 = vadd.f32 %v8527_v1, %v7844_v28  ;;  %v7856_v51 = vadd.f32 %v8527_v1, %v7845_v18  ;;  %v7857_v43 = vadd.f32 %v8527_v1, %v7846_v10  ;;  %v7858_v22 = vadd.f32 %v8527_v1, %v7847_v20 }
 0xafd   :  { %v7859_v3 = vmax.f32 %v7851_v40, 0.0  ;;  %v7860_v32 = vmax.f32 %v7852_v24, 0.0  ;;  %v7861_v13 = vmax.f32 %v7853_v14, 0.0  ;;  %v7862_v16 = vmax.f32 %v7854_v33, 0.0 }
 0xafe   :  { %v7863_v2 = vmax.f32 %v7855_v29, 0.0  ;;  %v7864_v6 = vmax.f32 %v7856_v51, 0.0  ;;  %v7865_v52 = vmax.f32 %v7857_v43, 0.0  ;;  %v7866_v11 = vmax.f32 %v7858_v22, 0.0 }
 0xaff   :  { %7867 = vst.msk [vmem:[#allocation5] sm:$0xff] %vm7750_vm6, %v7859_v3 }
 0xb00   :  { %7868 = vst.msk [vmem:[#allocation5 + $0x8] sm:$0xff] %vm7750_vm6, %v7860_v32 }
 0xb01   :  { %7869 = vst.msk [vmem:[#allocation5 + $0x10] sm:$0xff] %vm7750_vm6, %v7861_v13 }
 0xb02   :  { %7870 = vst.msk [vmem:[#allocation5 + $0x18] sm:$0xff] %vm7750_vm6, %v7862_v16 }
 0xb03   :  { %7871 = vst.msk [vmem:[#allocation5 + $0x20] sm:$0xff] %vm7750_vm6, %v7863_v2 }
 0xb04   :  { %7872 = vst.msk [vmem:[#allocation5 + $0x28] sm:$0xff] %vm7750_vm6, %v7864_v6 }
 0xb05   :  { %7873 = vst.msk [vmem:[#allocation5 + $0x30] sm:$0xff] %vm7750_vm6, %v7865_v52 }
 0xb06   :  { %7874 = vst.msk [vmem:[#allocation5 + $0x38] sm:$0xff] %vm7750_vm6, %v7866_v11  ;;  %v7875_v23 = vld [vmem:[#allocation5] sm:$0xff] }
 0xb07   :  { %v7880_v46 = vld [vmem:[#allocation5 + $0x8] sm:$0xff] }
 0xb08   :  { %v7876_v41 = vld [vmem:[#allocation5 + $0x10] sm:$0xff]  ;;  %v7884_v53 = vmax.f32 %v7875_v23, %v7880_v46 }
 0xb09   :  { %v7881_v36 = vld [vmem:[#allocation5 + $0x18] sm:$0xff] }
 0xb0a   :  { %v7877_v44 = vld [vmem:[#allocation5 + $0x20] sm:$0xff]  ;;  %v7885_v26 = vmax.f32 %v7876_v41, %v7881_v36  ;;  %7888 = vst.msk [vmem:[#allocation6] sm:$0xff] %vm7750_vm6, %v7884_v53 }
 0xb0b   :  { %v7882_v5 = vld [vmem:[#allocation5 + $0x28] sm:$0xff] }
 0xb0c   :  { %v7878_v58 = vld [vmem:[#allocation5 + $0x30] sm:$0xff]  ;;  %v7886_v4 = vmax.f32 %v7877_v44, %v7882_v5  ;;  %7889 = vst.msk [vmem:[#allocation6 + $0x8] sm:$0xff] %vm7750_vm6, %v7885_v26 }
 0xb0d   :  { %v7883_v54 = vld [vmem:[#allocation5 + $0x38] sm:$0xff] }
 0xb0e   :  { %v7887_v17 = vmax.f32 %v7878_v58, %v7883_v54  ;;  %7890 = vst.msk [vmem:[#allocation6 + $0x10] sm:$0xff] %vm7750_vm6, %v7886_v4 }
 0xb10   :  { %7891 = vst.msk [vmem:[#allocation6 + $0x18] sm:$0xff] %vm7750_vm6, %v7887_v17 }
 0xb11   :  { %v7892_v19 = vld [vmem:[#allocation6] ss:$2 sm:$0xf]  ;;  %v7900_v45 = vld [vmem:[#allocation6 + $0x1] ss:$2 sm:$0xf] }
 0xb12   :  { %v7907_v31 = vmax.f32 %v7892_v19, %v7900_v45 }
 0xb13   :  { %v7894_v61 = vld [vmem:[#allocation6 + $0x8] ss:$2 sm:$0xf]  ;;  %v7902_v12 = vld [vmem:[#allocation6 + $0x9] ss:$2 sm:$0xf] }
 0xb14   :  { %v7908_v38 = vmax.f32 %v7894_v61, %v7902_v12  ;;  %7912 = vst.msk [vmem:[%s15543_s8] sm:$0xf] %vm7911_vm11, %v7907_v31 }
 0xb15   :  { %v7896_v37 = vld [vmem:[#allocation6 + $0x10] ss:$2 sm:$0xf]  ;;  %v7904_v42 = vld [vmem:[#allocation6 + $0x11] ss:$2 sm:$0xf] }
 0xb16   :  { %v7909_v50 = vmax.f32 %v7896_v37, %v7904_v42  ;;  %7913 = vst.msk [vmem:[%s15543_s8 + $0x4] sm:$0xf] %vm7911_vm11, %v7908_v38 }
 0xb17   :  { %v7898_v49 = vld [vmem:[#allocation6 + $0x18] ss:$2 sm:$0xf]  ;;  %v7906_v30 = vld [vmem:[#allocation6 + $0x19] ss:$2 sm:$0xf] }
 0xb18   :  { %v7910_v39 = vmax.f32 %v7898_v49, %v7906_v30  ;;  %7914 = vst.msk [vmem:[%s15543_s8 + $0x8] sm:$0xf] %vm7911_vm11, %v7909_v50 }
 0xb1a   :  { %7915 = vst.msk [vmem:[%s15543_s8 + $0xc] sm:$0xf] %vm7911_vm11, %v7910_v39 }

</bundles_post_ra>
